<compile_context>
chip_gen: v5e
topology: v5e:2x2
jax: 0.10.0
libtpu: 0.0.40
codegen_flags: <defaults>
</compile_context>

<pallas_src>
import functools

import numpy as np
import jax
import jax.numpy as jnp
from jax.experimental import pallas as pl
from jax.experimental.pallas import tpu as pltpu


# Static architecture config (kernel, stride, pad, has_bias) for ConvnetEncoder with
# input_size=64 (the only size the PyTorch module supports).
CONV_CFG = (
    (7, 2, 1, False),
    (4, 2, 1, True),
    (4, 2, 1, True),
    (4, 1, 0, True),
)

_VMEM_LIMIT = 32 * 1024 * 1024   # plenty of headroom; safe on v5e/v6e (128 MiB) and v7x (64 MiB)


# -----------------------------------------------------------------------------
# Static layer geometry.  Activations between layers are stored row-major as
# (batch, padded_row, stored_W * C); stored_W already includes the NEXT layer's
# width zero-padding ("baked") so the kernel never pads.
# -----------------------------------------------------------------------------
def layer_geoms(input_size=64, nc=3, nf=8):
    chans = (nc, nf, nf * 2, nf * 4, nf * 8)
    geoms = []
    h = input_size
    stored_w = input_size
    virt_pad = CONV_CFG[0][2]     # layer-1 pad is "virtual" (model input is stored unpadded)
    for li, (k, s, p, has_bias) in enumerate(CONV_CFG):
        oh = (h + 2 * p - k) // s + 1
        next_pad = CONV_CFG[li + 1][2] if li + 1 < len(CONV_CFG) else 0
        geoms.append(dict(K=k, s=s, p=p, has_bias=has_bias,
                          cin=chans[li], cout=chans[li + 1],
                          H=h, stored_W=stored_w, virt_pad=virt_pad,
                          OH=oh, OW=oh, next_pad=next_pad,
                          out_W=oh + 2 * next_pad))
        h = oh
        stored_w = oh + 2 * next_pad
        virt_pad = 0
    return tuple(geoms)


def _parity_counts(prev_oh, p):
    hpad = prev_oh + 2 * p
    return (hpad + 1) // 2, hpad // 2


# -----------------------------------------------------------------------------
# One-time host-side weight repacking (outside the jitted step function).
# -----------------------------------------------------------------------------
def _toeplitz(w_oihw, g):
    """A[kh][(w_in, cin), (w_out, cout)]: folds the (kw, cin) contraction and the
    stride-2 column subsampling of one conv layer into a dense matrix; also bakes
    the NEXT layer's width zero-pad into the output columns."""
    cout, cin, k, _ = w_oihw.shape
    a = np.zeros((k, g["stored_W"], cin, g["out_W"], cout), np.float32)
    for kh in range(k):
        for ow in range(g["OW"]):
            for kw in range(k):
                w_st = g["s"] * ow + kw - g["virt_pad"]
                if 0 <= w_st < g["stored_W"]:
                    a[kh, w_st, :, ow + g["next_pad"], :] = w_oihw[:, :, kh, kw].T
    return a.reshape(k, g["stored_W"] * cin, g["out_W"] * cout)


def _baked_bias(b, g):
    cout = b.shape[0]
    bb = np.zeros((g["out_W"], cout), np.float32)
    bb[g["next_pad"]:g["next_pad"] + g["OW"], :] = b[None, :]
    return bb.reshape(1, -1)


def _parity_select(prev_oh, p, batch):
    """0/1 matrices selecting even / odd padded rows of the next layer's input from
    the producer layer's output rows (pad rows -> all-zero rows).  Block-diag over B."""
    nre, nro = _parity_counts(prev_oh, p)
    pe = np.zeros((nre, prev_oh), np.float32)
    po = np.zeros((nro, prev_oh), np.float32)
    for gi in range(nre):
        src = 2 * gi - p
        if 0 <= src < prev_oh:
            pe[gi, src] = 1.0
    for gi in range(nro):
        src = 2 * gi + 1 - p
        if 0 <= src < prev_oh:
            po[gi, src] = 1.0
    eye = np.eye(batch, dtype=np.float32)
    return np.kron(eye, pe), np.kron(eye, po)


def pack_params(params, batch, geoms):
    """Repack PyTorch-layout parameters into kernel-ready matrices: Toeplitz conv
    matrices, parity/row-selection matrices, flatten-permuted & BN-folded head
    weights.  Runs once, outside the per-step function (review: hoist weight glue)."""
    g1, g2, g3, g4 = geoms
    cw = [np.asarray(w, np.float32) for w in params["conv_ws"]]
    cb = [np.asarray(b, np.float32) for b in params["conv_bs"]]

    packed = dict(
        a1=jnp.asarray(_toeplitz(cw[0], g1), jnp.bfloat16),
        a2=jnp.asarray(_toeplitz(cw[1], g2), jnp.bfloat16),
        b2=jnp.asarray(_baked_bias(cb[1], g2), jnp.float32),
        a3=jnp.asarray(_toeplitz(cw[2], g3), jnp.bfloat16),
        b3=jnp.asarray(_baked_bias(cb[2], g3), jnp.float32),
        a4=jnp.asarray(_toeplitz(cw[3], g4), jnp.bfloat16),
        b4=jnp.asarray(_baked_bias(cb[3], g4), jnp.float32),
    )

    p2e, p2o = _parity_select(g1["OH"], g2["p"], batch)
    p3e, p3o = _parity_select(g2["OH"], g3["p"], batch)
    packed.update(p2e=jnp.asarray(p2e, jnp.bfloat16), p2o=jnp.asarray(p2o, jnp.bfloat16),
                  p3e=jnp.asarray(p3e, jnp.bfloat16), p3o=jnp.asarray(p3o, jnp.bfloat16))

    # Row selectors used by the head: sel4[oh] @ act4 picks rows (b, oh) for all b.
    oh4, ow4, c4 = g4["OH"], g4["OW"], g4["cout"]
    sel4 = np.zeros((oh4, batch, batch * oh4), np.float32)
    for oh in range(oh4):
        for b in range(batch):
            sel4[oh, b, b * oh4 + oh] = 1.0
    packed["sel4"] = jnp.asarray(sel4, jnp.bfloat16)

    # Flattened-feature permutation: PyTorch flatten order is (cout, oh, ow); the
    # kernel's conv features come out as (oh, ow, cout).  Permute wc1 rows, wl2
    # columns and the outer-BN scale/shift once so no in-kernel transpose is needed.
    oh_i, ow_i, co_i = np.meshgrid(np.arange(oh4), np.arange(ow4), np.arange(c4),
                                   indexing="ij")
    perm = (co_i * (oh4 * ow4) + oh_i * ow4 + ow_i).reshape(-1)

    wl2 = np.asarray(params["wl2"], np.float32)
    wc1 = np.asarray(params["wc1"], np.float32)
    s1, t1 = params["bn_l1"]
    s2, t2 = params["bn_loc_out"]
    s3, t3 = params["bn_c1"]
    s2 = np.asarray(s2, np.float32)
    t2 = np.asarray(t2, np.float32)
    packed.update(
        wl1=jnp.asarray(params["wl1"], jnp.bfloat16),
        s1=jnp.asarray(s1, jnp.float32), t1=jnp.asarray(t1, jnp.float32),
        wl2p=jnp.asarray(wl2[:, perm], jnp.bfloat16),
        s2p=jnp.asarray(s2[:, perm], jnp.float32),
        t2p=jnp.asarray(t2[:, perm], jnp.float32),
        wc1p=jnp.asarray(wc1[perm, :], jnp.bfloat16),
        s3=jnp.asarray(s3, jnp.float32), t3=jnp.asarray(t3, jnp.float32),
        wc2=jnp.asarray(params["wc2"], jnp.bfloat16),
    )
    return packed


# -----------------------------------------------------------------------------
# The fused kernel: 4 convs + loc-conditioned MLP head + masked CE, all in VMEM.
# -----------------------------------------------------------------------------
def _fused_kernel(e1_ref, o1_ref,
                  a1_ref, a2_ref, b2_ref, a3_ref, b3_ref, a4_ref, b4_ref,
                  p2e_ref, p2o_ref, p3e_ref, p3o_ref, sel4_ref,
                  locs_ref, onehot_ref, valid_ref,
                  wl1_ref, s1_ref, t1_ref, wl2_ref, s2_ref, t2_ref,
                  wc1_ref, s3_ref, t3_ref, wc2_ref,
                  loss_ref,
                  e2_s, o2_s, e3_s, o3_s, r4_s,
                  *, B, geoms):
    f32, bf16 = jnp.float32, jnp.bfloat16
    g1, g2, g3, g4 = geoms

    def conv(e_ref, o_ref, a_ref, bias, oh, k, stride):
        # K accumulation GEMMs, one per kernel row kh.  The (kw, cin) contraction and
        # stride-2 column subsampling live in the precomputed Toeplitz matrix
        # a_ref[kh]; stride-2 row subsampling is a contiguous slice of the even/odd
        # row buffers.  Accumulator is (B*oh, out_W*cout) f32 - tiny, never spilled
        # per tap like the old (M, Cout) lane-sparse accumulator.
        acc = None
        for kh in range(k):
            src = e_ref if (stride == 1 or kh % 2 == 0) else o_ref
            j = kh // stride
            lhs = src[:, j:j + oh, :].reshape(B * oh, src.shape[-1])
            part = jnp.dot(lhs, a_ref[kh], preferred_element_type=f32)
            acc = part if acc is None else acc + part
        if bias is not None:
            acc = acc + bias
        return jnp.maximum(acc, 0.0)

    def repack(act_bf16, pe_ref, po_ref, e_dst, o_dst):
        # Row-parity split for the next stride-2 layer via 0/1 selection GEMMs
        # (also inserts the next layer's top/bottom zero-pad rows: those P rows are 0).
        e = jnp.dot(pe_ref[...], act_bf16, preferred_element_type=f32)
        o = jnp.dot(po_ref[...], act_bf16, preferred_element_type=f32)
        e_dst[...] = e.astype(e_dst.dtype).reshape(e_dst.shape)
        o_dst[...] = o.astype(o_dst.dtype).reshape(o_dst.shape)

    # ---- conv encoder (all activations stay in VMEM) ----
    act1 = conv(e1_ref, o1_ref, a1_ref, None, g1["OH"], g1["K"], g1["s"])     # (B*30, 256)
    repack(act1.astype(bf16), p2e_ref, p2o_ref, e2_s, o2_s)

    act2 = conv(e2_s, o2_s, a2_ref, b2_ref[...], g2["OH"], g2["K"], g2["s"])  # (B*15, 272)
    repack(act2.astype(bf16), p3e_ref, p3o_ref, e3_s, o3_s)

    act3 = conv(e3_s, o3_s, a3_ref, b3_ref[...], g3["OH"], g3["K"], g3["s"])  # (B*7, 224)
    r4_s[...] = act3.astype(bf16).reshape(r4_s.shape)

    act4 = conv(r4_s, None, a4_ref, b4_ref[...], g4["OH"], g4["K"], g4["s"])  # (B*4, 256)
    a4b = act4.astype(bf16)

    # ---- loc-conditioning path (eval-mode BN folded to scale/shift; dropout = id) ----
    h1 = jnp.dot(locs_ref[...].astype(bf16), wl1_ref[...], preferred_element_type=f32)
    h1 = jnp.maximum(h1 * s1_ref[...] + t1_ref[...], 0.0)
    lf = jnp.dot(h1.astype(bf16), wl2_ref[...], preferred_element_type=f32)
    g_loc = jnp.maximum(lf * s2_ref[...] + t2_ref[...], 0.0)                  # (B, n_input)

    # ---- classifier: (conv_features + loc_features) @ wc1 without materializing the
    # flatten: wc1 rows are pre-permuted to (oh, ow, cout) order, so the loc part is
    # one 1024-deep GEMM and the conv part is OH aligned 256-deep GEMMs (batched
    # over B, no one-row micro-GEMMs). ----
    pre = jnp.dot(g_loc.astype(bf16), wc1_ref[...], preferred_element_type=f32)
    blk = g4["OW"] * g4["cout"]
    for oh in range(g4["OH"]):
        rows = jnp.dot(sel4_ref[oh], a4b, preferred_element_type=f32).astype(bf16)  # (B, blk)
        pre = pre + jnp.dot(rows, wc1_ref[oh * blk:(oh + 1) * blk, :],
                            preferred_element_type=f32)
    h2 = jnp.maximum(pre * s3_ref[...] + t3_ref[...], 0.0)
    lgt = jnp.dot(h2.astype(bf16), wc2_ref[...], preferred_element_type=f32)  # (B, n_classes)

    # ---- masked cross-entropy (ignore_index = -1), batched over B ----
    m = jnp.max(lgt, axis=-1, keepdims=True)
    lse = m + jnp.log(jnp.sum(jnp.exp(lgt - m), axis=-1, keepdims=True))
    picked = jnp.sum(lgt * onehot_ref[...], axis=-1, keepdims=True)
    v = valid_ref[...]
    num = jnp.sum((lse - picked) * v, axis=0, keepdims=True)
    den = jnp.sum(v, axis=0, keepdims=True)
    loss_ref[...] = num / den     # mean over non-ignored samples (0/0 -> NaN, like torch)


# -----------------------------------------------------------------------------
# Forward wrapper: one pallas_call.  Per-step XLA glue is only input layout prep.
# -----------------------------------------------------------------------------
def loc_cond_convnet_classifier_forward(packed, x_nchw, locs, labels, *, geoms, n_classes):
    g1, g2, g3, g4 = geoms
    B = x_nchw.shape[0]
    assert g1["s"] == 2 and g1["p"] == 1 and g1["H"] % 2 == 0

    # Input prep: NCHW -> per-row (w, c) layout, split into even/odd padded rows for
    # the stride-2 first layer (top/bottom pad rows are explicit zero rows).
    xr = jnp.transpose(x_nchw, (0, 2, 3, 1)).reshape(
        B, g1["H"], g1["stored_W"] * g1["cin"]).astype(jnp.bfloat16)
    zrow = jnp.zeros((B, 1, xr.shape[-1]), jnp.bfloat16)
    e1 = jnp.concatenate([zrow, xr[:, 1::2, :]], axis=1)    # padded rows 0, 2, 4, ...
    o1 = jnp.concatenate([xr[:, 0::2, :], zrow], axis=1)    # padded rows 1, 3, 5, ...
    onehot = jax.nn.one_hot(labels, n_classes, dtype=jnp.float32)
    valid = (labels != -1).astype(jnp.float32).reshape(B, 1)

    args = [e1, o1,
            packed["a1"], packed["a2"], packed["b2"], packed["a3"], packed["b3"],
            packed["a4"], packed["b4"],
            packed["p2e"], packed["p2o"], packed["p3e"], packed["p3o"], packed["sel4"],
            locs.astype(jnp.float32), onehot, valid,
            packed["wl1"], packed["s1"], packed["t1"],
            packed["wl2p"], packed["s2p"], packed["t2p"],
            packed["wc1p"], packed["s3"], packed["t3"], packed["wc2"]]
    in_specs = [pl.BlockSpec(a.shape, lambda i, n=a.ndim: (0,) * n) for a in args]

    nre2, nro2 = _parity_counts(g1["OH"], g2["p"])
    nre3, nro3 = _parity_counts(g2["OH"], g3["p"])
    rl2 = g2["stored_W"] * g2["cin"]
    rl3 = g3["stored_W"] * g3["cin"]
    rl4 = g4["stored_W"] * g4["cin"]
    scratch_shapes = [
        pltpu.VMEM((B, nre2, rl2), jnp.bfloat16),
        pltpu.VMEM((B, nro2, rl2), jnp.bfloat16),
        pltpu.VMEM((B, nre3, rl3), jnp.bfloat16),
        pltpu.VMEM((B, nro3, rl3), jnp.bfloat16),
        pltpu.VMEM((B, g3["OH"], rl4), jnp.bfloat16),
    ]

    conv_flops = sum(2 * g["K"] * (B * g["OH"]) * g["stored_W"] * g["cin"]
                     * g["out_W"] * g["cout"] for g in geoms)
    n_input = g4["OH"] * g4["OW"] * g4["cout"]
    n_hl = packed["wl1"].shape[1]
    n_hc = packed["wc1p"].shape[1]
    head_flops = 2 * B * (2 * n_hl + n_hl * n_input + 2 * n_input * n_hc + n_hc * n_classes)
    bytes_accessed = sum(int(np.prod(a.shape)) * a.dtype.itemsize for a in args) + 4

    loss = pl.pallas_call(
        functools.partial(_fused_kernel, B=B, geoms=geoms),
        out_shape=jax.ShapeDtypeStruct((1, 1), jnp.float32),
        grid=(1,),
        in_specs=in_specs,
        out_specs=pl.BlockSpec((1, 1), lambda i: (0, 0)),
        scratch_shapes=scratch_shapes,
        compiler_params=pltpu.CompilerParams(
            dimension_semantics=("arbitrary",),
            vmem_limit_bytes=_VMEM_LIMIT),
        cost_estimate=pl.CostEstimate(flops=int(conv_flops + head_flops),
                                      transcendentals=int(B * n_classes),
                                      bytes_accessed=int(bytes_accessed)),
    )(*args)
    return loss[0, 0]


# -----------------------------------------------------------------------------
# Deterministic synthetic parameters (no checkpoint loading).
# -----------------------------------------------------------------------------
def init_params(key, nc=3, nf=8, n_classes=10, n_hidden_class=32, n_hidden_loc=32):
    keys = jax.random.split(key, 32)
    ki = 0

    def ku(shape, fan_in, scale=1.0):
        nonlocal ki
        bound = scale / (float(fan_in) ** 0.5)
        out = jax.random.uniform(keys[ki], shape, jnp.float32, -bound, bound)
        ki += 1
        return out

    chans = (nc, nf, nf * 2, nf * 4, nf * 8)
    conv_ws, conv_bs = [], []
    for li, (k, s, p, has_bias) in enumerate(CONV_CFG):
        cin, cout = chans[li], chans[li + 1]
        # conv weights mildly up-scaled so the CE loss is sensitive to the features
        w = ku((cout, cin, k, k), cin * k * k, scale=1.5)
        b = ku((cout,), cin * k * k) if has_bias else jnp.zeros((cout,), jnp.float32)
        conv_ws.append(w)
        conv_bs.append(b)

    n_out = chans[-1]
    n_locs = (4, 4)                      # 64 -> 30 -> 15 -> 7 -> 4 spatial
    n_input = n_out * n_locs[0] * n_locs[1]

    def bn(n):
        nonlocal ki
        gamma = 0.8 + 0.4 * jax.random.uniform(keys[ki], (n,), jnp.float32); ki += 1
        beta = 0.1 * jax.random.uniform(keys[ki], (n,), jnp.float32, -1.0, 1.0); ki += 1
        mean = jnp.zeros((n,), jnp.float32)
        var = jnp.ones((n,), jnp.float32)
        scale = gamma / jnp.sqrt(var + 1e-5)
        shift = beta - mean * scale
        return scale.reshape(1, -1), shift.reshape(1, -1)

    return dict(
        conv_ws=conv_ws, conv_bs=conv_bs,
        # loc_encoder: Linear(2, Hl, bias=False) -> BN(Hl) -> ReLU -> Linear(Hl, n_input, bias=False)
        wl1=ku((2, n_hidden_loc), 2),
        bn_l1=bn(n_hidden_loc),
        wl2=ku((n_hidden_loc, n_input), n_hidden_loc, scale=2.0),
        bn_loc_out=bn(n_input),
        # classifier mlp: Linear(n_input, Hc, bias=False) -> BN(Hc) -> ReLU -> Linear(Hc, C, bias=False)
        wc1=ku((n_input, n_hidden_class), n_input, scale=4.0),
        bn_c1=bn(n_hidden_class),
        wc2=ku((n_hidden_class, n_classes), n_hidden_class, scale=4.0),
    )


# -----------------------------------------------------------------------------
# Pure-JAX f32 reference (for the tolerance check requested by the review).
# -----------------------------------------------------------------------------
def reference_forward(params, x_nchw, locs, labels, n_classes):
    y = x_nchw.astype(jnp.float32)
    for li, (k, s, p, _) in enumerate(CONV_CFG):
        y = jax.lax.conv_general_dilated(
            y, params["conv_ws"][li], window_strides=(s, s),
            padding=((p, p), (p, p)),
            dimension_numbers=("NCHW", "OIHW", "NCHW"))
        y = y + params["conv_bs"][li].reshape(1, -1, 1, 1)
        y = jnp.maximum(y, 0.0)
    feat = y.reshape(y.shape[0], -1)                       # torch flatten order (C, H, W)
    s1, t1 = params["bn_l1"]
    s2, t2 = params["bn_loc_out"]
    s3, t3 = params["bn_c1"]
    h1 = jnp.maximum((locs @ params["wl1"]) * s1 + t1, 0.0)
    g_loc = jnp.maximum((h1 @ params["wl2"]) * s2 + t2, 0.0)
    f = feat + g_loc
    h2 = jnp.maximum((f @ params["wc1"]) * s3 + t3, 0.0)
    lgt = h2 @ params["wc2"]
    m = jnp.max(lgt, axis=-1, keepdims=True)
    lse = (m + jnp.log(jnp.sum(jnp.exp(lgt - m), axis=-1, keepdims=True)))[:, 0]
    picked = jnp.take_along_axis(lgt, jnp.maximum(labels, 0)[:, None], axis=-1)[:, 0]
    valid = (labels != -1).astype(jnp.float32)
    return jnp.sum((lse - picked) * valid) / jnp.sum(valid)


if __name__ == "__main__":
    key = jax.random.PRNGKey(0)
    k_param, k_x, k_loc, k_lab = jax.random.split(key, 4)

    NC, NF, INPUT_SIZE = 3, 8, 64            # ConvnetEncoder only supports input_size=64
    N_CLASSES, N_HIDDEN_CLASS, N_HIDDEN_LOC = 10, 32, 32
    B = 2

    params = init_params(k_param, nc=NC, nf=NF, n_classes=N_CLASSES,
                         n_hidden_class=N_HIDDEN_CLASS, n_hidden_loc=N_HIDDEN_LOC)
    geoms = layer_geoms(input_size=INPUT_SIZE, nc=NC, nf=NF)
    packed = pack_params(params, B, geoms)   # one-time host-side weight repack

    x = jax.random.normal(k_x, (B, NC, INPUT_SIZE, INPUT_SIZE), jnp.float32)
    locs = jax.random.uniform(k_loc, (B, 2), jnp.float32, -1.0, 1.0)
    labels = jax.random.randint(k_lab, (B,), 0, N_CLASSES)

    fwd = jax.jit(functools.partial(loc_cond_convnet_classifier_forward,
                                    geoms=geoms, n_classes=N_CLASSES))
    loss = fwd(packed, x, locs, labels)
    jax.block_until_ready(loss)

    assert loss.shape == () and loss.dtype == jnp.float32
    assert bool(jnp.isfinite(loss))
    # bf16 GEMM operands with f32 accumulation vs. the f32 reference: small drift only.
    ref = reference_forward(params, x, locs, labels, N_CLASSES)
    assert abs(float(loss) - float(ref)) < 8e-2, (float(loss), float(ref))
    print("KERNEL_OK")
</pallas_src>

<mosaic_0001>
module attributes {stable_mosaic.version = 11 : i64} {
  func.func @_fused_kernel(%arg0: i32, %arg1: memref<2x33x192xbf16, #tpu.memory_space<vmem>>, %arg2: memref<2x33x192xbf16, #tpu.memory_space<vmem>>, %arg3: memref<7x192x256xbf16, #tpu.memory_space<vmem>>, %arg4: memref<4x256x272xbf16, #tpu.memory_space<vmem>>, %arg5: memref<1x272xf32, #tpu.memory_space<vmem>>, %arg6: memref<4x272x224xbf16, #tpu.memory_space<vmem>>, %arg7: memref<1x224xf32, #tpu.memory_space<vmem>>, %arg8: memref<4x224x256xbf16, #tpu.memory_space<vmem>>, %arg9: memref<1x256xf32, #tpu.memory_space<vmem>>, %arg10: memref<32x60xbf16, #tpu.memory_space<vmem>>, %arg11: memref<32x60xbf16, #tpu.memory_space<vmem>>, %arg12: memref<18x30xbf16, #tpu.memory_space<vmem>>, %arg13: memref<16x30xbf16, #tpu.memory_space<vmem>>, %arg14: memref<4x2x8xbf16, #tpu.memory_space<vmem>>, %arg15: memref<2x2xf32, #tpu.memory_space<vmem>>, %arg16: memref<2x10xf32, #tpu.memory_space<vmem>>, %arg17: memref<2x1xf32, #tpu.memory_space<vmem>>, %arg18: memref<2x32xbf16, #tpu.memory_space<vmem>>, %arg19: memref<1x32xf32, #tpu.memory_space<vmem>>, %arg20: memref<1x32xf32, #tpu.memory_space<vmem>>, %arg21: memref<32x1024xbf16, #tpu.memory_space<vmem>>, %arg22: memref<1x1024xf32, #tpu.memory_space<vmem>>, %arg23: memref<1x1024xf32, #tpu.memory_space<vmem>>, %arg24: memref<1024x32xbf16, #tpu.memory_space<vmem>>, %arg25: memref<1x32xf32, #tpu.memory_space<vmem>>, %arg26: memref<1x32xf32, #tpu.memory_space<vmem>>, %arg27: memref<32x10xbf16, #tpu.memory_space<vmem>>, %arg28: memref<1x1xf32, #tpu.memory_space<vmem>>, %arg29: memref<2x16x256xbf16, #tpu.memory_space<vmem>>, %arg30: memref<2x16x256xbf16, #tpu.memory_space<vmem>>, %arg31: memref<2x9x272xbf16, #tpu.memory_space<vmem>>, %arg32: memref<2x8x272xbf16, #tpu.memory_space<vmem>>, %arg33: memref<2x7x224xbf16, #tpu.memory_space<vmem>>) attributes {dimension_semantics = [#tpu.dimension_semantics<arbitrary>], iteration_bounds = array<i64: 1>, scalar_prefetch = 0 : i64, scratch_operands = 5 : i64, tpu.core_type = #tpu.core_type<tc>, window_params = [{pipeline_mode = #tpu.pipeline_mode<synchronous>, transform_indices = @transform_0, window_bounds = array<i64: 2, 33, 192>}, {pipeline_mode = #tpu.pipeline_mode<synchronous>, transform_indices = @transform_1, window_bounds = array<i64: 2, 33, 192>}, {pipeline_mode = #tpu.pipeline_mode<synchronous>, transform_indices = @transform_2, window_bounds = array<i64: 7, 192, 256>}, {pipeline_mode = #tpu.pipeline_mode<synchronous>, transform_indices = @transform_3, window_bounds = array<i64: 4, 256, 272>}, {pipeline_mode = #tpu.pipeline_mode<synchronous>, transform_indices = @transform_4, window_bounds = array<i64: 1, 272>}, {pipeline_mode = #tpu.pipeline_mode<synchronous>, transform_indices = @transform_5, window_bounds = array<i64: 4, 272, 224>}, {pipeline_mode = #tpu.pipeline_mode<synchronous>, transform_indices = @transform_6, window_bounds = array<i64: 1, 224>}, {pipeline_mode = #tpu.pipeline_mode<synchronous>, transform_indices = @transform_7, window_bounds = array<i64: 4, 224, 256>}, {pipeline_mode = #tpu.pipeline_mode<synchronous>, transform_indices = @transform_8, window_bounds = array<i64: 1, 256>}, {pipeline_mode = #tpu.pipeline_mode<synchronous>, transform_indices = @transform_9, window_bounds = array<i64: 32, 60>}, {pipeline_mode = #tpu.pipeline_mode<synchronous>, transform_indices = @transform_10, window_bounds = array<i64: 32, 60>}, {pipeline_mode = #tpu.pipeline_mode<synchronous>, transform_indices = @transform_11, window_bounds = array<i64: 18, 30>}, {pipeline_mode = #tpu.pipeline_mode<synchronous>, transform_indices = @transform_12, window_bounds = array<i64: 16, 30>}, {pipeline_mode = #tpu.pipeline_mode<synchronous>, transform_indices = @transform_13, window_bounds = array<i64: 4, 2, 8>}, {pipeline_mode = #tpu.pipeline_mode<synchronous>, transform_indices = @transform_14, window_bounds = array<i64: 2, 2>}, {pipeline_mode = #tpu.pipeline_mode<synchronous>, transform_indices = @transform_15, window_bounds = array<i64: 2, 10>}, {pipeline_mode = #tpu.pipeline_mode<synchronous>, transform_indices = @transform_16, window_bounds = array<i64: 2, 1>}, {pipeline_mode = #tpu.pipeline_mode<synchronous>, transform_indices = @transform_17, window_bounds = array<i64: 2, 32>}, {pipeline_mode = #tpu.pipeline_mode<synchronous>, transform_indices = @transform_18, window_bounds = array<i64: 1, 32>}, {pipeline_mode = #tpu.pipeline_mode<synchronous>, transform_indices = @transform_19, window_bounds = array<i64: 1, 32>}, {pipeline_mode = #tpu.pipeline_mode<synchronous>, transform_indices = @transform_20, window_bounds = array<i64: 32, 1024>}, {pipeline_mode = #tpu.pipeline_mode<synchronous>, transform_indices = @transform_21, window_bounds = array<i64: 1, 1024>}, {pipeline_mode = #tpu.pipeline_mode<synchronous>, transform_indices = @transform_22, window_bounds = array<i64: 1, 1024>}, {pipeline_mode = #tpu.pipeline_mode<synchronous>, transform_indices = @transform_23, window_bounds = array<i64: 1024, 32>}, {pipeline_mode = #tpu.pipeline_mode<synchronous>, transform_indices = @transform_24, window_bounds = array<i64: 1, 32>}, {pipeline_mode = #tpu.pipeline_mode<synchronous>, transform_indices = @transform_25, window_bounds = array<i64: 1, 32>}, {pipeline_mode = #tpu.pipeline_mode<synchronous>, transform_indices = @transform_26, window_bounds = array<i64: 32, 10>}, {pipeline_mode = #tpu.pipeline_mode<synchronous>, transform_indices = @transform_27, window_bounds = array<i64: 1, 1>}]} {
    %c0 = arith.constant 0 : index
    %c0_0 = arith.constant 0 : index
    %c0_1 = arith.constant 0 : index
    %0 = vector.load %arg1[%c0, %c0_0, %c0_1] : memref<2x33x192xbf16, #tpu.memory_space<vmem>>, vector<2x30x192xbf16>
    %1 = vector.shape_cast %0 : vector<2x30x192xbf16> to vector<60x192xbf16>
    %c0_2 = arith.constant 0 : index
    %c0_3 = arith.constant 0 : index
    %c0_4 = arith.constant 0 : index
    %2 = vector.load %arg3[%c0_2, %c0_3, %c0_4] : memref<7x192x256xbf16, #tpu.memory_space<vmem>>, vector<1x192x256xbf16>
    %3 = vector.shape_cast %2 : vector<1x192x256xbf16> to vector<192x256xbf16>
    %cst = arith.constant dense<0.000000e+00> : vector<60x256xf32>
    %4 = tpu.matmul %1, %3, %cst {dimension_numbers = #tpu.dot_dimension_numbers<[1], [0], [0], [1], [0, 0, 1, 1], [], []>} : vector<60x192xbf16>, vector<192x256xbf16>, vector<60x256xf32> -> vector<60x256xf32>
    %c0_5 = arith.constant 0 : index
    %c0_6 = arith.constant 0 : index
    %c0_7 = arith.constant 0 : index
    %5 = vector.load %arg2[%c0_5, %c0_6, %c0_7] : memref<2x33x192xbf16, #tpu.memory_space<vmem>>, vector<2x30x192xbf16>
    %6 = vector.shape_cast %5 : vector<2x30x192xbf16> to vector<60x192xbf16>
    %c1 = arith.constant 1 : index
    %c0_8 = arith.constant 0 : index
    %c0_9 = arith.constant 0 : index
    %7 = vector.load %arg3[%c1, %c0_8, %c0_9] : memref<7x192x256xbf16, #tpu.memory_space<vmem>>, vector<1x192x256xbf16>
    %8 = vector.shape_cast %7 : vector<1x192x256xbf16> to vector<192x256xbf16>
    %cst_10 = arith.constant dense<0.000000e+00> : vector<60x256xf32>
    %9 = tpu.matmul %6, %8, %cst_10 {dimension_numbers = #tpu.dot_dimension_numbers<[1], [0], [0], [1], [0, 0, 1, 1], [], []>} : vector<60x192xbf16>, vector<192x256xbf16>, vector<60x256xf32> -> vector<60x256xf32>
    %10 = arith.addf %4, %9 : vector<60x256xf32>
    %c0_11 = arith.constant 0 : index
    %c1_12 = arith.constant 1 : index
    %c0_13 = arith.constant 0 : index
    %11 = vector.load %arg1[%c0_11, %c1_12, %c0_13] : memref<2x33x192xbf16, #tpu.memory_space<vmem>>, vector<2x30x192xbf16>
    %12 = vector.shape_cast %11 : vector<2x30x192xbf16> to vector<60x192xbf16>
    %c2 = arith.constant 2 : index
    %c0_14 = arith.constant 0 : index
    %c0_15 = arith.constant 0 : index
    %13 = vector.load %arg3[%c2, %c0_14, %c0_15] : memref<7x192x256xbf16, #tpu.memory_space<vmem>>, vector<1x192x256xbf16>
    %14 = vector.shape_cast %13 : vector<1x192x256xbf16> to vector<192x256xbf16>
    %cst_16 = arith.constant dense<0.000000e+00> : vector<60x256xf32>
    %15 = tpu.matmul %12, %14, %cst_16 {dimension_numbers = #tpu.dot_dimension_numbers<[1], [0], [0], [1], [0, 0, 1, 1], [], []>} : vector<60x192xbf16>, vector<192x256xbf16>, vector<60x256xf32> -> vector<60x256xf32>
    %16 = arith.addf %10, %15 : vector<60x256xf32>
    %c0_17 = arith.constant 0 : index
    %c1_18 = arith.constant 1 : index
    %c0_19 = arith.constant 0 : index
    %17 = vector.load %arg2[%c0_17, %c1_18, %c0_19] : memref<2x33x192xbf16, #tpu.memory_space<vmem>>, vector<2x30x192xbf16>
    %18 = vector.shape_cast %17 : vector<2x30x192xbf16> to vector<60x192xbf16>
    %c3 = arith.constant 3 : index
    %c0_20 = arith.constant 0 : index
    %c0_21 = arith.constant 0 : index
    %19 = vector.load %arg3[%c3, %c0_20, %c0_21] : memref<7x192x256xbf16, #tpu.memory_space<vmem>>, vector<1x192x256xbf16>
    %20 = vector.shape_cast %19 : vector<1x192x256xbf16> to vector<192x256xbf16>
    %cst_22 = arith.constant dense<0.000000e+00> : vector<60x256xf32>
    %21 = tpu.matmul %18, %20, %cst_22 {dimension_numbers = #tpu.dot_dimension_numbers<[1], [0], [0], [1], [0, 0, 1, 1], [], []>} : vector<60x192xbf16>, vector<192x256xbf16>, vector<60x256xf32> -> vector<60x256xf32>
    %22 = arith.addf %16, %21 : vector<60x256xf32>
    %c0_23 = arith.constant 0 : index
    %c2_24 = arith.constant 2 : index
    %c0_25 = arith.constant 0 : index
    %23 = vector.load %arg1[%c0_23, %c2_24, %c0_25] : memref<2x33x192xbf16, #tpu.memory_space<vmem>>, vector<2x30x192xbf16>
    %24 = vector.shape_cast %23 : vector<2x30x192xbf16> to vector<60x192xbf16>
    %c4 = arith.constant 4 : index
    %c0_26 = arith.constant 0 : index
    %c0_27 = arith.constant 0 : index
    %25 = vector.load %arg3[%c4, %c0_26, %c0_27] : memref<7x192x256xbf16, #tpu.memory_space<vmem>>, vector<1x192x256xbf16>
    %26 = vector.shape_cast %25 : vector<1x192x256xbf16> to vector<192x256xbf16>
    %cst_28 = arith.constant dense<0.000000e+00> : vector<60x256xf32>
    %27 = tpu.matmul %24, %26, %cst_28 {dimension_numbers = #tpu.dot_dimension_numbers<[1], [0], [0], [1], [0, 0, 1, 1], [], []>} : vector<60x192xbf16>, vector<192x256xbf16>, vector<60x256xf32> -> vector<60x256xf32>
    %28 = arith.addf %22, %27 : vector<60x256xf32>
    %c0_29 = arith.constant 0 : index
    %c2_30 = arith.constant 2 : index
    %c0_31 = arith.constant 0 : index
    %29 = vector.load %arg2[%c0_29, %c2_30, %c0_31] : memref<2x33x192xbf16, #tpu.memory_space<vmem>>, vector<2x30x192xbf16>
    %30 = vector.shape_cast %29 : vector<2x30x192xbf16> to vector<60x192xbf16>
    %c5 = arith.constant 5 : index
    %c0_32 = arith.constant 0 : index
    %c0_33 = arith.constant 0 : index
    %31 = vector.load %arg3[%c5, %c0_32, %c0_33] : memref<7x192x256xbf16, #tpu.memory_space<vmem>>, vector<1x192x256xbf16>
    %32 = vector.shape_cast %31 : vector<1x192x256xbf16> to vector<192x256xbf16>
    %cst_34 = arith.constant dense<0.000000e+00> : vector<60x256xf32>
    %33 = tpu.matmul %30, %32, %cst_34 {dimension_numbers = #tpu.dot_dimension_numbers<[1], [0], [0], [1], [0, 0, 1, 1], [], []>} : vector<60x192xbf16>, vector<192x256xbf16>, vector<60x256xf32> -> vector<60x256xf32>
    %34 = arith.addf %28, %33 : vector<60x256xf32>
    %c0_35 = arith.constant 0 : index
    %c3_36 = arith.constant 3 : index
    %c0_37 = arith.constant 0 : index
    %35 = vector.load %arg1[%c0_35, %c3_36, %c0_37] : memref<2x33x192xbf16, #tpu.memory_space<vmem>>, vector<2x30x192xbf16>
    %36 = vector.shape_cast %35 : vector<2x30x192xbf16> to vector<60x192xbf16>
    %c6 = arith.constant 6 : index
    %c0_38 = arith.constant 0 : index
    %c0_39 = arith.constant 0 : index
    %37 = vector.load %arg3[%c6, %c0_38, %c0_39] : memref<7x192x256xbf16, #tpu.memory_space<vmem>>, vector<1x192x256xbf16>
    %38 = vector.shape_cast %37 : vector<1x192x256xbf16> to vector<192x256xbf16>
    %cst_40 = arith.constant dense<0.000000e+00> : vector<60x256xf32>
    %39 = tpu.matmul %36, %38, %cst_40 {dimension_numbers = #tpu.dot_dimension_numbers<[1], [0], [0], [1], [0, 0, 1, 1], [], []>} : vector<60x192xbf16>, vector<192x256xbf16>, vector<60x256xf32> -> vector<60x256xf32>
    %40 = arith.addf %34, %39 : vector<60x256xf32>
    %cst_41 = arith.constant 0.000000e+00 : f32
    %41 = vector.broadcast %cst_41 : f32 to vector<60x256xf32>
    %42 = arith.maximumf %40, %41 : vector<60x256xf32>
    %43 = arith.truncf %42 : vector<60x256xf32> to vector<60x256xbf16>
    %c0_42 = arith.constant 0 : index
    %c0_43 = arith.constant 0 : index
    %44 = vector.load %arg10[%c0_42, %c0_43] : memref<32x60xbf16, #tpu.memory_space<vmem>>, vector<32x60xbf16>
    %cst_44 = arith.constant dense<0.000000e+00> : vector<32x256xf32>
    %45 = tpu.matmul %44, %43, %cst_44 {dimension_numbers = #tpu.dot_dimension_numbers<[1], [0], [0], [1], [0, 0, 1, 1], [], []>} : vector<32x60xbf16>, vector<60x256xbf16>, vector<32x256xf32> -> vector<32x256xf32>
    %c0_45 = arith.constant 0 : index
    %c0_46 = arith.constant 0 : index
    %46 = vector.load %arg11[%c0_45, %c0_46] : memref<32x60xbf16, #tpu.memory_space<vmem>>, vector<32x60xbf16>
    %cst_47 = arith.constant dense<0.000000e+00> : vector<32x256xf32>
    %47 = tpu.matmul %46, %43, %cst_47 {dimension_numbers = #tpu.dot_dimension_numbers<[1], [0], [0], [1], [0, 0, 1, 1], [], []>} : vector<32x60xbf16>, vector<60x256xbf16>, vector<32x256xf32> -> vector<32x256xf32>
    %48 = arith.truncf %45 : vector<32x256xf32> to vector<32x256xbf16>
    %49 = vector.shape_cast %48 : vector<32x256xbf16> to vector<2x16x256xbf16>
    %c0_48 = arith.constant 0 : index
    %c0_49 = arith.constant 0 : index
    %c0_50 = arith.constant 0 : index
    %50 = vector.load %arg29[%c0_48, %c0_49, %c0_50] : memref<2x16x256xbf16, #tpu.memory_space<vmem>>, vector<2x16x256xbf16>
    tpu.vector_store %arg29[%c0_48, %c0_49, %c0_50], %49 {strides = array<i32>} : memref<2x16x256xbf16, #tpu.memory_space<vmem>>, vector<2x16x256xbf16>,
    %51 = arith.truncf %47 : vector<32x256xf32> to vector<32x256xbf16>
    %52 = vector.shape_cast %51 : vector<32x256xbf16> to vector<2x16x256xbf16>
    %c0_51 = arith.constant 0 : index
    %c0_52 = arith.constant 0 : index
    %c0_53 = arith.constant 0 : index
    %53 = vector.load %arg30[%c0_51, %c0_52, %c0_53] : memref<2x16x256xbf16, #tpu.memory_space<vmem>>, vector<2x16x256xbf16>
    tpu.vector_store %arg30[%c0_51, %c0_52, %c0_53], %52 {strides = array<i32>} : memref<2x16x256xbf16, #tpu.memory_space<vmem>>, vector<2x16x256xbf16>,
    %c0_54 = arith.constant 0 : index
    %c0_55 = arith.constant 0 : index
    %54 = vector.load %arg5[%c0_54, %c0_55] : memref<1x272xf32, #tpu.memory_space<vmem>>, vector<1x272xf32>
    %c0_56 = arith.constant 0 : index
    %c0_57 = arith.constant 0 : index
    %c0_58 = arith.constant 0 : index
    %55 = vector.load %arg29[%c0_56, %c0_57, %c0_58] : memref<2x16x256xbf16, #tpu.memory_space<vmem>>, vector<2x15x256xbf16>
    %56 = vector.shape_cast %55 : vector<2x15x256xbf16> to vector<30x256xbf16>
    %c0_59 = arith.constant 0 : index
    %c0_60 = arith.constant 0 : index
    %c0_61 = arith.constant 0 : index
    %57 = vector.load %arg4[%c0_59, %c0_60, %c0_61] : memref<4x256x272xbf16, #tpu.memory_space<vmem>>, vector<1x256x272xbf16>
    %58 = vector.shape_cast %57 : vector<1x256x272xbf16> to vector<256x272xbf16>
    %cst_62 = arith.constant dense<0.000000e+00> : vector<30x272xf32>
    %59 = tpu.matmul %56, %58, %cst_62 {dimension_numbers = #tpu.dot_dimension_numbers<[1], [0], [0], [1], [0, 0, 1, 1], [], []>} : vector<30x256xbf16>, vector<256x272xbf16>, vector<30x272xf32> -> vector<30x272xf32>
    %c0_63 = arith.constant 0 : index
    %c0_64 = arith.constant 0 : index
    %c0_65 = arith.constant 0 : index
    %60 = vector.load %arg30[%c0_63, %c0_64, %c0_65] : memref<2x16x256xbf16, #tpu.memory_space<vmem>>, vector<2x15x256xbf16>
    %61 = vector.shape_cast %60 : vector<2x15x256xbf16> to vector<30x256xbf16>
    %c1_66 = arith.constant 1 : index
    %c0_67 = arith.constant 0 : index
    %c0_68 = arith.constant 0 : index
    %62 = vector.load %arg4[%c1_66, %c0_67, %c0_68] : memref<4x256x272xbf16, #tpu.memory_space<vmem>>, vector<1x256x272xbf16>
    %63 = vector.shape_cast %62 : vector<1x256x272xbf16> to vector<256x272xbf16>
    %cst_69 = arith.constant dense<0.000000e+00> : vector<30x272xf32>
    %64 = tpu.matmul %61, %63, %cst_69 {dimension_numbers = #tpu.dot_dimension_numbers<[1], [0], [0], [1], [0, 0, 1, 1], [], []>} : vector<30x256xbf16>, vector<256x272xbf16>, vector<30x272xf32> -> vector<30x272xf32>
    %65 = arith.addf %59, %64 : vector<30x272xf32>
    %c0_70 = arith.constant 0 : index
    %c1_71 = arith.constant 1 : index
    %c0_72 = arith.constant 0 : index
    %66 = vector.load %arg29[%c0_70, %c1_71, %c0_72] : memref<2x16x256xbf16, #tpu.memory_space<vmem>>, vector<2x15x256xbf16>
    %67 = vector.shape_cast %66 : vector<2x15x256xbf16> to vector<30x256xbf16>
    %c2_73 = arith.constant 2 : index
    %c0_74 = arith.constant 0 : index
    %c0_75 = arith.constant 0 : index
    %68 = vector.load %arg4[%c2_73, %c0_74, %c0_75] : memref<4x256x272xbf16, #tpu.memory_space<vmem>>, vector<1x256x272xbf16>
    %69 = vector.shape_cast %68 : vector<1x256x272xbf16> to vector<256x272xbf16>
    %cst_76 = arith.constant dense<0.000000e+00> : vector<30x272xf32>
    %70 = tpu.matmul %67, %69, %cst_76 {dimension_numbers = #tpu.dot_dimension_numbers<[1], [0], [0], [1], [0, 0, 1, 1], [], []>} : vector<30x256xbf16>, vector<256x272xbf16>, vector<30x272xf32> -> vector<30x272xf32>
    %71 = arith.addf %65, %70 : vector<30x272xf32>
    %c0_77 = arith.constant 0 : index
    %c1_78 = arith.constant 1 : index
    %c0_79 = arith.constant 0 : index
    %72 = vector.load %arg30[%c0_77, %c1_78, %c0_79] : memref<2x16x256xbf16, #tpu.memory_space<vmem>>, vector<2x15x256xbf16>
    %73 = vector.shape_cast %72 : vector<2x15x256xbf16> to vector<30x256xbf16>
    %c3_80 = arith.constant 3 : index
    %c0_81 = arith.constant 0 : index
    %c0_82 = arith.constant 0 : index
    %74 = vector.load %arg4[%c3_80, %c0_81, %c0_82] : memref<4x256x272xbf16, #tpu.memory_space<vmem>>, vector<1x256x272xbf16>
    %75 = vector.shape_cast %74 : vector<1x256x272xbf16> to vector<256x272xbf16>
    %cst_83 = arith.constant dense<0.000000e+00> : vector<30x272xf32>
    %76 = tpu.matmul %73, %75, %cst_83 {dimension_numbers = #tpu.dot_dimension_numbers<[1], [0], [0], [1], [0, 0, 1, 1], [], []>} : vector<30x256xbf16>, vector<256x272xbf16>, vector<30x272xf32> -> vector<30x272xf32>
    %77 = arith.addf %71, %76 : vector<30x272xf32>
    %78 = vector.broadcast %54 : vector<1x272xf32> to vector<30x272xf32>
    %79 = arith.addf %77, %78 : vector<30x272xf32>
    %cst_84 = arith.constant 0.000000e+00 : f32
    %80 = vector.broadcast %cst_84 : f32 to vector<30x272xf32>
    %81 = arith.maximumf %79, %80 : vector<30x272xf32>
    %82 = arith.truncf %81 : vector<30x272xf32> to vector<30x272xbf16>
    %c0_85 = arith.constant 0 : index
    %c0_86 = arith.constant 0 : index
    %83 = vector.load %arg12[%c0_85, %c0_86] : memref<18x30xbf16, #tpu.memory_space<vmem>>, vector<18x30xbf16>
    %cst_87 = arith.constant dense<0.000000e+00> : vector<18x272xf32>
    %84 = tpu.matmul %83, %82, %cst_87 {dimension_numbers = #tpu.dot_dimension_numbers<[1], [0], [0], [1], [0, 0, 1, 1], [], []>} : vector<18x30xbf16>, vector<30x272xbf16>, vector<18x272xf32> -> vector<18x272xf32>
    %c0_88 = arith.constant 0 : index
    %c0_89 = arith.constant 0 : index
    %85 = vector.load %arg13[%c0_88, %c0_89] : memref<16x30xbf16, #tpu.memory_space<vmem>>, vector<16x30xbf16>
    %cst_90 = arith.constant dense<0.000000e+00> : vector<16x272xf32>
    %86 = tpu.matmul %85, %82, %cst_90 {dimension_numbers = #tpu.dot_dimension_numbers<[1], [0], [0], [1], [0, 0, 1, 1], [], []>} : vector<16x30xbf16>, vector<30x272xbf16>, vector<16x272xf32> -> vector<16x272xf32>
    %87 = arith.truncf %84 : vector<18x272xf32> to vector<18x272xbf16>
    %88 = vector.shape_cast %87 : vector<18x272xbf16> to vector<2x9x272xbf16>
    %c0_91 = arith.constant 0 : index
    %c0_92 = arith.constant 0 : index
    %c0_93 = arith.constant 0 : index
    %89 = vector.load %arg31[%c0_91, %c0_92, %c0_93] : memref<2x9x272xbf16, #tpu.memory_space<vmem>>, vector<2x9x272xbf16>
    tpu.vector_store %arg31[%c0_91, %c0_92, %c0_93], %88 {strides = array<i32>} : memref<2x9x272xbf16, #tpu.memory_space<vmem>>, vector<2x9x272xbf16>,
    %90 = arith.truncf %86 : vector<16x272xf32> to vector<16x272xbf16>
    %91 = vector.shape_cast %90 : vector<16x272xbf16> to vector<2x8x272xbf16>
    %c0_94 = arith.constant 0 : index
    %c0_95 = arith.constant 0 : index
    %c0_96 = arith.constant 0 : index
    %92 = vector.load %arg32[%c0_94, %c0_95, %c0_96] : memref<2x8x272xbf16, #tpu.memory_space<vmem>>, vector<2x8x272xbf16>
    tpu.vector_store %arg32[%c0_94, %c0_95, %c0_96], %91 {strides = array<i32>} : memref<2x8x272xbf16, #tpu.memory_space<vmem>>, vector<2x8x272xbf16>,
    %c0_97 = arith.constant 0 : index
    %c0_98 = arith.constant 0 : index
    %93 = vector.load %arg7[%c0_97, %c0_98] : memref<1x224xf32, #tpu.memory_space<vmem>>, vector<1x224xf32>
    %c0_99 = arith.constant 0 : index
    %c0_100 = arith.constant 0 : index
    %c0_101 = arith.constant 0 : index
    %94 = vector.load %arg31[%c0_99, %c0_100, %c0_101] : memref<2x9x272xbf16, #tpu.memory_space<vmem>>, vector<2x7x272xbf16>
    %95 = vector.shape_cast %94 : vector<2x7x272xbf16> to vector<14x272xbf16>
    %c0_102 = arith.constant 0 : index
    %c0_103 = arith.constant 0 : index
    %c0_104 = arith.constant 0 : index
    %96 = vector.load %arg6[%c0_102, %c0_103, %c0_104] : memref<4x272x224xbf16, #tpu.memory_space<vmem>>, vector<1x272x224xbf16>
    %97 = vector.shape_cast %96 : vector<1x272x224xbf16> to vector<272x224xbf16>
    %cst_105 = arith.constant dense<0.000000e+00> : vector<14x224xf32>
    %98 = tpu.matmul %95, %97, %cst_105 {dimension_numbers = #tpu.dot_dimension_numbers<[1], [0], [0], [1], [0, 0, 1, 1], [], []>} : vector<14x272xbf16>, vector<272x224xbf16>, vector<14x224xf32> -> vector<14x224xf32>
    %c0_106 = arith.constant 0 : index
    %c0_107 = arith.constant 0 : index
    %c0_108 = arith.constant 0 : index
    %99 = vector.load %arg32[%c0_106, %c0_107, %c0_108] : memref<2x8x272xbf16, #tpu.memory_space<vmem>>, vector<2x7x272xbf16>
    %100 = vector.shape_cast %99 : vector<2x7x272xbf16> to vector<14x272xbf16>
    %c1_109 = arith.constant 1 : index
    %c0_110 = arith.constant 0 : index
    %c0_111 = arith.constant 0 : index
    %101 = vector.load %arg6[%c1_109, %c0_110, %c0_111] : memref<4x272x224xbf16, #tpu.memory_space<vmem>>, vector<1x272x224xbf16>
    %102 = vector.shape_cast %101 : vector<1x272x224xbf16> to vector<272x224xbf16>
    %cst_112 = arith.constant dense<0.000000e+00> : vector<14x224xf32>
    %103 = tpu.matmul %100, %102, %cst_112 {dimension_numbers = #tpu.dot_dimension_numbers<[1], [0], [0], [1], [0, 0, 1, 1], [], []>} : vector<14x272xbf16>, vector<272x224xbf16>, vector<14x224xf32> -> vector<14x224xf32>
    %104 = arith.addf %98, %103 : vector<14x224xf32>
    %c0_113 = arith.constant 0 : index
    %c1_114 = arith.constant 1 : index
    %c0_115 = arith.constant 0 : index
    %105 = vector.load %arg31[%c0_113, %c1_114, %c0_115] : memref<2x9x272xbf16, #tpu.memory_space<vmem>>, vector<2x7x272xbf16>
    %106 = vector.shape_cast %105 : vector<2x7x272xbf16> to vector<14x272xbf16>
    %c2_116 = arith.constant 2 : index
    %c0_117 = arith.constant 0 : index
    %c0_118 = arith.constant 0 : index
    %107 = vector.load %arg6[%c2_116, %c0_117, %c0_118] : memref<4x272x224xbf16, #tpu.memory_space<vmem>>, vector<1x272x224xbf16>
    %108 = vector.shape_cast %107 : vector<1x272x224xbf16> to vector<272x224xbf16>
    %cst_119 = arith.constant dense<0.000000e+00> : vector<14x224xf32>
    %109 = tpu.matmul %106, %108, %cst_119 {dimension_numbers = #tpu.dot_dimension_numbers<[1], [0], [0], [1], [0, 0, 1, 1], [], []>} : vector<14x272xbf16>, vector<272x224xbf16>, vector<14x224xf32> -> vector<14x224xf32>
    %110 = arith.addf %104, %109 : vector<14x224xf32>
    %c0_120 = arith.constant 0 : index
    %c1_121 = arith.constant 1 : index
    %c0_122 = arith.constant 0 : index
    %111 = vector.load %arg32[%c0_120, %c1_121, %c0_122] : memref<2x8x272xbf16, #tpu.memory_space<vmem>>, vector<2x7x272xbf16>
    %112 = vector.shape_cast %111 : vector<2x7x272xbf16> to vector<14x272xbf16>
    %c3_123 = arith.constant 3 : index
    %c0_124 = arith.constant 0 : index
    %c0_125 = arith.constant 0 : index
    %113 = vector.load %arg6[%c3_123, %c0_124, %c0_125] : memref<4x272x224xbf16, #tpu.memory_space<vmem>>, vector<1x272x224xbf16>
    %114 = vector.shape_cast %113 : vector<1x272x224xbf16> to vector<272x224xbf16>
    %cst_126 = arith.constant dense<0.000000e+00> : vector<14x224xf32>
    %115 = tpu.matmul %112, %114, %cst_126 {dimension_numbers = #tpu.dot_dimension_numbers<[1], [0], [0], [1], [0, 0, 1, 1], [], []>} : vector<14x272xbf16>, vector<272x224xbf16>, vector<14x224xf32> -> vector<14x224xf32>
    %116 = arith.addf %110, %115 : vector<14x224xf32>
    %117 = vector.broadcast %93 : vector<1x224xf32> to vector<14x224xf32>
    %118 = arith.addf %116, %117 : vector<14x224xf32>
    %cst_127 = arith.constant 0.000000e+00 : f32
    %119 = vector.broadcast %cst_127 : f32 to vector<14x224xf32>
    %120 = arith.maximumf %118, %119 : vector<14x224xf32>
    %121 = arith.truncf %120 : vector<14x224xf32> to vector<14x224xbf16>
    %122 = vector.shape_cast %121 : vector<14x224xbf16> to vector<2x7x224xbf16>
    %c0_128 = arith.constant 0 : index
    %c0_129 = arith.constant 0 : index
    %c0_130 = arith.constant 0 : index
    %123 = vector.load %arg33[%c0_128, %c0_129, %c0_130] : memref<2x7x224xbf16, #tpu.memory_space<vmem>>, vector<2x7x224xbf16>
    tpu.vector_store %arg33[%c0_128, %c0_129, %c0_130], %122 {strides = array<i32>} : memref<2x7x224xbf16, #tpu.memory_space<vmem>>, vector<2x7x224xbf16>,
    %c0_131 = arith.constant 0 : index
    %c0_132 = arith.constant 0 : index
    %124 = vector.load %arg9[%c0_131, %c0_132] : memref<1x256xf32, #tpu.memory_space<vmem>>, vector<1x256xf32>
    %c0_133 = arith.constant 0 : index
    %c0_134 = arith.constant 0 : index
    %c0_135 = arith.constant 0 : index
    %125 = vector.load %arg33[%c0_133, %c0_134, %c0_135] : memref<2x7x224xbf16, #tpu.memory_space<vmem>>, vector<2x4x224xbf16>
    %126 = vector.shape_cast %125 : vector<2x4x224xbf16> to vector<8x224xbf16>
    %c0_136 = arith.constant 0 : index
    %c0_137 = arith.constant 0 : index
    %c0_138 = arith.constant 0 : index
    %127 = vector.load %arg8[%c0_136, %c0_137, %c0_138] : memref<4x224x256xbf16, #tpu.memory_space<vmem>>, vector<1x224x256xbf16>
    %128 = vector.shape_cast %127 : vector<1x224x256xbf16> to vector<224x256xbf16>
    %cst_139 = arith.constant dense<0.000000e+00> : vector<8x256xf32>
    %129 = tpu.matmul %126, %128, %cst_139 {dimension_numbers = #tpu.dot_dimension_numbers<[1], [0], [0], [1], [0, 0, 1, 1], [], []>} : vector<8x224xbf16>, vector<224x256xbf16>, vector<8x256xf32> -> vector<8x256xf32>
    %c0_140 = arith.constant 0 : index
    %c1_141 = arith.constant 1 : index
    %c0_142 = arith.constant 0 : index
    %130 = vector.load %arg33[%c0_140, %c1_141, %c0_142] : memref<2x7x224xbf16, #tpu.memory_space<vmem>>, vector<2x4x224xbf16>
    %131 = vector.shape_cast %130 : vector<2x4x224xbf16> to vector<8x224xbf16>
    %c1_143 = arith.constant 1 : index
    %c0_144 = arith.constant 0 : index
    %c0_145 = arith.constant 0 : index
    %132 = vector.load %arg8[%c1_143, %c0_144, %c0_145] : memref<4x224x256xbf16, #tpu.memory_space<vmem>>, vector<1x224x256xbf16>
    %133 = vector.shape_cast %132 : vector<1x224x256xbf16> to vector<224x256xbf16>
    %cst_146 = arith.constant dense<0.000000e+00> : vector<8x256xf32>
    %134 = tpu.matmul %131, %133, %cst_146 {dimension_numbers = #tpu.dot_dimension_numbers<[1], [0], [0], [1], [0, 0, 1, 1], [], []>} : vector<8x224xbf16>, vector<224x256xbf16>, vector<8x256xf32> -> vector<8x256xf32>
    %135 = arith.addf %129, %134 : vector<8x256xf32>
    %c0_147 = arith.constant 0 : index
    %c2_148 = arith.constant 2 : index
    %c0_149 = arith.constant 0 : index
    %136 = vector.load %arg33[%c0_147, %c2_148, %c0_149] : memref<2x7x224xbf16, #tpu.memory_space<vmem>>, vector<2x4x224xbf16>
    %137 = vector.shape_cast %136 : vector<2x4x224xbf16> to vector<8x224xbf16>
    %c2_150 = arith.constant 2 : index
    %c0_151 = arith.constant 0 : index
    %c0_152 = arith.constant 0 : index
    %138 = vector.load %arg8[%c2_150, %c0_151, %c0_152] : memref<4x224x256xbf16, #tpu.memory_space<vmem>>, vector<1x224x256xbf16>
    %139 = vector.shape_cast %138 : vector<1x224x256xbf16> to vector<224x256xbf16>
    %cst_153 = arith.constant dense<0.000000e+00> : vector<8x256xf32>
    %140 = tpu.matmul %137, %139, %cst_153 {dimension_numbers = #tpu.dot_dimension_numbers<[1], [0], [0], [1], [0, 0, 1, 1], [], []>} : vector<8x224xbf16>, vector<224x256xbf16>, vector<8x256xf32> -> vector<8x256xf32>
    %141 = arith.addf %135, %140 : vector<8x256xf32>
    %c0_154 = arith.constant 0 : index
    %c3_155 = arith.constant 3 : index
    %c0_156 = arith.constant 0 : index
    %142 = vector.load %arg33[%c0_154, %c3_155, %c0_156] : memref<2x7x224xbf16, #tpu.memory_space<vmem>>, vector<2x4x224xbf16>
    %143 = vector.shape_cast %142 : vector<2x4x224xbf16> to vector<8x224xbf16>
    %c3_157 = arith.constant 3 : index
    %c0_158 = arith.constant 0 : index
    %c0_159 = arith.constant 0 : index
    %144 = vector.load %arg8[%c3_157, %c0_158, %c0_159] : memref<4x224x256xbf16, #tpu.memory_space<vmem>>, vector<1x224x256xbf16>
    %145 = vector.shape_cast %144 : vector<1x224x256xbf16> to vector<224x256xbf16>
    %cst_160 = arith.constant dense<0.000000e+00> : vector<8x256xf32>
    %146 = tpu.matmul %143, %145, %cst_160 {dimension_numbers = #tpu.dot_dimension_numbers<[1], [0], [0], [1], [0, 0, 1, 1], [], []>} : vector<8x224xbf16>, vector<224x256xbf16>, vector<8x256xf32> -> vector<8x256xf32>
    %147 = arith.addf %141, %146 : vector<8x256xf32>
    %148 = vector.broadcast %124 : vector<1x256xf32> to vector<8x256xf32>
    %149 = arith.addf %147, %148 : vector<8x256xf32>
    %cst_161 = arith.constant 0.000000e+00 : f32
    %150 = vector.broadcast %cst_161 : f32 to vector<8x256xf32>
    %151 = arith.maximumf %149, %150 : vector<8x256xf32>
    %152 = arith.truncf %151 : vector<8x256xf32> to vector<8x256xbf16>
    %c0_162 = arith.constant 0 : index
    %c0_163 = arith.constant 0 : index
    %153 = vector.load %arg15[%c0_162, %c0_163] : memref<2x2xf32, #tpu.memory_space<vmem>>, vector<2x2xf32>
    %154 = arith.truncf %153 : vector<2x2xf32> to vector<2x2xbf16>
    %c0_164 = arith.constant 0 : index
    %c0_165 = arith.constant 0 : index
    %155 = vector.load %arg18[%c0_164, %c0_165] : memref<2x32xbf16, #tpu.memory_space<vmem>>, vector<2x32xbf16>
    %cst_166 = arith.constant dense<0.000000e+00> : vector<2x32xf32>
    %156 = tpu.matmul %154, %155, %cst_166 {dimension_numbers = #tpu.dot_dimension_numbers<[1], [0], [0], [1], [0, 0, 1, 1], [], []>} : vector<2x2xbf16>, vector<2x32xbf16>, vector<2x32xf32> -> vector<2x32xf32>
    %c0_167 = arith.constant 0 : index
    %c0_168 = arith.constant 0 : index
    %157 = vector.load %arg19[%c0_167, %c0_168] : memref<1x32xf32, #tpu.memory_space<vmem>>, vector<1x32xf32>
    %158 = vector.broadcast %157 : vector<1x32xf32> to vector<2x32xf32>
    %159 = arith.mulf %156, %158 : vector<2x32xf32>
    %c0_169 = arith.constant 0 : index
    %c0_170 = arith.constant 0 : index
    %160 = vector.load %arg20[%c0_169, %c0_170] : memref<1x32xf32, #tpu.memory_space<vmem>>, vector<1x32xf32>
    %161 = vector.broadcast %160 : vector<1x32xf32> to vector<2x32xf32>
    %162 = arith.addf %159, %161 : vector<2x32xf32>
    %cst_171 = arith.constant 0.000000e+00 : f32
    %163 = vector.broadcast %cst_171 : f32 to vector<2x32xf32>
    %164 = arith.maximumf %162, %163 : vector<2x32xf32>
    %165 = arith.truncf %164 : vector<2x32xf32> to vector<2x32xbf16>
    %c0_172 = arith.constant 0 : index
    %c0_173 = arith.constant 0 : index
    %166 = vector.load %arg21[%c0_172, %c0_173] : memref<32x1024xbf16, #tpu.memory_space<vmem>>, vector<32x1024xbf16>
    %cst_174 = arith.constant dense<0.000000e+00> : vector<2x1024xf32>
    %167 = tpu.matmul %165, %166, %cst_174 {dimension_numbers = #tpu.dot_dimension_numbers<[1], [0], [0], [1], [0, 0, 1, 1], [], []>} : vector<2x32xbf16>, vector<32x1024xbf16>, vector<2x1024xf32> -> vector<2x1024xf32>
    %c0_175 = arith.constant 0 : index
    %c0_176 = arith.constant 0 : index
    %168 = vector.load %arg22[%c0_175, %c0_176] : memref<1x1024xf32, #tpu.memory_space<vmem>>, vector<1x1024xf32>
    %169 = vector.broadcast %168 : vector<1x1024xf32> to vector<2x1024xf32>
    %170 = arith.mulf %167, %169 : vector<2x1024xf32>
    %c0_177 = arith.constant 0 : index
    %c0_178 = arith.constant 0 : index
    %171 = vector.load %arg23[%c0_177, %c0_178] : memref<1x1024xf32, #tpu.memory_space<vmem>>, vector<1x1024xf32>
    %172 = vector.broadcast %171 : vector<1x1024xf32> to vector<2x1024xf32>
    %173 = arith.addf %170, %172 : vector<2x1024xf32>
    %cst_179 = arith.constant 0.000000e+00 : f32
    %174 = vector.broadcast %cst_179 : f32 to vector<2x1024xf32>
    %175 = arith.maximumf %173, %174 : vector<2x1024xf32>
    %176 = arith.truncf %175 : vector<2x1024xf32> to vector<2x1024xbf16>
    %c0_180 = arith.constant 0 : index
    %c0_181 = arith.constant 0 : index
    %177 = vector.load %arg24[%c0_180, %c0_181] : memref<1024x32xbf16, #tpu.memory_space<vmem>>, vector<1024x32xbf16>
    %cst_182 = arith.constant dense<0.000000e+00> : vector<2x32xf32>
    %178 = tpu.matmul %176, %177, %cst_182 {dimension_numbers = #tpu.dot_dimension_numbers<[1], [0], [0], [1], [0, 0, 1, 1], [], []>} : vector<2x1024xbf16>, vector<1024x32xbf16>, vector<2x32xf32> -> vector<2x32xf32>
    %c0_183 = arith.constant 0 : index
    %c0_184 = arith.constant 0 : index
    %c0_185 = arith.constant 0 : index
    %179 = vector.load %arg14[%c0_183, %c0_184, %c0_185] : memref<4x2x8xbf16, #tpu.memory_space<vmem>>, vector<1x2x8xbf16>
    %180 = vector.shape_cast %179 : vector<1x2x8xbf16> to vector<2x8xbf16>
    %cst_186 = arith.constant dense<0.000000e+00> : vector<2x256xf32>
    %181 = tpu.matmul %180, %152, %cst_186 {dimension_numbers = #tpu.dot_dimension_numbers<[1], [0], [0], [1], [0, 0, 1, 1], [], []>} : vector<2x8xbf16>, vector<8x256xbf16>, vector<2x256xf32> -> vector<2x256xf32>
    %182 = arith.truncf %181 : vector<2x256xf32> to vector<2x256xbf16>
    %c0_187 = arith.constant 0 : index
    %c0_188 = arith.constant 0 : index
    %183 = vector.load %arg24[%c0_187, %c0_188] : memref<1024x32xbf16, #tpu.memory_space<vmem>>, vector<256x32xbf16>
    %cst_189 = arith.constant dense<0.000000e+00> : vector<2x32xf32>
    %184 = tpu.matmul %182, %183, %cst_189 {dimension_numbers = #tpu.dot_dimension_numbers<[1], [0], [0], [1], [0, 0, 1, 1], [], []>} : vector<2x256xbf16>, vector<256x32xbf16>, vector<2x32xf32> -> vector<2x32xf32>
    %185 = arith.addf %178, %184 : vector<2x32xf32>
    %c1_190 = arith.constant 1 : index
    %c0_191 = arith.constant 0 : index
    %c0_192 = arith.constant 0 : index
    %186 = vector.load %arg14[%c1_190, %c0_191, %c0_192] : memref<4x2x8xbf16, #tpu.memory_space<vmem>>, vector<1x2x8xbf16>
    %187 = vector.shape_cast %186 : vector<1x2x8xbf16> to vector<2x8xbf16>
    %cst_193 = arith.constant dense<0.000000e+00> : vector<2x256xf32>
    %188 = tpu.matmul %187, %152, %cst_193 {dimension_numbers = #tpu.dot_dimension_numbers<[1], [0], [0], [1], [0, 0, 1, 1], [], []>} : vector<2x8xbf16>, vector<8x256xbf16>, vector<2x256xf32> -> vector<2x256xf32>
    %189 = arith.truncf %188 : vector<2x256xf32> to vector<2x256xbf16>
    %c256 = arith.constant 256 : index
    %c0_194 = arith.constant 0 : index
    %190 = vector.load %arg24[%c256, %c0_194] : memref<1024x32xbf16, #tpu.memory_space<vmem>>, vector<256x32xbf16>
    %cst_195 = arith.constant dense<0.000000e+00> : vector<2x32xf32>
    %191 = tpu.matmul %189, %190, %cst_195 {dimension_numbers = #tpu.dot_dimension_numbers<[1], [0], [0], [1], [0, 0, 1, 1], [], []>} : vector<2x256xbf16>, vector<256x32xbf16>, vector<2x32xf32> -> vector<2x32xf32>
    %192 = arith.addf %185, %191 : vector<2x32xf32>
    %c2_196 = arith.constant 2 : index
    %c0_197 = arith.constant 0 : index
    %c0_198 = arith.constant 0 : index
    %193 = vector.load %arg14[%c2_196, %c0_197, %c0_198] : memref<4x2x8xbf16, #tpu.memory_space<vmem>>, vector<1x2x8xbf16>
    %194 = vector.shape_cast %193 : vector<1x2x8xbf16> to vector<2x8xbf16>
    %cst_199 = arith.constant dense<0.000000e+00> : vector<2x256xf32>
    %195 = tpu.matmul %194, %152, %cst_199 {dimension_numbers = #tpu.dot_dimension_numbers<[1], [0], [0], [1], [0, 0, 1, 1], [], []>} : vector<2x8xbf16>, vector<8x256xbf16>, vector<2x256xf32> -> vector<2x256xf32>
    %196 = arith.truncf %195 : vector<2x256xf32> to vector<2x256xbf16>
    %c512 = arith.constant 512 : index
    %c0_200 = arith.constant 0 : index
    %197 = vector.load %arg24[%c512, %c0_200] : memref<1024x32xbf16, #tpu.memory_space<vmem>>, vector<256x32xbf16>
    %cst_201 = arith.constant dense<0.000000e+00> : vector<2x32xf32>
    %198 = tpu.matmul %196, %197, %cst_201 {dimension_numbers = #tpu.dot_dimension_numbers<[1], [0], [0], [1], [0, 0, 1, 1], [], []>} : vector<2x256xbf16>, vector<256x32xbf16>, vector<2x32xf32> -> vector<2x32xf32>
    %199 = arith.addf %192, %198 : vector<2x32xf32>
    %c3_202 = arith.constant 3 : index
    %c0_203 = arith.constant 0 : index
    %c0_204 = arith.constant 0 : index
    %200 = vector.load %arg14[%c3_202, %c0_203, %c0_204] : memref<4x2x8xbf16, #tpu.memory_space<vmem>>, vector<1x2x8xbf16>
    %201 = vector.shape_cast %200 : vector<1x2x8xbf16> to vector<2x8xbf16>
    %cst_205 = arith.constant dense<0.000000e+00> : vector<2x256xf32>
    %202 = tpu.matmul %201, %152, %cst_205 {dimension_numbers = #tpu.dot_dimension_numbers<[1], [0], [0], [1], [0, 0, 1, 1], [], []>} : vector<2x8xbf16>, vector<8x256xbf16>, vector<2x256xf32> -> vector<2x256xf32>
    %203 = arith.truncf %202 : vector<2x256xf32> to vector<2x256xbf16>
    %c768 = arith.constant 768 : index
    %c0_206 = arith.constant 0 : index
    %204 = vector.load %arg24[%c768, %c0_206] : memref<1024x32xbf16, #tpu.memory_space<vmem>>, vector<256x32xbf16>
    %cst_207 = arith.constant dense<0.000000e+00> : vector<2x32xf32>
    %205 = tpu.matmul %203, %204, %cst_207 {dimension_numbers = #tpu.dot_dimension_numbers<[1], [0], [0], [1], [0, 0, 1, 1], [], []>} : vector<2x256xbf16>, vector<256x32xbf16>, vector<2x32xf32> -> vector<2x32xf32>
    %206 = arith.addf %199, %205 : vector<2x32xf32>
    %c0_208 = arith.constant 0 : index
    %c0_209 = arith.constant 0 : index
    %207 = vector.load %arg25[%c0_208, %c0_209] : memref<1x32xf32, #tpu.memory_space<vmem>>, vector<1x32xf32>
    %208 = vector.broadcast %207 : vector<1x32xf32> to vector<2x32xf32>
    %209 = arith.mulf %206, %208 : vector<2x32xf32>
    %c0_210 = arith.constant 0 : index
    %c0_211 = arith.constant 0 : index
    %210 = vector.load %arg26[%c0_210, %c0_211] : memref<1x32xf32, #tpu.memory_space<vmem>>, vector<1x32xf32>
    %211 = vector.broadcast %210 : vector<1x32xf32> to vector<2x32xf32>
    %212 = arith.addf %209, %211 : vector<2x32xf32>
    %cst_212 = arith.constant 0.000000e+00 : f32
    %213 = vector.broadcast %cst_212 : f32 to vector<2x32xf32>
    %214 = arith.maximumf %212, %213 : vector<2x32xf32>
    %215 = arith.truncf %214 : vector<2x32xf32> to vector<2x32xbf16>
    %c0_213 = arith.constant 0 : index
    %c0_214 = arith.constant 0 : index
    %216 = vector.load %arg27[%c0_213, %c0_214] : memref<32x10xbf16, #tpu.memory_space<vmem>>, vector<32x10xbf16>
    %cst_215 = arith.constant dense<0.000000e+00> : vector<2x10xf32>
    %217 = tpu.matmul %215, %216, %cst_215 {dimension_numbers = #tpu.dot_dimension_numbers<[1], [0], [0], [1], [0, 0, 1, 1], [], []>} : vector<2x32xbf16>, vector<32x10xbf16>, vector<2x10xf32> -> vector<2x10xf32>
    %cst_216 = arith.constant dense<0xFF800000> : vector<2xf32>
    %218 = vector.multi_reduction <maximumf>, %217, %cst_216 [1] : vector<2x10xf32> to vector<2xf32>
    %219 = vector.shape_cast %218 : vector<2xf32> to vector<2x1xf32>
    %220 = vector.broadcast %219 : vector<2x1xf32> to vector<2x10xf32>
    %221 = arith.subf %217, %220 : vector<2x10xf32>
    %222 = math.exp %221 : vector<2x10xf32>
    %cst_217 = arith.constant dense<0.000000e+00> : vector<2xf32>
    %223 = vector.multi_reduction <add>, %222, %cst_217 [1] : vector<2x10xf32> to vector<2xf32>
    %224 = vector.shape_cast %223 : vector<2xf32> to vector<2x1xf32>
    %225 = math.log %224 : vector<2x1xf32>
    %226 = arith.addf %219, %225 : vector<2x1xf32>
    %c0_218 = arith.constant 0 : index
    %c0_219 = arith.constant 0 : index
    %227 = vector.load %arg16[%c0_218, %c0_219] : memref<2x10xf32, #tpu.memory_space<vmem>>, vector<2x10xf32>
    %228 = arith.mulf %217, %227 : vector<2x10xf32>
    %cst_220 = arith.constant dense<0.000000e+00> : vector<2xf32>
    %229 = vector.multi_reduction <add>, %228, %cst_220 [1] : vector<2x10xf32> to vector<2xf32>
    %230 = vector.shape_cast %229 : vector<2xf32> to vector<2x1xf32>
    %c0_221 = arith.constant 0 : index
    %c0_222 = arith.constant 0 : index
    %231 = vector.load %arg17[%c0_221, %c0_222] : memref<2x1xf32, #tpu.memory_space<vmem>>, vector<2x1xf32>
    %232 = arith.subf %226, %230 : vector<2x1xf32>
    %233 = arith.mulf %232, %231 : vector<2x1xf32>
    %cst_223 = arith.constant dense<0.000000e+00> : vector<1xf32>
    %234 = vector.multi_reduction <add>, %233, %cst_223 [0] : vector<2x1xf32> to vector<1xf32>
    %235 = vector.shape_cast %234 : vector<1xf32> to vector<1x1xf32>
    %cst_224 = arith.constant dense<0.000000e+00> : vector<1xf32>
    %236 = vector.multi_reduction <add>, %231, %cst_224 [0] : vector<2x1xf32> to vector<1xf32>
    %237 = vector.shape_cast %236 : vector<1xf32> to vector<1x1xf32>
    %238 = arith.divf %235, %237 : vector<1x1xf32>
    %c0_225 = arith.constant 0 : index
    %c0_226 = arith.constant 0 : index
    %239 = vector.load %arg28[%c0_225, %c0_226] : memref<1x1xf32, #tpu.memory_space<vmem>>, vector<1x1xf32>
    tpu.vector_store %arg28[%c0_225, %c0_226], %238 {strides = array<i32>} : memref<1x1xf32, #tpu.memory_space<vmem>>, vector<1x1xf32>,
    return
  }
  func.func @transform_0(%arg0: i32) -> (i32, i32, i32) {
    %c0_i32 = arith.constant 0 : i32
    %c0_i32_0 = arith.constant 0 : i32
    %c0_i32_1 = arith.constant 0 : i32
    %c0_i32_2 = arith.constant 0 : i32
    return %c0_i32, %c0_i32_0, %c0_i32_1 : i32, i32, i32
  }
  func.func @transform_1(%arg0: i32) -> (i32, i32, i32) {
    %c0_i32 = arith.constant 0 : i32
    %c0_i32_0 = arith.constant 0 : i32
    %c0_i32_1 = arith.constant 0 : i32
    %c0_i32_2 = arith.constant 0 : i32
    return %c0_i32, %c0_i32_0, %c0_i32_1 : i32, i32, i32
  }
  func.func @transform_2(%arg0: i32) -> (i32, i32, i32) {
    %c0_i32 = arith.constant 0 : i32
    %c0_i32_0 = arith.constant 0 : i32
    %c0_i32_1 = arith.constant 0 : i32
    %c0_i32_2 = arith.constant 0 : i32
    return %c0_i32, %c0_i32_0, %c0_i32_1 : i32, i32, i32
  }
  func.func @transform_3(%arg0: i32) -> (i32, i32, i32) {
    %c0_i32 = arith.constant 0 : i32
    %c0_i32_0 = arith.constant 0 : i32
    %c0_i32_1 = arith.constant 0 : i32
    %c0_i32_2 = arith.constant 0 : i32
    return %c0_i32, %c0_i32_0, %c0_i32_1 : i32, i32, i32
  }
  func.func @transform_4(%arg0: i32) -> (i32, i32) {
    %c0_i32 = arith.constant 0 : i32
    %c0_i32_0 = arith.constant 0 : i32
    %c0_i32_1 = arith.constant 0 : i32
    return %c0_i32, %c0_i32_0 : i32, i32
  }
  func.func @transform_5(%arg0: i32) -> (i32, i32, i32) {
    %c0_i32 = arith.constant 0 : i32
    %c0_i32_0 = arith.constant 0 : i32
    %c0_i32_1 = arith.constant 0 : i32
    %c0_i32_2 = arith.constant 0 : i32
    return %c0_i32, %c0_i32_0, %c0_i32_1 : i32, i32, i32
  }
  func.func @transform_6(%arg0: i32) -> (i32, i32) {
    %c0_i32 = arith.constant 0 : i32
    %c0_i32_0 = arith.constant 0 : i32
    %c0_i32_1 = arith.constant 0 : i32
    return %c0_i32, %c0_i32_0 : i32, i32
  }
  func.func @transform_7(%arg0: i32) -> (i32, i32, i32) {
    %c0_i32 = arith.constant 0 : i32
    %c0_i32_0 = arith.constant 0 : i32
    %c0_i32_1 = arith.constant 0 : i32
    %c0_i32_2 = arith.constant 0 : i32
    return %c0_i32, %c0_i32_0, %c0_i32_1 : i32, i32, i32
  }
  func.func @transform_8(%arg0: i32) -> (i32, i32) {
    %c0_i32 = arith.constant 0 : i32
    %c0_i32_0 = arith.constant 0 : i32
    %c0_i32_1 = arith.constant 0 : i32
    return %c0_i32, %c0_i32_0 : i32, i32
  }
  func.func @transform_9(%arg0: i32) -> (i32, i32) {
    %c0_i32 = arith.constant 0 : i32
    %c0_i32_0 = arith.constant 0 : i32
    %c0_i32_1 = arith.constant 0 : i32
    return %c0_i32, %c0_i32_0 : i32, i32
  }
  func.func @transform_10(%arg0: i32) -> (i32, i32) {
    %c0_i32 = arith.constant 0 : i32
    %c0_i32_0 = arith.constant 0 : i32
    %c0_i32_1 = arith.constant 0 : i32
    return %c0_i32, %c0_i32_0 : i32, i32
  }
  func.func @transform_11(%arg0: i32) -> (i32, i32) {
    %c0_i32 = arith.constant 0 : i32
    %c0_i32_0 = arith.constant 0 : i32
    %c0_i32_1 = arith.constant 0 : i32
    return %c0_i32, %c0_i32_0 : i32, i32
  }
  func.func @transform_12(%arg0: i32) -> (i32, i32) {
    %c0_i32 = arith.constant 0 : i32
    %c0_i32_0 = arith.constant 0 : i32
    %c0_i32_1 = arith.constant 0 : i32
    return %c0_i32, %c0_i32_0 : i32, i32
  }
  func.func @transform_13(%arg0: i32) -> (i32, i32, i32) {
    %c0_i32 = arith.constant 0 : i32
    %c0_i32_0 = arith.constant 0 : i32
    %c0_i32_1 = arith.constant 0 : i32
    %c0_i32_2 = arith.constant 0 : i32
    return %c0_i32, %c0_i32_0, %c0_i32_1 : i32, i32, i32
  }
  func.func @transform_14(%arg0: i32) -> (i32, i32) {
    %c0_i32 = arith.constant 0 : i32
    %c0_i32_0 = arith.constant 0 : i32
    %c0_i32_1 = arith.constant 0 : i32
    return %c0_i32, %c0_i32_0 : i32, i32
  }
  func.func @transform_15(%arg0: i32) -> (i32, i32) {
    %c0_i32 = arith.constant 0 : i32
    %c0_i32_0 = arith.constant 0 : i32
    %c0_i32_1 = arith.constant 0 : i32
    return %c0_i32, %c0_i32_0 : i32, i32
  }
  func.func @transform_16(%arg0: i32) -> (i32, i32) {
    %c0_i32 = arith.constant 0 : i32
    %c0_i32_0 = arith.constant 0 : i32
    %c0_i32_1 = arith.constant 0 : i32
    return %c0_i32, %c0_i32_0 : i32, i32
  }
  func.func @transform_17(%arg0: i32) -> (i32, i32) {
    %c0_i32 = arith.constant 0 : i32
    %c0_i32_0 = arith.constant 0 : i32
    %c0_i32_1 = arith.constant 0 : i32
    return %c0_i32, %c0_i32_0 : i32, i32
  }
  func.func @transform_18(%arg0: i32) -> (i32, i32) {
    %c0_i32 = arith.constant 0 : i32
    %c0_i32_0 = arith.constant 0 : i32
    %c0_i32_1 = arith.constant 0 : i32
    return %c0_i32, %c0_i32_0 : i32, i32
  }
  func.func @transform_19(%arg0: i32) -> (i32, i32) {
    %c0_i32 = arith.constant 0 : i32
    %c0_i32_0 = arith.constant 0 : i32
    %c0_i32_1 = arith.constant 0 : i32
    return %c0_i32, %c0_i32_0 : i32, i32
  }
  func.func @transform_20(%arg0: i32) -> (i32, i32) {
    %c0_i32 = arith.constant 0 : i32
    %c0_i32_0 = arith.constant 0 : i32
    %c0_i32_1 = arith.constant 0 : i32
    return %c0_i32, %c0_i32_0 : i32, i32
  }
  func.func @transform_21(%arg0: i32) -> (i32, i32) {
    %c0_i32 = arith.constant 0 : i32
    %c0_i32_0 = arith.constant 0 : i32
    %c0_i32_1 = arith.constant 0 : i32
    return %c0_i32, %c0_i32_0 : i32, i32
  }
  func.func @transform_22(%arg0: i32) -> (i32, i32) {
    %c0_i32 = arith.constant 0 : i32
    %c0_i32_0 = arith.constant 0 : i32
    %c0_i32_1 = arith.constant 0 : i32
    return %c0_i32, %c0_i32_0 : i32, i32
  }
  func.func @transform_23(%arg0: i32) -> (i32, i32) {
    %c0_i32 = arith.constant 0 : i32
    %c0_i32_0 = arith.constant 0 : i32
    %c0_i32_1 = arith.constant 0 : i32
    return %c0_i32, %c0_i32_0 : i32, i32
  }
  func.func @transform_24(%arg0: i32) -> (i32, i32) {
    %c0_i32 = arith.constant 0 : i32
    %c0_i32_0 = arith.constant 0 : i32
    %c0_i32_1 = arith.constant 0 : i32
    return %c0_i32, %c0_i32_0 : i32, i32
  }
  func.func @transform_25(%arg0: i32) -> (i32, i32) {
    %c0_i32 = arith.constant 0 : i32
    %c0_i32_0 = arith.constant 0 : i32
    %c0_i32_1 = arith.constant 0 : i32
    return %c0_i32, %c0_i32_0 : i32, i32
  }
  func.func @transform_26(%arg0: i32) -> (i32, i32) {
    %c0_i32 = arith.constant 0 : i32
    %c0_i32_0 = arith.constant 0 : i32
    %c0_i32_1 = arith.constant 0 : i32
    return %c0_i32, %c0_i32_0 : i32, i32
  }
  func.func @transform_27(%arg0: i32) -> (i32, i32) {
    %c0_i32 = arith.constant 0 : i32
    %c0_i32_0 = arith.constant 0 : i32
    %c0_i32_1 = arith.constant 0 : i32
    return %c0_i32, %c0_i32_0 : i32, i32
  }
}

</mosaic_0001>

<bundles_post_ra>
// kernel: loc_cond_convnet_classifier_forward.1
= control target key start
LH: loop header
LB: loop body
LE: loop exit
PB: predicated region body
PF: predicated region fallthrough
CT: control target
= control target key end

     0   :  { %s22980_s0 = inlined_call_operand.vmem [shape: bf16[2,33,192], index: 0, kind: input, shape index: {}]   ;;  %s22981_s1 = inlined_call_operand.vmem [shape: bf16[2,33,192], index: 1, kind: input, shape index: {}]   ;;  %s22982_s2 = inlined_call_operand.vmem [shape: bf16[7,192,256], index: 2, kind: input, shape index: {}]   ;;  %s22983_s3 = inlined_call_operand.vmem [shape: bf16[4,256,272], index: 3, kind: input, shape index: {}]   ;;  %s22984_s4 = inlined_call_operand.vmem [shape: f32[1,272], index: 4, kind: input, shape index: {}]   ;;  %s22985_s5 = inlined_call_operand.vmem [shape: bf16[4,272,224], index: 5, kind: input, shape index: {}]   ;;  %s22986_s6 = inlined_call_operand.vmem [shape: f32[1,224], index: 6, kind: input, shape index: {}]   ;;  %s22987_s7 = inlined_call_operand.vmem [shape: bf16[4,224,256], index: 7, kind: input, shape index: {}]   ;;  %s22988_s8 = inlined_call_operand.vmem [shape: f32[1,256], index: 8, kind: input, shape index: {}]   ;;  %s22989_s9 = inlined_call_operand.vmem [shape: bf16[32,60], index: 9, kind: input, shape index: {}]   ;;  %s22990_s10 = inlined_call_operand.vmem [shape: bf16[32,60], index: 10, kind: input, shape index: {}]   ;;  %s22991_s11 = inlined_call_operand.vmem [shape: bf16[18,30], index: 11, kind: input, shape index: {}]   ;;  %s22992_s12 = inlined_call_operand.vmem [shape: bf16[16,30], index: 12, kind: input, shape index: {}]   ;;  %s22993_s13 = inlined_call_operand.vmem [shape: bf16[4,2,8], index: 13, kind: input, shape index: {}]   ;;  %s22994_s14 = inlined_call_operand.vmem [shape: f32[2,2], index: 14, kind: input, shape index: {}]   ;;  %s22995_s15 = inlined_call_operand.vmem [shape: f32[2,10], index: 15, kind: input, shape index: {}]   ;;  %s22996_s16 = inlined_call_operand.vmem [shape: f32[2,1], index: 16, kind: input, shape index: {}]   ;;  %s22997_s17 = inlined_call_operand.vmem [shape: bf16[2,32], index: 17, kind: input, shape index: {}]   ;;  %s22998_s18 = inlined_call_operand.vmem [shape: f32[1,32], index: 18, kind: input, shape index: {}]   ;;  %s22999_s19 = inlined_call_operand.vmem [shape: f32[1,32], index: 19, kind: input, shape index: {}]   ;;  %s23000_s20 = inlined_call_operand.vmem [shape: bf16[32,1024], index: 20, kind: input, shape index: {}]   ;;  %s23001_s21 = inlined_call_operand.vmem [shape: f32[1,1024], index: 21, kind: input, shape index: {}]   ;;  %s23002_s22 = inlined_call_operand.vmem [shape: f32[1,1024], index: 22, kind: input, shape index: {}]   ;;  %s23003_s23 = inlined_call_operand.vmem [shape: bf16[1024,32], index: 23, kind: input, shape index: {}]   ;;  %s23004_s24 = inlined_call_operand.vmem [shape: f32[1,32], index: 24, kind: input, shape index: {}]   ;;  %s23005_s25 = inlined_call_operand.vmem [shape: f32[1,32], index: 25, kind: input, shape index: {}]   ;;  %s23006_s26 = inlined_call_operand.vmem [shape: bf16[32,10], index: 26, kind: input, shape index: {}]   ;;  %s23007_s27 = inlined_call_operand.hbm [shape: f32[1,1], index: 27, kind: output, shape index: {}]  }
   0x1   :  { %23023 = sst [smem:[#allocation53_spill]] %s22980_s0 }
   0x2   :  { %23024 = sst [smem:[#allocation54_spill]] %s22981_s1 }
   0x3   :  { %23025 = sst [smem:[#allocation55_spill]] %s22982_s2 }
   0x4   :  { %23026 = sst [smem:[#allocation56_spill]] %s22983_s3 }
   0x5   :  { %23027 = sst [smem:[#allocation57_spill]] %s22984_s4 }
   0x6   :  { %23028 = sst [smem:[#allocation58_spill]] %s22985_s5 }
   0x7   :  { %23029 = sst [smem:[#allocation59_spill]] %s22986_s6 }
   0x8   :  { %23030 = sst [smem:[#allocation60_spill]] %s22987_s7 }
   0x9   :  { %23031 = sst [smem:[#allocation61_spill]] %s22988_s8 }
   0xa   :  { %23032 = sst [smem:[#allocation62_spill]] %s22989_s9 }
   0xb   :  { %23033 = sst [smem:[#allocation63_spill]] %s22990_s10 }
   0xc   :  { %23034 = sst [smem:[#allocation64_spill]] %s22991_s11 }
   0xd   :  { %s23035_s8 = sld [smem:[#allocation55_spill]]  ;;  %vm112_vm0 = vcmask 1040384   ;;  %vm116_vm1 = vcmask 1041409   ;;  %vm120_vm2 = vcmask 1042434   ;;  %vm124_vm3 = vcmask 1043459  }
   0xe   :  { %s23036_s6 = sld [smem:[#allocation54_spill]] }
  0x13   :  { %v11309_v0 = vld [vmem:[%s23035_s8 + $0x130] sm:$0xf]  ;;  %v15021_v1 = vld [vmem:[%s23035_s8 + $0x134] sm:$0xf0]  ;;  %v15020_v5 = vld [vmem:[%s23035_s8 + $0x134] sm:$0xf] }
  0x14   :  { %v11341_v2 = vld [vmem:[%s23035_s8 + $0x170] sm:$0xf]  ;;  %v11310_v3 = vor.u32 %v15021_v1, %v11309_v0  ;;  %v15029_v4 = vld [vmem:[%s23035_s8 + $0x174] sm:$0xf0]  ;;  %v11311_v6 = vld [vmem:[%s23035_s8 + $0x138] sm:$0xf0] }
  0x15   :  { %v11342_v7 = vor.u32 %v15029_v4, %v11341_v2  ;;  %v11314_v8 = vor.u32 %v15020_v5, %v11311_v6  ;;  %v15028_v9 = vld [vmem:[%s23035_s8 + $0x174] sm:$0xf]  ;;  %v11343_v10 = vld [vmem:[%s23035_s8 + $0x178] sm:$0xf0]  ;;  %v11301_v11 = vld [vmem:[%s23035_s8 + $0x120] sm:$0xf] }
  0x16   :  { %569 = vmatpush.bf16.msra.mxu0 %v11310_v3  ;;  %v11346_v12 = vor.u32 %v15028_v9, %v11343_v10  ;;  %v15019_v13 = vld [vmem:[%s23035_s8 + $0x124] sm:$0xf0]  ;;  %v11333_v14 = vld [vmem:[%s23035_s8 + $0x160] sm:$0xf]  ;;  %v15018_v18 = vld [vmem:[%s23035_s8 + $0x124] sm:$0xf] }
  0x17   :  { %v15027_v15 = vld [vmem:[%s23035_s8 + $0x164] sm:$0xf0]  ;;  %602 = vmatpush.bf16.msra.mxu1 %v11342_v7  ;;  %627 = vmatpush.bf16.msra.mxu2 %v11314_v8  ;;  %v11302_v16 = vor.u32 %v15019_v13, %v11301_v11  ;;  %v11303_v19 = vld [vmem:[%s23035_s8 + $0x128] sm:$0xf0]  ;;  %v15026_v20 = vld [vmem:[%s23035_s8 + $0x164] sm:$0xf] }
  0x18   :  { %v11334_v17 = vor.u32 %v15027_v15, %v11333_v14  ;;  %660 = vmatpush.bf16.msra.mxu3 %v11346_v12  ;;  %v11306_v21 = vor.u32 %v15018_v18, %v11303_v19  ;;  %v11335_v22 = vld [vmem:[%s23035_s8 + $0x168] sm:$0xf0]  ;;  %v11293_v23 = vld [vmem:[%s23035_s8 + $0x110] sm:$0xf]  ;;  %v15017_v24 = vld [vmem:[%s23035_s8 + $0x114] sm:$0xf0] }
  0x19   :  { %v11338_v25 = vor.u32 %v15026_v20, %v11335_v22  ;;  %v11325_v26 = vld [vmem:[%s23035_s8 + $0x150] sm:$0xf]  ;;  %v15025_v27 = vld [vmem:[%s23035_s8 + $0x154] sm:$0xf0]  ;;  %v15016_v28 = vld [vmem:[%s23035_s8 + $0x114] sm:$0xf]  ;;  %v11294_v29 = vor.u32 %v15017_v24, %v11293_v23 }
  0x1a   :  { %570 = vmatpush.bf16.msra.mxu0 %v11302_v16  ;;  %v11295_v30 = vld [vmem:[%s23035_s8 + $0x118] sm:$0xf0]  ;;  %v15024_v31 = vld [vmem:[%s23035_s8 + $0x154] sm:$0xf]  ;;  %v11326_v33 = vor.u32 %v15025_v27, %v11325_v26  ;;  %v11285_v35 = vld [vmem:[%s23035_s8 + $0x100] sm:$0xf] }
  0x1b   :  { %v11327_v32 = vld [vmem:[%s23035_s8 + $0x158] sm:$0xf0]  ;;  %603 = vmatpush.bf16.msra.mxu1 %v11334_v17  ;;  %628 = vmatpush.bf16.msra.mxu2 %v11306_v21  ;;  %v11298_v34 = vor.u32 %v15016_v28, %v11295_v30  ;;  %v15015_v36 = vld [vmem:[%s23035_s8 + $0x104] sm:$0xf0]  ;;  %v11317_v37 = vld [vmem:[%s23035_s8 + $0x140] sm:$0xf] }
  0x1c   :  { %661 = vmatpush.bf16.msra.mxu3 %v11338_v25  ;;  %v11330_v38 = vor.u32 %v15024_v31, %v11327_v32  ;;  %v15023_v39 = vld [vmem:[%s23035_s8 + $0x144] sm:$0xf0]  ;;  %v15014_v40 = vld [vmem:[%s23035_s8 + $0x104] sm:$0xf]  ;;  %v11287_v41 = vld [vmem:[%s23035_s8 + $0x108] sm:$0xf0]  ;;  %v11286_v42 = vor.u32 %v15015_v36, %v11285_v35 }
  0x1d   :  { %v15022_v43 = vld [vmem:[%s23035_s8 + $0x144] sm:$0xf]  ;;  %v11319_v44 = vld [vmem:[%s23035_s8 + $0x148] sm:$0xf0]  ;;  %v11318_v47 = vor.u32 %v15023_v39, %v11317_v37  ;;  %v11290_v48 = vor.u32 %v15014_v40, %v11287_v41  ;;  %v11277_v51 = vld [vmem:[%s23035_s8 + $0xf0] sm:$0xf] }
  0x1e   :  { %571 = vmatpush.bf16.msra.mxu0 %v11294_v29  ;;  %v230_v45 = vld [vmem:[%s23036_s6] sm:$0xff]  ;;  %v231_v46 = vld [vmem:[%s23036_s6 + $0x8] sm:$0xff]  ;;  %v15013_v52 = vld [vmem:[%s23035_s8 + $0xf4] sm:$0xf0]  ;;  %v11322_v53 = vor.u32 %v15022_v43, %v11319_v44 }
  0x1f   :  { %604 = vmatpush.bf16.msra.mxu1 %v11326_v33  ;;  %629 = vmatpush.bf16.msra.mxu2 %v11298_v34  ;;  %v246_v49 = vrot.slane %v230_v45, 3  ;;  %v247_v50 = vrot.slane %v231_v46, 3  ;;  %v11278_v54 = vor.u32 %v15013_v52, %v11277_v51  ;;  %v15012_v59 = vld [vmem:[%s23035_s8 + $0xf4] sm:$0xf]  ;;  %v11279_v60 = vld [vmem:[%s23035_s8 + $0xf8] sm:$0xf0] }
  0x20   :  { %662 = vmatpush.bf16.msra.mxu3 %v11330_v38  ;;  %v11269_v61 = vld [vmem:[%s23035_s8 + $0xe0] sm:$0xf]  ;;  %v15011_v5 = vld [vmem:[%s23035_s8 + $0xe4] sm:$0xf0]  ;;  %v15010_v6 = vld [vmem:[%s23035_s8 + $0xe4] sm:$0xf]  ;;  %v11282_v9 = vor.u32 %v15012_v59, %v11279_v60 }
  0x21   :  { %v256_v55 = vsel %vm112_vm0, %v230_v45, %v246_v49  ;;  %v257_v56 = vsel %vm116_vm1, %v230_v45, %v246_v49  ;;  %v260_v57 = vsel %vm120_vm2, %v230_v45, %v246_v49  ;;  %v263_v58 = vsel %vm124_vm3, %v230_v45, %v246_v49  ;;  %v11271_v10 = vld [vmem:[%s23035_s8 + $0xe8] sm:$0xf0]  ;;  %v232_v12 = vld [vmem:[%s23036_s6 + $0x10] sm:$0xff]  ;;  %v15009_v15 = vld [vmem:[%s23035_s8 + $0xd4] sm:$0xf0] }
  0x22   :  { %572 = vmatpush.bf16.msra.mxu0 %v11286_v42  ;;  %v259_v62 = vrot.slane %v257_v56, 1  ;;  %v262_v63 = vrot.slane %v260_v57, 2  ;;  %v265_v0 = vrot.slane %v263_v58, 3  ;;  %v268_v1 = vsel %vm112_vm0, %v231_v46, %v247_v50  ;;  %369 = vst [vmem:[#allocation1] ss:$9 sm:$0xff] %v256_v55 }
  0x23   :  { %605 = vmatpush.bf16.msra.mxu1 %v11318_v47  ;;  %630 = vmatpush.bf16.msra.mxu2 %v11290_v48  ;;  %v269_v2 = vsel %vm116_vm1, %v231_v46, %v247_v50  ;;  %v272_v3 = vsel %vm120_vm2, %v231_v46, %v247_v50  ;;  %v275_v4 = vsel %vm124_vm3, %v231_v46, %v247_v50  ;;  %v11261_v14 = vld [vmem:[%s23035_s8 + $0xd0] sm:$0xf]  ;;  %v15008_v17 = vld [vmem:[%s23035_s8 + $0xd4] sm:$0xf]  ;;  %v11263_v18 = vld [vmem:[%s23035_s8 + $0xd8] sm:$0xf0] }
  0x24   :  { %380 = vst [vmem:[#allocation1 + $0x4] ss:$9 sm:$0xff] %v268_v1  ;;  %663 = vmatpush.bf16.msra.mxu3 %v11322_v53  ;;  %v271_v7 = vrot.slane %v269_v2, 1  ;;  %v274_v8 = vrot.slane %v272_v3, 2  ;;  %v277_v11 = vrot.slane %v275_v4, 3  ;;  %v11270_v13 = vor.u32 %v15011_v5, %v11269_v61 }
  0x25   :  { %372 = vst [vmem:[#allocation1 + $0x1] ss:$9 sm:$0xff] %v259_v62  ;;  %v11274_v16 = vor.u32 %v15010_v6, %v11271_v10  ;;  %v233_v19 = vld [vmem:[%s23036_s6 + $0x18] sm:$0x77]  ;;  %v248_v20 = vrot.slane %v232_v12, 3  ;;  %v11262_v22 = vor.u32 %v15009_v15, %v11261_v14  ;;  %v11266_v23 = vor.u32 %v15008_v17, %v11263_v18 }
  0x26   :  { %375 = vst [vmem:[#allocation1 + $0x2] ss:$9 sm:$0xff] %v262_v63  ;;  %573 = vmatpush.bf16.msra.mxu0 %v11278_v54  ;;  %v11253_v21 = vld [vmem:[%s23035_s8 + $0xc0] sm:$0xf]  ;;  %v15007_v24 = vld [vmem:[%s23035_s8 + $0xc4] sm:$0xf0] }
  0x27   :  { %378 = vst [vmem:[#allocation1 + $0x3] ss:$9 sm:$0xff] %v265_v0  ;;  %631 = vmatpush.bf16.msra.mxu2 %v11282_v9  ;;  %v249_v25 = vrot.slane %v233_v19, 3  ;;  %v281_v26 = vsel %vm116_vm1, %v232_v12, %v248_v20  ;;  %v15006_v27 = vld [vmem:[%s23035_s8 + $0xc4] sm:$0xf]  ;;  %v284_v29 = vsel %vm120_vm2, %v232_v12, %v248_v20 }
  0x28   :  { %383 = vst [vmem:[#allocation1 + $0x5] ss:$9 sm:$0xff] %v271_v7  ;;  %v11255_v28 = vld [vmem:[%s23035_s8 + $0xc8] sm:$0xf0] }
  0x29   :  { %386 = vst [vmem:[#allocation1 + $0x6] ss:$9 sm:$0xff] %v274_v8 }
  0x2a   :  { %389 = vst [vmem:[#allocation1 + $0x7] ss:$9 sm:$0xff] %v277_v11  ;;  %574 = vmatpush.bf16.msra.mxu0 %v11270_v13 }
  0x2b   :  { %632 = vmatpush.bf16.msra.mxu2 %v11274_v16 }
  0x2c   :  { %32 = vsyncpa [#allocation8], 0  ;;  %v234_v30 = vld [vmem:[%s23036_s6 + $0x28] sm:$0xff]  ;;  %v287_v31 = vsel %vm124_vm3, %v232_v12, %v248_v20  ;;  %vm560_vm4 = vcmask 523264   ;;  %v11254_v32 = vor.u32 %v15007_v24, %v11253_v21  ;;  %v280_v33 = vsel %vm112_vm0, %v232_v12, %v248_v20  ;;  %v11413_v38 = vld [vmem:[%s23035_s8 + $0x70] sm:$0xf] }
  0x2d   :  { %v283_v34 = vrot.slane %v281_v26, 1  ;;  %v11258_v35 = vor.u32 %v15006_v27, %v11255_v28  ;;  %v286_v36 = vrot.slane %v284_v29, 2  ;;  %v293_v37 = vsel %vm116_vm1, %v233_v19, %v249_v25  ;;  %v14997_v39 = vld [vmem:[%s23035_s8 + $0x74] sm:$0xf0]  ;;  %v11405_v46 = vld [vmem:[%s23035_s8 + $0x60] sm:$0xf] }
  0x2e   :  { %575 = vmatpush.bf16.msra.mxu0 %v11262_v22  ;;  %v250_v42 = vrot.slane %v234_v30, 3  ;;  %v289_v43 = vrot.slane %v287_v31, 3  ;;  %v296_v44 = vsel %vm120_vm2, %v233_v19, %v249_v25  ;;  %v11414_v45 = vor.u32 %v14997_v39, %v11413_v38  ;;  %v14995_v47 = vld [vmem:[%s23035_s8 + $0x64] sm:$0xf0]  ;;  %v235_v51 = vld [vmem:[%s23036_s6 + $0x30] sm:$0xff]  ;;  %v16115_v62 = vld [vmem:[%s23036_s6 + $0x38] sm:$0xff] }
  0x2f   :  { %633 = vmatpush.bf16.msra.mxu2 %v11266_v23  ;;  %v292_v48 = vsel %vm112_vm0, %v233_v19, %v249_v25  ;;  %v295_v49 = vrot.slane %v293_v37, 1  ;;  %v298_v50 = vrot.slane %v296_v44, 2  ;;  %v11406_v52 = vor.u32 %v14995_v47, %v11405_v46  ;;  %v11397_v53 = vld [vmem:[%s23035_s8 + $0x50] sm:$0xf]  ;;  %v14993_v54 = vld [vmem:[%s23035_s8 + $0x54] sm:$0xf0] }
  0x30   :  { %884 = vmatpush.bf16.msrb.mxu1 %v11414_v45  ;;  %v301_v55 = vsel %vm112_vm0, %v234_v30, %v250_v42  ;;  %v251_v56 = vrot.slane %v235_v51, 3  ;;  %v11398_v57 = vor.u32 %v14993_v54, %v11397_v53  ;;  %v11389_v58 = vld [vmem:[%s23035_s8 + $0x40] sm:$0xf]  ;;  %v14991_v59 = vld [vmem:[%s23035_s8 + $0x44] sm:$0xf0]  ;;  %v302_v60 = vsel %vm116_vm1, %v234_v30, %v250_v42  ;;  %s23037_s28 = sld [smem:[#allocation53_spill]] }
  0x31   :  { %v391_v40 = vld [vmem:[#allocation1 + $0x9] sm:$0xff]  ;;  %v390_v41 = vld [vmem:[#allocation1] sm:$0xff]  ;;  %v305_v61 = vsel %vm120_vm2, %v234_v30, %v250_v42  ;;  %v308_v63 = vsel %vm124_vm3, %v234_v30, %v250_v42  ;;  %v11390_v2 = vor.u32 %v14991_v59, %v11389_v58  ;;  %v304_v3 = vrot.slane %v302_v60, 1  ;;  %v14989_v17 = vld [vmem:[%s23035_s8 + $0x34] sm:$0xf0]  ;;  %s23126_s9 = sld [smem:[#allocation63_spill]] }
  0x32   :  { %11347 = vmatmul.msk.bf16.vlgmr.msra.gmra.mxu1 %vm560_vm4, %v391_v40  ;;  %11351 = vmatmul.msk.bf16.vlgmr.msra.gmra.mxu3 %vm560_vm4, %v391_v40  ;;  %392 = vst [vmem:[#allocation1] ss:$9 sm:$0xff] %v280_v33  ;;  %v314_v0 = vsel %vm116_vm1, %v235_v51, %v251_v56  ;;  %v317_v1 = vsel %vm120_vm2, %v235_v51, %v251_v56  ;;  %v16124_v5 = vld [vmem:[%s23036_s6 + $0x40] sm:$0x77]  ;;  %v307_v6 = vrot.slane %v305_v61, 2  ;;  %v252_v7 = vrot.slane %v16115_v62, 3 }
  0x33   :  { %576 = vmatpush.bf16.msra.mxu0 %v11254_v32  ;;  %394 = vst [vmem:[#allocation1 + $0x1] ss:$9 sm:$0xff] %v283_v34  ;;  %634 = vmatpush.bf16.msra.mxu2 %v11258_v35  ;;  %v320_v4 = vsel %vm124_vm3, %v235_v51, %v251_v56  ;;  %v310_v8 = vrot.slane %v308_v63, 3  ;;  %v316_v9 = vrot.slane %v314_v0, 1  ;;  %v319_v10 = vrot.slane %v317_v1, 2  ;;  %s23127_s10 = sld [smem:[#allocation62_spill]] }
  0x34   :  { %396 = vst [vmem:[#allocation1 + $0x2] ss:$9 sm:$0xff] %v286_v36  ;;  %885 = vmatpush.bf16.msrb.mxu1 %v11406_v52  ;;  %v322_v13 = vrot.slane %v320_v4, 3  ;;  %v16128_v14 = vrot.slane %v16124_v5, 3  ;;  %v11381_v15 = vld [vmem:[%s23035_s8 + $0x30] sm:$0xf]  ;;  %v313_v16 = vsel %vm112_vm0, %v235_v51, %v251_v56  ;;  %v325_v28 = vsel %vm112_vm0, %v16115_v62, %v252_v7 }
  0x35   :  { %398 = vst [vmem:[#allocation1 + $0x3] ss:$9 sm:$0xff] %v289_v43  ;;  %v11445_v18 = vld [vmem:[%s23035_s8 + $0xb0] sm:$0xf]  ;;  %v11382_v19 = vor.u32 %v14989_v17, %v11381_v15  ;;  %v15005_v20 = vld [vmem:[%s23035_s8 + $0xb4] sm:$0xf0]  ;;  %v329_v46 = vsel %vm120_vm2, %v16115_v62, %v252_v7 }
  0x36   :  { %577 = vmatmul.bf16.vlgmr.msra.gmra.mxu0 %v390_v41  ;;  %399 = vst [vmem:[#allocation1 + $0x4] ss:$9 sm:$0xff] %v292_v48  ;;  %635 = vmatmul.bf16.vlgmr.msra.gmra.mxu2 %v390_v41  ;;  %v14996_v21 = vld [vmem:[%s23035_s8 + $0x74] sm:$0xf]  ;;  %v11446_v22 = vor.u32 %v15005_v20, %v11445_v18  ;;  %v11415_v23 = vld [vmem:[%s23035_s8 + $0x78] sm:$0xf0]  ;;  %v326_v41 = vsel %vm116_vm1, %v16115_v62, %v252_v7 }
  0x37   :  { %401 = vst [vmem:[#allocation1 + $0x5] ss:$9 sm:$0xff] %v295_v49  ;;  %v11373_v24 = vld [vmem:[%s23035_s8 + $0x20] sm:$0xf]  ;;  %v11418_v25 = vor.u32 %v14996_v21, %v11415_v23  ;;  %v14987_v26 = vld [vmem:[%s23035_s8 + $0x24] sm:$0xf0]  ;;  %v332_v49 = vsel %vm124_vm3, %v16115_v62, %v252_v7  ;;  %v338_v52 = vsel %vm116_vm1, %v16124_v5, %v16128_v14  ;;  %v341_v59 = vsel %vm120_vm2, %v16124_v5, %v16128_v14 }
  0x38   :  { %403 = vst [vmem:[#allocation1 + $0x6] ss:$9 sm:$0xff] %v298_v50  ;;  %886 = vmatpush.bf16.msrb.mxu1 %v11398_v57  ;;  %v11437_v27 = vld [vmem:[%s23035_s8 + $0xa0] sm:$0xf]  ;;  %917 = vmatpush.bf16.msrb.mxu3 %v11446_v22  ;;  %v11374_v29 = vor.u32 %v14987_v26, %v11373_v24  ;;  %v15003_v30 = vld [vmem:[%s23035_s8 + $0xa4] sm:$0xf0]  ;;  %v337_v1 = vsel %vm112_vm0, %v16124_v5, %v16128_v14 }
  0x39   :  { %404 = vst [vmem:[#allocation1 + $0x7] ss:$9 sm:$0xff] %v301_v55  ;;  %v14994_v31 = vld [vmem:[%s23035_s8 + $0x64] sm:$0xf]  ;;  %v11438_v32 = vor.u32 %v15003_v30, %v11437_v27  ;;  %v11407_v33 = vld [vmem:[%s23035_s8 + $0x68] sm:$0xf0]  ;;  %942 = vmatpush.bf16.msrb.mxu0 %v11418_v25 }
  0x3a   :  { %v11365_v34 = vld [vmem:[%s23035_s8 + $0x10] sm:$0xf]  ;;  %v11410_v35 = vor.u32 %v14994_v31, %v11407_v33  ;;  %v14985_v36 = vld [vmem:[%s23035_s8 + $0x14] sm:$0xf0]  ;;  %v14992_v40 = vld [vmem:[%s23035_s8 + $0x54] sm:$0xf] }
  0x3b   :  { %v11429_v37 = vld [vmem:[%s23035_s8 + $0x90] sm:$0xf]  ;;  %v11366_v38 = vor.u32 %v14985_v36, %v11365_v34  ;;  %v15001_v39 = vld [vmem:[%s23035_s8 + $0x94] sm:$0xf0]  ;;  %v11399_v43 = vld [vmem:[%s23035_s8 + $0x58] sm:$0xf0] }
  0x3c   :  { %887 = vmatpush.bf16.msrb.mxu1 %v11390_v2  ;;  %918 = vmatpush.bf16.msrb.mxu3 %v11438_v32  ;;  %v11430_v42 = vor.u32 %v15001_v39, %v11429_v37  ;;  %v11357_v44 = vld [vmem:[%s23035_s8] sm:$0xf]  ;;  %v14983_v45 = vld [vmem:[%s23035_s8 + $0x4] sm:$0xf0]  ;;  %v11402_v50 = vor.u32 %v14992_v40, %v11399_v43  ;;  %v328_v51 = vrot.slane %v326_v41, 1  ;;  %v331_v56 = vrot.slane %v329_v46, 2 }
  0x3d   :  { %v11421_v47 = vld [vmem:[%s23035_s8 + $0x80] sm:$0xf]  ;;  %v14999_v48 = vld [vmem:[%s23035_s8 + $0x84] sm:$0xf0]  ;;  %943 = vmatpush.bf16.msrb.mxu0 %v11410_v35  ;;  %v11358_v53 = vor.u32 %v14983_v45, %v11357_v44  ;;  %v14990_v54 = vld [vmem:[%s23035_s8 + $0x44] sm:$0xf] }
  0x3e   :  { %v11391_v55 = vld [vmem:[%s23035_s8 + $0x48] sm:$0xf0]  ;;  %v11422_v57 = vor.u32 %v14999_v48, %v11421_v47  ;;  %v334_v58 = vrot.slane %v332_v49, 3  ;;  %v88_v60 = vld [vmem:[%s23037_s28] sm:$0xff]  ;;  %v340_v63 = vrot.slane %v338_v52, 1  ;;  %v343_v4 = vrot.slane %v341_v59, 2 }
  0x3f   :  { %v11394_v0 = vor.u32 %v14990_v54, %v11391_v55  ;;  %v14988_v2 = vld [vmem:[%s23035_s8 + $0x34] sm:$0xf]  ;;  %v89_v5 = vld [vmem:[%s23037_s28 + $0x8] sm:$0xff]  ;;  %v11431_v17 = vld [vmem:[%s23035_s8 + $0x98] sm:$0xf0]  ;;  %s23128_s3 = sld [smem:[#allocation56_spill]] }
  0x40   :  { %v406_v11 = vld [vmem:[#allocation1 + $0x9] sm:$0xff]  ;;  %v405_v12 = vld [vmem:[#allocation1] sm:$0xff]  ;;  %888 = vmatpush.bf16.msrb.mxu1 %v11382_v19  ;;  %919 = vmatpush.bf16.msrb.mxu3 %v11430_v42  ;;  %v15004_v7 = vld [vmem:[%s23035_s8 + $0xb4] sm:$0xf]  ;;  %v105_v18 = vrot.slane %v89_v5, 3  ;;  %s23132_s11 = sld [smem:[#allocation57_spill]] }
  0x41   :  { %408 = vst [vmem:[#allocation1] ss:$9 sm:$0xff] %v304_v3  ;;  %944 = vmatpush.bf16.msrb.mxu0 %v11402_v50  ;;  %v11383_v3 = vld [vmem:[%s23035_s8 + $0x38] sm:$0xf0]  ;;  %v11439_v14 = vld [vmem:[%s23035_s8 + $0xa8] sm:$0xf0] }
  0x42   :  { %11348 = vmatmul.msk.bf16.gmra.mxu1 %vm560_vm4, %v406_v11  ;;  %11352 = vmatmul.msk.bf16.gmra.mxu3 %vm560_vm4, %v406_v11  ;;  %410 = vst [vmem:[#allocation1 + $0x1] ss:$9 sm:$0xff] %v307_v6  ;;  %v104_v6 = vrot.slane %v88_v60, 3  ;;  %v14986_v11 = vld [vmem:[%s23035_s8 + $0x24] sm:$0xf]  ;;  %v131_v31 = vsel %vm116_vm1, %v89_v5, %v105_v18  ;;  %v134_v37 = vsel %vm120_vm2, %v89_v5, %v105_v18  ;;  %v90_v45 = vld [vmem:[%s23037_s28 + $0x10] sm:$0xff] }
  0x43   :  { %412 = vst [vmem:[#allocation1 + $0x2] ss:$9 sm:$0xff] %v310_v8  ;;  %v11447_v8 = vld [vmem:[%s23035_s8 + $0xb8] sm:$0xf0]  ;;  %v14984_v22 = vld [vmem:[%s23035_s8 + $0x14] sm:$0xf]  ;;  %v137_v39 = vsel %vm124_vm3, %v89_v5, %v105_v18  ;;  %v16295_v41 = vsel %vm112_vm0, %v89_v5, %v105_v18 }
  0x44   :  { %413 = vst [vmem:[#allocation1 + $0x3] ss:$9 sm:$0xff] %v313_v16  ;;  %889 = vmatpush.bf16.msrb.mxu1 %v11374_v29  ;;  %920 = vmatpush.bf16.msrb.mxu3 %v11422_v57  ;;  %v15000_v16 = vld [vmem:[%s23035_s8 + $0x94] sm:$0xf]  ;;  %v117_v19 = vsel %vm116_vm1, %v88_v60, %v104_v6  ;;  %v121_v21 = vsel %vm120_vm2, %v88_v60, %v104_v6  ;;  %v11367_v23 = vld [vmem:[%s23035_s8 + $0x18] sm:$0xf0] }
  0x45   :  { %415 = vst [vmem:[#allocation1 + $0x4] ss:$9 sm:$0xff] %v316_v9  ;;  %945 = vmatpush.bf16.msrb.mxu0 %v11394_v0  ;;  %v11386_v9 = vor.u32 %v14988_v2, %v11383_v3  ;;  %v125_v24 = vsel %vm124_vm3, %v88_v60, %v104_v6  ;;  %v11434_v25 = vor.u32 %v15000_v16, %v11431_v17  ;;  %v16272_v27 = vrot.slane %v117_v19, 1  ;;  %v11423_v29 = vld [vmem:[%s23035_s8 + $0x88] sm:$0xf0]  ;;  %v93_v3 = vld [vmem:[%s23037_s28 + $0x30] sm:$0xff] }
  0x46   :  { %582 = vmatmul.bf16.gmra.mxu0 %v405_v12  ;;  %417 = vst [vmem:[#allocation1 + $0x5] ss:$9 sm:$0xff] %v319_v10  ;;  %640 = vmatmul.bf16.gmra.mxu2 %v405_v12  ;;  %v11450_v10 = vor.u32 %v15004_v7, %v11447_v8  ;;  %v11375_v12 = vld [vmem:[%s23035_s8 + $0x28] sm:$0xf0]  ;;  %v16270_v26 = vsel %vm112_vm0, %v88_v60, %v104_v6  ;;  %v16280_v30 = vrot.slane %v121_v21, 2  ;;  %v16286_v36 = vrot.slane %v125_v24, 3 }
  0x47   :  { %419 = vst [vmem:[#allocation1 + $0x6] ss:$9 sm:$0xff] %v322_v13  ;;  %v15002_v13 = vld [vmem:[%s23035_s8 + $0xa4] sm:$0xf]  ;;  %v11378_v20 = vor.u32 %v14986_v11, %v11375_v12  ;;  %v11370_v32 = vor.u32 %v14984_v22, %v11367_v23  ;;  %v16297_v42 = vrot.slane %v131_v31, 1  ;;  %v16300_v43 = vrot.slane %v134_v37, 2 }
  0x48   :  { %420 = vst [vmem:[#allocation1 + $0x7] ss:$9 sm:$0xff] %v325_v28  ;;  %890 = vmatpush.bf16.msrb.mxu1 %v11366_v38  ;;  %975 = vmatpush.bf16.msrb.mxu2 %v11450_v10  ;;  %v11442_v15 = vor.u32 %v15002_v13, %v11439_v14  ;;  %v14998_v28 = vld [vmem:[%s23035_s8 + $0x84] sm:$0xf]  ;;  %v11359_v38 = vld [vmem:[%s23035_s8 + $0x8] sm:$0xf0] }
  0x49   :  { %946 = vmatpush.bf16.msrb.mxu0 %v11386_v9  ;;  %v14982_v33 = vld [vmem:[%s23035_s8 + $0x4] sm:$0xf]  ;;  %v11426_v40 = vor.u32 %v14998_v28, %v11423_v29  ;;  %v16306_v46 = vrot.slane %v137_v39, 3  ;;  %v106_v47 = vrot.slane %v90_v45, 3  ;;  %v91_v48 = vld [vmem:[%s23037_s28 + $0x18] sm:$0x77] }
  0x4a   :  { %v11362_v44 = vor.u32 %v14982_v33, %v11359_v38  ;;  %v107_v49 = vrot.slane %v91_v48, 3  ;;  %v15045_v6 = vld [vmem:[%s23035_s8 + $0x1f4] sm:$0xf0]  ;;  %v11563_v7 = vld [vmem:[%s23035_s8 + $0x1e0] sm:$0xf]  ;;  %v109_v9 = vrot.slane %v93_v3, 3 }
  0x4b   :  { %v143_v50 = vsel %vm116_vm1, %v90_v45, %v106_v47  ;;  %v149_v52 = vsel %vm124_vm3, %v90_v45, %v106_v47  ;;  %v16325_v54 = vsel %vm112_vm0, %v90_v45, %v106_v47  ;;  %v15043_v8 = vld [vmem:[%s23035_s8 + $0x1e4] sm:$0xf0]  ;;  %v11555_v14 = vld [vmem:[%s23035_s8 + $0x1d0] sm:$0xf]  ;;  %v94_v17 = vld [vmem:[%s23037_s28 + $0x38] sm:$0xff]  ;;  %s23133_s7 = sld [smem:[#allocation64_spill]] }
  0x4c   :  { %891 = vmatpush.bf16.msrb.mxu1 %v11358_v53  ;;  %976 = vmatpush.bf16.msrb.mxu2 %v11442_v15  ;;  %v92_v53 = vld [vmem:[%s23037_s28 + $0x28] sm:$0xff]  ;;  %v16327_v55 = vrot.slane %v143_v50, 1  ;;  %v155_v57 = vsel %vm116_vm1, %v91_v48, %v107_v49  ;;  %v16332_v60 = vrot.slane %v149_v52, 3  ;;  %v11564_v12 = vor.u32 %v15043_v8, %v11563_v7  ;;  %v15041_v15 = vld [vmem:[%s23035_s8 + $0x1d4] sm:$0xf0]  ;;  %s23135_s0 = sld [smem:[#allocation58_spill]] }
  0x4d   :  { %947 = vmatpush.bf16.msrb.mxu0 %v11378_v20  ;;  %v157_v0 = vrot.slane %v155_v57, 1  ;;  %v176_v19 = vsel %vm116_vm1, %v93_v3, %v109_v9  ;;  %v179_v21 = vsel %vm120_vm2, %v93_v3, %v109_v9  ;;  %v11556_v22 = vor.u32 %v15041_v15, %v11555_v14  ;;  %v11603_v37 = vld [vmem:[%s23035_s8 + $0x230] sm:$0xf]  ;;  %v15053_v38 = vld [vmem:[%s23035_s8 + $0x234] sm:$0xf0]  ;;  %s23162_s29 = sld [smem:[#allocation61_spill]] }
  0x4e   :  { %v110_v28 = vrot.slane %v94_v17, 3  ;;  %v16383_v29 = vsel %vm112_vm0, %v93_v3, %v109_v9  ;;  %v16385_v31 = vrot.slane %v176_v19, 1  ;;  %vm1120_vm5 = vsmask.f32 256 }
  0x4f   :  { %v422_v61 = vld [vmem:[#allocation1 + $0x9] sm:$0xff]  ;;  %v421_v62 = vld [vmem:[#allocation1] sm:$0xff]  ;;  %vm1121_vm6 = vsmask.f32 1284  ;;  %v11604_v39 = vor.u32 %v15053_v38, %v11603_v37  ;;  %vm23021_vm8 = vsmask.f32 2312 }
  0x50   :  { %424 = vst [vmem:[#allocation1] ss:$9 sm:$0xff] %v328_v51  ;;  %977 = vmatpush.bf16.msrb.mxu2 %v11434_v25  ;;  %v146_v51 = vsel %vm120_vm2, %v90_v45, %v106_v47  ;;  %v182_v25 = vsel %vm124_vm3, %v93_v3, %v109_v9  ;;  %vm1122_vm7 = vmor %vm1120_vm5, %vm1121_vm6  ;;  %vm1125_vm10 = vsmask.f32 3340  ;;  %v191_v45 = vsel %vm120_vm2, %v94_v17, %v110_v28  ;;  %v11547_v37 = vld [vmem:[%s23035_s8 + $0x1c0] sm:$0xf] }
  0x51   :  { %426 = vst [vmem:[#allocation1 + $0x1] ss:$9 sm:$0xff] %v331_v56  ;;  %948 = vmatpush.bf16.msrb.mxu0 %v11370_v32  ;;  %v16329_v56 = vrot.slane %v146_v51, 2  ;;  %v16388_v32 = vrot.slane %v179_v21, 2  ;;  %v16391_v33 = vrot.slane %v182_v25, 3  ;;  %vm1124_vm9 = vmor %vm1122_vm7, %vm23021_vm8  ;;  %1634 = vmatpush.bf16.msra.mxu3 %v11604_v39  ;;  %v194_v47 = vsel %vm124_vm3, %v94_v17, %v110_v28 }
  0x52   :  { %11349 = vmatmul.msk.bf16.gmra.mxu1 %vm560_vm4, %v422_v61  ;;  %11353 = vmatmul.msk.bf16.gmra.mxu3 %vm560_vm4, %v422_v61  ;;  %428 = vst [vmem:[#allocation1 + $0x2] ss:$9 sm:$0xff] %v334_v58  ;;  %v158_v61 = vsel %vm120_vm2, %v91_v48, %v107_v49  ;;  %vm1126_vm11 = vmor %vm1124_vm9, %vm1125_vm10  ;;  %vm23020_vm12 = vsmask.f32 4368  ;;  %v16423_v51 = vrot.slane %v194_v47, 3  ;;  %v1156_v7 = vshll.u32 %v16286_v36, 16 }
  0x53   :  { %429 = vst [vmem:[#allocation1 + $0x3] ss:$9 sm:$0xff] %v337_v1  ;;  %v160_v1 = vrot.slane %v158_v61, 2  ;;  %vm1128_vm13 = vmor %vm1126_vm11, %vm23020_vm12  ;;  %vm1129_vm14 = vsmask.f32 5396  ;;  %v1159_v8 = vshrl.u32 %v16286_v36, 16 }
  0x54   :  { %431 = vst [vmem:[#allocation1 + $0x4] ss:$9 sm:$0xff] %v340_v63  ;;  %978 = vmatpush.bf16.msrb.mxu2 %v11426_v40  ;;  %v154_v63 = vsel %vm112_vm0, %v91_v48, %v107_v49  ;;  %v16420_v49 = vrot.slane %v191_v45, 2  ;;  %vm1130_vm15 = vmor %vm1128_vm13, %vm1129_vm14  ;;  %vm23019_vm6 = vsmask.f32 6424  ;;  %v1187_v19 = vshll.u32 %v16306_v46, 16 }
  0x55   :  { %433 = vst [vmem:[#allocation1 + $0x5] ss:$9 sm:$0xff] %v343_v4  ;;  %949 = vmatpush.bf16.msrb.mxu0 %v11362_v44  ;;  %v11571_v4 = vld [vmem:[%s23035_s8 + $0x1f0] sm:$0xf]  ;;  %v188_v44 = vsel %vm116_vm1, %v94_v17, %v110_v28  ;;  %vm1132_vm7 = vmor %vm1130_vm15, %vm23019_vm6  ;;  %vm1133_vm9 = vsmask.f32 7452 }
  0x56   :  { %587 = vmatmul.bf16.gmra.mxu0 %v421_v62  ;;  %645 = vmatmul.bf16.gmra.mxu2 %v421_v62  ;;  %v108_v62 = vrot.slane %v92_v53, 3  ;;  %v11572_v5 = vor.u32 %v15045_v6, %v11571_v4  ;;  %v16417_v48 = vrot.slane %v188_v44, 1  ;;  %vm16437_vm10 = vmor %vm1132_vm7, %vm1133_vm9  ;;  %v1143_v4 = vshrl.u32 %v16272_v27, 16  ;;  %v15039_v38 = vld [vmem:[%s23035_s8 + $0x1c4] sm:$0xf0] }
  0x57   :  { %v1148_v6 = vshll.u32 %v16280_v30, 16  ;;  %v1197_v44 = vshrl.u32 %v16325_v54, 16  ;;  %v11595_v45 = vld [vmem:[%s23035_s8 + $0x220] sm:$0xf]  ;;  %v15051_v47 = vld [vmem:[%s23035_s8 + $0x224] sm:$0xf0]  ;;  %vm20324_vm6 = vmand %vm112_vm0, %vm1120_vm5 }
  0x58   :  { %v16341_v2 = vsel %vm112_vm0, %v92_v53, %v108_v62  ;;  %v164_v10 = vsel %vm116_vm1, %v92_v53, %v108_v62  ;;  %v167_v11 = vsel %vm120_vm2, %v92_v53, %v108_v62  ;;  %1601 = vmatpush.bf16.msra.mxu1 %v11572_v5  ;;  %v170_v13 = vsel %vm124_vm3, %v92_v53, %v108_v62  ;;  %v1003_v62 = vld [vmem:[%s23037_s28 + $0x18] sm:$0xff] }
  0x59   :  { %v16370_v16 = vrot.slane %v164_v10, 1  ;;  %v16375_v18 = vrot.slane %v167_v11, 2  ;;  %v16378_v20 = vrot.slane %v170_v13, 3  ;;  %v1151_v5 = vshrl.u32 %v16280_v30, 16 }
  0x5a   :  { %v1171_v11 = vshll.u32 %v16297_v42, 16  ;;  %v1179_v13 = vshll.u32 %v16300_v43, 16  ;;  %vm3922_vm11 = vcmask 490496   ;;  %vm6483_vm13 = vcmask 1046528  }
  0x5b   :  { %vm6476_vm14 = vcmask 244736   ;;  %vm6636_vm15 = vcmask 1044484   ;;  %vm6643_vm7 = vcmask 1045509   ;;  %vm6626_vm9 = vcmask 1041408  }
  0x5c   :  { %v435_v34 = vld [vmem:[#allocation1 + $0x9] sm:$0xff]  ;;  %v434_v35 = vld [vmem:[#allocation1] sm:$0xff]  ;;  %1602 = vmatpush.bf16.msra.mxu1 %v11564_v12 }
  0x5d   :  { %685 = vst [vmem:[#allocation1] ss:$9 sm:$0xff] %v16270_v26 }
  0x5e   :  { %688 = vst [vmem:[#allocation1 + $0x1] ss:$9 sm:$0xff] %v16272_v27 }
  0x5f   :  { %691 = vst [vmem:[#allocation1 + $0x2] ss:$9 sm:$0xff] %v16280_v30  ;;  %v1150_v30 = vsel %vm16437_vm10, %v1143_v4, %v1148_v6  ;;  %v11548_v4 = vor.u32 %v15039_v38, %v11547_v37 }
  0x60   :  { %694 = vst [vmem:[#allocation1 + $0x3] ss:$9 sm:$0xff] %v16286_v36  ;;  %1603 = vmatpush.bf16.msra.mxu1 %v11556_v22  ;;  %v1174_v36 = vshrl.u32 %v16297_v42, 16  ;;  %v1190_v22 = vshrl.u32 %v16306_v46, 16 }
  0x61   :  { %696 = vst [vmem:[#allocation1 + $0x4] ss:$9 sm:$0xff] %v16295_v41 }
  0x62   :  { %11350 = vmatmul.msk.bf16.gmra.mxu1 %vm560_vm4, %v435_v34  ;;  %11354 = vmatmul.msk.bf16.gmra.mxu3 %vm560_vm4, %v435_v34  ;;  %699 = vst [vmem:[#allocation1 + $0x5] ss:$9 sm:$0xff] %v16297_v42  ;;  %v16396_v34 = vsel %vm112_vm0, %v94_v17, %v110_v28  ;;  %v1158_v17 = vsel %vm16437_vm10, %v1151_v5, %v1156_v7 }
  0x63   :  { %702 = vst [vmem:[#allocation1 + $0x6] ss:$9 sm:$0xff] %v16300_v43  ;;  %v1181_v28 = vsel %vm16437_vm10, %v1174_v36, %v1179_v13  ;;  %v11531_v36 = vld [vmem:[%s23035_s8 + $0x1a0] sm:$0xf]  ;;  %v15035_v13 = vld [vmem:[%s23035_s8 + $0x1a4] sm:$0xf0] }
  0x64   :  { %705 = vst [vmem:[#allocation1 + $0x7] ss:$9 sm:$0xff] %v16306_v46  ;;  %v15044_v46 = vld [vmem:[%s23035_s8 + $0x1f4] sm:$0xf]  ;;  %1604 = vmatpush.bf16.msra.mxu1 %v11548_v4 }
  0x66   :  { %592 = vmatmul.bf16.gmra.mxu0 %v434_v35  ;;  %650 = vmatmul.bf16.gmra.mxu2 %v434_v35  ;;  %v95_v35 = vld [vmem:[%s23037_s28 + $0x40] sm:$0x77] }
  0x67   :  { %v111_v40 = vrot.slane %v95_v35, 3 }
  0x69   :  { %v200_v50 = vsel %vm116_vm1, %v95_v35, %v111_v40  ;;  %v203_v52 = vsel %vm120_vm2, %v95_v35, %v111_v40 }
  0x6a   :  { %v205_v61 = vrot.slane %v203_v52, 2 }
  0x6b   :  { %v706_v58 = vld [vmem:[#allocation1] sm:$0xff]  ;;  %v707_v59 = vld [vmem:[#allocation1 + $0x9] sm:$0xff] }
  0x6c   :  { %708 = vst [vmem:[#allocation1] ss:$9 sm:$0xff] %v16325_v54 }
  0x6d   :  { %710 = vst [vmem:[#allocation1 + $0x1] ss:$9 sm:$0xff] %v16327_v55 }
  0x6e   :  { %712 = vst [vmem:[#allocation1 + $0x2] ss:$9 sm:$0xff] %v16329_v56 }
  0x6f   :  { %714 = vst [vmem:[#allocation1 + $0x3] ss:$9 sm:$0xff] %v16332_v60 }
  0x70   :  { %715 = vst [vmem:[#allocation1 + $0x4] ss:$9 sm:$0xff] %v154_v63  ;;  %v1019_v63 = vrot.slane %v1003_v62, 3 }
  0x71   :  { %717 = vst [vmem:[#allocation1 + $0x5] ss:$9 sm:$0xff] %v157_v0  ;;  %v1135_v0 = vshrl.u32 %v16270_v26, 16  ;;  %v1163_v26 = vshll.u32 %v16295_v41, 16 }
  0x72   :  { %892 = vmatmul.bf16.vlgmr.msrb.gmra.mxu1 %v706_v58  ;;  %11451 = vmatmul.msk.bf16.vlgmr.msrb.gmra.mxu3 %vm560_vm4, %v707_v59  ;;  %719 = vst [vmem:[#allocation1 + $0x6] ss:$9 sm:$0xff] %v160_v1  ;;  %v1140_v1 = vshll.u32 %v16272_v27, 16  ;;  %v16449_v9 = vsel %vm116_vm1, %v1003_v62, %v1019_v63  ;;  %v1166_v27 = vshrl.u32 %v16295_v41, 16  ;;  %v16456_v12 = vsel %vm120_vm2, %v1003_v62, %v1019_v63 }
  0x73   :  { %720 = vst [vmem:[#allocation1 + $0x7] ss:$9 sm:$0xff] %v16341_v2  ;;  %v1182_v41 = vshrl.u32 %v16300_v43, 16  ;;  %v16471_v21 = vsel %vm124_vm3, %v1003_v62, %v1019_v63  ;;  %v1165_v42 = vsel %vm16437_vm10, %v1159_v8, %v1163_v26  ;;  %v1068_v43 = vrot.slane %v16456_v12, 2  ;;  %v15040_v26 = vld [vmem:[%s23035_s8 + $0x1d4] sm:$0xf] }
  0x74   :  { %v1142_v10 = vsel %vm16437_vm10, %v1135_v0, %v1140_v1  ;;  %v1173_v25 = vsel %vm16437_vm10, %v1166_v27, %v1171_v11  ;;  %v1071_v39 = vrot.slane %v16471_v21, 3  ;;  %v15037_v0 = vld [vmem:[%s23035_s8 + $0x1b4] sm:$0xf0]  ;;  %v11596_v8 = vor.u32 %v15051_v47, %v11595_v45  ;;  %v11557_v27 = vld [vmem:[%s23035_s8 + $0x1d8] sm:$0xf0] }
  0x75   :  { %v15052_v11 = vld [vmem:[%s23035_s8 + $0x234] sm:$0xf]  ;;  %v11605_v12 = vld [vmem:[%s23035_s8 + $0x238] sm:$0xf0]  ;;  %v15047_v21 = vld [vmem:[%s23035_s8 + $0x204] sm:$0xf0] }
  0x76   :  { %950 = vmatmul.bf16.vlgmr.msrb.gmra.mxu0 %v706_v58  ;;  %11455 = vmatmul.msk.bf16.vlgmr.msrb.gmra.mxu2 %vm560_vm4, %v707_v59  ;;  %v199_v58 = vsel %vm112_vm0, %v95_v35, %v111_v40  ;;  %v202_v59 = vrot.slane %v200_v50, 1  ;;  %v11573_v35 = vld [vmem:[%s23035_s8 + $0x1f8] sm:$0xf0]  ;;  %v1189_v40 = vsel %vm16437_vm10, %v1182_v41, %v1187_v19  ;;  %v16507_v50 = vsel %vm112_vm0, %v1003_v62, %v1019_v63  ;;  %v15038_v45 = vld [vmem:[%s23035_s8 + $0x1c4] sm:$0xf] }
  0x77   :  { %v1218_v62 = vshll.u32 %v16332_v60, 16  ;;  %v1221_v63 = vshrl.u32 %v16332_v60, 16  ;;  %v11576_v1 = vor.u32 %v15044_v46, %v11573_v35  ;;  %v15049_v60 = vld [vmem:[%s23035_s8 + $0x214] sm:$0xf0]  ;;  %v1225_v6 = vshll.u32 %v16507_v50, 16  ;;  %1635 = vmatpush.bf16.msra.mxu3 %v11596_v8 }
  0x78   :  { %v1228_v5 = vshrl.u32 %v16507_v50, 16  ;;  %v1241_v46 = vshll.u32 %v1068_v43, 16  ;;  %v1244_v35 = vshrl.u32 %v1068_v43, 16  ;;  %v1249_v37 = vshll.u32 %v1071_v39, 16  ;;  %v11549_v47 = vld [vmem:[%s23035_s8 + $0x1c8] sm:$0xf0] }
  0x79   :  { %1659 = vmatpush.bf16.msra.mxu0 %v11576_v1  ;;  %v1252_v43 = vshrl.u32 %v16341_v2, 16  ;;  %v1257_v39 = vshll.u32 %v16370_v16, 16  ;;  %v15048_v2 = vld [vmem:[%s23035_s8 + $0x214] sm:$0xf]  ;;  %v11541_v1 = vld [vmem:[%s23035_s8 + $0x1b8] sm:$0xf0] }
  0x7a   :  { %v721_v23 = vld [vmem:[#allocation1] sm:$0xff]  ;;  %v722_v24 = vld [vmem:[#allocation1 + $0x9] sm:$0xff]  ;;  %v1251_v4 = vsel %vm16437_vm10, %v1244_v35, %v1249_v37  ;;  %v1260_v8 = vshrl.u32 %v16370_v16, 16  ;;  %v1299_v35 = vshrl.u32 %v16388_v32, 16  ;;  %v1304_v37 = vshll.u32 %v16391_v33, 16 }
  0x7b   :  { %724 = vst [vmem:[#allocation1] ss:$9 sm:$0xff] %v16370_v16 }
  0x7c   :  { %726 = vst [vmem:[#allocation1 + $0x1] ss:$9 sm:$0xff] %v16375_v18 }
  0x7d   :  { %728 = vst [vmem:[#allocation1 + $0x2] ss:$9 sm:$0xff] %v16378_v20 }
  0x7e   :  { %729 = vst [vmem:[#allocation1 + $0x3] ss:$9 sm:$0xff] %v16383_v29 }
  0x7f   :  { %731 = vst [vmem:[#allocation1 + $0x4] ss:$9 sm:$0xff] %v16385_v31 }
  0x80   :  { %733 = vst [vmem:[#allocation1 + $0x5] ss:$9 sm:$0xff] %v16388_v32 }
  0x81   :  { %735 = vst [vmem:[#allocation1 + $0x6] ss:$9 sm:$0xff] %v16391_v33 }
  0x82   :  { %897 = vmatmul.bf16.gmra.mxu1 %v721_v23  ;;  %11452 = vmatmul.msk.bf16.gmra.mxu3 %vm560_vm4, %v722_v24  ;;  %736 = vst [vmem:[#allocation1 + $0x7] ss:$9 sm:$0xff] %v16396_v34 }
  0x86   :  { %955 = vmatmul.bf16.gmra.mxu0 %v721_v23  ;;  %11456 = vmatmul.msk.bf16.gmra.mxu2 %vm560_vm4, %v722_v24  ;;  %v1194_v23 = vshll.u32 %v16325_v54, 16  ;;  %v1065_v24 = vrot.slane %v16449_v9, 1  ;;  %v15042_v54 = vld [vmem:[%s23035_s8 + $0x1e4] sm:$0xf] }
  0x88   :  { %v1196_v52 = vsel %vm16437_vm10, %v1190_v22, %v1194_v23  ;;  %v1233_v7 = vshll.u32 %v1065_v24, 16  ;;  %v15050_v22 = vld [vmem:[%s23035_s8 + $0x224] sm:$0xf]  ;;  %v11597_v23 = vld [vmem:[%s23035_s8 + $0x228] sm:$0xf0] }
  0x89   :  { %v737_v53 = vld [vmem:[#allocation1] sm:$0xff]  ;;  %v738_v57 = vld [vmem:[#allocation1 + $0x9] sm:$0xff] }
  0x8a   :  { %740 = vst [vmem:[#allocation1] ss:$9 sm:$0xff] %v16417_v48 }
  0x8b   :  { %742 = vst [vmem:[#allocation1 + $0x1] ss:$9 sm:$0xff] %v16420_v49 }
  0x8c   :  { %744 = vst [vmem:[#allocation1 + $0x2] ss:$9 sm:$0xff] %v16423_v51 }
  0x8d   :  { %745 = vst [vmem:[#allocation1 + $0x3] ss:$9 sm:$0xff] %v199_v58  ;;  %v11565_v58 = vld [vmem:[%s23035_s8 + $0x1e8] sm:$0xf0] }
  0x8e   :  { %747 = vst [vmem:[#allocation1 + $0x4] ss:$9 sm:$0xff] %v202_v59  ;;  %v1210_v59 = vshll.u32 %v16329_v56, 16  ;;  %v11568_v9 = vor.u32 %v15042_v54, %v11565_v58  ;;  %v11600_v54 = vor.u32 %v15050_v22, %v11597_v23  ;;  %v1227_v58 = vsel %vm16437_vm10, %v1221_v63, %v1225_v6 }
  0x8f   :  { %749 = vst [vmem:[#allocation1 + $0x5] ss:$9 sm:$0xff] %v205_v61  ;;  %v1213_v61 = vshrl.u32 %v16329_v56, 16  ;;  %v11587_v56 = vld [vmem:[%s23035_s8 + $0x210] sm:$0xf]  ;;  %v11552_v63 = vor.u32 %v15038_v45, %v11549_v47  ;;  %v1259_v6 = vsel %vm16437_vm10, %v1252_v43, %v1257_v39  ;;  %v1288_v22 = vshll.u32 %v16385_v31, 16 }
  0x90   :  { %1660 = vmatpush.bf16.msra.mxu0 %v11568_v9  ;;  %v1314_v43 = vshrl.u32 %v16396_v34, 16  ;;  %v1319_v39 = vshll.u32 %v16417_v48, 16 }
  0x91   :  { %v1220_v38 = vsel %vm16437_vm10, %v1213_v61, %v1218_v62  ;;  %v1235_v62 = vsel %vm16437_vm10, %v1228_v5, %v1233_v7  ;;  %v15046_v5 = vld [vmem:[%s23035_s8 + $0x204] sm:$0xf]  ;;  %v11581_v7 = vld [vmem:[%s23035_s8 + $0x208] sm:$0xf0] }
  0x92   :  { %902 = vmatmul.bf16.gmra.mxu1 %v737_v53  ;;  %11453 = vmatmul.msk.bf16.gmra.mxu3 %vm560_vm4, %v738_v57 }
  0x96   :  { %v16462_v14 = vld [vmem:[#allocation1] sm:$0xff]  ;;  %v16464_v15 = vld [vmem:[#allocation1 + $0x9] sm:$0xff]  ;;  %960 = vmatmul.bf16.gmra.mxu0 %v737_v53  ;;  %11457 = vmatmul.msk.bf16.gmra.mxu2 %vm560_vm4, %v738_v57  ;;  %v1202_v53 = vshll.u32 %v16327_v55, 16  ;;  %v1205_v57 = vshrl.u32 %v16327_v55, 16 }
  0x97   :  { %1395 = vst [vmem:[#allocation1] ss:$9 sm:$0xff] %v1142_v10  ;;  %v11539_v55 = vld [vmem:[%s23035_s8 + $0x1b0] sm:$0xf] }
  0x98   :  { %1398 = vst [vmem:[#allocation1 + $0x1] ss:$9 sm:$0xff] %v1150_v30  ;;  %v11540_v10 = vor.u32 %v15037_v0, %v11539_v55  ;;  %v11588_v30 = vor.u32 %v15049_v60, %v11587_v56  ;;  %v1204_v41 = vsel %vm16437_vm10, %v1197_v44, %v1202_v53  ;;  %v1212_v19 = vsel %vm16437_vm10, %v1205_v57, %v1210_v59  ;;  %v15033_v57 = vld [vmem:[%s23035_s8 + $0x194] sm:$0xf0]  ;;  %v11589_v59 = vld [vmem:[%s23035_s8 + $0x218] sm:$0xf0] }
  0x99   :  { %1401 = vst [vmem:[#allocation1 + $0x2] ss:$9 sm:$0xff] %v1158_v17  ;;  %v11579_v17 = vld [vmem:[%s23035_s8 + $0x200] sm:$0xf]  ;;  %v11532_v44 = vor.u32 %v15035_v13, %v11531_v36  ;;  %v15036_v0 = vld [vmem:[%s23035_s8 + $0x1b4] sm:$0xf]  ;;  %v11592_v60 = vor.u32 %v15048_v2, %v11589_v59 }
  0x9a   :  { %1404 = vst [vmem:[#allocation1 + $0x3] ss:$9 sm:$0xff] %v1165_v42  ;;  %v11608_v42 = vor.u32 %v15052_v11, %v11605_v12  ;;  %1605 = vmatpush.bf16.msra.mxu1 %v11540_v10  ;;  %1636 = vmatpush.bf16.msra.mxu3 %v11588_v30  ;;  %v11580_v53 = vor.u32 %v15047_v21, %v11579_v17  ;;  %v15031_v56 = vld [vmem:[%s23035_s8 + $0x184] sm:$0xf0]  ;;  %v11533_v11 = vld [vmem:[%s23035_s8 + $0x1a8] sm:$0xf0] }
  0x9b   :  { %1407 = vst [vmem:[#allocation1 + $0x4] ss:$9 sm:$0xff] %v1173_v25  ;;  %v16577_v25 = vld [vmem:[%s23037_s28 + $0x40] sm:$0xff]  ;;  %v11544_v9 = vor.u32 %v15036_v0, %v11541_v1  ;;  %v11584_v12 = vor.u32 %v15046_v5, %v11581_v7  ;;  %v1268_v13 = vshrl.u32 %v16375_v18, 16  ;;  %v1273_v17 = vshll.u32 %v16378_v20, 16 }
  0x9c   :  { %1410 = vst [vmem:[#allocation1 + $0x5] ss:$9 sm:$0xff] %v1181_v28  ;;  %v1236_v28 = vshrl.u32 %v1065_v24, 16  ;;  %v11523_v24 = vld [vmem:[%s23035_s8 + $0x190] sm:$0xf]  ;;  %1692 = vmatpush.bf16.msra.mxu2 %v11608_v42  ;;  %v16609_v61 = vrot.slane %v16577_v25, 3 }
  0x9d   :  { %1413 = vst [vmem:[#allocation1 + $0x6] ss:$9 sm:$0xff] %v1189_v40  ;;  %v11560_v40 = vor.u32 %v15040_v26, %v11557_v27  ;;  %v11524_v55 = vor.u32 %v15033_v57, %v11523_v24  ;;  %v1265_v26 = vshll.u32 %v16375_v18, 16  ;;  %v15034_v27 = vld [vmem:[%s23035_s8 + $0x1a4] sm:$0xf]  ;;  %v1280_v21 = vshll.u32 %v16383_v29, 16 }
  0x9e   :  { %1416 = vst [vmem:[#allocation1 + $0x7] ss:$9 sm:$0xff] %v1196_v52  ;;  %1606 = vmatpush.bf16.msra.mxu1 %v11532_v44  ;;  %1637 = vmatpush.bf16.msra.mxu3 %v11580_v53  ;;  %v16650_v16 = vsel %vm116_vm1, %v16577_v25, %v16609_v61  ;;  %v16655_v30 = vsel %vm120_vm2, %v16577_v25, %v16609_v61  ;;  %v1283_v42 = vshrl.u32 %v16383_v29, 16  ;;  %v1291_v18 = vshrl.u32 %v16385_v31, 16  ;;  %v11525_v29 = vld [vmem:[%s23035_s8 + $0x198] sm:$0xf0] }
  0x9f   :  { %1661 = vmatpush.bf16.msra.mxu0 %v11560_v40  ;;  %v16660_v36 = vsel %vm124_vm3, %v16577_v25, %v16609_v61  ;;  %v11536_v23 = vor.u32 %v15034_v27, %v11533_v11  ;;  %v1311_v40 = vshll.u32 %v16396_v34, 16  ;;  %v1113_v31 = vrot.slane %v16650_v16, 1 }
  0xa0   :  { %1693 = vmatpush.bf16.msra.mxu2 %v11600_v54  ;;  %v1116_v44 = vrot.slane %v16655_v30, 2  ;;  %v1119_v45 = vrot.slane %v16660_v36, 3  ;;  %v1275_v47 = vsel %vm16437_vm10, %v1268_v13, %v1273_v17  ;;  %v16708_v54 = vld [vmem:[%s23036_s6 + $0x8] sm:$0xff]  ;;  %v16713_v2 = vsel %vm112_vm0, %v16577_v25, %v16609_v61 }
  0xa1   :  { %v1290_v34 = vsel %vm16437_vm10, %v1283_v42, %v1288_v22  ;;  %v1306_v25 = vsel %vm16437_vm10, %v1299_v35, %v1304_v37  ;;  %v1327_v0 = vshll.u32 %v16420_v49, 16  ;;  %v1330_v1 = vshrl.u32 %v16420_v49, 16 }
  0xa2   :  { %907 = vmatmul.bf16.gmra.mxu1 %v16462_v14  ;;  %11454 = vmatmul.msk.bf16.gmra.mxu3 %vm560_vm4, %v16464_v15  ;;  %v1342_v5 = vshll.u32 %v16713_v2, 16  ;;  %v1345_v7 = vshrl.u32 %v16713_v2, 16  ;;  %v16778_v36 = vshll.u32 %v1116_v44, 16  ;;  %v16792_v42 = vshll.u32 %v1119_v45, 16  ;;  %v11761_v45 = vld [vmem:[%s23035_s8 + $0x2f0] sm:$0xf] }
  0xa3   :  { %1662 = vmatpush.bf16.msra.mxu0 %v11552_v63  ;;  %1607 = vmatpush.bf16.msra.mxu1 %v11524_v55  ;;  %v1322_v55 = vshrl.u32 %v16417_v48, 16  ;;  %v1335_v48 = vshll.u32 %v16423_v51, 16 }
  0xa4   :  { %1694 = vmatpush.bf16.msra.mxu2 %v11592_v60  ;;  %v1321_v60 = vsel %vm16437_vm10, %v1314_v43, %v1319_v39  ;;  %v15065_v43 = vld [vmem:[%s23035_s8 + $0x294] sm:$0xf0] }
  0xa5   :  { %v16592_v50 = vld [vmem:[#allocation1] sm:$0xff]  ;;  %v16594_v52 = vld [vmem:[#allocation1 + $0x9] sm:$0xff] }
  0xa6   :  { %1420 = vst [vmem:[#allocation1] ss:$9 sm:$0xff] %v1204_v41  ;;  %965 = vmatmul.bf16.gmra.mxu0 %v16462_v14  ;;  %11458 = vmatmul.msk.bf16.gmra.mxu2 %vm560_vm4, %v16464_v15  ;;  %v1243_v14 = vsel %vm16437_vm10, %v1236_v28, %v1241_v46  ;;  %v11515_v15 = vld [vmem:[%s23035_s8 + $0x180] sm:$0xf]  ;;  %v1276_v41 = vshrl.u32 %v16378_v20, 16  ;;  %v1267_v28 = vsel %vm16437_vm10, %v1260_v8, %v1265_v26  ;;  %v1296_v46 = vshll.u32 %v16388_v32, 16 }
  0xa7   :  { %1422 = vst [vmem:[#allocation1 + $0x1] ss:$9 sm:$0xff] %v1212_v19  ;;  %v11516_v10 = vor.u32 %v15031_v56, %v11515_v15  ;;  %1663 = vmatpush.bf16.msra.mxu0 %v11544_v9  ;;  %v15032_v20 = vld [vmem:[%s23035_s8 + $0x194] sm:$0xf]  ;;  %v16694_v32 = vld [vmem:[%s23036_s6] sm:$0xff]  ;;  %v16734_v15 = vrot.slane %v16708_v54, 3 }
  0xa8   :  { %1424 = vst [vmem:[#allocation1 + $0x2] ss:$9 sm:$0xff] %v1220_v38  ;;  %1695 = vmatpush.bf16.msra.mxu2 %v11584_v12  ;;  %v1307_v38 = vshrl.u32 %v16391_v33, 16  ;;  %v1282_v24 = vsel %vm16437_vm10, %v1276_v41, %v1280_v21  ;;  %v1298_v63 = vsel %vm16437_vm10, %v1291_v18, %v1296_v46  ;;  %v16746_v8 = vshll.u32 %v1113_v31, 16  ;;  %v11729_v9 = vld [vmem:[%s23035_s8 + $0x2b0] sm:$0xf] }
  0xa9   :  { %1426 = vst [vmem:[#allocation1 + $0x3] ss:$9 sm:$0xff] %v1227_v58  ;;  %1608 = vmatpush.bf16.msra.mxu1 %v11516_v10  ;;  %v11528_v58 = vor.u32 %v15032_v20, %v11525_v29  ;;  %v16748_v26 = vshrl.u32 %v1113_v31, 16  ;;  %v16759_v10 = vld [vmem:[%s23036_s6 + $0x10] sm:$0xff]  ;;  %v16774_v16 = vsel %vm116_vm1, %v16708_v54, %v16734_v15  ;;  %v16783_v13 = vsel %vm120_vm2, %v16708_v54, %v16734_v15  ;;  %v15067_v18 = vld [vmem:[%s23035_s8 + $0x2a4] sm:$0xf0] }
  0xaa   :  { %1428 = vst [vmem:[#allocation1 + $0x4] ss:$9 sm:$0xff] %v1235_v62  ;;  %v15030_v62 = vld [vmem:[%s23035_s8 + $0x184] sm:$0xf]  ;;  %v1313_v61 = vsel %vm16437_vm10, %v1307_v38, %v1311_v40  ;;  %v16790_v21 = vshrl.u32 %v1116_v44, 16  ;;  %v1774_v37 = vrot.slane %v16774_v16, 1  ;;  %v16814_v40 = vsel %vm124_vm3, %v16708_v54, %v16734_v15 }
  0xab   :  { %1430 = vst [vmem:[#allocation1 + $0x5] ss:$9 sm:$0xff] %v1243_v14  ;;  %1664 = vmatpush.bf16.msra.mxu0 %v11536_v23  ;;  %v11517_v14 = vld [vmem:[%s23035_s8 + $0x188] sm:$0xf0]  ;;  %v1777_v38 = vrot.slane %v16783_v13, 2  ;;  %v1360_v2 = vsel %vm16437_vm10, %v16748_v26, %v16778_v36  ;;  %v16945_v16 = vld [vmem:[%s23036_s6 + $0x18] sm:$0xff] }
  0xac   :  { %1432 = vst [vmem:[#allocation1 + $0x6] ss:$9 sm:$0xff] %v1251_v4  ;;  %v1749_v4 = vrot.slane %v16694_v32, 3  ;;  %v11520_v49 = vor.u32 %v15030_v62, %v11517_v14  ;;  %v16950_v13 = vld [vmem:[%s23036_s6 + $0x28] sm:$0xff] }
  0xad   :  { %1434 = vst [vmem:[#allocation1 + $0x7] ss:$9 sm:$0xff] %v1259_v6  ;;  %v1338_v6 = vshrl.u32 %v16423_v51, 16  ;;  %v15069_v51 = vld [vmem:[%s23035_s8 + $0x2b4] sm:$0xf0] }
  0xae   :  { %v1760_v27 = vsel %vm116_vm1, %v16694_v32, %v1749_v4  ;;  %v16765_v11 = vsel %vm120_vm2, %v16694_v32, %v1749_v4  ;;  %v16769_v12 = vsel %vm124_vm3, %v16694_v32, %v1749_v4  ;;  %v11730_v23 = vor.u32 %v15069_v51, %v11729_v9  ;;  %v11753_v9 = vld [vmem:[%s23035_s8 + $0x2e0] sm:$0xf]  ;;  %v15075_v51 = vld [vmem:[%s23035_s8 + $0x2e4] sm:$0xf0] }
  0xaf   :  { %v16665_v19 = vpop.f32.mrf.mxu1  ;;  %1665 = vmatpush.bf16.msra.mxu0 %v11528_v58  ;;  %v16805_v46 = vsel %vm112_vm0, %v16694_v32, %v1749_v4  ;;  %v1762_v20 = vrot.slane %v1760_v27, 1  ;;  %v1765_v29 = vrot.slane %v16765_v11, 2  ;;  %v1768_v35 = vrot.slane %v16769_v12, 3  ;;  %v15068_v32 = vld [vmem:[%s23035_s8 + $0x2b4] sm:$0xf] }
  0xb0   :  { %2319 = vmatpush.bf16.msrb.mxu1 %v11730_v23  ;;  %v11731_v58 = vld [vmem:[%s23035_s8 + $0x2b8] sm:$0xf0]  ;;  %v11754_v27 = vor.u32 %v15075_v51, %v11753_v9  ;;  %v15066_v11 = vld [vmem:[%s23035_s8 + $0x2a4] sm:$0xf]  ;;  %v11723_v12 = vld [vmem:[%s23035_s8 + $0x2a8] sm:$0xf0] }
  0xb1   :  { %v16841_v62 = vshll.u32 %v1762_v20, 16  ;;  %v16893_v26 = vshll.u32 %v1768_v35, 16  ;;  %v1877_v36 = vshrl.u32 %v1768_v35, 16  ;;  %v11726_v23 = vor.u32 %v15066_v11, %v11723_v12  ;;  %v15061_v35 = vld [vmem:[%s23035_s8 + $0x274] sm:$0xf0] }
  0xb2   :  { %11609 = vmatmul.msk.bf16.vlgmr.msra.gmra.mxu3 %vm560_vm4, %v16594_v52  ;;  %1609 = vmatmul.bf16.vlgmr.msra.gmra.mxu1 %v16592_v50 }
  0xb3   :  { %v578_v33 = vpop.f32.mrf.mxu0  ;;  %1666 = vmatpush.bf16.msra.mxu0 %v11520_v49  ;;  %v1352_v49 = vsel %vm16437_vm10, %v1345_v7, %v16746_v8  ;;  %v1368_v7 = vsel %vm16437_vm10, %v16790_v21, %v16792_v42  ;;  %v1771_v21 = vsel %vm112_vm0, %v16708_v54, %v16734_v15  ;;  %v15064_v54 = vld [vmem:[%s23035_s8 + $0x294] sm:$0xf]  ;;  %v11697_v15 = vld [vmem:[%s23035_s8 + $0x270] sm:$0xf] }
  0xb4   :  { %v16701_v53 = vld [vmem:[#allocation1] sm:$0xff]  ;;  %v16703_v57 = vld [vmem:[#allocation1 + $0x9] sm:$0xff]  ;;  %v16786_v17 = vadd.f32 %v16665_v19, %v578_v33  ;;  %v16801_v19 = vrot.slane %v16759_v10, 3  ;;  %v1329_v33 = vsel %vm16437_vm10, %v1322_v55, %v1327_v0  ;;  %v16851_v0 = vshrl.u32 %v1762_v20, 16 }
  0xb5   :  { %1438 = vst [vmem:[#allocation1] ss:$9 sm:$0xff] %v1267_v28  ;;  %v665_v59 = vpop.f32.mrf.mxu3  ;;  %v11721_v28 = vld [vmem:[%s23035_s8 + $0x2a0] sm:$0xf] }
  0xb6   :  { %1440 = vst [vmem:[#allocation1 + $0x1] ss:$9 sm:$0xff] %v1275_v47  ;;  %11613 = vmatmul.msk.bf16.vlgmr.msra.gmra.mxu2 %vm560_vm4, %v16594_v52  ;;  %1667 = vmatmul.bf16.vlgmr.msra.gmra.mxu0 %v16592_v50  ;;  %v11722_v44 = vor.u32 %v15067_v18, %v11721_v28  ;;  %v15077_v47 = vld [vmem:[%s23035_s8 + $0x2f4] sm:$0xf0]  ;;  %v1337_v50 = vsel %vm16437_vm10, %v1330_v1, %v1335_v48  ;;  %v16853_v1 = vshll.u32 %v1765_v29, 16 }
  0xb7   :  { %1442 = vst [vmem:[#allocation1 + $0x2] ss:$9 sm:$0xff] %v1282_v24  ;;  %v16736_v56 = vpop.f32.mrf.mxu1  ;;  %v11713_v24 = vld [vmem:[%s23035_s8 + $0x290] sm:$0xf]  ;;  %v11762_v39 = vor.u32 %v15077_v47, %v11761_v45  ;;  %v11705_v48 = vld [vmem:[%s23035_s8 + $0x280] sm:$0xf] }
  0xb8   :  { %1444 = vst [vmem:[#allocation1 + $0x3] ss:$9 sm:$0xff] %v1290_v34  ;;  %v1780_v34 = vrot.slane %v16814_v40, 3  ;;  %2320 = vmatpush.bf16.msrb.mxu1 %v11722_v44  ;;  %v11745_v28 = vld [vmem:[%s23035_s8 + $0x2d0] sm:$0xf]  ;;  %v1881_v44 = vshll.u32 %v1771_v21, 16  ;;  %v1868_v51 = vsel %vm16437_vm10, %v16851_v0, %v16853_v1 }
  0xb9   :  { %1446 = vst [vmem:[#allocation1 + $0x4] ss:$9 sm:$0xff] %v1298_v63  ;;  %v636_v52 = vpop.f32.mrf.mxu2  ;;  %v11734_v63 = vor.u32 %v15068_v32, %v11731_v58  ;;  %2352 = vmatpush.bf16.msrb.mxu3 %v11762_v39  ;;  %v15073_v18 = vld [vmem:[%s23035_s8 + $0x2d4] sm:$0xf0]  ;;  %v1884_v45 = vshrl.u32 %v1771_v21, 16  ;;  %v1889_v47 = vshll.u32 %v1774_v37, 16 }
  0xba   :  { %1448 = vst [vmem:[#allocation1 + $0x5] ss:$9 sm:$0xff] %v1306_v25  ;;  %v16788_v41 = vadd.f32 %v665_v59, %v636_v52  ;;  %v1853_v59 = vshrl.u32 %v16805_v46, 16  ;;  %v1344_v25 = vsel %vm16437_vm10, %v1338_v6, %v1342_v5  ;;  %v15063_v6 = vld [vmem:[%s23035_s8 + $0x284] sm:$0xf0]  ;;  %v11714_v52 = vor.u32 %v15065_v43, %v11713_v24 }
  0xbb   :  { %1450 = vst [vmem:[#allocation1 + $0x6] ss:$9 sm:$0xff] %v1313_v61  ;;  %v16776_v30 = vpop.f32.mrf.mxu0  ;;  %2377 = vmatpush.bf16.msrb.mxu0 %v11734_v63  ;;  %v11706_v20 = vor.u32 %v15063_v6, %v11705_v48  ;;  %v16924_v32 = vshrl.u32 %v1774_v37, 16  ;;  %v16932_v24 = vshrl.u32 %v1777_v38, 16  ;;  %v16936_v43 = vshll.u32 %v1780_v34, 16 }
  0xbc   :  { %1452 = vst [vmem:[#allocation1 + $0x7] ss:$9 sm:$0xff] %v1321_v60  ;;  %2321 = vmatpush.bf16.msrb.mxu1 %v11714_v52  ;;  %v11698_v37 = vor.u32 %v15061_v35, %v11697_v15  ;;  %v15062_v63 = vld [vmem:[%s23035_s8 + $0x284] sm:$0xf]  ;;  %v11689_v48 = vld [vmem:[%s23035_s8 + $0x260] sm:$0xf]  ;;  %v1860_v9 = vsel %vm16437_vm10, %v1853_v59, %v16841_v62  ;;  %v1883_v46 = vsel %vm16437_vm10, %v1877_v36, %v1881_v44 }
  0xbd   :  { %v667_v22 = vpop.f32.mrf.mxu3  ;;  %2353 = vmatpush.bf16.msrb.mxu3 %v11754_v27  ;;  %v15059_v6 = vld [vmem:[%s23035_s8 + $0x264] sm:$0xf0]  ;;  %v11707_v52 = vld [vmem:[%s23035_s8 + $0x288] sm:$0xf0]  ;;  %v1908_v59 = vshrl.u32 %v1780_v34, 16  ;;  %v17005_v27 = vsel %vm116_vm1, %v16759_v10, %v16801_v19 }
  0xbe   :  { %v11681_v0 = vld [vmem:[%s23035_s8 + $0x250] sm:$0xf]  ;;  %v15057_v1 = vld [vmem:[%s23035_s8 + $0x254] sm:$0xf0]  ;;  %v11690_v12 = vor.u32 %v15059_v6, %v11689_v48  ;;  %v11699_v21 = vld [vmem:[%s23035_s8 + $0x278] sm:$0xf0] }
  0xbf   :  { %v612_v31 = vpop.f32.mrf.mxu1  ;;  %2378 = vmatpush.bf16.msrb.mxu0 %v11726_v23  ;;  %v1907_v23 = vsel %vm16437_vm10, %v16932_v24, %v16936_v43  ;;  %v1786_v15 = vrot.slane %v17005_v27, 1  ;;  %v15058_v24 = vld [vmem:[%s23035_s8 + $0x264] sm:$0xf]  ;;  %v11691_v43 = vld [vmem:[%s23035_s8 + $0x268] sm:$0xf0] }
  0xc0   :  { %2322 = vmatpush.bf16.msrb.mxu1 %v11706_v20  ;;  %v17040_v20 = vsel %vm124_vm3, %v16759_v10, %v16801_v19  ;;  %v11755_v48 = vld [vmem:[%s23035_s8 + $0x2e8] sm:$0xf0] }
  0xc1   :  { %v638_v14 = vpop.f32.mrf.mxu2  ;;  %v1920_v27 = vshll.u32 %v1786_v15, 16 }
  0xc2   :  { %11610 = vmatmul.msk.bf16.gmra.mxu3 %vm560_vm4, %v16703_v57  ;;  %1614 = vmatmul.bf16.gmra.mxu1 %v16701_v53  ;;  %v16856_v4 = vadd.f32 %v667_v22, %v638_v14  ;;  %v16891_v22 = vshrl.u32 %v1765_v29, 16  ;;  %v11746_v29 = vor.u32 %v15073_v18, %v11745_v28  ;;  %v15071_v14 = vld [vmem:[%s23035_s8 + $0x2c4] sm:$0xf0]  ;;  %v15076_v28 = vld [vmem:[%s23035_s8 + $0x2f4] sm:$0xf]  ;;  %v1787_v18 = vsel %vm120_vm2, %v16759_v10, %v16801_v19 }
  0xc3   :  { %v16847_v61 = vld [vmem:[#allocation1] sm:$0xff]  ;;  %v16849_v55 = vld [vmem:[#allocation1 + $0x9] sm:$0xff]  ;;  %v583_v60 = vpop.f32.mrf.mxu0 }
  0xc4   :  { %1456 = vst [vmem:[#allocation1] ss:$9 sm:$0xff] %v1329_v33  ;;  %v16869_v5 = vadd.f32 %v612_v31, %v583_v60  ;;  %2354 = vmatpush.bf16.msrb.mxu3 %v11746_v29  ;;  %2323 = vmatpush.bf16.msrb.mxu1 %v11698_v37 }
  0xc5   :  { %1458 = vst [vmem:[#allocation1 + $0x1] ss:$9 sm:$0xff] %v1337_v50  ;;  %v670_v8 = vpop.f32.mrf.mxu3  ;;  %v16928_v50 = vshll.u32 %v1777_v38, 16  ;;  %v11737_v38 = vld [vmem:[%s23035_s8 + $0x2c0] sm:$0xf] }
  0xc6   :  { %1460 = vst [vmem:[#allocation1 + $0x2] ss:$9 sm:$0xff] %v1344_v25  ;;  %11614 = vmatmul.msk.bf16.gmra.mxu2 %vm560_vm4, %v16703_v57  ;;  %v11715_v57 = vld [vmem:[%s23035_s8 + $0x298] sm:$0xf0]  ;;  %v16964_v25 = vsel %vm112_vm0, %v16759_v10, %v16801_v19  ;;  %1672 = vmatmul.bf16.gmra.mxu0 %v16701_v53  ;;  %v1891_v53 = vsel %vm16437_vm10, %v1884_v45, %v1889_v47  ;;  %v11673_v45 = vld [vmem:[%s23035_s8 + $0x240] sm:$0xf] }
  0xc7   :  { %1462 = vst [vmem:[#allocation1 + $0x3] ss:$9 sm:$0xff] %v1352_v49  ;;  %v16898_v42 = vpop.f32.mrf.mxu1  ;;  %v11718_v31 = vor.u32 %v15064_v54, %v11715_v57  ;;  %v11738_v49 = vor.u32 %v15071_v14, %v11737_v38  ;;  %v1912_v34 = vshll.u32 %v16964_v25, 16  ;;  %v1899_v36 = vsel %vm16437_vm10, %v16924_v32, %v16928_v50  ;;  %v11763_v57 = vld [vmem:[%s23035_s8 + $0x2f8] sm:$0xf0] }
  0xc8   :  { %23040 = vst [vmem:[#allocation10_spill] sm:$0xff] %v16898_v42  ;;  %v11766_v44 = vor.u32 %v15076_v28, %v11763_v57  ;;  %v15055_v47 = vld [vmem:[%s23035_s8 + $0x244] sm:$0xf0]  ;;  %2324 = vmatpush.bf16.msrb.mxu1 %v11690_v12  ;;  %v11682_v50 = vor.u32 %v15057_v1, %v11681_v0  ;;  %v11683_v0 = vld [vmem:[%s23035_s8 + $0x258] sm:$0xf0]  ;;  %v1915_v1 = vshrl.u32 %v16964_v25, 16 }
  0xc9   :  { %1464 = vst [vmem:[#allocation1 + $0x4] ss:$9 sm:$0xff] %v1360_v2  ;;  %v641_v33 = vpop.f32.mrf.mxu2  ;;  %2379 = vmatpush.bf16.msrb.mxu0 %v11718_v31  ;;  %v11710_v2 = vor.u32 %v15062_v63, %v11707_v52  ;;  %2355 = vmatpush.bf16.msrb.mxu3 %v11738_v49  ;;  %v1914_v38 = vsel %vm16437_vm10, %v1908_v59, %v1912_v34  ;;  %v1789_v49 = vrot.slane %v1787_v18, 2  ;;  %v1792_v52 = vrot.slane %v17040_v20, 3  ;;  %v15072_v34 = vld [vmem:[%s23035_s8 + $0x2d4] sm:$0xf] }
  0xca   :  { %1466 = vst [vmem:[#allocation1 + $0x5] ss:$9 sm:$0xff] %v1368_v7  ;;  %v16938_v39 = vadd.f32 %v670_v8, %v641_v33  ;;  %v16985_v7 = vrot.slane %v16945_v16, 3  ;;  %v1876_v8 = vsel %vm16437_vm10, %v16891_v22, %v16893_v26  ;;  %v15060_v22 = vld [vmem:[%s23035_s8 + $0x274] sm:$0xf]  ;;  %v17018_v26 = vrot.slane %v16950_v13, 3  ;;  %2410 = vmatpush.bf16.msrb.mxu2 %v11766_v44 }
  0xcb   :  { %v16940_v58 = vpop.f32.mrf.mxu0  ;;  %v11702_v54 = vor.u32 %v15060_v22, %v11699_v21  ;;  %v11694_v63 = vor.u32 %v15058_v24, %v11691_v43  ;;  %v11674_v59 = vor.u32 %v15055_v47, %v11673_v45  ;;  %v1923_v22 = vshrl.u32 %v1786_v15, 16  ;;  %v15054_v57 = vld [vmem:[%s23035_s8 + $0x244] sm:$0xf]  ;;  %v11675_v15 = vld [vmem:[%s23035_s8 + $0x248] sm:$0xf0] }
  0xcc   :  { %23041 = vst [vmem:[#allocation11_spill] sm:$0xff] %v16940_v58  ;;  %v17051_v35 = vsel %vm116_vm1, %v16945_v16, %v16985_v7  ;;  %v17056_v10 = vsel %vm120_vm2, %v16945_v16, %v16985_v7  ;;  %v17070_v32 = vsel %vm124_vm3, %v16945_v16, %v16985_v7  ;;  %v17083_v37 = vsel %vm116_vm1, %v16950_v13, %v17018_v26  ;;  %v15082_v58 = vld [vmem:[%s23035_s8 + $0x324] sm:$0xf] }
  0xcd   :  { %v672_v60 = vpop.f32.mrf.mxu3  ;;  %2380 = vmatpush.bf16.msrb.mxu0 %v11710_v2  ;;  %v1801_v2 = vrot.slane %v17056_v10, 2  ;;  %2325 = vmatpush.bf16.msrb.mxu1 %v11682_v50  ;;  %v1936_v25 = vshll.u32 %v1792_v52, 16  ;;  %v1939_v20 = vshrl.u32 %v1792_v52, 16  ;;  %v11678_v47 = vor.u32 %v15054_v57, %v11675_v15  ;;  %v17142_v50 = vld [vmem:[%s23036_s6 + $0x30] sm:$0xff] }
  0xcf   :  { %v617_v62 = vpop.f32.mrf.mxu1 }
  0xd1   :  { %v17007_v11 = vld [vmem:[#allocation1] sm:$0xff]  ;;  %v17009_v40 = vld [vmem:[#allocation1 + $0x9] sm:$0xff]  ;;  %v643_v29 = vpop.f32.mrf.mxu2  ;;  %2381 = vmatpush.bf16.msrb.mxu0 %v11702_v54  ;;  %2326 = vmatpush.bf16.msrb.mxu1 %v11674_v59  ;;  %v1807_v54 = vsel %vm112_vm0, %v16950_v13, %v17018_v26 }
  0xd2   :  { %2113 = vst [vmem:[#allocation1] ss:$9 sm:$0xff] %v1860_v9  ;;  %11611 = vmatmul.msk.bf16.gmra.mxu3 %vm560_vm4, %v16849_v55  ;;  %1619 = vmatmul.bf16.gmra.mxu1 %v16847_v61  ;;  %v17059_v19 = vadd.f32 %v672_v60, %v643_v29  ;;  %v15074_v60 = vld [vmem:[%s23035_s8 + $0x2e4] sm:$0xf] }
  0xd3   :  { %2116 = vst [vmem:[#allocation1 + $0x1] ss:$9 sm:$0xff] %v1868_v51  ;;  %v588_v31 = vpop.f32.mrf.mxu0  ;;  %v11758_v6 = vor.u32 %v15074_v60, %v11755_v48  ;;  %v1798_v51 = vrot.slane %v17051_v35, 1  ;;  %v15070_v35 = vld [vmem:[%s23035_s8 + $0x2c4] sm:$0xf] }
  0xd4   :  { %2119 = vst [vmem:[#allocation1 + $0x2] ss:$9 sm:$0xff] %v1876_v8  ;;  %v17072_v33 = vadd.f32 %v617_v62, %v588_v31  ;;  %v1804_v8 = vrot.slane %v17070_v32, 3  ;;  %v1795_v62 = vsel %vm112_vm0, %v16945_v16, %v16985_v7  ;;  %v11747_v7 = vld [vmem:[%s23035_s8 + $0x2d8] sm:$0xf0]  ;;  %v1922_v31 = vsel %vm16437_vm10, %v1915_v1, %v1920_v27 }
  0xd5   :  { %2122 = vst [vmem:[#allocation1 + $0x3] ss:$9 sm:$0xff] %v1883_v46  ;;  %v675_v14 = vpop.f32.mrf.mxu3  ;;  %v1810_v46 = vrot.slane %v17083_v37, 1  ;;  %2382 = vmatpush.bf16.msrb.mxu0 %v11694_v63  ;;  %2411 = vmatpush.bf16.msrb.mxu2 %v11758_v6  ;;  %v11750_v21 = vor.u32 %v15072_v34, %v11747_v7  ;;  %v1943_v29 = vshll.u32 %v1795_v62, 16  ;;  %v1946_v44 = vshrl.u32 %v1795_v62, 16 }
  0xd6   :  { %2125 = vst [vmem:[#allocation1 + $0x4] ss:$9 sm:$0xff] %v1891_v53  ;;  %11615 = vmatmul.msk.bf16.gmra.mxu2 %vm560_vm4, %v16849_v55  ;;  %v15056_v55 = vld [vmem:[%s23035_s8 + $0x254] sm:$0xf]  ;;  %v1951_v45 = vshll.u32 %v1798_v51, 16  ;;  %v1954_v43 = vshrl.u32 %v1798_v51, 16  ;;  %1677 = vmatmul.bf16.gmra.mxu0 %v16847_v61  ;;  %v1814_v27 = vsel %vm124_vm3, %v16950_v13, %v17018_v26 }
  0xd7   :  { %2128 = vst [vmem:[#allocation1 + $0x5] ss:$9 sm:$0xff] %v1899_v36  ;;  %v17094_v9 = vpop.f32.mrf.mxu1  ;;  %v11686_v53 = vor.u32 %v15056_v55, %v11683_v0  ;;  %v1928_v36 = vshll.u32 %v1789_v49, 16  ;;  %v11739_v32 = vld [vmem:[%s23035_s8 + $0x2c8] sm:$0xf0]  ;;  %v1962_v6 = vshrl.u32 %v1801_v2, 16  ;;  %v1945_v59 = vsel %vm16437_vm10, %v1939_v20, %v1943_v29 }
  0xd8   :  { %2131 = vst [vmem:[#allocation1 + $0x6] ss:$9 sm:$0xff] %v1907_v23  ;;  %v1931_v23 = vshrl.u32 %v1789_v49, 16  ;;  %v1967_v49 = vshll.u32 %v1804_v8, 16  ;;  %v1970_v62 = vshrl.u32 %v1807_v54, 16  ;;  %v1975_v51 = vshll.u32 %v1810_v46, 16 }
  0xd9   :  { %23042 = vst [vmem:[#allocation12_spill] sm:$0xff] %v17094_v9  ;;  %v646_v12 = vpop.f32.mrf.mxu2  ;;  %2383 = vmatpush.bf16.msrb.mxu0 %v11686_v53  ;;  %2412 = vmatpush.bf16.msrb.mxu2 %v11750_v21  ;;  %v1930_v24 = vsel %vm16437_vm10, %v1923_v22, %v1928_v36  ;;  %v17160_v61 = vld [vmem:[%s23036_s6 + $0x38] sm:$0xff]  ;;  %v1754_v55 = vrot.slane %v17142_v50, 3  ;;  %v1811_v8 = vsel %vm120_vm2, %v16950_v13, %v17018_v26  ;;  %v1816_v21 = vrot.slane %v1814_v27, 3 }
  0xda   :  { %2134 = vst [vmem:[#allocation1 + $0x7] ss:$9 sm:$0xff] %v1914_v38  ;;  %v17118_v28 = vadd.f32 %v675_v14, %v646_v12  ;;  %v1959_v38 = vshll.u32 %v1801_v2, 16  ;;  %v11742_v14 = vor.u32 %v15070_v35, %v11739_v32  ;;  %v1938_v48 = vsel %vm16437_vm10, %v1931_v23, %v1936_v25 }
  0xdb   :  { %v17120_v18 = vpop.f32.mrf.mxu0  ;;  %v1953_v2 = vsel %vm16437_vm10, %v1946_v44, %v1951_v45  ;;  %v1969_v7 = vsel %vm16437_vm10, %v1962_v6, %v1967_v49  ;;  %v1755_v12 = vrot.slane %v17160_v61, 3  ;;  %v1977_v36 = vsel %vm16437_vm10, %v1970_v62, %v1975_v51 }
  0xdc   :  { %23043 = vst [vmem:[#allocation13_spill] sm:$0xff] %v17120_v18  ;;  %v1961_v1 = vsel %vm16437_vm10, %v1954_v43, %v1959_v38  ;;  %v1813_v23 = vrot.slane %v1811_v8, 2  ;;  %v1820_v13 = vsel %vm116_vm1, %v17142_v50, %v1754_v55  ;;  %v1823_v25 = vsel %vm120_vm2, %v17142_v50, %v1754_v55 }
  0xdd   :  { %v677_v10 = vpop.f32.mrf.mxu3  ;;  %2384 = vmatpush.bf16.msrb.mxu0 %v11678_v47  ;;  %2413 = vmatpush.bf16.msrb.mxu2 %v11742_v14  ;;  %v1826_v20 = vsel %vm124_vm3, %v17142_v50, %v1754_v55  ;;  %v1819_v54 = vsel %vm112_vm0, %v17142_v50, %v1754_v55  ;;  %v1822_v57 = vrot.slane %v1820_v13, 1  ;;  %v1825_v15 = vrot.slane %v1823_v25, 2 }
  0xde   :  { %v17199_v35 = vsel %vm116_vm1, %v17160_v61, %v1755_v12  ;;  %v1828_v44 = vrot.slane %v1826_v20, 3  ;;  %v1986_v45 = vshrl.u32 %v1813_v23, 16  ;;  %v1991_v47 = vshll.u32 %v1816_v21, 16 }
  0xdf   :  { %v622_v60 = vpop.f32.mrf.mxu1  ;;  %v1998_v43 = vshll.u32 %v1819_v54, 16  ;;  %v2006_v6 = vshll.u32 %v1822_v57, 16  ;;  %v2014_v49 = vshll.u32 %v1825_v15, 16  ;;  %v2017_v55 = vshrl.u32 %v1825_v15, 16 }
  0xe0   :  { %v1993_v51 = vsel %vm16437_vm10, %v1986_v45, %v1991_v47  ;;  %v1835_v25 = vsel %vm120_vm2, %v17160_v61, %v1755_v12 }
  0xe1   :  { %v17146_v63 = vld [vmem:[#allocation1 + $0x9] sm:$0xff]  ;;  %v17151_v52 = vld [vmem:[#allocation1] sm:$0xff]  ;;  %v648_v0 = vpop.f32.mrf.mxu2 }
  0xe2   :  { %2138 = vst [vmem:[#allocation1] ss:$9 sm:$0xff] %v1922_v31  ;;  %11612 = vmatmul.msk.bf16.gmra.mxu3 %vm560_vm4, %v17009_v40  ;;  %1624 = vmatmul.bf16.gmra.mxu1 %v17007_v11  ;;  %v17176_v53 = vadd.f32 %v677_v10, %v648_v0  ;;  %v1978_v10 = vshrl.u32 %v1810_v46, 16  ;;  %v1983_v31 = vshll.u32 %v1813_v23, 16  ;;  %v2009_v46 = vshrl.u32 %v1822_v57, 16 }
  0xe3   :  { %2140 = vst [vmem:[#allocation1 + $0x1] ss:$9 sm:$0xff] %v1930_v24  ;;  %v593_v34 = vpop.f32.mrf.mxu0  ;;  %v1994_v24 = vshrl.u32 %v1816_v21, 16 }
  0xe4   :  { %2142 = vst [vmem:[#allocation1 + $0x2] ss:$9 sm:$0xff] %v1938_v48  ;;  %v17181_v22 = vadd.f32 %v622_v60, %v593_v34  ;;  %v1834_v60 = vrot.slane %v17199_v35, 1  ;;  %v2001_v48 = vshrl.u32 %v1819_v54, 16  ;;  %v1985_v37 = vsel %vm16437_vm10, %v1978_v10, %v1983_v31 }
  0xe5   :  { %2144 = vst [vmem:[#allocation1 + $0x3] ss:$9 sm:$0xff] %v1945_v59  ;;  %v680_v26 = vpop.f32.mrf.mxu3  ;;  %v17215_v59 = vld [vmem:[%s23036_s6 + $0x40] sm:$0xff]  ;;  %v2000_v0 = vsel %vm16437_vm10, %v1994_v24, %v1998_v43  ;;  %v2016_v20 = vsel %vm16437_vm10, %v2009_v46, %v2014_v49  ;;  %v1838_v54 = vsel %vm124_vm3, %v17160_v61, %v1755_v12  ;;  %v1837_v10 = vrot.slane %v1835_v25, 2 }
  0xe6   :  { %2146 = vst [vmem:[#allocation1 + $0x4] ss:$9 sm:$0xff] %v1953_v2  ;;  %11616 = vmatmul.msk.bf16.gmra.mxu2 %vm560_vm4, %v17009_v40  ;;  %v1831_v40 = vsel %vm112_vm0, %v17160_v61, %v1755_v12  ;;  %v2022_v2 = vshll.u32 %v1828_v44, 16  ;;  %1682 = vmatmul.bf16.gmra.mxu0 %v17007_v11  ;;  %v2037_v13 = vshll.u32 %v1834_v60, 16  ;;  %v1840_v45 = vrot.slane %v1838_v54, 3 }
  0xe7   :  { %2148 = vst [vmem:[#allocation1 + $0x5] ss:$9 sm:$0xff] %v1961_v1  ;;  %v17191_v29 = vpop.f32.mrf.mxu1  ;;  %v2025_v1 = vshrl.u32 %v1828_v44, 16  ;;  %v2029_v27 = vshll.u32 %v1831_v40, 16  ;;  %v2032_v23 = vshrl.u32 %v1831_v40, 16 }
  0xe8   :  { %2150 = vst [vmem:[#allocation1 + $0x6] ss:$9 sm:$0xff] %v1969_v7  ;;  %v2024_v11 = vsel %vm16437_vm10, %v2017_v55, %v2022_v2  ;;  %v2056_v55 = vshrl.u32 %v1840_v45, 16 }
  0xe9   :  { %23044 = vst [vmem:[#allocation14_spill] sm:$0xff] %v17191_v29  ;;  %v651_v32 = vpop.f32.mrf.mxu2  ;;  %v2039_v31 = vsel %vm16437_vm10, %v2032_v23, %v2037_v13  ;;  %v15083_v29 = vld [vmem:[%s23035_s8 + $0x324] sm:$0xf0] }
  0xea   :  { %2152 = vst [vmem:[#allocation1 + $0x7] ss:$9 sm:$0xff] %v1977_v36  ;;  %v17205_v38 = vadd.f32 %v680_v26, %v651_v32  ;;  %v2008_v36 = vsel %vm16437_vm10, %v2001_v48, %v2006_v6  ;;  %v1756_v26 = vrot.slane %v17215_v59, 3 }
  0xeb   :  { %v17207_v14 = vpop.f32.mrf.mxu0 }
  0xec   :  { %23045 = vst [vmem:[#allocation15_spill] sm:$0xff] %v17207_v14  ;;  %v1844_v12 = vsel %vm116_vm1, %v17215_v59, %v1756_v26  ;;  %v1847_v47 = vsel %vm120_vm2, %v17215_v59, %v1756_v26  ;;  %v1850_v40 = vsel %vm124_vm3, %v17215_v59, %v1756_v26  ;;  %v1843_v43 = vsel %vm112_vm0, %v17215_v59, %v1756_v26 }
  0xed   :  { %v682_v62 = vpop.f32.mrf.mxu3  ;;  %v1846_v48 = vrot.slane %v1844_v12, 1  ;;  %v1849_v46 = vrot.slane %v1847_v47, 2  ;;  %v1852_v49 = vrot.slane %v1850_v40, 3  ;;  %v2060_v2 = vshll.u32 %v1843_v43, 16  ;;  %v2452_v47 = vld [vmem:[%s23037_s28 + $0x8] sm:$0xff] }
  0xef   :  { %v893_v7 = vpop.f32.mrf.mxu1  ;;  %v2071_v13 = vshrl.u32 %v1846_v48, 16  ;;  %v2076_v26 = vshll.u32 %v1849_v46, 16 }
  0xf0   :  { %v894_v21 = vadd.f32 %v893_v7, %v16786_v17  ;;  %v2031_v17 = vsel %vm16437_vm10, %v2025_v1, %v2029_v27  ;;  %v2063_v1 = vshrl.u32 %v1843_v43, 16  ;;  %v2068_v27 = vshll.u32 %v1846_v48, 16  ;;  %v15091_v43 = vld [vmem:[%s23035_s8 + $0x364] sm:$0xf0] }
  0xf1   :  { %v17219_v8 = vld [vmem:[#allocation1 + $0x9] sm:$0xff]  ;;  %v17223_v34 = vld [vmem:[#allocation1] sm:$0xff]  ;;  %v653_v57 = vpop.f32.mrf.mxu2 }
  0xf2   :  { %2156 = vst [vmem:[#allocation1] ss:$9 sm:$0xff] %v1985_v37  ;;  %11767 = vmatmul.msk.bf16.vlgmr.msrb.gmra.mxu3 %vm560_vm4, %v17146_v63  ;;  %2327 = vmatmul.bf16.vlgmr.msrb.gmra.mxu1 %v17151_v52  ;;  %v17243_v15 = vadd.f32 %v682_v62, %v653_v57  ;;  %v2045_v37 = vshll.u32 %v1837_v10, 16  ;;  %v2048_v62 = vshrl.u32 %v1837_v10, 16  ;;  %v2070_v57 = vsel %vm16437_vm10, %v2063_v1, %v2068_v27  ;;  %v11857_v10 = vld [vmem:[%s23035_s8 + $0x370] sm:$0xf] }
  0xf3   :  { %2158 = vst [vmem:[#allocation1 + $0x1] ss:$9 sm:$0xff] %v1993_v51  ;;  %v951_v35 = vpop.f32.mrf.mxu0  ;;  %v2053_v51 = vshll.u32 %v1840_v45, 16 }
  0xf4   :  { %2160 = vst [vmem:[#allocation1 + $0x2] ss:$9 sm:$0xff] %v2000_v0  ;;  %v952_v44 = vadd.f32 %v951_v35, %v16788_v41  ;;  %v2040_v41 = vshrl.u32 %v1834_v60, 16  ;;  %v2079_v60 = vshrl.u32 %v1849_v46, 16  ;;  %v2078_v35 = vsel %vm16437_vm10, %v2071_v13, %v2076_v26  ;;  %v11881_v13 = vld [vmem:[%s23035_s8 + $0x3a0] sm:$0xf] }
  0xf5   :  { %2162 = vst [vmem:[#allocation1 + $0x3] ss:$9 sm:$0xff] %v2008_v36  ;;  %v922_v32 = vpop.f32.mrf.mxu3  ;;  %v2451_v26 = vld [vmem:[%s23037_s28] sm:$0xee] }
  0xf6   :  { %2164 = vst [vmem:[#allocation1 + $0x4] ss:$9 sm:$0xff] %v2016_v20  ;;  %v17254_v24 = vadd.f32 %v922_v32, %v894_v21  ;;  %11771 = vmatmul.msk.bf16.vlgmr.msrb.gmra.mxu2 %vm560_vm4, %v17146_v63  ;;  %v2047_v23 = vsel %vm16437_vm10, %v2040_v41, %v2045_v37  ;;  %v2055_v63 = vsel %vm16437_vm10, %v2048_v62, %v2053_v51  ;;  %v2084_v21 = vshll.u32 %v1852_v49, 16  ;;  %v11841_v62 = vld [vmem:[%s23035_s8 + $0x350] sm:$0xf] }
  0xf7   :  { %2166 = vst [vmem:[#allocation1 + $0x5] ss:$9 sm:$0xff] %v2024_v11  ;;  %v17258_v6 = vpop.f32.mrf.mxu1  ;;  %v2062_v11 = vsel %vm16437_vm10, %v2056_v55, %v2060_v2  ;;  %2385 = vmatmul.bf16.vlgmr.msrb.gmra.mxu0 %v17151_v52  ;;  %v15089_v51 = vld [vmem:[%s23035_s8 + $0x354] sm:$0xf0] }
  0xf8   :  { %2168 = vst [vmem:[#allocation1 + $0x6] ss:$9 sm:$0xff] %v2031_v17  ;;  %v11842_v55 = vor.u32 %v15089_v51, %v11841_v62  ;;  %v15101_v2 = vld [vmem:[%s23035_s8 + $0x3b4] sm:$0xf0] }
  0xf9   :  { %2170 = vst [vmem:[#allocation1 + $0x7] ss:$9 sm:$0xff] %v2039_v31  ;;  %v980_v0 = vpop.f32.mrf.mxu2  ;;  %v15093_v31 = vld [vmem:[%s23035_s8 + $0x374] sm:$0xf0] }
  0xfa   :  { %v17262_v7 = vadd.f32 %v980_v0, %v952_v44  ;;  %v2086_v44 = vsel %vm16437_vm10, %v2079_v60, %v2084_v21  ;;  %v11858_v45 = vor.u32 %v15093_v31, %v11857_v10  ;;  %v11859_v0 = vld [vmem:[%s23035_s8 + $0x378] sm:$0xf0] }
  0xfb   :  { %v953_v36 = vpop.f32.mrf.mxu0  ;;  %v2454_v60 = vld [vmem:[%s23037_s28 + $0x18] sm:$0xff] }
  0xfc   :  { %v954_v52 = vadd.f32 %v953_v36, %v16856_v4  ;;  %2714 = vmatpush.bf16.msra.mxu1 %v11858_v45  ;;  %v11849_v4 = vld [vmem:[%s23035_s8 + $0x360] sm:$0xf] }
  0xfd   :  { %v17268_v25 = vpop.f32.mrf.mxu3  ;;  %v11850_v41 = vor.u32 %v15091_v43, %v11849_v4  ;;  %v11833_v36 = vld [vmem:[%s23035_s8 + $0x340] sm:$0xf] }
  0xfe   :  { %23046 = vst [vmem:[#allocation16_spill] sm:$0xff] %v17268_v25 }
  0xff   :  { %v898_v17 = vpop.f32.mrf.mxu1 }
 0x100   :  { %v17270_v20 = vld [vmem:[#allocation1 + $0x9] sm:$0xff]  ;;  %v17274_v54 = vld [vmem:[#allocation1] sm:$0xff]  ;;  %v899_v12 = vadd.f32 %v898_v17, %v16869_v5  ;;  %2715 = vmatpush.bf16.msra.mxu1 %v11850_v41 }
 0x101   :  { %2174 = vst [vmem:[#allocation1] ss:$9 sm:$0xff] %v2047_v23  ;;  %v982_v32 = vpop.f32.mrf.mxu2  ;;  %v15087_v23 = vld [vmem:[%s23035_s8 + $0x344] sm:$0xf0] }
 0x102   :  { %2176 = vst [vmem:[#allocation1 + $0x1] ss:$9 sm:$0xff] %v2055_v63  ;;  %11768 = vmatmul.msk.bf16.gmra.mxu3 %vm560_vm4, %v17219_v8  ;;  %2332 = vmatmul.bf16.gmra.mxu1 %v17223_v34  ;;  %v17297_v5 = vadd.f32 %v982_v32, %v954_v52  ;;  %v11834_v21 = vor.u32 %v15087_v23, %v11833_v36  ;;  %v11851_v52 = vld [vmem:[%s23035_s8 + $0x368] sm:$0xf0] }
 0x103   :  { %2178 = vst [vmem:[#allocation1 + $0x2] ss:$9 sm:$0xff] %v2062_v11  ;;  %v956_v40 = vpop.f32.mrf.mxu0  ;;  %v15099_v11 = vld [vmem:[%s23035_s8 + $0x3a4] sm:$0xf0] }
 0x104   :  { %2180 = vst [vmem:[#allocation1 + $0x3] ss:$9 sm:$0xff] %v2070_v57  ;;  %v957_v48 = vadd.f32 %v956_v40, %v16938_v39  ;;  %v11889_v39 = vld [vmem:[%s23035_s8 + $0x3b0] sm:$0xf]  ;;  %2716 = vmatpush.bf16.msra.mxu1 %v11842_v55  ;;  %v15090_v57 = vld [vmem:[%s23035_s8 + $0x364] sm:$0xf] }
 0x105   :  { %2182 = vst [vmem:[#allocation1 + $0x4] ss:$9 sm:$0xff] %v2078_v35  ;;  %v927_v37 = vpop.f32.mrf.mxu3  ;;  %v11890_v1 = vor.u32 %v15101_v2, %v11889_v39  ;;  %v11854_v40 = vor.u32 %v15090_v57, %v11851_v52 }
 0x106   :  { %23047 = vst [vmem:[#allocation17_spill] sm:$0xff] %v17297_v5  ;;  %v17306_v46 = vadd.f32 %v927_v37, %v899_v12  ;;  %11772 = vmatmul.msk.bf16.gmra.mxu2 %vm560_vm4, %v17219_v8  ;;  %v15092_v8 = vld [vmem:[%s23035_s8 + $0x374] sm:$0xf]  ;;  %v11819_v5 = vld [vmem:[%s23035_s8 + $0x328] sm:$0xf0] }
 0x107   :  { %2184 = vst [vmem:[#allocation1 + $0x5] ss:$9 sm:$0xff] %v2086_v44  ;;  %v17308_v49 = vpop.f32.mrf.mxu1  ;;  %v11862_v27 = vor.u32 %v15092_v8, %v11859_v0  ;;  %2747 = vmatpush.bf16.msra.mxu3 %v11890_v1  ;;  %v11882_v44 = vor.u32 %v15099_v11, %v11881_v13  ;;  %2390 = vmatmul.bf16.gmra.mxu0 %v17223_v34  ;;  %v2456_v37 = vld [vmem:[%s23037_s28 + $0x30] sm:$0xff] }
 0x108   :  { %2462 = vst [vmem:[#allocation1 + $0x20] sm:$0xff] %v2452_v47  ;;  %2717 = vmatpush.bf16.msra.mxu1 %v11834_v21 }
 0x109   :  { %23048 = vst [vmem:[#allocation18_spill] sm:$0xff] %v17308_v49  ;;  %v985_v63 = vpop.f32.mrf.mxu2  ;;  %2772 = vmatpush.bf16.msra.mxu0 %v11862_v27 }
 0x10a   :  { %v17351_v17 = vadd.f32 %v985_v63, %v957_v48  ;;  %v2455_v63 = vld [vmem:[%s23037_s28 + $0x28] sm:$0xee] }
 0x10b   :  { %v958_v35 = vpop.f32.mrf.mxu0  ;;  %2748 = vmatpush.bf16.msra.mxu3 %v11882_v44 }
 0x10c   :  { %v959_v48 = vadd.f32 %v958_v35, %v17059_v19 }
 0x10d   :  { %v17366_v32 = vpop.f32.mrf.mxu3  ;;  %2773 = vmatpush.bf16.msra.mxu0 %v11854_v40 }
 0x10e   :  { %v17364_v47 = vld [vmem:[#allocation1] sm:$0xff]  ;;  %23049 = vst [vmem:[#allocation19_spill] sm:$0xff] %v17366_v32  ;;  %v2186_v52 = vld [vmem:[#allocation1 + $0x9] sm:$0xff] }
 0x10f   :  { %v17353_v10 = vld [vmem:[#allocation1 + $0x20] ss:$4 sm:$0xff]  ;;  %v17355_v31 = vld [vmem:[#allocation1 + $0x21] ss:$4 sm:$0xff]  ;;  %v17357_v12 = vld [vmem:[#allocation1 + $0x22] ss:$4 sm:$0xff]  ;;  %v903_v4 = vpop.f32.mrf.mxu1 }
 0x110   :  { %v17359_v45 = vld [vmem:[#allocation1 + $0x23] ss:$4 sm:$0xff]  ;;  %2460 = vst [vmem:[#allocation1] sm:$0xff] %v2451_v26  ;;  %v904_v43 = vadd.f32 %v903_v4, %v17072_v33 }
 0x111   :  { %2480 = vst [vmem:[#allocation1 + $0x20] sm:$0xff] %v2454_v60  ;;  %v987_v41 = vpop.f32.mrf.mxu2  ;;  %v2453_v33 = vld [vmem:[%s23037_s28 + $0x10] sm:$0xff]  ;;  %v2458_v26 = vld [vmem:[%s23037_s28 + $0x40] sm:$0xff] }
 0x112   :  { %11769 = vmatmul.msk.bf16.gmra.mxu3 %vm560_vm4, %v17270_v20  ;;  %2337 = vmatmul.bf16.gmra.mxu1 %v17274_v54  ;;  %v17377_v62 = vadd.f32 %v987_v41, %v959_v48 }
 0x113   :  { %v961_v51 = vpop.f32.mrf.mxu0 }
 0x114   :  { %23050 = vst [vmem:[#allocation20_spill] sm:$0xff] %v17377_v62  ;;  %v962_v55 = vadd.f32 %v961_v51, %v17118_v28 }
 0x115   :  { %v932_v2 = vpop.f32.mrf.mxu3 }
 0x116   :  { %v17395_v27 = vadd.f32 %v932_v2, %v904_v43  ;;  %11773 = vmatmul.msk.bf16.gmra.mxu2 %vm560_vm4, %v17270_v20 }
 0x117   :  { %v17391_v0 = vld [vmem:[#allocation1 + $0x1] ss:$4 sm:$0xff]  ;;  %v17393_v1 = vld [vmem:[#allocation1 + $0x2] ss:$4 sm:$0xff]  ;;  %v17397_v36 = vld [vmem:[#allocation1 + $0x3] ss:$4 sm:$0xff]  ;;  %v17399_v23 = vpop.f32.mrf.mxu1  ;;  %2395 = vmatmul.bf16.gmra.mxu0 %v17274_v54 }
 0x118   :  { %v17382_v34 = vld [vmem:[#allocation1 + $0x20] ss:$4 sm:$0xff]  ;;  %v17384_v19 = vld [vmem:[#allocation1 + $0x21] ss:$4 sm:$0xff]  ;;  %v17386_v39 = vld [vmem:[#allocation1 + $0x22] ss:$4 sm:$0xff] }
 0x119   :  { %v17389_v8 = vld [vmem:[#allocation1 + $0x23] ss:$4 sm:$0xff]  ;;  %23051 = vst [vmem:[#allocation21_spill] sm:$0xff] %v17399_v23  ;;  %v990_v13 = vpop.f32.mrf.mxu2 }
 0x11a   :  { %2492 = vst [vmem:[#allocation1 + $0x20] sm:$0xff] %v2456_v37  ;;  %v17403_v28 = vadd.f32 %v990_v13, %v962_v55  ;;  %v11825_v37 = vld [vmem:[%s23035_s8 + $0x330] sm:$0xf]  ;;  %v15085_v54 = vld [vmem:[%s23035_s8 + $0x334] sm:$0xf0] }
 0x11b   :  { %2478 = vst [vmem:[#allocation1] sm:$0xff] %v2453_v33  ;;  %v963_v41 = vpop.f32.mrf.mxu0  ;;  %v11826_v33 = vor.u32 %v15085_v54, %v11825_v37  ;;  %v15088_v54 = vld [vmem:[%s23035_s8 + $0x354] sm:$0xf] }
 0x11d   :  { %v17417_v57 = vpop.f32.mrf.mxu3  ;;  %2718 = vmatpush.bf16.msra.mxu1 %v11826_v33 }
 0x11e   :  { %23052 = vst [vmem:[#allocation22_spill] sm:$0xff] %v17417_v57 }
 0x11f   :  { %v908_v40 = vpop.f32.mrf.mxu1 }
 0x120   :  { %v909_v48 = vadd.f32 %v908_v40, %v17181_v22  ;;  %v17444_v22 = vld [vmem:[%s23037_s28 + $0x38] sm:$0xff]  ;;  %v11873_v40 = vld [vmem:[%s23035_s8 + $0x390] sm:$0xf] }
 0x121   :  { %v17411_v60 = vld [vmem:[#allocation1 + $0x20] ss:$4 sm:$0xff]  ;;  %v17413_v21 = vld [vmem:[#allocation1 + $0x21] ss:$4 sm:$0xff]  ;;  %v17415_v11 = vld [vmem:[#allocation1 + $0x22] ss:$4 sm:$0xff] }
 0x122   :  { %v17419_v20 = vld [vmem:[#allocation1 + $0x23] ss:$4 sm:$0xff]  ;;  %v17421_v35 = vld [vmem:[#allocation1] ss:$4 sm:$0xff]  ;;  %v17423_v44 = vld [vmem:[#allocation1 + $0x1] ss:$4 sm:$0xff]  ;;  %11770 = vmatmul.msk.bf16.gmra.mxu3 %vm560_vm4, %v2186_v52  ;;  %2342 = vmatmul.bf16.gmra.mxu1 %v17364_v47 }
 0x123   :  { %2503 = vst [vmem:[#allocation1 + $0x20] sm:$0xff] %v2458_v26  ;;  %v17426_v4 = vld [vmem:[#allocation1 + $0x2] ss:$4 sm:$0xff]  ;;  %v17428_v43 = vld [vmem:[#allocation1 + $0x3] ss:$4 sm:$0xff] }
 0x124   :  { %2490 = vst [vmem:[#allocation1] sm:$0xff] %v2455_v63 }
 0x125   :  { %v937_v51 = vpop.f32.mrf.mxu3 }
 0x126   :  { %v17439_v55 = vadd.f32 %v937_v51, %v909_v48  ;;  %11774 = vmatmul.msk.bf16.gmra.mxu2 %vm560_vm4, %v2186_v52  ;;  %v15097_v48 = vld [vmem:[%s23035_s8 + $0x394] sm:$0xf0]  ;;  %v11843_v52 = vld [vmem:[%s23035_s8 + $0x358] sm:$0xf0]  ;;  %v964_v51 = vadd.f32 %v963_v41, %v17176_v53  ;;  %v15095_v53 = vld [vmem:[%s23035_s8 + $0x384] sm:$0xf0] }
 0x127   :  { %v17451_v26 = vpop.f32.mrf.mxu1  ;;  %v11874_v37 = vor.u32 %v15097_v48, %v11873_v40  ;;  %v11846_v33 = vor.u32 %v15088_v54, %v11843_v52  ;;  %v11865_v40 = vld [vmem:[%s23035_s8 + $0x380] sm:$0xf]  ;;  %v992_v48 = vpop.f32.mrf.mxu2  ;;  %v15086_v41 = vld [vmem:[%s23035_s8 + $0x344] sm:$0xf]  ;;  %v11835_v54 = vld [vmem:[%s23035_s8 + $0x348] sm:$0xf0]  ;;  %2400 = vmatmul.bf16.gmra.mxu0 %v17364_v47 }
 0x128   :  { %23053 = vst [vmem:[#allocation23_spill] sm:$0xff] %v17451_v26  ;;  %v11817_v26 = vld [vmem:[%s23035_s8 + $0x320] sm:$0xf]  ;;  %v17487_v52 = vadd.f32 %v992_v48, %v964_v51  ;;  %v11866_v57 = vor.u32 %v15095_v53, %v11865_v40  ;;  %v11838_v23 = vor.u32 %v15086_v41, %v11835_v54  ;;  %v15084_v53 = vld [vmem:[%s23035_s8 + $0x334] sm:$0xf] }
 0x129   :  { %2749 = vmatpush.bf16.msra.mxu3 %v11874_v37  ;;  %v11818_v14 = vor.u32 %v15083_v29, %v11817_v26  ;;  %2774 = vmatpush.bf16.msra.mxu0 %v11846_v33  ;;  %v11809_v29 = vld [vmem:[%s23035_s8 + $0x310] sm:$0xf]  ;;  %v15081_v26 = vld [vmem:[%s23035_s8 + $0x314] sm:$0xf0]  ;;  %v966_v33 = vpop.f32.mrf.mxu0  ;;  %v11827_v41 = vld [vmem:[%s23035_s8 + $0x338] sm:$0xf0] }
 0x12a   :  { %v17495_v37 = vld [vmem:[#allocation1 + $0x20] ss:$4 sm:$0xff]  ;;  %v17497_v9 = vld [vmem:[#allocation1 + $0x21] ss:$4 sm:$0xff]  ;;  %v17499_v18 = vld [vmem:[#allocation1 + $0x22] ss:$4 sm:$0xff]  ;;  %v11810_v40 = vor.u32 %v15081_v26, %v11809_v29  ;;  %v967_v48 = vadd.f32 %v966_v33, %v17205_v38  ;;  %v11830_v47 = vor.u32 %v15084_v53, %v11827_v41 }
 0x12b   :  { %v17446_v2 = vld [vmem:[#allocation1 + $0x1] ss:$4 sm:$0xff]  ;;  %v17448_v13 = vld [vmem:[#allocation1 + $0x2] ss:$4 sm:$0xff]  ;;  %v17453_v63 = vld [vmem:[#allocation1 + $0x3] ss:$4 sm:$0xff]  ;;  %2719 = vmatpush.bf16.msra.mxu1 %v11818_v14 }
 0x12c   :  { %2501 = vst [vmem:[#allocation1] sm:$0xff] %v17444_v22  ;;  %v17501_v62 = vld [vmem:[#allocation1 + $0x23] ss:$4 sm:$0xff] }
 0x12d   :  { %v17503_v51 = vpop.f32.mrf.mxu3  ;;  %v15100_v54 = vld [vmem:[%s23035_s8 + $0x3b4] sm:$0xf]  ;;  %2750 = vmatpush.bf16.msra.mxu3 %v11866_v57  ;;  %v11891_v14 = vld [vmem:[%s23035_s8 + $0x3b8] sm:$0xf0]  ;;  %v11801_v38 = vld [vmem:[%s23035_s8 + $0x300] sm:$0xf]  ;;  %2775 = vmatpush.bf16.msra.mxu0 %v11838_v23 }
 0x12e   :  { %23054 = vst [vmem:[#allocation24_spill] sm:$0xff] %v17503_v51  ;;  %v15079_v29 = vld [vmem:[%s23035_s8 + $0x304] sm:$0xf0]  ;;  %v11894_v57 = vor.u32 %v15100_v54, %v11891_v14  ;;  %v15098_v23 = vld [vmem:[%s23035_s8 + $0x3a4] sm:$0xf]  ;;  %v11822_v14 = vor.u32 %v15082_v58, %v11819_v5 }
 0x12f   :  { %v1610_v32 = vpop.f32.mrf.mxu1  ;;  %2720 = vmatpush.bf16.msra.mxu1 %v11810_v40  ;;  %v11802_v42 = vor.u32 %v15079_v29, %v11801_v38  ;;  %v11883_v40 = vld [vmem:[%s23035_s8 + $0x3a8] sm:$0xf0]  ;;  %v995_v53 = vpop.f32.mrf.mxu2  ;;  %v11875_v38 = vld [vmem:[%s23035_s8 + $0x398] sm:$0xf0] }
 0x130   :  { %2805 = vmatpush.bf16.msra.mxu2 %v11894_v57  ;;  %v11886_v41 = vor.u32 %v15098_v23, %v11883_v40  ;;  %v17548_v54 = vadd.f32 %v995_v53, %v967_v48  ;;  %v11811_v58 = vld [vmem:[%s23035_s8 + $0x318] sm:$0xf0] }
 0x131   :  { %2776 = vmatpush.bf16.msra.mxu0 %v11830_v47 }
 0x133   :  { %v17525_v26 = vld [vmem:[#allocation1] ss:$4 sm:$0xff]  ;;  %v17527_v33 = vld [vmem:[#allocation1 + $0x1] ss:$4 sm:$0xff]  ;;  %v17529_v51 = vld [vmem:[#allocation1 + $0x2] ss:$4 sm:$0xff]  ;;  %2721 = vmatpush.bf16.msra.mxu1 %v11802_v42 }
 0x134   :  { %v17531_v49 = vld [vmem:[#allocation1 + $0x3] ss:$4 sm:$0xff]  ;;  %2806 = vmatpush.bf16.msra.mxu2 %v11886_v41 }
 0x135   :  { %2537 = vst [vmem:[#allocation1] ss:$9 sm:$0xff] %v17391_v0  ;;  %v15096_v0 = vld [vmem:[%s23035_s8 + $0x394] sm:$0xf]  ;;  %v1639_v29 = vpop.f32.mrf.mxu3  ;;  %v15094_v42 = vld [vmem:[%s23035_s8 + $0x384] sm:$0xf]  ;;  %2777 = vmatpush.bf16.msra.mxu0 %v11822_v14 }
 0x136   :  { %2539 = vst [vmem:[#allocation1 + $0x1] ss:$9 sm:$0xff] %v17393_v1  ;;  %v968_v1 = vpop.f32.mrf.mxu0  ;;  %v1640_v5 = vadd.f32 %v1639_v29, %v1610_v32  ;;  %v11878_v47 = vor.u32 %v15096_v0, %v11875_v38  ;;  %v11803_v32 = vld [vmem:[%s23035_s8 + $0x308] sm:$0xf0] }
 0x137   :  { %2541 = vst [vmem:[#allocation1 + $0x2] ss:$9 sm:$0xff] %v17397_v36  ;;  %v15080_v36 = vld [vmem:[%s23035_s8 + $0x314] sm:$0xf]  ;;  %v969_v48 = vadd.f32 %v968_v1, %v17243_v15  ;;  %v17576_v15 = vpop.f32.mrf.mxu1 }
 0x138   :  { %2543 = vst [vmem:[#allocation1 + $0x3] ss:$9 sm:$0xff] %v17353_v10  ;;  %v11867_v10 = vld [vmem:[%s23035_s8 + $0x388] sm:$0xf0]  ;;  %v17574_v57 = vadd.f32 %v1640_v5, %v17254_v24  ;;  %2807 = vmatpush.bf16.msra.mxu2 %v11878_v47 }
 0x139   :  { %2545 = vst [vmem:[#allocation1 + $0x4] ss:$9 sm:$0xff] %v17355_v31  ;;  %v11814_v31 = vor.u32 %v15080_v36, %v11811_v58  ;;  %v11870_v23 = vor.u32 %v15094_v42, %v11867_v10  ;;  %v15113_v42 = vld [vmem:[%s23035_s8 + $0x414] sm:$0xf0]  ;;  %v12017_v10 = vld [vmem:[%s23035_s8 + $0x470] sm:$0xf] }
 0x13a   :  { %2547 = vst [vmem:[#allocation1 + $0x5] ss:$9 sm:$0xff] %v17357_v12  ;;  %v15078_v12 = vld [vmem:[%s23035_s8 + $0x304] sm:$0xf] }
 0x13b   :  { %2549 = vst [vmem:[#allocation1 + $0x6] ss:$9 sm:$0xff] %v17359_v45  ;;  %v997_v45 = vpop.f32.mrf.mxu2  ;;  %2778 = vmatpush.bf16.msra.mxu0 %v11814_v31  ;;  %v11806_v40 = vor.u32 %v15078_v12, %v11803_v32  ;;  %v15125_v12 = vld [vmem:[%s23035_s8 + $0x474] sm:$0xf0]  ;;  %v15116_v32 = vld [vmem:[%s23035_s8 + $0x434] sm:$0xf] }
 0x13c   :  { %2551 = vst [vmem:[#allocation1 + $0x7] ss:$9 sm:$0xff] %v17421_v35  ;;  %v17585_v24 = vadd.f32 %v997_v45, %v969_v48  ;;  %2808 = vmatpush.bf16.msra.mxu2 %v11870_v23  ;;  %v11987_v23 = vld [vmem:[%s23035_s8 + $0x438] sm:$0xf0]  ;;  %v12018_v45 = vor.u32 %v15125_v12, %v12017_v10  ;;  %v2850_v12 = vld [vmem:[%s23036_s6 + $0x28] sm:$0xee] }
 0x13d   :  { %v17587_v53 = vpop.f32.mrf.mxu3 }
 0x13e   :  { %v1668_v41 = vpop.f32.mrf.mxu0  ;;  %3142 = vmatpush.bf16.msrb.mxu3 %v12018_v45 }
 0x13f   :  { %2779 = vmatpush.bf16.msra.mxu0 %v11806_v40  ;;  %v1615_v0 = vpop.f32.mrf.mxu1  ;;  %v11990_v40 = vor.u32 %v15116_v32, %v11987_v23 }
 0x143   :  { %v2552_v35 = vld [vmem:[#allocation1] sm:$0xff]  ;;  %v2553_v14 = vld [vmem:[#allocation1 + $0x9] sm:$0xff]  ;;  %v1697_v38 = vpop.f32.mrf.mxu2  ;;  %3167 = vmatpush.bf16.msrb.mxu0 %v11990_v40 }
 0x144   :  { %2554 = vst [vmem:[#allocation1] ss:$9 sm:$0xff] %v17423_v44  ;;  %11895 = vmatmul.msk.bf16.vlgmr.msra.gmra.mxu3 %vm560_vm4, %v2553_v14  ;;  %2722 = vmatmul.bf16.vlgmr.msra.gmra.mxu1 %v2552_v35  ;;  %v1698_v29 = vadd.f32 %v1697_v38, %v1668_v41  ;;  %v11961_v41 = vld [vmem:[%s23035_s8 + $0x400] sm:$0xf]  ;;  %v15123_v38 = vld [vmem:[%s23035_s8 + $0x464] sm:$0xf0] }
 0x145   :  { %2555 = vst [vmem:[#allocation1 + $0x1] ss:$9 sm:$0xff] %v17426_v4  ;;  %11899 = vmatmul.msk.bf16.vlgmr.msra.gmra.mxu2 %vm560_vm4, %v2553_v14  ;;  %2780 = vmatmul.bf16.vlgmr.msra.gmra.mxu0 %v2552_v35  ;;  %v1644_v1 = vpop.f32.mrf.mxu3  ;;  %v15111_v35 = vld [vmem:[%s23035_s8 + $0x404] sm:$0xf0]  ;;  %v12009_v14 = vld [vmem:[%s23035_s8 + $0x460] sm:$0xf] }
 0x146   :  { %2556 = vst [vmem:[#allocation1 + $0x2] ss:$9 sm:$0xff] %v17428_v43  ;;  %v1645_v44 = vadd.f32 %v1644_v1, %v1615_v0  ;;  %v17598_v36 = vadd.f32 %v1698_v29, %v17262_v7  ;;  %v17605_v43 = vpop.f32.mrf.mxu0  ;;  %v11962_v0 = vor.u32 %v15111_v35, %v11961_v41  ;;  %v15114_v29 = vld [vmem:[%s23035_s8 + $0x424] sm:$0xf] }
 0x147   :  { %2557 = vst [vmem:[#allocation1 + $0x3] ss:$9 sm:$0xff] %v17382_v34  ;;  %v17607_v34 = vpop.f32.mrf.mxu1  ;;  %v2846_v1 = vld [vmem:[%s23036_s6] sm:$0xee] }
 0x148   :  { %2558 = vst [vmem:[#allocation1 + $0x4] ss:$9 sm:$0xff] %v17384_v19  ;;  %v17603_v4 = vadd.f32 %v1645_v44, %v17306_v46 }
 0x149   :  { %2559 = vst [vmem:[#allocation1 + $0x5] ss:$9 sm:$0xff] %v17386_v39 }
 0x14a   :  { %2560 = vst [vmem:[#allocation1 + $0x6] ss:$9 sm:$0xff] %v17389_v8 }
 0x14b   :  { %2561 = vst [vmem:[#allocation1 + $0x7] ss:$9 sm:$0xff] %v17446_v2  ;;  %v17609_v58 = vpop.f32.mrf.mxu2 }
 0x14c   :  { %23055 = vst [vmem:[#allocation25_spill] sm:$0xff] %v17607_v34 }
 0x14d   :  { %v17611_v19 = vpop.f32.mrf.mxu3 }
 0x14e   :  { %23056 = vst [vmem:[#allocation26_spill] sm:$0xff] %v17611_v19  ;;  %v1673_v7 = vpop.f32.mrf.mxu0  ;;  %v11947_v19 = vld [vmem:[%s23035_s8 + $0x3e8] sm:$0xf0] }
 0x14f   :  { %v1620_v46 = vpop.f32.mrf.mxu1 }
 0x152   :  { %v2563_v39 = vld [vmem:[#allocation1 + $0x9] sm:$0xff]  ;;  %v2562_v5 = vld [vmem:[#allocation1] sm:$0xff] }
 0x153   :  { %2564 = vst [vmem:[#allocation1] ss:$9 sm:$0xff] %v17448_v13  ;;  %v1702_v8 = vpop.f32.mrf.mxu2 }
 0x154   :  { %11896 = vmatmul.msk.bf16.gmra.mxu3 %vm560_vm4, %v2563_v39  ;;  %2565 = vst [vmem:[#allocation1 + $0x1] ss:$9 sm:$0xff] %v17453_v63  ;;  %2727 = vmatmul.bf16.gmra.mxu1 %v2562_v5  ;;  %v1703_v2 = vadd.f32 %v1702_v8, %v1673_v7  ;;  %v12010_v7 = vor.u32 %v15123_v38, %v12009_v14  ;;  %v11979_v8 = vld [vmem:[%s23035_s8 + $0x428] sm:$0xf0]  ;;  %v11953_v38 = vld [vmem:[%s23035_s8 + $0x3f0] sm:$0xf] }
 0x155   :  { %2566 = vst [vmem:[#allocation1 + $0x2] ss:$9 sm:$0xff] %v17411_v60  ;;  %11900 = vmatmul.msk.bf16.gmra.mxu2 %vm560_vm4, %v2563_v39  ;;  %2785 = vmatmul.bf16.gmra.mxu0 %v2562_v5  ;;  %v1649_v13 = vpop.f32.mrf.mxu3 }
 0x156   :  { %2567 = vst [vmem:[#allocation1 + $0x3] ss:$9 sm:$0xff] %v17413_v21  ;;  %v1650_v63 = vadd.f32 %v1649_v13, %v1620_v46  ;;  %v17623_v48 = vadd.f32 %v1703_v2, %v17351_v17  ;;  %v15117_v17 = vld [vmem:[%s23035_s8 + $0x434] sm:$0xf0]  ;;  %3143 = vmatpush.bf16.msrb.mxu3 %v12010_v7 }
 0x157   :  { %2568 = vst [vmem:[#allocation1 + $0x4] ss:$9 sm:$0xff] %v17415_v11  ;;  %v11985_v11 = vld [vmem:[%s23035_s8 + $0x430] sm:$0xf] }
 0x158   :  { %2569 = vst [vmem:[#allocation1 + $0x5] ss:$9 sm:$0xff] %v17419_v20  ;;  %v17627_v60 = vadd.f32 %v1650_v63, %v17395_v27  ;;  %v11986_v27 = vor.u32 %v15117_v17, %v11985_v11  ;;  %v11977_v20 = vld [vmem:[%s23035_s8 + $0x420] sm:$0xf]  ;;  %v11982_v63 = vor.u32 %v15114_v29, %v11979_v8  ;;  %v15109_v29 = vld [vmem:[%s23035_s8 + $0x3f4] sm:$0xf0] }
 0x159   :  { %2570 = vst [vmem:[#allocation1 + $0x6] ss:$9 sm:$0xff] %v17525_v26  ;;  %v17654_v26 = vpop.f32.mrf.mxu1 }
 0x15a   :  { %2571 = vst [vmem:[#allocation1 + $0x7] ss:$9 sm:$0xff] %v17527_v33  ;;  %3109 = vmatpush.bf16.msrb.mxu1 %v11986_v27  ;;  %3168 = vmatpush.bf16.msrb.mxu0 %v11982_v63 }
 0x15b   :  { %23058 = vst [vmem:[#allocation28_spill] sm:$0xff] %v17654_v26 }
 0x15d   :  { %v17656_v33 = vpop.f32.mrf.mxu3 }
 0x15e   :  { %23059 = vst [vmem:[#allocation29_spill] sm:$0xff] %v17656_v33  ;;  %v15124_v33 = vld [vmem:[%s23035_s8 + $0x474] sm:$0xf] }
 0x161   :  { %v2573_v21 = vld [vmem:[#allocation1 + $0x9] sm:$0xff]  ;;  %v2572_v47 = vld [vmem:[#allocation1] sm:$0xff] }
 0x162   :  { %2574 = vst [vmem:[#allocation1] ss:$9 sm:$0xff] %v17529_v51  ;;  %v17652_v51 = vpop.f32.mrf.mxu0 }
 0x163   :  { %2575 = vst [vmem:[#allocation1 + $0x1] ss:$9 sm:$0xff] %v17531_v49  ;;  %v2847_v49 = vld [vmem:[%s23036_s6 + $0x8] sm:$0xff] }
 0x164   :  { %11897 = vmatmul.msk.bf16.gmra.mxu3 %vm560_vm4, %v2573_v21  ;;  %2576 = vst [vmem:[#allocation1 + $0x2] ss:$9 sm:$0xff] %v17495_v37  ;;  %2732 = vmatmul.bf16.gmra.mxu1 %v2572_v47 }
 0x165   :  { %2577 = vst [vmem:[#allocation1 + $0x3] ss:$9 sm:$0xff] %v17497_v9  ;;  %11901 = vmatmul.msk.bf16.gmra.mxu2 %vm560_vm4, %v2573_v21  ;;  %2790 = vmatmul.bf16.gmra.mxu0 %v2572_v47  ;;  %v15115_v9 = vld [vmem:[%s23035_s8 + $0x424] sm:$0xf0]  ;;  %v1625_v21 = vpop.f32.mrf.mxu1  ;;  %v1654_v47 = vpop.f32.mrf.mxu3 }
 0x166   :  { %2578 = vst [vmem:[#allocation1 + $0x4] ss:$9 sm:$0xff] %v17499_v18  ;;  %v11978_v37 = vor.u32 %v15115_v9, %v11977_v20  ;;  %v17658_v18 = vpop.f32.mrf.mxu2  ;;  %v1655_v17 = vadd.f32 %v1654_v47, %v1625_v21  ;;  %v2848_v9 = vld [vmem:[%s23036_s6 + $0x10] sm:$0xff]  ;;  %v11971_v47 = vld [vmem:[%s23035_s8 + $0x418] sm:$0xf0] }
 0x167   :  { %2579 = vst [vmem:[#allocation1 + $0x5] ss:$9 sm:$0xff] %v17501_v62  ;;  %v11969_v62 = vld [vmem:[%s23035_s8 + $0x410] sm:$0xf]  ;;  %v15112_v21 = vld [vmem:[%s23035_s8 + $0x414] sm:$0xf] }
 0x168   :  { %2857 = vst [vmem:[#allocation1 + $0x20] sm:$0xff] %v2847_v49  ;;  %3110 = vmatpush.bf16.msrb.mxu1 %v11978_v37  ;;  %v11970_v31 = vor.u32 %v15113_v42, %v11969_v62  ;;  %v17710_v20 = vadd.f32 %v1655_v17, %v17439_v55  ;;  %v11945_v17 = vld [vmem:[%s23035_s8 + $0x3e0] sm:$0xf] }
 0x169   :  { %23057 = vst [vmem:[#allocation27_spill] sm:$0xff] %v17652_v51  ;;  %v15106_v51 = vld [vmem:[%s23035_s8 + $0x3e4] sm:$0xf] }
 0x16a   :  { %23060 = vst [vmem:[#allocation30_spill] sm:$0xff] %v17658_v18  ;;  %v1678_v11 = vpop.f32.mrf.mxu0 }
 0x16c   :  { %3111 = vmatpush.bf16.msrb.mxu1 %v11970_v31 }
 0x16e   :  { %v2580_v2 = vld [vmem:[#allocation1] sm:$0xff]  ;;  %v2581_v13 = vld [vmem:[#allocation1 + $0x9] sm:$0xff]  ;;  %v1707_v27 = vpop.f32.mrf.mxu2 }
 0x16f   :  { %v17696_v44 = vld [vmem:[#allocation1 + $0x20] ss:$4 sm:$0xff]  ;;  %v17698_v39 = vld [vmem:[#allocation1 + $0x21] ss:$4 sm:$0xff]  ;;  %v17700_v5 = vld [vmem:[#allocation1 + $0x22] ss:$4 sm:$0xff]  ;;  %v1708_v49 = vadd.f32 %v1707_v27, %v1678_v11  ;;  %v11974_v11 = vor.u32 %v15112_v21, %v11971_v47 }
 0x170   :  { %v17702_v46 = vld [vmem:[#allocation1 + $0x23] ss:$4 sm:$0xff]  ;;  %3112 = vmatpush.bf16.msrb.mxu1 %v11962_v0  ;;  %2855 = vst [vmem:[#allocation1] sm:$0xff] %v2846_v1  ;;  %v11954_v1 = vor.u32 %v15109_v29, %v11953_v38 }
 0x171   :  { %2875 = vst [vmem:[#allocation1 + $0x20] sm:$0xff] %v16945_v16  ;;  %v17714_v16 = vadd.f32 %v1708_v49, %v17403_v28  ;;  %v15107_v27 = vld [vmem:[%s23035_s8 + $0x3e4] sm:$0xf0]  ;;  %v17788_v49 = vpop.f32.mrf.mxu1  ;;  %v15110_v29 = vld [vmem:[%s23035_s8 + $0x404] sm:$0xf]  ;;  %3169 = vmatpush.bf16.msrb.mxu0 %v11974_v11 }
 0x172   :  { %v1680_v0 = vpop.f32.mrf.mxu0  ;;  %23061 = vst [vmem:[#allocation31_spill] sm:$0xff] %v17788_v49  ;;  %v15119_v38 = vld [vmem:[%s23035_s8 + $0x444] sm:$0xf0]  ;;  %v11937_v21 = vld [vmem:[%s23035_s8 + $0x3d0] sm:$0xf] }
 0x173   :  { %v15105_v47 = vld [vmem:[%s23035_s8 + $0x3d4] sm:$0xf0] }
 0x174   :  { %11898 = vmatmul.msk.bf16.gmra.mxu3 %vm560_vm4, %v2581_v13  ;;  %2737 = vmatmul.bf16.gmra.mxu1 %v2580_v2 }
 0x175   :  { %11902 = vmatmul.msk.bf16.gmra.mxu2 %vm560_vm4, %v2581_v13  ;;  %2795 = vmatmul.bf16.gmra.mxu0 %v2580_v2  ;;  %v12001_v2 = vld [vmem:[%s23035_s8 + $0x450] sm:$0xf]  ;;  %v15121_v13 = vld [vmem:[%s23035_s8 + $0x454] sm:$0xf0] }
 0x176   :  { %3113 = vmatpush.bf16.msrb.mxu1 %v11954_v1  ;;  %v12002_v63 = vor.u32 %v15121_v13, %v12001_v2  ;;  %v11963_v1 = vld [vmem:[%s23035_s8 + $0x408] sm:$0xf0]  ;;  %v1709_v2 = vpop.f32.mrf.mxu2 }
 0x177   :  { %v17727_v55 = vld [vmem:[#allocation1 + $0x1] ss:$4 sm:$0xff]  ;;  %v17729_v31 = vld [vmem:[#allocation1 + $0x2] ss:$4 sm:$0xff]  ;;  %v17732_v28 = vld [vmem:[#allocation1 + $0x3] ss:$4 sm:$0xff]  ;;  %v1710_v11 = vadd.f32 %v1709_v2, %v1680_v0 }
 0x178   :  { %v17719_v37 = vld [vmem:[#allocation1 + $0x20] ss:$4 sm:$0xff]  ;;  %v17721_v62 = vld [vmem:[#allocation1 + $0x21] ss:$4 sm:$0xff]  ;;  %v17723_v42 = vld [vmem:[#allocation1 + $0x22] ss:$4 sm:$0xff]  ;;  %3144 = vmatpush.bf16.msrb.mxu3 %v12002_v63  ;;  %v11966_v63 = vor.u32 %v15110_v29, %v11963_v1 }
 0x179   :  { %v17725_v10 = vld [vmem:[#allocation1 + $0x23] ss:$4 sm:$0xff]  ;;  %2873 = vst [vmem:[#allocation1] sm:$0xff] %v2848_v9  ;;  %v17790_v9 = vpop.f32.mrf.mxu3  ;;  %v17825_v26 = vadd.f32 %v1710_v11, %v17487_v52 }
 0x17a   :  { %2887 = vst [vmem:[#allocation1 + $0x20] sm:$0xff] %v17142_v50  ;;  %v15108_v29 = vld [vmem:[%s23035_s8 + $0x3f4] sm:$0xf]  ;;  %v11955_v1 = vld [vmem:[%s23035_s8 + $0x3f8] sm:$0xf0]  ;;  %3170 = vmatpush.bf16.msrb.mxu0 %v11966_v63 }
 0x17b   :  { %23062 = vst [vmem:[#allocation32_spill] sm:$0xff] %v17790_v9  ;;  %v12019_v0 = vld [vmem:[%s23035_s8 + $0x478] sm:$0xf0]  ;;  %v15103_v2 = vld [vmem:[%s23035_s8 + $0x3c4] sm:$0xf0]  ;;  %v11958_v52 = vor.u32 %v15108_v29, %v11955_v1 }
 0x17c   :  { %23063 = vst [vmem:[#allocation33_spill] sm:$0xff] %v17825_v26  ;;  %v15122_v63 = vld [vmem:[%s23035_s8 + $0x464] sm:$0xf] }
 0x17e   :  { %3171 = vmatpush.bf16.msrb.mxu0 %v11958_v52 }
 0x180   :  { %v17745_v41 = vld [vmem:[#allocation1] ss:$4 sm:$0xff]  ;;  %v17747_v35 = vld [vmem:[#allocation1 + $0x1] ss:$4 sm:$0xff]  ;;  %v17750_v50 = vld [vmem:[#allocation1 + $0x2] ss:$4 sm:$0xff] }
 0x181   :  { %v17737_v32 = vld [vmem:[#allocation1 + $0x20] ss:$4 sm:$0xff]  ;;  %v17739_v23 = vld [vmem:[#allocation1 + $0x21] ss:$4 sm:$0xff]  ;;  %v17741_v45 = vld [vmem:[#allocation1 + $0x22] ss:$4 sm:$0xff]  ;;  %v2357_v29 = vpop.f32.mrf.mxu3 }
 0x182   :  { %v17743_v40 = vld [vmem:[#allocation1 + $0x23] ss:$4 sm:$0xff] }
 0x183   :  { %2898 = vst [vmem:[#allocation1 + $0x20] sm:$0xff] %v17215_v59  ;;  %v17752_v14 = vld [vmem:[#allocation1 + $0x3] ss:$4 sm:$0xff] }
 0x184   :  { %2885 = vst [vmem:[#allocation1] sm:$0xff] %v2850_v12  ;;  %v11946_v12 = vor.u32 %v15107_v27, %v11945_v17 }
 0x186   :  { %3114 = vmatpush.bf16.msrb.mxu1 %v11946_v12  ;;  %v11929_v12 = vld [vmem:[%s23035_s8 + $0x3c0] sm:$0xf] }
 0x187   :  { %v11930_v26 = vor.u32 %v15103_v2, %v11929_v12  ;;  %v15120_v2 = vld [vmem:[%s23035_s8 + $0x454] sm:$0xf] }
 0x18a   :  { %v17807_v17 = vld [vmem:[#allocation1 + $0x20] ss:$4 sm:$0xff]  ;;  %v17809_v27 = vld [vmem:[#allocation1 + $0x21] ss:$4 sm:$0xff]  ;;  %v17811_v9 = vld [vmem:[#allocation1 + $0x22] ss:$4 sm:$0xff] }
 0x18b   :  { %v17760_v7 = vld [vmem:[#allocation1 + $0x1] ss:$4 sm:$0xff]  ;;  %v17762_v8 = vld [vmem:[#allocation1 + $0x2] ss:$4 sm:$0xff]  ;;  %v17764_v59 = vld [vmem:[#allocation1 + $0x3] ss:$4 sm:$0xff] }
 0x18c   :  { %2896 = vst [vmem:[#allocation1] sm:$0xff] %v17160_v61  ;;  %v11993_v61 = vld [vmem:[%s23035_s8 + $0x440] sm:$0xf] }
 0x18d   :  { %v11994_v13 = vor.u32 %v15119_v38, %v11993_v61  ;;  %v17813_v49 = vld [vmem:[#allocation1 + $0x23] ss:$4 sm:$0xff]  ;;  %v1683_v61 = vpop.f32.mrf.mxu0  ;;  %v11938_v38 = vor.u32 %v15105_v47, %v11937_v21 }
 0x18f   :  { %3145 = vmatpush.bf16.msrb.mxu3 %v11994_v13  ;;  %v12022_v13 = vor.u32 %v15124_v33, %v12019_v0  ;;  %3115 = vmatpush.bf16.msrb.mxu1 %v11938_v38  ;;  %v12011_v33 = vld [vmem:[%s23035_s8 + $0x468] sm:$0xf0]  ;;  %v2328_v38 = vpop.f32.mrf.mxu1  ;;  %v1712_v0 = vpop.f32.mrf.mxu2 }
 0x190   :  { %v12014_v1 = vor.u32 %v15122_v63, %v12011_v33  ;;  %v2358_v12 = vadd.f32 %v2357_v29, %v2328_v38  ;;  %v17896_v38 = vpop.f32.mrf.mxu3 }
 0x191   :  { %3200 = vmatpush.bf16.msrb.mxu2 %v12022_v13  ;;  %v12003_v13 = vld [vmem:[%s23035_s8 + $0x458] sm:$0xf0]  ;;  %23065 = vst [vmem:[#allocation35_spill] sm:$0xff] %v17896_v38 }
 0x192   :  { %v12006_v63 = vor.u32 %v15120_v2, %v12003_v13 }
 0x193   :  { %v17836_v21 = vld [vmem:[#allocation1] ss:$4 sm:$0xff]  ;;  %v17838_v47 = vld [vmem:[#allocation1 + $0x1] ss:$4 sm:$0xff]  ;;  %v17840_v18 = vld [vmem:[#allocation1 + $0x2] ss:$4 sm:$0xff]  ;;  %3116 = vmatpush.bf16.msrb.mxu1 %v11930_v26 }
 0x194   :  { %v17842_v11 = vld [vmem:[#allocation1 + $0x3] ss:$4 sm:$0xff] }
 0x195   :  { %2932 = vst [vmem:[#allocation1] ss:$9 sm:$0xff] %v17727_v55  ;;  %v11950_v55 = vor.u32 %v15106_v51, %v11947_v19  ;;  %v11939_v19 = vld [vmem:[%s23035_s8 + $0x3d8] sm:$0xf0]  ;;  %v17874_v51 = vadd.f32 %v2358_v12, %v17574_v57  ;;  %v1685_v52 = vpop.f32.mrf.mxu0  ;;  %3201 = vmatpush.bf16.msrb.mxu2 %v12014_v1 }
 0x196   :  { %2934 = vst [vmem:[#allocation1 + $0x1] ss:$9 sm:$0xff] %v17729_v31  ;;  %v1713_v31 = vadd.f32 %v1712_v0, %v1683_v61  ;;  %v11995_v61 = vld [vmem:[%s23035_s8 + $0x448] sm:$0xf0] }
 0x197   :  { %2936 = vst [vmem:[#allocation1 + $0x2] ss:$9 sm:$0xff] %v17732_v28  ;;  %v15104_v28 = vld [vmem:[%s23035_s8 + $0x3d4] sm:$0xf]  ;;  %3172 = vmatpush.bf16.msrb.mxu0 %v11950_v55  ;;  %v17894_v33 = vpop.f32.mrf.mxu1 }
 0x198   :  { %2938 = vst [vmem:[#allocation1 + $0x3] ss:$9 sm:$0xff] %v17696_v44  ;;  %v17878_v26 = vadd.f32 %v1713_v31, %v17548_v54  ;;  %v15118_v44 = vld [vmem:[%s23035_s8 + $0x444] sm:$0xf]  ;;  %v11942_v57 = vor.u32 %v15104_v28, %v11939_v19  ;;  %v11931_v54 = vld [vmem:[%s23035_s8 + $0x3c8] sm:$0xf0]  ;;  %v2362_v13 = vpop.f32.mrf.mxu3 }
 0x199   :  { %2940 = vst [vmem:[#allocation1 + $0x4] ss:$9 sm:$0xff] %v17698_v39  ;;  %v15102_v39 = vld [vmem:[%s23035_s8 + $0x3c4] sm:$0xf]  ;;  %3202 = vmatpush.bf16.msrb.mxu2 %v12006_v63 }
 0x19a   :  { %2942 = vst [vmem:[#allocation1 + $0x5] ss:$9 sm:$0xff] %v17700_v5  ;;  %v11998_v5 = vor.u32 %v15118_v44, %v11995_v61  ;;  %v11934_v29 = vor.u32 %v15102_v39, %v11931_v54  ;;  %v15137_v61 = vld [vmem:[%s23035_s8 + $0x4d4] sm:$0xf0]  ;;  %v12175_v54 = vld [vmem:[%s23035_s8 + $0x530] sm:$0xf] }
 0x19b   :  { %2944 = vst [vmem:[#allocation1 + $0x6] ss:$9 sm:$0xff] %v17702_v46  ;;  %3173 = vmatpush.bf16.msrb.mxu0 %v11942_v57  ;;  %v1714_v46 = vpop.f32.mrf.mxu2  ;;  %v3244_v57 = vld [vmem:[%s23037_s28 + $0x18] sm:$0xff] }
 0x19c   :  { %2946 = vst [vmem:[#allocation1 + $0x7] ss:$9 sm:$0xff] %v17745_v41  ;;  %v1715_v1 = vadd.f32 %v1714_v46, %v1685_v52  ;;  %v15140_v46 = vld [vmem:[%s23035_s8 + $0x4f4] sm:$0xf] }
 0x19d   :  { %23064 = vst [vmem:[#allocation34_spill] sm:$0xff] %v17894_v33  ;;  %3203 = vmatpush.bf16.msrb.mxu2 %v11998_v5  ;;  %v2386_v55 = vpop.f32.mrf.mxu0  ;;  %v15149_v5 = vld [vmem:[%s23035_s8 + $0x534] sm:$0xf0] }
 0x19e   :  { %v17899_v41 = vadd.f32 %v1715_v1, %v17585_v24  ;;  %v12145_v1 = vld [vmem:[%s23035_s8 + $0x4f8] sm:$0xf0] }
 0x19f   :  { %3174 = vmatpush.bf16.msrb.mxu0 %v11934_v29  ;;  %v2333_v2 = vpop.f32.mrf.mxu1  ;;  %v12176_v29 = vor.u32 %v15149_v5, %v12175_v54 }
 0x1a0   :  { %23066 = vst [vmem:[#allocation36_spill] sm:$0xff] %v17899_v41  ;;  %v2363_v24 = vadd.f32 %v2362_v13, %v2333_v2  ;;  %v17921_v19 = vpop.f32.mrf.mxu3 }
 0x1a1   :  { %23069 = vst [vmem:[#allocation39_spill] sm:$0xff] %v17921_v19  ;;  %3785 = vmatpush.bf16.msra.mxu3 %v12176_v29 }
 0x1a3   :  { %v2947_v0 = vld [vmem:[#allocation1] sm:$0xff]  ;;  %v2948_v12 = vld [vmem:[#allocation1 + $0x9] sm:$0xff]  ;;  %v2415_v31 = vpop.f32.mrf.mxu2 }
 0x1a4   :  { %2949 = vst [vmem:[#allocation1] ss:$9 sm:$0xff] %v17747_v35  ;;  %12023 = vmatmul.msk.bf16.vlgmr.msrb.gmra.mxu3 %vm560_vm4, %v2948_v12  ;;  %3117 = vmatmul.bf16.vlgmr.msrb.gmra.mxu1 %v2947_v0  ;;  %v2416_v28 = vadd.f32 %v2415_v31, %v2386_v55  ;;  %v17910_v35 = vadd.f32 %v2363_v24, %v17603_v4 }
 0x1a5   :  { %2950 = vst [vmem:[#allocation1 + $0x1] ss:$9 sm:$0xff] %v17750_v50  ;;  %12027 = vmatmul.msk.bf16.vlgmr.msrb.gmra.mxu2 %vm560_vm4, %v2948_v12  ;;  %3175 = vmatmul.bf16.vlgmr.msrb.gmra.mxu0 %v2947_v0  ;;  %v3241_v12 = vld [vmem:[%s23037_s28] sm:$0xee]  ;;  %v12148_v24 = vor.u32 %v15140_v46, %v12145_v1  ;;  %v12111_v1 = vld [vmem:[%s23035_s8 + $0x4b0] sm:$0xf] }
 0x1a6   :  { %2951 = vst [vmem:[#allocation1 + $0x2] ss:$9 sm:$0xff] %v17752_v14  ;;  %v17914_v50 = vadd.f32 %v2416_v28, %v17598_v36  ;;  %v17917_v14 = vpop.f32.mrf.mxu0 }
 0x1a7   :  { %2952 = vst [vmem:[#allocation1 + $0x3] ss:$9 sm:$0xff] %v17719_v37  ;;  %v17919_v37 = vpop.f32.mrf.mxu1  ;;  %3810 = vmatpush.bf16.msra.mxu0 %v12148_v24  ;;  %v12159_v24 = vld [vmem:[%s23035_s8 + $0x510] sm:$0xf] }
 0x1a8   :  { %2953 = vst [vmem:[#allocation1 + $0x4] ss:$9 sm:$0xff] %v17721_v62  ;;  %v2367_v4 = vpop.f32.mrf.mxu3 }
 0x1a9   :  { %2954 = vst [vmem:[#allocation1 + $0x5] ss:$9 sm:$0xff] %v17723_v42 }
 0x1aa   :  { %2955 = vst [vmem:[#allocation1 + $0x6] ss:$9 sm:$0xff] %v17725_v10 }
 0x1ab   :  { %2956 = vst [vmem:[#allocation1 + $0x7] ss:$9 sm:$0xff] %v17760_v7  ;;  %v17923_v62 = vpop.f32.mrf.mxu2 }
 0x1ac   :  { %23067 = vst [vmem:[#allocation37_spill] sm:$0xff] %v17917_v14 }
 0x1ad   :  { %23068 = vst [vmem:[#allocation38_spill] sm:$0xff] %v17919_v37 }
 0x1ae   :  { %23070 = vst [vmem:[#allocation40_spill] sm:$0xff] %v17923_v62  ;;  %v2391_v10 = vpop.f32.mrf.mxu0 }
 0x1af   :  { %v2338_v36 = vpop.f32.mrf.mxu1 }
 0x1b0   :  { %v2368_v7 = vadd.f32 %v2367_v4, %v2338_v36 }
 0x1b2   :  { %v2958_v52 = vld [vmem:[#allocation1 + $0x9] sm:$0xff]  ;;  %v2957_v42 = vld [vmem:[#allocation1] sm:$0xff] }
 0x1b3   :  { %2959 = vst [vmem:[#allocation1] ss:$9 sm:$0xff] %v17762_v8  ;;  %v2420_v63 = vpop.f32.mrf.mxu2 }
 0x1b4   :  { %12024 = vmatmul.msk.bf16.gmra.mxu3 %vm560_vm4, %v2958_v52  ;;  %2960 = vst [vmem:[#allocation1 + $0x1] ss:$9 sm:$0xff] %v17764_v59  ;;  %3122 = vmatmul.bf16.gmra.mxu1 %v2957_v42  ;;  %v2421_v8 = vadd.f32 %v2420_v63, %v2391_v10  ;;  %v17935_v59 = vadd.f32 %v2368_v7, %v17627_v60  ;;  %v15141_v60 = vld [vmem:[%s23035_s8 + $0x4f4] sm:$0xf0]  ;;  %v12167_v10 = vld [vmem:[%s23035_s8 + $0x520] sm:$0xf] }
 0x1b5   :  { %2961 = vst [vmem:[#allocation1 + $0x2] ss:$9 sm:$0xff] %v17737_v32  ;;  %12028 = vmatmul.msk.bf16.gmra.mxu2 %vm560_vm4, %v2958_v52  ;;  %3180 = vmatmul.bf16.gmra.mxu0 %v2957_v42  ;;  %v12119_v52 = vld [vmem:[%s23035_s8 + $0x4c0] sm:$0xf]  ;;  %v15135_v42 = vld [vmem:[%s23035_s8 + $0x4c4] sm:$0xf0] }
 0x1b6   :  { %2962 = vst [vmem:[#allocation1 + $0x3] ss:$9 sm:$0xff] %v17739_v23  ;;  %v17939_v32 = vadd.f32 %v2421_v8, %v17623_v48  ;;  %v12120_v4 = vor.u32 %v15135_v42, %v12119_v52  ;;  %v15147_v7 = vld [vmem:[%s23035_s8 + $0x524] sm:$0xf0]  ;;  %v15136_v52 = vld [vmem:[%s23035_s8 + $0x4d4] sm:$0xf] }
 0x1b7   :  { %2963 = vst [vmem:[#allocation1 + $0x4] ss:$9 sm:$0xff] %v17741_v45  ;;  %v12143_v45 = vld [vmem:[%s23035_s8 + $0x4f0] sm:$0xf] }
 0x1b8   :  { %2964 = vst [vmem:[#allocation1 + $0x5] ss:$9 sm:$0xff] %v17743_v40  ;;  %v12144_v48 = vor.u32 %v15141_v60, %v12143_v45  ;;  %v17956_v40 = vpop.f32.mrf.mxu0  ;;  %v12137_v45 = vld [vmem:[%s23035_s8 + $0x4e8] sm:$0xf0] }
 0x1b9   :  { %2965 = vst [vmem:[#allocation1 + $0x6] ss:$9 sm:$0xff] %v17836_v21 }
 0x1ba   :  { %2966 = vst [vmem:[#allocation1 + $0x7] ss:$9 sm:$0xff] %v17838_v47  ;;  %3752 = vmatpush.bf16.msra.mxu1 %v12144_v48  ;;  %v17966_v47 = vpop.f32.mrf.mxu1 }
 0x1bb   :  { %23071 = vst [vmem:[#allocation41_spill] sm:$0xff] %v17956_v40 }
 0x1bc   :  { %23072 = vst [vmem:[#allocation42_spill] sm:$0xff] %v17966_v47 }
 0x1c0   :  { %v2396_v28 = vpop.f32.mrf.mxu0 }
 0x1c1   :  { %v2968_v23 = vld [vmem:[#allocation1 + $0x9] sm:$0xff]  ;;  %v2967_v44 = vld [vmem:[#allocation1] sm:$0xff] }
 0x1c2   :  { %2969 = vst [vmem:[#allocation1] ss:$9 sm:$0xff] %v17840_v18  ;;  %v3242_v18 = vld [vmem:[%s23037_s28 + $0x8] sm:$0xff]  ;;  %v2343_v63 = vpop.f32.mrf.mxu1 }
 0x1c3   :  { %2970 = vst [vmem:[#allocation1 + $0x1] ss:$9 sm:$0xff] %v17842_v11  ;;  %v17968_v11 = vpop.f32.mrf.mxu3 }
 0x1c4   :  { %12025 = vmatmul.msk.bf16.gmra.mxu3 %vm560_vm4, %v2968_v23  ;;  %2971 = vst [vmem:[#allocation1 + $0x2] ss:$9 sm:$0xff] %v17807_v17  ;;  %3127 = vmatmul.bf16.gmra.mxu1 %v2967_v44  ;;  %v12135_v17 = vld [vmem:[%s23035_s8 + $0x4e0] sm:$0xf] }
 0x1c5   :  { %2972 = vst [vmem:[#allocation1 + $0x3] ss:$9 sm:$0xff] %v17809_v27  ;;  %12029 = vmatmul.msk.bf16.gmra.mxu2 %vm560_vm4, %v2968_v23  ;;  %3185 = vmatmul.bf16.gmra.mxu0 %v2967_v44  ;;  %v15139_v27 = vld [vmem:[%s23035_s8 + $0x4e4] sm:$0xf0]  ;;  %v12168_v23 = vor.u32 %v15147_v7, %v12167_v10  ;;  %v15138_v44 = vld [vmem:[%s23035_s8 + $0x4e4] sm:$0xf] }
 0x1c6   :  { %2973 = vst [vmem:[#allocation1 + $0x4] ss:$9 sm:$0xff] %v17811_v9  ;;  %v12136_v21 = vor.u32 %v15139_v27, %v12135_v17  ;;  %v17970_v9 = vpop.f32.mrf.mxu2  ;;  %v15131_v10 = vld [vmem:[%s23035_s8 + $0x4a4] sm:$0xf0] }
 0x1c7   :  { %2974 = vst [vmem:[#allocation1 + $0x5] ss:$9 sm:$0xff] %v17813_v49  ;;  %v12127_v49 = vld [vmem:[%s23035_s8 + $0x4d0] sm:$0xf]  ;;  %3786 = vmatpush.bf16.msra.mxu3 %v12168_v23  ;;  %v15143_v23 = vld [vmem:[%s23035_s8 + $0x504] sm:$0xf0] }
 0x1c8   :  { %3254 = vst [vmem:[#allocation1 + $0x20] sm:$0xff] %v3242_v18  ;;  %3753 = vmatpush.bf16.msra.mxu1 %v12136_v21  ;;  %v12128_v39 = vor.u32 %v15137_v61, %v12127_v49  ;;  %v12140_v18 = vor.u32 %v15138_v44, %v12137_v45  ;;  %v3246_v49 = vld [vmem:[%s23037_s28 + $0x28] sm:$0xee]  ;;  %v3243_v61 = vld [vmem:[%s23037_s28 + $0x10] sm:$0xff]  ;;  %v18048_v46 = vpop.f32.mrf.mxu0  ;;  %v15134_v44 = vld [vmem:[%s23035_s8 + $0x4c4] sm:$0xf] }
 0x1c9   :  { %23073 = vst [vmem:[#allocation43_spill] sm:$0xff] %v17968_v11 }
 0x1ca   :  { %23074 = vst [vmem:[#allocation44_spill] sm:$0xff] %v17970_v9  ;;  %3811 = vmatpush.bf16.msra.mxu0 %v12140_v18  ;;  %v15129_v18 = vld [vmem:[%s23035_s8 + $0x494] sm:$0xf0]  ;;  %v15146_v9 = vld [vmem:[%s23035_s8 + $0x524] sm:$0xf] }
 0x1cb   :  { %v2372_v8 = vpop.f32.mrf.mxu3  ;;  %23075 = vst [vmem:[#allocation45_spill] sm:$0xff] %v18048_v46 }
 0x1cc   :  { %3754 = vmatpush.bf16.msra.mxu1 %v12128_v39  ;;  %v2373_v60 = vadd.f32 %v2372_v8, %v2343_v63  ;;  %v12151_v8 = vld [vmem:[%s23035_s8 + $0x500] sm:$0xf] }
 0x1cd   :  { %v12152_v45 = vor.u32 %v15143_v23, %v12151_v8 }
 0x1ce   :  { %v2975_v0 = vld [vmem:[#allocation1] sm:$0xff]  ;;  %v2976_v36 = vld [vmem:[#allocation1 + $0x9] sm:$0xff]  ;;  %v2425_v48 = vpop.f32.mrf.mxu2  ;;  %v18024_v27 = vadd.f32 %v2373_v60, %v17710_v20 }
 0x1cf   :  { %v17996_v55 = vld [vmem:[#allocation1 + $0x20] ss:$4 sm:$0xff]  ;;  %v17998_v2 = vld [vmem:[#allocation1 + $0x21] ss:$4 sm:$0xff]  ;;  %v18000_v13 = vld [vmem:[#allocation1 + $0x22] ss:$4 sm:$0xff]  ;;  %v2426_v17 = vadd.f32 %v2425_v48, %v2396_v28 }
 0x1d0   :  { %v18002_v31 = vld [vmem:[#allocation1 + $0x23] ss:$4 sm:$0xff]  ;;  %3252 = vst [vmem:[#allocation1] sm:$0xff] %v3241_v12  ;;  %3755 = vmatpush.bf16.msra.mxu1 %v12120_v4  ;;  %v3331_v62 = vshrl.u32 %v17996_v55, 16 }
 0x1d1   :  { %3272 = vst [vmem:[#allocation1 + $0x20] sm:$0xff] %v3244_v57  ;;  %v18027_v21 = vadd.f32 %v2426_v17, %v17714_v16  ;;  %v15145_v28 = vld [vmem:[%s23035_s8 + $0x514] sm:$0xf0]  ;;  %v12103_v4 = vld [vmem:[%s23035_s8 + $0x4a0] sm:$0xf] }
 0x1d2   :  { %v12160_v42 = vor.u32 %v15145_v28, %v12159_v24  ;;  %v12104_v63 = vor.u32 %v15131_v10, %v12103_v4  ;;  %v12121_v60 = vld [vmem:[%s23035_s8 + $0x4c8] sm:$0xf0]  ;;  %v12095_v48 = vld [vmem:[%s23035_s8 + $0x490] sm:$0xf]  ;;  %v3245_v17 = vld [vmem:[%s23037_s28 + $0x20] sm:$0x11] }
 0x1d3   :  { %v12096_v28 = vor.u32 %v15129_v18, %v12095_v48  ;;  %v18116_v10 = vpop.f32.mrf.mxu3  ;;  %v15132_v48 = vld [vmem:[%s23035_s8 + $0x4b4] sm:$0xf]  ;;  %v12113_v18 = vld [vmem:[%s23035_s8 + $0x4b8] sm:$0xf0] }
 0x1d4   :  { %12026 = vmatmul.msk.bf16.gmra.mxu3 %vm560_vm4, %v2976_v36  ;;  %3132 = vmatmul.bf16.gmra.mxu1 %v2975_v0  ;;  %23078 = vst [vmem:[#allocation48_spill] sm:$0xff] %v18116_v10  ;;  %v12087_v10 = vld [vmem:[%s23035_s8 + $0x480] sm:$0xf] }
 0x1d5   :  { %3190 = vmatmul.bf16.gmra.mxu0 %v2975_v0  ;;  %12030 = vmatmul.msk.bf16.gmra.mxu2 %vm560_vm4, %v2976_v36  ;;  %v15133_v0 = vld [vmem:[%s23035_s8 + $0x4b4] sm:$0xf0]  ;;  %v12129_v36 = vld [vmem:[%s23035_s8 + $0x4d8] sm:$0xf0] }
 0x1d6   :  { %v12112_v12 = vor.u32 %v15133_v0, %v12111_v1  ;;  %v12132_v7 = vor.u32 %v15136_v52, %v12129_v36  ;;  %3787 = vmatpush.bf16.msra.mxu3 %v12160_v42  ;;  %v18112_v36 = vpop.f32.mrf.mxu1  ;;  %v18114_v4 = vpop.f32.mrf.mxu2 }
 0x1d7   :  { %v18044_v16 = vld [vmem:[#allocation1 + $0x1] ss:$4 sm:$0xff]  ;;  %v18046_v5 = vld [vmem:[#allocation1 + $0x2] ss:$4 sm:$0xff]  ;;  %v18050_v29 = vld [vmem:[#allocation1 + $0x3] ss:$4 sm:$0xff] }
 0x1d8   :  { %v18036_v57 = vld [vmem:[#allocation1 + $0x20] ss:$4 sm:$0xff]  ;;  %v18038_v20 = vld [vmem:[#allocation1 + $0x21] ss:$4 sm:$0xff]  ;;  %v18040_v39 = vld [vmem:[#allocation1 + $0x22] ss:$4 sm:$0xff]  ;;  %3756 = vmatpush.bf16.msra.mxu1 %v12112_v12  ;;  %3812 = vmatpush.bf16.msra.mxu0 %v12132_v7  ;;  %v2401_v7 = vpop.f32.mrf.mxu0 }
 0x1d9   :  { %v18042_v54 = vld [vmem:[#allocation1 + $0x23] ss:$4 sm:$0xff]  ;;  %3270 = vst [vmem:[#allocation1] sm:$0xff] %v3243_v61  ;;  %v3321_v19 = vshll.u32 %v18050_v29, 16  ;;  %v3324_v34 = vshrl.u32 %v18050_v29, 16 }
 0x1da   :  { %3285 = vst [vmem:[#allocation1 + $0x20] sm:$0xff] %v3246_v49  ;;  %v12124_v49 = vor.u32 %v15134_v44, %v12121_v60  ;;  %3788 = vmatpush.bf16.msra.mxu3 %v12152_v45 }
 0x1db   :  { %23076 = vst [vmem:[#allocation46_spill] sm:$0xff] %v18112_v36  ;;  %v2752_v46 = vpop.f32.mrf.mxu3 }
 0x1dc   :  { %3757 = vmatpush.bf16.msra.mxu1 %v12104_v63  ;;  %23077 = vst [vmem:[#allocation47_spill] sm:$0xff] %v18114_v4  ;;  %3813 = vmatpush.bf16.msra.mxu0 %v12124_v49  ;;  %v3247_v63 = vld [vmem:[%s23037_s28 + $0x30] sm:$0xff]  ;;  %v12116_v49 = vor.u32 %v15132_v48, %v12113_v18  ;;  %v15130_v48 = vld [vmem:[%s23035_s8 + $0x4a4] sm:$0xf]  ;;  %v12105_v18 = vld [vmem:[%s23035_s8 + $0x4a8] sm:$0xf0] }
 0x1de   :  { %v2723_v41 = vpop.f32.mrf.mxu1 }
 0x1df   :  { %v2753_v40 = vadd.f32 %v2752_v46, %v2723_v41  ;;  %v15144_v46 = vld [vmem:[%s23035_s8 + $0x514] sm:$0xf] }
 0x1e0   :  { %v18104_v12 = vld [vmem:[#allocation1] ss:$4 sm:$0xff]  ;;  %v18106_v24 = vld [vmem:[#allocation1 + $0x1] ss:$4 sm:$0xff]  ;;  %v18108_v52 = vld [vmem:[#allocation1 + $0x2] ss:$4 sm:$0xff]  ;;  %3758 = vmatpush.bf16.msra.mxu1 %v12096_v28  ;;  %v18152_v47 = vpop.f32.mrf.mxu0  ;;  %3814 = vmatpush.bf16.msra.mxu0 %v12116_v49 }
 0x1e1   :  { %v18097_v61 = vld [vmem:[#allocation1 + $0x21] ss:$4 sm:$0xff]  ;;  %v18099_v1 = vld [vmem:[#allocation1 + $0x22] ss:$4 sm:$0xff]  ;;  %v18101_v0 = vld [vmem:[#allocation1 + $0x23] ss:$4 sm:$0xff]  ;;  %v18176_v41 = vadd.f32 %v2753_v40, %v17874_v51 }
 0x1e2   :  { %3292 = vst [vmem:[#allocation1 + $0x20] sm:$0xff] %v17444_v22  ;;  %v18110_v42 = vld [vmem:[#allocation1 + $0x3] ss:$4 sm:$0xff]  ;;  %v3250_v22 = vld [vmem:[%s23037_s28 + $0x48] sm:$0x11]  ;;  %v3359_v33 = vshrl.u32 %v18104_v12, 16 }
 0x1e3   :  { %3282 = vst [vmem:[#allocation1] sm:$0xff] %v3245_v17  ;;  %v15148_v17 = vld [vmem:[%s23035_s8 + $0x534] sm:$0xf]  ;;  %v12177_v28 = vld [vmem:[%s23035_s8 + $0x538] sm:$0xf0]  ;;  %v3363_v25 = vshll.u32 %v18106_v24, 16 }
 0x1e4   :  { %v12180_v36 = vor.u32 %v15148_v17, %v12177_v28  ;;  %23079 = vst [vmem:[#allocation49_spill] sm:$0xff] %v18152_v47  ;;  %v12108_v17 = vor.u32 %v15130_v48, %v12105_v18  ;;  %v12097_v49 = vld [vmem:[%s23035_s8 + $0x498] sm:$0xf0]  ;;  %v15126_v48 = vld [vmem:[%s23035_s8 + $0x484] sm:$0xf] }
 0x1e5   :  { %v12089_v18 = vld [vmem:[%s23035_s8 + $0x488] sm:$0xf0] }
 0x1e6   :  { %3843 = vmatpush.bf16.msra.mxu2 %v12180_v36  ;;  %3815 = vmatpush.bf16.msra.mxu0 %v12108_v17  ;;  %v18203_v47 = vpop.f32.mrf.mxu1  ;;  %v15142_v17 = vld [vmem:[%s23035_s8 + $0x504] sm:$0xf] }
 0x1e7   :  { %23081 = vst [vmem:[#allocation51_spill] sm:$0xff] %v18203_v47  ;;  %v3328_v47 = vshll.u32 %v17996_v55, 16 }
 0x1e9   :  { %v18124_v8 = vld [vmem:[#allocation1 + $0x20] ss:$4 sm:$0xff]  ;;  %v18126_v23 = vld [vmem:[#allocation1 + $0x21] ss:$4 sm:$0xff]  ;;  %v18128_v44 = vld [vmem:[#allocation1 + $0x22] ss:$4 sm:$0xff] }
 0x1ea   :  { %v18130_v45 = vld [vmem:[#allocation1 + $0x23] ss:$4 sm:$0xff]  ;;  %v18132_v60 = vld [vmem:[#allocation1] ss:$4 sm:$0xff] }
 0x1eb   :  { %3304 = vst [vmem:[#allocation1 + $0x20] sm:$0xff] %v3250_v22  ;;  %v2430_v22 = vpop.f32.mrf.mxu2 }
 0x1ec   :  { %3290 = vst [vmem:[#allocation1] sm:$0xff] %v3247_v63  ;;  %v15127_v63 = vld [vmem:[%s23035_s8 + $0x484] sm:$0xf0]  ;;  %v2431_v4 = vadd.f32 %v2430_v22, %v2401_v7  ;;  %v15128_v22 = vld [vmem:[%s23035_s8 + $0x494] sm:$0xf] }
 0x1ed   :  { %v12088_v11 = vor.u32 %v15127_v63, %v12087_v10  ;;  %v12169_v10 = vld [vmem:[%s23035_s8 + $0x528] sm:$0xf0]  ;;  %v12100_v51 = vor.u32 %v15128_v22, %v12097_v49  ;;  %v3310_v22 = vshrl.u32 %v18044_v16, 16  ;;  %v3314_v49 = vshll.u32 %v18046_v5, 16 }
 0x1ee   :  { %v18167_v7 = vadd.f32 %v2431_v4, %v17878_v26  ;;  %v12172_v28 = vor.u32 %v15146_v9, %v12169_v10  ;;  %v12161_v26 = vld [vmem:[%s23035_s8 + $0x518] sm:$0xf0] }
 0x1ef   :  { %3759 = vmatpush.bf16.msra.mxu1 %v12088_v11  ;;  %v3249_v11 = vld [vmem:[%s23037_s28 + $0x40] sm:$0xff]  ;;  %v12164_v63 = vor.u32 %v15144_v46, %v12161_v26  ;;  %v18213_v46 = vpop.f32.mrf.mxu3  ;;  %v2781_v26 = vpop.f32.mrf.mxu0  ;;  %3816 = vmatpush.bf16.msra.mxu0 %v12100_v51  ;;  %v3316_v16 = vsel %vm16437_vm10, %v3310_v22, %v3314_v49  ;;  %v3338_v51 = vshrl.u32 %v17998_v2, 16  ;;  %v3356_v22 = vshll.u32 %v18104_v12, 16 }
 0x1f0   :  { %3844 = vmatpush.bf16.msra.mxu2 %v12172_v28  ;;  %v12153_v28 = vld [vmem:[%s23035_s8 + $0x508] sm:$0xf0]  ;;  %23082 = vst [vmem:[#allocation52_spill] sm:$0xff] %v18213_v46  ;;  %v3335_v46 = vshll.u32 %v17998_v2, 16  ;;  %v3330_v2 = vsel %vm16437_vm10, %v3324_v34, %v3328_v47  ;;  %v2728_v49 = vpop.f32.mrf.mxu1 }
 0x1f1   :  { %v12156_v37 = vor.u32 %v15142_v17, %v12153_v28 }
 0x1f2   :  { %v18223_v14 = vld [vmem:[#allocation1 + $0x20] ss:$4 sm:$0xff]  ;;  %v3337_v38 = vsel %vm16437_vm10, %v3331_v62, %v3335_v46 }
 0x1f3   :  { %v18187_v9 = vld [vmem:[#allocation1] ss:$4 sm:$0xff]  ;;  %v18189_v36 = vld [vmem:[#allocation1 + $0x1] ss:$4 sm:$0xff]  ;;  %v18191_v4 = vld [vmem:[#allocation1 + $0x2] ss:$4 sm:$0xff]  ;;  %v18201_v10 = vpop.f32.mrf.mxu2 }
 0x1f4   :  { %v18193_v40 = vld [vmem:[#allocation1 + $0x3] ss:$4 sm:$0xff]  ;;  %23080 = vst [vmem:[#allocation50_spill] sm:$0xff] %v18201_v10  ;;  %v3317_v10 = vshrl.u32 %v18046_v5, 16  ;;  %3845 = vmatpush.bf16.msra.mxu2 %v12164_v63  ;;  %v3342_v5 = vshll.u32 %v18000_v13, 16  ;;  %v3345_v63 = vshrl.u32 %v18000_v13, 16 }
 0x1f5   :  { %3302 = vst [vmem:[#allocation1] sm:$0xff] %v3249_v11  ;;  %v12092_v11 = vor.u32 %v15126_v48, %v12089_v18  ;;  %v3349_v48 = vshll.u32 %v18002_v31, 16  ;;  %v3352_v13 = vshrl.u32 %v18002_v31, 16 }
 0x1f6   :  { %v3323_v55 = vsel %vm16437_vm10, %v3317_v10, %v3321_v19  ;;  %v3344_v34 = vsel %vm16437_vm10, %v3338_v51, %v3342_v5  ;;  %v3370_v5 = vshll.u32 %v18108_v52, 16 }
 0x1f7   :  { %3817 = vmatpush.bf16.msra.mxu0 %v12092_v11  ;;  %v18247_v10 = vpop.f32.mrf.mxu0  ;;  %v3351_v31 = vsel %vm16437_vm10, %v3345_v63, %v3349_v48  ;;  %v3358_v12 = vsel %vm16437_vm10, %v3352_v13, %v3356_v22  ;;  %v3377_v48 = vshll.u32 %v18110_v42, 16  ;;  %v3394_v13 = vshrl.u32 %v18038_v20, 16 }
 0x1f8   :  { %3846 = vmatpush.bf16.msra.mxu2 %v12156_v37  ;;  %v2757_v37 = vpop.f32.mrf.mxu3  ;;  %v3398_v22 = vshll.u32 %v18040_v39, 16 }
 0x1f9   :  { %v2758_v47 = vadd.f32 %v2757_v37, %v2728_v49  ;;  %v3401_v49 = vshrl.u32 %v18040_v39, 16  ;;  %v3419_v39 = vshll.u32 %v18099_v1, 16 }
 0x1fb   :  { %v2810_v11 = vpop.f32.mrf.mxu2  ;;  %v18259_v46 = vadd.f32 %v2758_v47, %v17910_v35  ;;  %v3373_v35 = vshrl.u32 %v18108_v52, 16  ;;  %v3415_v47 = vshrl.u32 %v18097_v61, 16 }
 0x1fc   :  { %v18229_v29 = vld [vmem:[#allocation1] ss:$4 sm:$0xff]  ;;  %v18231_v18 = vld [vmem:[#allocation1 + $0x1] ss:$4 sm:$0xff]  ;;  %v18233_v17 = vld [vmem:[#allocation1 + $0x2] ss:$4 sm:$0xff]  ;;  %v2811_v19 = vadd.f32 %v2810_v11, %v2781_v26  ;;  %v3365_v26 = vsel %vm16437_vm10, %v3359_v33, %v3363_v25 }
 0x1fd   :  { %v18237_v28 = vld [vmem:[#allocation1 + $0x3] ss:$4 sm:$0xff]  ;;  %v3380_v25 = vshrl.u32 %v18110_v42, 16  ;;  %v3384_v33 = vshll.u32 %v18036_v57, 16  ;;  %v3379_v52 = vsel %vm16437_vm10, %v3373_v35, %v3377_v48  ;;  %v3405_v42 = vshll.u32 %v18042_v54, 16 }
 0x1fe   :  { %3546 = vst [vmem:[#allocation1] ss:$9 sm:$0xff] %v3316_v16  ;;  %v18254_v62 = vadd.f32 %v2811_v19, %v17914_v50  ;;  %v18263_v16 = vpop.f32.mrf.mxu1  ;;  %v3366_v50 = vshrl.u32 %v18106_v24, 16  ;;  %v3408_v19 = vshrl.u32 %v18042_v54, 16 }
 0x1ff   :  { %3549 = vst [vmem:[#allocation1 + $0x1] ss:$9 sm:$0xff] %v3323_v55  ;;  %v3387_v55 = vshrl.u32 %v18036_v57, 16  ;;  %v3386_v57 = vsel %vm16437_vm10, %v3380_v25, %v3384_v33  ;;  %v3421_v25 = vsel %vm16437_vm10, %v3415_v47, %v3419_v39  ;;  %v3422_v33 = vshrl.u32 %v18099_v1, 16 }
 0x200   :  { %3552 = vst [vmem:[#allocation1 + $0x2] ss:$9 sm:$0xff] %v3330_v2  ;;  %v18269_v63 = vpop.f32.mrf.mxu3  ;;  %v3391_v2 = vshll.u32 %v18038_v20, 16  ;;  %v3372_v24 = vsel %vm16437_vm10, %v3366_v50, %v3370_v5  ;;  %v3407_v5 = vsel %vm16437_vm10, %v3401_v49, %v3405_v42  ;;  %v3440_v49 = vshll.u32 %v18189_v36, 16 }
 0x201   :  { %3555 = vst [vmem:[#allocation1 + $0x3] ss:$9 sm:$0xff] %v3337_v38  ;;  %v2786_v38 = vpop.f32.mrf.mxu0  ;;  %v3443_v42 = vshrl.u32 %v18189_v36, 16  ;;  %v3447_v1 = vshll.u32 %v18191_v4, 16  ;;  %v3464_v47 = vshrl.u32 %v18124_v8, 16  ;;  %v3468_v39 = vshll.u32 %v18126_v23, 16 }
 0x202   :  { %3558 = vst [vmem:[#allocation1 + $0x4] ss:$9 sm:$0xff] %v3344_v34  ;;  %v3412_v34 = vshll.u32 %v18132_v60, 16  ;;  %v3393_v20 = vsel %vm16437_vm10, %v3387_v55, %v3391_v2  ;;  %v3426_v55 = vshll.u32 %v18101_v0, 16 }
 0x203   :  { %3561 = vst [vmem:[#allocation1 + $0x5] ss:$9 sm:$0xff] %v3351_v31  ;;  %v18265_v51 = vpop.f32.mrf.mxu2 }
 0x204   :  { %3564 = vst [vmem:[#allocation1 + $0x6] ss:$9 sm:$0xff] %v3358_v12  ;;  %v3414_v35 = vsel %vm16437_vm10, %v3408_v19, %v3412_v34  ;;  %v3457_v19 = vshrl.u32 %v18193_v40, 16 }
 0x205   :  { %3567 = vst [vmem:[#allocation1 + $0x7] ss:$9 sm:$0xff] %v3365_v26  ;;  %v3400_v26 = vsel %vm16437_vm10, %v3394_v13, %v3398_v22  ;;  %v3433_v13 = vshll.u32 %v18187_v9, 16 }
 0x206   :  { %v2733_v31 = vpop.f32.mrf.mxu1 }
 0x208   :  { %v2762_v54 = vpop.f32.mrf.mxu3 }
 0x209   :  { %v18297_v50 = vpop.f32.mrf.mxu0  ;;  %v2763_v61 = vadd.f32 %v2762_v54, %v2733_v31  ;;  %v3471_v31 = vshrl.u32 %v18126_v23, 16 }
 0x20b   :  { %v2815_v12 = vpop.f32.mrf.mxu2 }
 0x20c   :  { %v3569_v11 = vld [vmem:[#allocation1 + $0x9] sm:$0xff]  ;;  %v3568_v37 = vld [vmem:[#allocation1] sm:$0xff]  ;;  %v2816_v60 = vadd.f32 %v2815_v12, %v2786_v38  ;;  %v18309_v38 = vadd.f32 %v2763_v61, %v17935_v59  ;;  %v3436_v59 = vshrl.u32 %v18187_v9, 16  ;;  %v3461_v9 = vshll.u32 %v18124_v8, 16 }
 0x20d   :  { %12181 = vmatmul.msk.bf16.vlgmr.msra.gmra.mxu3 %vm560_vm4, %v3569_v11  ;;  %3760 = vmatmul.bf16.vlgmr.msra.gmra.mxu1 %v3568_v37  ;;  %3571 = vst [vmem:[#allocation1] ss:$9 sm:$0xff] %v3372_v24  ;;  %v3475_v12 = vshll.u32 %v18128_v44, 16  ;;  %v3470_v61 = vsel %vm16437_vm10, %v3464_v47, %v3468_v39 }
 0x20e   :  { %3573 = vst [vmem:[#allocation1 + $0x1] ss:$9 sm:$0xff] %v3379_v52  ;;  %3818 = vmatmul.bf16.vlgmr.msra.gmra.mxu0 %v3568_v37  ;;  %12185 = vmatmul.msk.bf16.vlgmr.msra.gmra.mxu2 %vm560_vm4, %v3569_v11  ;;  %v18304_v48 = vadd.f32 %v2816_v60, %v17939_v32  ;;  %v18313_v2 = vpop.f32.mrf.mxu1  ;;  %v3429_v32 = vshrl.u32 %v18101_v0, 16  ;;  %v3428_v11 = vsel %vm16437_vm10, %v3422_v33, %v3426_v55  ;;  %v3450_v37 = vshrl.u32 %v18191_v4, 16 }
 0x20f   :  { %3575 = vst [vmem:[#allocation1 + $0x2] ss:$9 sm:$0xff] %v3386_v57  ;;  %v3454_v0 = vshll.u32 %v18193_v40, 16  ;;  %v3442_v36 = vsel %vm16437_vm10, %v3436_v59, %v3440_v49  ;;  %v3449_v4 = vsel %vm16437_vm10, %v3443_v42, %v3447_v1  ;;  %v3463_v8 = vsel %vm16437_vm10, %v3457_v19, %v3461_v9 }
 0x210   :  { %3577 = vst [vmem:[#allocation1 + $0x3] ss:$9 sm:$0xff] %v3393_v20  ;;  %v18319_v22 = vpop.f32.mrf.mxu3  ;;  %v3435_v57 = vsel %vm16437_vm10, %v3429_v32, %v3433_v13  ;;  %v3478_v32 = vshrl.u32 %v18128_v44, 16  ;;  %v3482_v13 = vshll.u32 %v18130_v45, 16  ;;  %v3489_v59 = vshll.u32 %v18229_v29, 16 }
 0x211   :  { %3579 = vst [vmem:[#allocation1 + $0x4] ss:$9 sm:$0xff] %v3400_v26  ;;  %v2791_v52 = vpop.f32.mrf.mxu0  ;;  %v3456_v40 = vsel %vm16437_vm10, %v3450_v37, %v3454_v0  ;;  %v3496_v1 = vshll.u32 %v18231_v18, 16  ;;  %v3499_v37 = vshrl.u32 %v18231_v18, 16  ;;  %v3503_v44 = vshll.u32 %v18233_v17, 16 }
 0x212   :  { %3581 = vst [vmem:[#allocation1 + $0x5] ss:$9 sm:$0xff] %v3407_v5  ;;  %v3506_v0 = vshrl.u32 %v18233_v17, 16  ;;  %v3517_v9 = vshll.u32 %v18223_v14, 16 }
 0x213   :  { %3583 = vst [vmem:[#allocation1 + $0x6] ss:$9 sm:$0xff] %v3414_v35  ;;  %v18315_v24 = vpop.f32.mrf.mxu2 }
 0x214   :  { %3585 = vst [vmem:[#allocation1 + $0x7] ss:$9 sm:$0xff] %v3421_v25  ;;  %v3477_v25 = vsel %vm16437_vm10, %v3471_v31, %v3475_v12 }
 0x216   :  { %v2738_v26 = vpop.f32.mrf.mxu1 }
 0x218   :  { %v2767_v23 = vpop.f32.mrf.mxu3 }
 0x219   :  { %v18347_v5 = vpop.f32.mrf.mxu0  ;;  %v2768_v35 = vadd.f32 %v2767_v23, %v2738_v26 }
 0x21b   :  { %v3587_v34 = vld [vmem:[#allocation1 + $0x9] sm:$0xff]  ;;  %v3586_v20 = vld [vmem:[#allocation1] sm:$0xff]  ;;  %v2820_v54 = vpop.f32.mrf.mxu2  ;;  %v18357_v55 = vadd.f32 %v2768_v35, %v18024_v27 }
 0x21c   :  { %3589 = vst [vmem:[#allocation1] ss:$9 sm:$0xff] %v3428_v11  ;;  %v2821_v60 = vadd.f32 %v2820_v54, %v2791_v52  ;;  %v3485_v52 = vshrl.u32 %v18130_v45, 16  ;;  %v3484_v45 = vsel %vm16437_vm10, %v3478_v32, %v3482_v13 }
 0x21d   :  { %12182 = vmatmul.msk.bf16.gmra.mxu3 %vm560_vm4, %v3587_v34  ;;  %3765 = vmatmul.bf16.gmra.mxu1 %v3586_v20  ;;  %3591 = vst [vmem:[#allocation1 + $0x1] ss:$9 sm:$0xff] %v3435_v57  ;;  %v3510_v57 = vshll.u32 %v18237_v28, 16 }
 0x21e   :  { %3593 = vst [vmem:[#allocation1 + $0x2] ss:$9 sm:$0xff] %v3442_v36  ;;  %3823 = vmatmul.bf16.gmra.mxu0 %v3586_v20  ;;  %12186 = vmatmul.msk.bf16.gmra.mxu2 %vm560_vm4, %v3587_v34  ;;  %v18354_v33 = vadd.f32 %v2821_v60, %v18027_v21  ;;  %v18363_v49 = vpop.f32.mrf.mxu1  ;;  %v3492_v21 = vshrl.u32 %v18229_v29, 16  ;;  %v3491_v19 = vsel %vm16437_vm10, %v3485_v52, %v3489_v59  ;;  %v3513_v29 = vshrl.u32 %v18237_v28, 16 }
 0x21f   :  { %3595 = vst [vmem:[#allocation1 + $0x3] ss:$9 sm:$0xff] %v3449_v4  ;;  %v3505_v36 = vsel %vm16437_vm10, %v3499_v37, %v3503_v44  ;;  %v3512_v17 = vsel %vm16437_vm10, %v3506_v0, %v3510_v57 }
 0x220   :  { %3597 = vst [vmem:[#allocation1 + $0x4] ss:$9 sm:$0xff] %v3456_v40  ;;  %v18369_v27 = vpop.f32.mrf.mxu3  ;;  %v3498_v18 = vsel %vm16437_vm10, %v3492_v21, %v3496_v1  ;;  %v3519_v28 = vsel %vm16437_vm10, %v3513_v29, %v3517_v9  ;;  %vm6631_vm10 = vcmask 1042433  }
 0x221   :  { %3599 = vst [vmem:[#allocation1 + $0x5] ss:$9 sm:$0xff] %v3463_v8  ;;  %v2796_v11 = vpop.f32.mrf.mxu0 }
 0x222   :  { %3601 = vst [vmem:[#allocation1 + $0x6] ss:$9 sm:$0xff] %v3470_v61 }
 0x223   :  { %3603 = vst [vmem:[#allocation1 + $0x7] ss:$9 sm:$0xff] %v3477_v25  ;;  %v18365_v42 = vpop.f32.mrf.mxu2 }
 0x226   :  { %v3118_v47 = vpop.f32.mrf.mxu1 }
 0x228   :  { %v3147_v4 = vpop.f32.mrf.mxu3 }
 0x229   :  { %v18391_v31 = vpop.f32.mrf.mxu0  ;;  %v3148_v12 = vadd.f32 %v3147_v4, %v3118_v47 }
 0x22a   :  { %v3605_v34 = vld [vmem:[#allocation1 + $0x9] sm:$0xff]  ;;  %v3604_v20 = vld [vmem:[#allocation1] sm:$0xff] }
 0x22b   :  { %3607 = vst [vmem:[#allocation1] ss:$9 sm:$0xff] %v3484_v45  ;;  %v2825_v14 = vpop.f32.mrf.mxu2  ;;  %v18395_v26 = vadd.f32 %v3148_v12, %v18176_v41 }
 0x22c   :  { %3609 = vst [vmem:[#allocation1 + $0x1] ss:$9 sm:$0xff] %v3491_v19  ;;  %v2826_v39 = vadd.f32 %v2825_v14, %v2796_v11 }
 0x22d   :  { %12183 = vmatmul.msk.bf16.gmra.mxu3 %vm560_vm4, %v3605_v34  ;;  %3770 = vmatmul.bf16.gmra.mxu1 %v3604_v20  ;;  %3611 = vst [vmem:[#allocation1 + $0x2] ss:$9 sm:$0xff] %v3498_v18 }
 0x22e   :  { %3613 = vst [vmem:[#allocation1 + $0x3] ss:$9 sm:$0xff] %v3505_v36  ;;  %3828 = vmatmul.bf16.gmra.mxu0 %v3604_v20  ;;  %12187 = vmatmul.msk.bf16.gmra.mxu2 %vm560_vm4, %v3605_v34  ;;  %v2843_v40 = vadd.f32 %v2826_v39, %v18167_v7  ;;  %v18399_v54 = vpop.f32.mrf.mxu1 }
 0x22f   :  { %3615 = vst [vmem:[#allocation1 + $0x4] ss:$9 sm:$0xff] %v3512_v17 }
 0x230   :  { %3617 = vst [vmem:[#allocation1 + $0x5] ss:$9 sm:$0xff] %v3519_v28  ;;  %v18401_v8 = vpop.f32.mrf.mxu3 }
 0x231   :  { %v3176_v23 = vpop.f32.mrf.mxu0 }
 0x233   :  { %v18397_v3 = vpop.f32.mrf.mxu2 }
 0x236   :  { %v3123_v35 = vpop.f32.mrf.mxu1 }
 0x237   :  { %v3619_v60 = vld [vmem:[#allocation1 + $0x9] sm:$0xff]  ;;  %v3618_v61 = vld [vmem:[#allocation1] sm:$0xff] }
 0x238   :  { %v3152_v7 = vpop.f32.mrf.mxu3 }
 0x239   :  { %v3178_v32 = vpop.f32.mrf.mxu0  ;;  %v3153_v13 = vadd.f32 %v3152_v7, %v3123_v35 }
 0x23b   :  { %v3205_v25 = vpop.f32.mrf.mxu2  ;;  %v18407_v59 = vadd.f32 %v3153_v13, %v18259_v46  ;;  %v610_v13 = vadd.f32 %v16736_v56, %v16776_v30 }
 0x23c   :  { %v3206_v41 = vadd.f32 %v3205_v25, %v3176_v23 }
 0x23d   :  { %12184 = vmatmul.msk.bf16.gmra.mxu3 %vm560_vm4, %v3619_v60  ;;  %3775 = vmatmul.bf16.gmra.mxu1 %v3618_v61 }
 0x23e   :  { %3833 = vmatmul.bf16.gmra.mxu0 %v3618_v61  ;;  %12188 = vmatmul.msk.bf16.gmra.mxu2 %vm560_vm4, %v3619_v60  ;;  %v3226_v52 = vadd.f32 %v3206_v41, %v18254_v62  ;;  %v18409_v21 = vpop.f32.mrf.mxu1  ;;  %vm3929_vm4 = vcmask 1045504  }
 0x240   :  { %v18411_v11 = vpop.f32.mrf.mxu3 }
 0x241   :  { %v3181_v37 = vpop.f32.mrf.mxu0 }
 0x243   :  { %v3207_v1 = vpop.f32.mrf.mxu2 }
 0x246   :  { %v3128_v44 = vpop.f32.mrf.mxu1 }
 0x248   :  { %v3157_v0 = vpop.f32.mrf.mxu3 }
 0x249   :  { %v3158_v19 = vadd.f32 %v3157_v0, %v3128_v44  ;;  %v18413_v29 = vpop.f32.mrf.mxu0  ;;  %v1642_v44 = vadd.f32 %v17587_v53, %v17576_v15  ;;  %v23083_v0 = vld [vmem:[#allocation16_spill] sm:$0xff] }
 0x24b   :  { %v3210_v45 = vpop.f32.mrf.mxu2  ;;  %v18419_v62 = vadd.f32 %v3158_v19, %v18309_v38  ;;  %v23084_v19 = vld [vmem:[#allocation34_spill] sm:$0xff] }
 0x24c   :  { %v3211_v57 = vadd.f32 %v3210_v45, %v3181_v37  ;;  %v896_v37 = vadd.f32 %v17258_v6, %v610_v13 }
 0x24e   :  { %v18416_v9 = vadd.f32 %v3211_v57, %v18304_v48  ;;  %v18421_v46 = vpop.f32.mrf.mxu1  ;;  %v925_v57 = vadd.f32 %v23083_v0, %v896_v37  ;;  %v2813_v37 = vadd.f32 %v18265_v51, %v18247_v10  ;;  %v23091_v10 = vld [vmem:[#allocation11_spill] sm:$0xff]  ;;  %v23092_v51 = vld [vmem:[#allocation10_spill] sm:$0xff] }
 0x250   :  { %v18425_v20 = vpop.f32.mrf.mxu3  ;;  %v1719_v6 = vadd.f32 %v1642_v44, %v925_v57 }
 0x251   :  { %v3186_v18 = vpop.f32.mrf.mxu0 }
 0x253   :  { %v18423_v34 = vpop.f32.mrf.mxu2 }
 0x256   :  { %v3133_v36 = vpop.f32.mrf.mxu1 }
 0x258   :  { %v3162_v28 = vpop.f32.mrf.mxu3 }
 0x259   :  { %v3163_v47 = vadd.f32 %v3162_v28, %v3133_v36  ;;  %v18433_v38 = vpop.f32.mrf.mxu0 }
 0x25b   :  { %v3215_v17 = vpop.f32.mrf.mxu2  ;;  %v18431_v48 = vadd.f32 %v3163_v47, %v18357_v55  ;;  %v23087_v47 = vld [vmem:[#allocation40_spill] sm:$0xff] }
 0x25c   :  { %v3216_v14 = vadd.f32 %v3215_v17, %v3186_v18  ;;  %v23085_v18 = vld [vmem:[#allocation35_spill] sm:$0xff] }
 0x25d   :  { %v2360_v36 = vadd.f32 %v23085_v18, %v23084_v19  ;;  %v3208_v18 = vadd.f32 %v3207_v1, %v3178_v32  ;;  %v23093_v32 = vld [vmem:[#allocation18_spill] sm:$0xff] }
 0x25e   :  { %v18428_v39 = vadd.f32 %v3216_v14, %v18354_v33  ;;  %v18439_v35 = vpop.f32.mrf.mxu1  ;;  %v23086_v14 = vld [vmem:[#allocation37_spill] sm:$0xff] }
 0x260   :  { %v18443_v7 = vpop.f32.mrf.mxu3 }
 0x261   :  { %v3191_v12 = vpop.f32.mrf.mxu0 }
 0x263   :  { %v18435_v4 = vpop.f32.mrf.mxu2 }
 0x269   :  { %v18441_v25 = vpop.f32.mrf.mxu0 }
 0x26b   :  { %v3220_v23 = vpop.f32.mrf.mxu2 }
 0x26c   :  { %v3221_v60 = vadd.f32 %v3220_v23, %v3191_v12  ;;  %v2418_v12 = vadd.f32 %v23087_v47, %v23086_v14  ;;  %v23088_v23 = vld [vmem:[#allocation51_spill] sm:$0xff] }
 0x26e   :  { %v18437_v61 = vadd.f32 %v3221_v60, %v2843_v40  ;;  %v1700_v40 = vadd.f32 %v17609_v58, %v17605_v43  ;;  %v23089_v60 = vld [vmem:[#allocation52_spill] sm:$0xff]  ;;  %v23090_v58 = vld [vmem:[#allocation17_spill] sm:$0xff] }
 0x26f   :  { %v2755_v15 = vadd.f32 %v23089_v60, %v23088_v23 }
 0x270   :  { %v1720_v13 = vadd.f32 %v1700_v40, %v23090_v58 }
 0x272   :  { %v2438_v19 = vadd.f32 %v2418_v12, %v1720_v13  ;;  %v23094_v12 = vld [vmem:[#allocation25_spill] sm:$0xff]  ;;  %v23096_v13 = vld [vmem:[#allocation27_spill] sm:$0xff] }
 0x273   :  { %v18445_v33 = vpop.f32.mrf.mxu2 }
 0x274   :  { %v2833_v44 = vadd.f32 %v2813_v37, %v2438_v19  ;;  %v23097_v37 = vld [vmem:[#allocation30_spill] sm:$0xff]  ;;  %v23098_v19 = vld [vmem:[#allocation19_spill] sm:$0xff] }
 0x28a   :  { %v3761_v41 = vpop.f32.mrf.mxu1 }
 0x28b   :  { %v3819_v55 = vpop.f32.mrf.mxu0 }
 0x290   :  { %v3790_v45 = vpop.f32.mrf.mxu3 }
 0x291   :  { %v3791_v17 = vadd.f32 %v3790_v45, %v3761_v41  ;;  %v3848_v28 = vpop.f32.mrf.mxu2  ;;  %v2437_v41 = vadd.f32 %v2360_v36, %v1719_v6  ;;  %v3150_v45 = vadd.f32 %v18401_v8, %v18399_v54  ;;  %v23095_v6 = vld [vmem:[#allocation26_spill] sm:$0xff] }
 0x292   :  { %v3763_v56 = vpop.f32.mrf.mxu1  ;;  %v3849_v30 = vadd.f32 %v3848_v28, %v3819_v55 }
 0x293   :  { %v3868_v53 = vadd.f32 %v3791_v17, %v18395_v26  ;;  %v3821_v43 = vpop.f32.mrf.mxu0  ;;  %v2832_v55 = vadd.f32 %v2755_v15, %v2437_v41  ;;  %v3228_v26 = vadd.f32 %v3208_v18, %v2833_v44  ;;  %v1647_v15 = vadd.f32 %v23095_v6, %v23094_v12 }
 0x294   :  { %v3869_v0 = vadd.f32 %v3849_v30, %v3226_v52  ;;  %v615_v52 = vadd.f32 %v23092_v51, %v23091_v10  ;;  %v2818_v51 = vadd.f32 %v18315_v24, %v18297_v50 }
 0x295   :  { %v3227_v28 = vadd.f32 %v3150_v45, %v2832_v55  ;;  %v3884_v36 = vmax.f32 %v3868_v53, 0.0  ;;  %v23099_v55 = vld [vmem:[#allocation38_spill] sm:$0xff]  ;;  %v23100_v53 = vld [vmem:[#allocation39_spill] sm:$0xff] }
 0x296   :  { %v3885_v54 = vmax.f32 %v3869_v0, 0.0  ;;  %v901_v1 = vadd.f32 %v23093_v32, %v615_v52  ;;  %v2365_v44 = vadd.f32 %v23100_v53, %v23099_v55  ;;  %v23106_v53 = vld [vmem:[#allocation21_spill] sm:$0xff] }
 0x298   :  { %v3792_v57 = vpop.f32.mrf.mxu3  ;;  %v930_v18 = vadd.f32 %v23098_v19, %v901_v1  ;;  %v23105_v19 = vld [vmem:[#allocation12_spill] sm:$0xff] }
 0x299   :  { %v3793_v14 = vadd.f32 %v3792_v57, %v3763_v56  ;;  %v3850_v47 = vpop.f32.mrf.mxu2  ;;  %v23101_v57 = vld [vmem:[#allocation41_spill] sm:$0xff] }
 0x29a   :  { %v3766_v17 = vpop.f32.mrf.mxu1  ;;  %v3851_v23 = vadd.f32 %v3850_v47, %v3821_v43  ;;  %v1705_v43 = vadd.f32 %v23097_v37, %v23096_v13 }
 0x29b   :  { %v3870_v40 = vadd.f32 %v3793_v14, %v3227_v28  ;;  %v3824_v60 = vpop.f32.mrf.mxu0  ;;  %v23102_v28 = vld [vmem:[#allocation44_spill] sm:$0xff] }
 0x29c   :  { %v3871_v58 = vadd.f32 %v3851_v23, %v3228_v26  ;;  %v2423_v14 = vadd.f32 %v23102_v28, %v23101_v57  ;;  %v1723_v26 = vadd.f32 %v1647_v15, %v930_v18  ;;  %v2760_v23 = vadd.f32 %v18269_v63, %v18263_v16 }
 0x29d   :  { %v3886_v30 = vmax.f32 %v3870_v40, 0.0 }
 0x29e   :  { %v3887_v8 = vmax.f32 %v3871_v58, 0.0  ;;  %v23103_v58 = vld [vmem:[#allocation20_spill] sm:$0xff]  ;;  %v2441_v52 = vadd.f32 %v2365_v44, %v1723_v26 }
 0x29f   :  { %v18472_v56 = vpack.c.bf16 %v3886_v30, %v3884_v36  ;;  %v1724_v10 = vadd.f32 %v1705_v43, %v23103_v58  ;;  %v3155_v36 = vadd.f32 %v18411_v11, %v18409_v21 }
 0x2a0   :  { %v3795_v41 = vpop.f32.mrf.mxu3  ;;  %v18476_v45 = vpack.c.bf16 %v3887_v8, %v3885_v54  ;;  %v3213_v8 = vadd.f32 %v18423_v34, %v18413_v29  ;;  %v2836_v1 = vadd.f32 %v2760_v23, %v2441_v52  ;;  %v23110_v23 = vld [vmem:[#allocation42_spill] sm:$0xff]  ;;  %v23113_v52 = vld [vmem:[#allocation47_spill] sm:$0xff] }
 0x2a1   :  { %v3853_v0 = vpop.f32.mrf.mxu2  ;;  %v3796_v30 = vadd.f32 %v3795_v41, %v3766_v17  ;;  %v2442_v54 = vadd.f32 %v2423_v14, %v1724_v10  ;;  %v23104_v41 = vld [vmem:[#allocation13_spill] sm:$0xff] }
 0x2a2   :  { %v3768_v47 = vpop.f32.mrf.mxu1  ;;  %v3854_v32 = vadd.f32 %v3853_v0, %v3824_v60  ;;  %v3231_v16 = vadd.f32 %v3155_v36, %v2836_v1  ;;  %v620_v29 = vadd.f32 %v23105_v19, %v23104_v41  ;;  %v23108_v0 = vld [vmem:[#allocation29_spill] sm:$0xff] }
 0x2a3   :  { %v3826_v40 = vpop.f32.mrf.mxu0  ;;  %v2837_v12 = vadd.f32 %v2818_v51, %v2442_v54  ;;  %v3872_v63 = vadd.f32 %v3796_v30, %v18407_v59  ;;  %v23107_v59 = vld [vmem:[#allocation28_spill] sm:$0xff]  ;;  %v23112_v51 = vld [vmem:[#allocation45_spill] sm:$0xff] }
 0x2a4   :  { %v3873_v24 = vadd.f32 %v3854_v32, %v18416_v9  ;;  %v906_v44 = vadd.f32 %v23106_v53, %v620_v29  ;;  %v1652_v57 = vadd.f32 %v23108_v0, %v23107_v59  ;;  %v2428_v36 = vadd.f32 %v23113_v52, %v23112_v51  ;;  %v23115_v29 = vld [vmem:[#allocation15_spill] sm:$0xff]  ;;  %v23123_v51 = vld [vmem:[#allocation49_spill] sm:$0xff]  ;;  %v23124_v52 = vld [vmem:[#allocation50_spill] sm:$0xff] }
 0x2a5   :  { %v3232_v37 = vadd.f32 %v3213_v8, %v2837_v12  ;;  %v3888_v34 = vmax.f32 %v3872_v63, 0.0  ;;  %v2765_v8 = vadd.f32 %v18319_v22, %v18313_v2  ;;  %v2823_v32 = vadd.f32 %v18365_v42, %v18347_v5  ;;  %v23114_v63 = vld [vmem:[#allocation33_spill] sm:$0xff] }
 0x2a6   :  { %v3889_v18 = vmax.f32 %v3873_v24, 0.0  ;;  %v3160_v12 = vadd.f32 %v18425_v20, %v18421_v46 }
 0x2a8   :  { %v3797_v6 = vpop.f32.mrf.mxu3 }
 0x2a9   :  { %v3798_v15 = vadd.f32 %v3797_v6, %v3768_v47  ;;  %v3855_v13 = vpop.f32.mrf.mxu2  ;;  %v23109_v47 = vld [vmem:[#allocation22_spill] sm:$0xff] }
 0x2aa   :  { %v3771_v50 = vpop.f32.mrf.mxu1  ;;  %v3856_v43 = vadd.f32 %v3855_v13, %v3826_v40  ;;  %v935_v26 = vadd.f32 %v23109_v47, %v906_v44  ;;  %v23111_v40 = vld [vmem:[#allocation43_spill] sm:$0xff]  ;;  %v3218_v13 = vadd.f32 %v18435_v4, %v18433_v38  ;;  %v23120_v47 = vld [vmem:[#allocation24_spill] sm:$0xff] }
 0x2ab   :  { %v3874_v21 = vadd.f32 %v3798_v15, %v3231_v16  ;;  %v3829_v11 = vpop.f32.mrf.mxu0  ;;  %v2370_v58 = vadd.f32 %v23111_v40, %v23110_v23  ;;  %v2446_v15 = vadd.f32 %v2428_v36, %v23114_v63  ;;  %v23118_v44 = vld [vmem:[#allocation31_spill] sm:$0xff]  ;;  %v23121_v23 = vld [vmem:[#allocation46_spill] sm:$0xff]  ;;  %v23122_v40 = vld [vmem:[#allocation48_spill] sm:$0xff]  ;;  %v2433_v36 = vadd.f32 %v23124_v52, %v23123_v51 }
 0x2ac   :  { %v3875_v17 = vadd.f32 %v3856_v43, %v3232_v37  ;;  %v1727_v54 = vadd.f32 %v1652_v57, %v935_v26  ;;  %v3223_v63 = vadd.f32 %v18445_v33, %v18441_v25  ;;  %v15218_v51 = vld [vmem:[%s23128_s3 + $0x200] sm:$0xf0]  ;;  %v12443_v52 = vld [vmem:[%s23128_s3 + $0x2b8] sm:$0xf] }
 0x2ad   :  { %v3890_v60 = vmax.f32 %v3874_v21, 0.0  ;;  %v2841_v43 = vadd.f32 %v2823_v32, %v2446_v15 }
 0x2ae   :  { %v3891_v55 = vmax.f32 %v3875_v17, 0.0  ;;  %v2445_v1 = vadd.f32 %v2370_v58, %v1727_v54  ;;  %v2375_v58 = vadd.f32 %v23122_v40, %v23121_v23  ;;  %v2770_v54 = vadd.f32 %v18369_v27, %v18363_v49  ;;  %v12457_v40 = vld [vmem:[%s23128_s3 + $0x2dc] sm:$0xf0] }
 0x2af   :  { %v18499_v28 = vpack.c.bf16 %v3890_v60, %v3888_v34  ;;  %v3236_v42 = vadd.f32 %v3218_v13, %v2841_v43  ;;  %v23116_v34 = vld [vmem:[#allocation14_spill] sm:$0xff] }
 0x2b0   :  { %v3800_v14 = vpop.f32.mrf.mxu3  ;;  %v18501_v9 = vpack.c.bf16 %v3891_v55, %v3889_v18  ;;  %v2840_v24 = vadd.f32 %v2765_v8, %v2445_v1  ;;  %v625_v60 = vadd.f32 %v23116_v34, %v23115_v29  ;;  %v23117_v55 = vld [vmem:[#allocation23_spill] sm:$0xff]  ;;  %v2828_v8 = vadd.f32 %v18397_v3, %v18391_v31  ;;  %v15248_v34 = vld [vmem:[%s23128_s3 + $0x2f0] sm:$0xf0] }
 0x2b1   :  { %v3858_v10 = vpop.f32.mrf.mxu2  ;;  %v3801_v6 = vadd.f32 %v3800_v14, %v3771_v50  ;;  %v3165_v1 = vadd.f32 %v18443_v7, %v18439_v35 }
 0x2b2   :  { %v3773_v30 = vpop.f32.mrf.mxu1  ;;  %v3859_v37 = vadd.f32 %v3858_v10, %v3829_v11  ;;  %v3235_v17 = vadd.f32 %v3160_v12, %v2840_v24  ;;  %v911_v53 = vadd.f32 %v23117_v55, %v625_v60  ;;  %v15223_v60 = vld [vmem:[%s23128_s3 + $0x22c] sm:$0xf]  ;;  %v12469_v55 = vld [vmem:[%s23128_s3 + $0x2f4] sm:$0xf0] }
 0x2b3   :  { %v3831_v16 = vpop.f32.mrf.mxu0  ;;  %v3876_v2 = vadd.f32 %v3801_v6, %v18419_v62  ;;  %v23119_v62 = vld [vmem:[#allocation32_spill] sm:$0xff] }
 0x2b4   :  { %v3877_v41 = vadd.f32 %v3859_v37, %v18428_v39  ;;  %v1657_v59 = vadd.f32 %v23119_v62, %v23118_v44  ;;  %v940_v26 = vadd.f32 %v23120_v47, %v911_v53  ;;  %v23125_v6 = vld [vmem:[#allocation36_spill] sm:$0xff]  ;;  %v15221_v62 = vld [vmem:[%s23128_s3 + $0x218] sm:$0xf0]  ;;  %v12361_v47 = vld [vmem:[%s23128_s3 + $0x21c] sm:$0xf0] }
 0x2b5   :  { %v3892_v38 = vmax.f32 %v3876_v2, 0.0  ;;  %v12359_v53 = vld [vmem:[%s23128_s3 + $0x210] sm:$0xf] }
 0x2b6   :  { %v3893_v11 = vmax.f32 %v3877_v41, 0.0 }
 0x2b8   :  { %v3802_v21 = vpop.f32.mrf.mxu3 }
 0x2b9   :  { %v3803_v22 = vadd.f32 %v3802_v21, %v3773_v30  ;;  %v3860_v5 = vpop.f32.mrf.mxu2  ;;  %v1731_v30 = vadd.f32 %v1657_v59, %v940_v26  ;;  %v12455_v59 = vld [vmem:[%s23128_s3 + $0x2d0] sm:$0xf]  ;;  %v15244_v26 = vld [vmem:[%s23128_s3 + $0x2d4] sm:$0xf] }
 0x2ba   :  { %v3861_v46 = vadd.f32 %v3860_v5, %v3831_v16  ;;  %v3776_v50 = vpop.f32.mrf.mxu1  ;;  %v2450_v16 = vadd.f32 %v2433_v36, %v23125_v6  ;;  %v12445_v6 = vld [vmem:[%s23128_s3 + $0x2c4] sm:$0xf0] }
 0x2bb   :  { %v3878_v20 = vadd.f32 %v3803_v22, %v3235_v17  ;;  %v3834_v0 = vpop.f32.mrf.mxu0  ;;  %v2449_v32 = vadd.f32 %v2375_v58, %v1731_v30  ;;  %v12460_v58 = vor.u32 %v15244_v26, %v12457_v40  ;;  %v15242_v30 = vld [vmem:[%s23128_s3 + $0x2c0] sm:$0xf0] }
 0x2bc   :  { %v3879_v19 = vadd.f32 %v3861_v46, %v3236_v42  ;;  %v2845_v24 = vadd.f32 %v2828_v8, %v2450_v16  ;;  %v12349_v8 = vld [vmem:[%s23128_s3 + $0x204] sm:$0xf0]  ;;  %v12335_v16 = vld [vmem:[%s23128_s3 + $0x1e0] sm:$0xf] }
 0x2bd   :  { %v3894_v4 = vmax.f32 %v3878_v20, 0.0  ;;  %v2844_v37 = vadd.f32 %v2770_v54, %v2449_v32  ;;  %v15217_v54 = vld [vmem:[%s23128_s3 + $0x1fc] sm:$0xf]  ;;  %v12444_v32 = vor.u32 %v15242_v30, %v12443_v52 }
 0x2be   :  { %v3895_v18 = vmax.f32 %v3879_v19, 0.0  ;;  %v3240_v17 = vadd.f32 %v3223_v63, %v2845_v24  ;;  %v12467_v19 = vld [vmem:[%s23128_s3 + $0x2e8] sm:$0xf] }
 0x2bf   :  { %v3904_v57 = vpack.c.bf16 %v3894_v4, %v3892_v38  ;;  %v3239_v21 = vadd.f32 %v3165_v1, %v2844_v37  ;;  %v12373_v38 = vld [vmem:[%s23128_s3 + $0x234] sm:$0xf0]  ;;  %v12468_v4 = vor.u32 %v15248_v34, %v12467_v19  ;;  %v12352_v1 = vor.u32 %v15217_v54, %v12349_v8  ;;  %v15239_v37 = vld [vmem:[%s23128_s3 + $0x2a8] sm:$0xf0]  ;;  %v12313_v34 = vld [vmem:[%s23128_s3 + $0x1bc] sm:$0xf0] }
 0x2c0   :  { %v3805_v14 = vpop.f32.mrf.mxu3  ;;  %v3905_v39 = vpack.c.bf16 %v3895_v18, %v3893_v11  ;;  %v12376_v11 = vor.u32 %v15223_v60, %v12373_v38  ;;  %v15247_v18 = vld [vmem:[%s23128_s3 + $0x2ec] sm:$0xf]  ;;  %v15232_v60 = vld [vmem:[%s23128_s3 + $0x274] sm:$0xf] }
 0x2c1   :  { %v3863_v10 = vpop.f32.mrf.mxu2  ;;  %v3806_v12 = vadd.f32 %v3805_v14, %v3776_v50  ;;  %v15150_v50 = vld [vmem:[%s23127_s10] sm:$0xff]  ;;  %v12472_v44 = vor.u32 %v15247_v18, %v12469_v55 }
 0x2c2   :  { %v3778_v15 = vpop.f32.mrf.mxu1  ;;  %v3864_v13 = vadd.f32 %v3863_v10, %v3834_v0  ;;  %v15245_v0 = vld [vmem:[%s23128_s3 + $0x2d8] sm:$0xf0]  ;;  %v12347_v10 = vld [vmem:[%s23128_s3 + $0x1f8] sm:$0xf] }
 0x2c3   :  { %v3880_v49 = vadd.f32 %v3806_v12, %v18431_v48  ;;  %v3836_v31 = vpop.f32.mrf.mxu0  ;;  %v12456_v14 = vor.u32 %v15245_v0, %v12455_v59  ;;  %v12348_v36 = vor.u32 %v15218_v51, %v12347_v10  ;;  %v15241_v12 = vld [vmem:[%s23128_s3 + $0x2bc] sm:$0xf] }
 0x2c4   :  { %v3881_v35 = vadd.f32 %v3864_v13, %v18437_v61  ;;  %v15152_v61 = vld [vmem:[%s23126_s9] sm:$0xff]  ;;  %v12448_v63 = vor.u32 %v15241_v12, %v12445_v6  ;;  %v15229_v6 = vld [vmem:[%s23128_s3 + $0x25c] sm:$0xf] }
 0x2c5   :  { %v3896_v5 = vmax.f32 %v3880_v49, 0.0  ;;  %v12431_v13 = vld [vmem:[%s23128_s3 + $0x2a0] sm:$0xf]  ;;  %v12337_v49 = vld [vmem:[%s23128_s3 + $0x1ec] sm:$0xf0] }
 0x2c6   :  { %v3897_v25 = vmax.f32 %v3881_v35, 0.0 }
 0x2c8   :  { %v3807_v43 = vpop.f32.mrf.mxu3 }
 0x2c9   :  { %v3808_v27 = vadd.f32 %v3807_v43, %v3778_v15  ;;  %v3865_v3 = vpop.f32.mrf.mxu2  ;;  %v15215_v15 = vld [vmem:[%s23128_s3 + $0x1e8] sm:$0xf0]  ;;  %v12432_v43 = vor.u32 %v15239_v37, %v12431_v13 }
 0x2ca   :  { %v3866_v7 = vadd.f32 %v3865_v3, %v3836_v31  ;;  %v12336_v24 = vor.u32 %v15215_v15, %v12335_v16  ;;  %v12433_v3 = vld [vmem:[%s23128_s3 + $0x2ac] sm:$0xf0]  ;;  %v12397_v16 = vld [vmem:[%s23128_s3 + $0x264] sm:$0xf0] }
 0x2cb   :  { %v3882_v2 = vadd.f32 %v3808_v27, %v3239_v21  ;;  %v15214_v21 = vld [vmem:[%s23128_s3 + $0x1e4] sm:$0xf] }
 0x2cc   :  { %v3883_v22 = vadd.f32 %v3866_v7, %v3240_v17  ;;  %v15238_v27 = vld [vmem:[%s23128_s3 + $0x2a4] sm:$0xf]  ;;  %v12340_v31 = vor.u32 %v15214_v21, %v12337_v49  ;;  %v12323_v7 = vld [vmem:[%s23128_s3 + $0x1c8] sm:$0xf]  ;;  %v12400_v49 = vor.u32 %v15229_v6, %v12397_v16  ;;  %v15200_v16 = vld [vmem:[%s23128_s3 + $0x170] sm:$0xf0] }
 0x2cd   :  { %v3898_v42 = vmax.f32 %v3882_v2, 0.0  ;;  %v12436_v17 = vor.u32 %v15238_v27, %v12433_v3  ;;  %v15212_v2 = vld [vmem:[%s23128_s3 + $0x1d0] sm:$0xf0]  ;;  %v12667_v6 = vld [vmem:[%s23128_s3 + $0x168] sm:$0xf] }
 0x2ce   :  { %v3899_v33 = vmax.f32 %v3883_v22, 0.0  ;;  %v12419_v22 = vld [vmem:[%s23128_s3 + $0x288] sm:$0xf] }
 0x2cf   :  { %v3906_v41 = vpack.c.bf16 %v3898_v42, %v3896_v5  ;;  %v12324_v5 = vor.u32 %v15212_v2, %v12323_v7  ;;  %v15236_v42 = vld [vmem:[%s23128_s3 + $0x290] sm:$0xf0] }
 0x2d0   :  { %v3907_v46 = vpack.c.bf16 %v3899_v33, %v3897_v25  ;;  %v15211_v25 = vld [vmem:[%s23128_s3 + $0x1cc] sm:$0xf]  ;;  %v12325_v33 = vld [vmem:[%s23128_s3 + $0x1d4] sm:$0xf0] }
 0x2d1   :  { %v3931_v20 = vsel %vm3929_vm4, %v3906_v41, 0  ;;  %v12420_v41 = vor.u32 %v15236_v42, %v12419_v22  ;;  %v12287_v42 = vld [vmem:[%s23128_s3 + $0x180] sm:$0xf] }
 0x2d2   :  { %3940 = vmatpush.bf16.msrb.mxu1 %v3931_v20  ;;  %3998 = vmatpush.bf16.msrb.mxu0 %v3931_v20  ;;  %v3934_v48 = vsel %vm3929_vm4, %v3907_v46, 0  ;;  %v12328_v46 = vor.u32 %v15211_v25, %v12325_v33  ;;  %v15235_v20 = vld [vmem:[%s23128_s3 + $0x28c] sm:$0xf]  ;;  %vm23022_vm4 = vcmask 125952  }
 0x2d3   :  { %3959 = vmatpush.bf16.msrb.mxu3 %v3934_v48  ;;  %4017 = vmatpush.bf16.msrb.mxu2 %v3934_v48  ;;  %v12421_v48 = vld [vmem:[%s23128_s3 + $0x294] sm:$0xf0] }
 0x2d6   :  { %3941 = vmatpush.bf16.msrb.mxu1 %v3904_v57  ;;  %3999 = vmatpush.bf16.msrb.mxu0 %v3904_v57  ;;  %v12360_v57 = vor.u32 %v15221_v62, %v12359_v53  ;;  %v12299_v53 = vld [vmem:[%s23128_s3 + $0x198] sm:$0xf] }
 0x2d7   :  { %3960 = vmatpush.bf16.msrb.mxu3 %v3905_v39  ;;  %4018 = vmatpush.bf16.msrb.mxu2 %v3905_v39  ;;  %v15220_v39 = vld [vmem:[%s23128_s3 + $0x214] sm:$0xf]  ;;  %v12395_v62 = vld [vmem:[%s23128_s3 + $0x258] sm:$0xf] }
 0x2d8   :  { %v12364_v23 = vor.u32 %v15220_v39, %v12361_v47 }
 0x2da   :  { %3942 = vmatpush.bf16.msrb.mxu1 %v18499_v28  ;;  %4000 = vmatpush.bf16.msrb.mxu0 %v18499_v28  ;;  %v15153_v28 = vld [vmem:[%s23126_s9 + $0x8] sm:$0xff] }
 0x2db   :  { %3961 = vmatpush.bf16.msrb.mxu3 %v18501_v9  ;;  %4019 = vmatpush.bf16.msrb.mxu2 %v18501_v9  ;;  %v15224_v9 = vld [vmem:[%s23128_s3 + $0x230] sm:$0xf0] }
 0x2de   :  { %3943 = vmatpush.bf16.msrb.mxu1 %v18472_v56  ;;  %4001 = vmatpush.bf16.msrb.mxu0 %v18472_v56  ;;  %v15151_v56 = vld [vmem:[%s23127_s10 + $0x8] sm:$0xff] }
 0x2df   :  { %3962 = vmatpush.bf16.msrb.mxu3 %v18476_v45  ;;  %4020 = vmatpush.bf16.msrb.mxu2 %v18476_v45  ;;  %v12371_v45 = vld [vmem:[%s23128_s3 + $0x228] sm:$0xf] }
 0x2e0   :  { %v12372_v29 = vor.u32 %v15224_v9, %v12371_v45  ;;  %v15233_v45 = vld [vmem:[%s23128_s3 + $0x278] sm:$0xf0] }
 0x2e1   :  { %12209 = vmatmul.msk.bf16.vlgmr.msrb.gmra.mxu0 %vm3922_vm11, %v15152_v61  ;;  %12197 = vmatmul.msk.bf16.vlgmr.msrb.gmra.mxu1 %vm3922_vm11, %v15150_v50 }
 0x2e2   :  { %12211 = vmatmul.msk.bf16.vlgmr.msrb.gmra.mxu2 %vm3922_vm11, %v15152_v61  ;;  %12199 = vmatmul.msk.bf16.vlgmr.msrb.gmra.mxu3 %vm3922_vm11, %v15150_v50  ;;  %v12311_v61 = vld [vmem:[%s23128_s3 + $0x1b0] sm:$0xf]  ;;  %v12424_v50 = vor.u32 %v15235_v20, %v12421_v48  ;;  %v15203_v48 = vld [vmem:[%s23128_s3 + $0x188] sm:$0xf0] }
 0x2e3   :  { %4682 = vmatpush.bf16.msra.mxu1 %v12372_v29  ;;  %4701 = vmatpush.bf16.msra.mxu3 %v12468_v4  ;;  %v15208_v29 = vld [vmem:[%s23128_s3 + $0x1b4] sm:$0xf]  ;;  %v12409_v4 = vld [vmem:[%s23128_s3 + $0x27c] sm:$0xf0] }
 0x2e4   :  { %4720 = vmatpush.bf16.msra.mxu0 %v12376_v11  ;;  %4739 = vmatpush.bf16.msra.mxu2 %v12472_v44  ;;  %v12316_v38 = vor.u32 %v15208_v29, %v12313_v34  ;;  %v12412_v18 = vor.u32 %v15232_v60, %v12409_v4  ;;  %v15206_v44 = vld [vmem:[%s23128_s3 + $0x1a0] sm:$0xf0] }
 0x2e5   :  { %v12300_v0 = vor.u32 %v15206_v44, %v12299_v53  ;;  %v12289_v53 = vld [vmem:[%s23128_s3 + $0x18c] sm:$0xf0]  ;;  %v15226_v44 = vld [vmem:[%s23128_s3 + $0x244] sm:$0xf] }
 0x2e7   :  { %4683 = vmatpush.bf16.msra.mxu1 %v12360_v57  ;;  %4702 = vmatpush.bf16.msra.mxu3 %v12456_v14  ;;  %v15230_v57 = vld [vmem:[%s23128_s3 + $0x260] sm:$0xf0] }
 0x2e8   :  { %4721 = vmatpush.bf16.msra.mxu0 %v12364_v23  ;;  %4740 = vmatpush.bf16.msra.mxu2 %v12460_v58  ;;  %v12396_v39 = vor.u32 %v15230_v57, %v12395_v62  ;;  %v12379_v57 = vld [vmem:[%s23128_s3 + $0x230] sm:$0xf] }
 0x2eb   :  { %4684 = vmatpush.bf16.msra.mxu1 %v12348_v36  ;;  %4703 = vmatpush.bf16.msra.mxu3 %v12444_v32  ;;  %v15205_v32 = vld [vmem:[%s23128_s3 + $0x19c] sm:$0xf] }
 0x2ec   :  { %4722 = vmatpush.bf16.msra.mxu0 %v12352_v1  ;;  %4741 = vmatpush.bf16.msra.mxu2 %v12448_v63  ;;  %v12301_v1 = vld [vmem:[%s23128_s3 + $0x1a4] sm:$0xf0] }
 0x2ed   :  { %v12304_v21 = vor.u32 %v15205_v32, %v12301_v1 }
 0x2ef   :  { %4685 = vmatpush.bf16.msra.mxu1 %v12336_v24  ;;  %4704 = vmatpush.bf16.msra.mxu3 %v12432_v43 }
 0x2f0   :  { %4723 = vmatpush.bf16.msra.mxu0 %v12340_v31  ;;  %4742 = vmatpush.bf16.msra.mxu2 %v12436_v17 }
 0x2f1   :  { %12210 = vmatmul.msk.bf16.gmra.mxu0 %vm3922_vm11, %v15153_v28  ;;  %12198 = vmatmul.msk.bf16.gmra.mxu1 %vm3922_vm11, %v15151_v56 }
 0x2f2   :  { %12212 = vmatmul.msk.bf16.gmra.mxu2 %vm3922_vm11, %v15153_v28  ;;  %12200 = vmatmul.msk.bf16.gmra.mxu3 %vm3922_vm11, %v15151_v56  ;;  %v15209_v28 = vld [vmem:[%s23128_s3 + $0x1b8] sm:$0xf0]  ;;  %v12407_v56 = vld [vmem:[%s23128_s3 + $0x270] sm:$0xf]  ;;  %vm6638_vm11 = vcmask 1043458  }
 0x2f3   :  { %4686 = vmatpush.bf16.msra.mxu1 %v12324_v5  ;;  %4705 = vmatpush.bf16.msra.mxu3 %v12420_v41  ;;  %v12312_v9 = vor.u32 %v15209_v28, %v12311_v61  ;;  %v12408_v19 = vor.u32 %v15233_v45, %v12407_v56  ;;  %v15227_v28 = vld [vmem:[%s23128_s3 + $0x248] sm:$0xf0] }
 0x2f4   :  { %4724 = vmatpush.bf16.msra.mxu0 %v12328_v46  ;;  %4743 = vmatpush.bf16.msra.mxu2 %v12424_v50  ;;  %v12383_v50 = vld [vmem:[%s23128_s3 + $0x240] sm:$0xf] }
 0x2f5   :  { %v12384_v29 = vor.u32 %v15227_v28, %v12383_v50 }
 0x2f7   :  { %4687 = vmatpush.bf16.msra.mxu1 %v12312_v9  ;;  %4706 = vmatpush.bf16.msra.mxu3 %v12408_v19  ;;  %v12288_v19 = vor.u32 %v15203_v48, %v12287_v42 }
 0x2f8   :  { %4725 = vmatpush.bf16.msra.mxu0 %v12316_v38  ;;  %4744 = vmatpush.bf16.msra.mxu2 %v12412_v18 }
 0x2fb   :  { %4688 = vmatpush.bf16.msra.mxu1 %v12300_v0  ;;  %4707 = vmatpush.bf16.msra.mxu3 %v12396_v39  ;;  %v12385_v0 = vld [vmem:[%s23128_s3 + $0x24c] sm:$0xf0] }
 0x2fc   :  { %4726 = vmatpush.bf16.msra.mxu0 %v12304_v21  ;;  %4745 = vmatpush.bf16.msra.mxu2 %v12400_v49  ;;  %v12367_v49 = vld [vmem:[%s23128_s3 + $0x218] sm:$0xf] }
 0x2ff   :  { %4689 = vmatpush.bf16.msra.mxu1 %v12288_v19  ;;  %4708 = vmatpush.bf16.msra.mxu3 %v12384_v29 }
 0x35e   :  { %v4003_v35 = vpop.f32.mrf.mxu0  ;;  %v3945_v37 = vpop.f32.mrf.mxu1 }
 0x365   :  { %v4022_v11 = vpop.f32.mrf.mxu2  ;;  %v3964_v24 = vpop.f32.mrf.mxu3 }
 0x366   :  { %v4040_v55 = vpack.c.bf16 %v4022_v11, %v4003_v35  ;;  %v4005_v14 = vpop.f32.mrf.mxu0  ;;  %v3947_v11 = vpop.f32.mrf.mxu1  ;;  %v18775_v62 = vpack.c.bf16 %v3964_v24, %v3945_v37 }
 0x368   :  { %v4215_v59 = vrot.slane %v4040_v55, 3 }
 0x36a   :  { %v4221_v47 = vsel %vm112_vm0, %v4040_v55, %v4215_v59  ;;  %v4223_v26 = vsel %vm116_vm1, %v4040_v55, %v4215_v59  ;;  %v4226_v23 = vsel %vm120_vm2, %v4040_v55, %v4215_v59  ;;  %v4229_v40 = vsel %vm124_vm3, %v4040_v55, %v4215_v59  ;;  %v15202_v55 = vld [vmem:[%s23128_s3 + $0x184] sm:$0xf] }
 0x36b   :  { %v4225_v58 = vrot.slane %v4223_v26, 1  ;;  %v4228_v10 = vrot.slane %v4226_v23, 2  ;;  %v4231_v51 = vrot.slane %v4229_v40, 3  ;;  %v5891_v52 = vunpack.i.h.s16 %v4221_v47  ;;  %4382 = vst [vmem:[#allocation1] ss:$9 sm:$0xff] %v4221_v47 }
 0x36c   :  { %v12475_v26 = vld [vmem:[%s23128_s3 + $0x2f0] sm:$0xf]  ;;  %v15249_v23 = vld [vmem:[%s23128_s3 + $0x2f8] sm:$0xf0]  ;;  %v12571_v40 = vld [vmem:[%s23128_s3 + $0xa8] sm:$0xf]  ;;  %v12292_v1 = vor.u32 %v15202_v55, %v12289_v53 }
 0x36d   :  { %v5893_v36 = vunpack.i.h.s16 %v4225_v58  ;;  %v5895_v30 = vunpack.i.h.s16 %v4228_v10  ;;  %v18720_v54 = vpack.i.b16 %v4225_v58, %v5891_v52  ;;  %4385 = vst [vmem:[#allocation1 + $0x1] ss:$9 sm:$0xff] %v4225_v58  ;;  %v4024_v8 = vpop.f32.mrf.mxu2  ;;  %v5897_v43 = vunpack.i.h.s16 %v4231_v51  ;;  %v3966_v18 = vpop.f32.mrf.mxu3 }
 0x36e   :  { %4388 = vst [vmem:[#allocation1 + $0x2] ss:$9 sm:$0xff] %v4228_v10  ;;  %v4041_v12 = vpack.c.bf16 %v4024_v8, %v4005_v14  ;;  %v4008_v22 = vpop.f32.mrf.mxu0  ;;  %v15225_v14 = vld [vmem:[%s23128_s3 + $0x238] sm:$0xf0]  ;;  %4727 = vmatpush.bf16.msra.mxu0 %v12292_v1  ;;  %v3950_v28 = vpop.f32.mrf.mxu1  ;;  %v15194_v1 = vld [vmem:[%s23128_s3 + $0x140] sm:$0xf0] }
 0x36f   :  { %v18734_v63 = vpack.i.b16 %v4228_v10, %v5893_v36  ;;  %v18736_v15 = vpack.i.b16 %v4231_v51, %v5895_v30  ;;  %4391 = vst [vmem:[#allocation1 + $0x3] ss:$9 sm:$0xff] %v4231_v51  ;;  %v15176_v30 = vld [vmem:[%s23128_s3 + $0xb0] sm:$0xf0]  ;;  %v12380_v24 = vor.u32 %v15225_v14, %v12379_v57  ;;  %v15219_v57 = vld [vmem:[%s23128_s3 + $0x208] sm:$0xf0] }
 0x370   :  { %v4216_v13 = vrot.slane %v4041_v12, 3  ;;  %v12572_v21 = vor.u32 %v15176_v30, %v12571_v40  ;;  %v12451_v14 = vld [vmem:[%s23128_s3 + $0x2c0] sm:$0xf] }
 0x371   :  { %4758 = vmatpush.bf16.msrb.mxu1 %v12380_v24 }
 0x372   :  { %v4234_v27 = vsel %vm112_vm0, %v4041_v12, %v4216_v13  ;;  %v4236_v31 = vsel %vm116_vm1, %v4041_v12, %v4216_v13  ;;  %v4239_v3 = vsel %vm120_vm2, %v4041_v12, %v4216_v13  ;;  %v4242_v17 = vsel %vm124_vm3, %v4041_v12, %v4216_v13  ;;  %5112 = vmatpush.bf16.msrb.mxu0 %v12572_v21  ;;  %v15240_v21 = vld [vmem:[%s23128_s3 + $0x2b0] sm:$0xf0] }
 0x373   :  { %v4238_v35 = vrot.slane %v4236_v31, 1  ;;  %v4241_v7 = vrot.slane %v4239_v3, 2  ;;  %v5899_v2 = vunpack.i.h.s16 %v4234_v27  ;;  %4394 = vst [vmem:[#allocation1 + $0x4] ss:$9 sm:$0xff] %v4234_v27  ;;  %v18742_v5 = vpack.i.b16 %v4234_v27, %v5897_v43 }
 0x374   :  { %v4244_v25 = vrot.slane %v4242_v17, 3  ;;  %v12388_v12 = vor.u32 %v15226_v44, %v12385_v0  ;;  %v18813_v13 = vrot.slane %v18775_v62, 3  ;;  %v12476_v43 = vor.u32 %v15249_v23, %v12475_v26  ;;  %v12355_v0 = vld [vmem:[%s23128_s3 + $0x200] sm:$0xf] }
 0x375   :  { %v5901_v33 = vunpack.i.h.s16 %v4238_v35  ;;  %v5903_v41 = vunpack.i.h.s16 %v4241_v7  ;;  %v18747_v46 = vpack.i.b16 %v4238_v35, %v5899_v2  ;;  %4397 = vst [vmem:[#allocation1 + $0x5] ss:$9 sm:$0xff] %v4238_v35  ;;  %v4027_v20 = vpop.f32.mrf.mxu2  ;;  %v18820_v3 = vpack.c.bf16 %v3966_v18, %v3947_v11  ;;  %v15222_v35 = vld [vmem:[%s23128_s3 + $0x220] sm:$0xf0] }
 0x376   :  { %4400 = vst [vmem:[#allocation1 + $0x6] ss:$9 sm:$0xff] %v4241_v7  ;;  %v4042_v61 = vpack.c.bf16 %v4027_v20, %v4008_v22  ;;  %v5905_v47 = vunpack.i.h.s16 %v4244_v25  ;;  %v4010_v52 = vpop.f32.mrf.mxu0  ;;  %4746 = vmatpush.bf16.msra.mxu2 %v12388_v12  ;;  %v12668_v17 = vor.u32 %v15200_v16, %v12667_v6  ;;  %v15246_v2 = vld [vmem:[%s23128_s3 + $0x2e0] sm:$0xf0]  ;;  %4777 = vmatpush.bf16.msrb.mxu3 %v12476_v43  ;;  %v12343_v6 = vld [vmem:[%s23128_s3 + $0x1e8] sm:$0xf] }
 0x377   :  { %v18758_v56 = vpack.i.b16 %v4241_v7, %v5901_v33  ;;  %v18760_v45 = vpack.i.b16 %v4244_v25, %v5903_v41  ;;  %v12463_v7 = vld [vmem:[%s23128_s3 + $0x2d8] sm:$0xf]  ;;  %v12368_v19 = vor.u32 %v15222_v35, %v12367_v49  ;;  %v18880_v26 = vrot.slane %v18820_v3, 3  ;;  %v15216_v16 = vld [vmem:[%s23128_s3 + $0x1f0] sm:$0xf0] }
 0x378   :  { %v4217_v9 = vrot.slane %v4042_v61, 3  ;;  %v12464_v29 = vor.u32 %v15246_v2, %v12463_v7  ;;  %v12439_v43 = vld [vmem:[%s23128_s3 + $0x2a8] sm:$0xf]  ;;  %v4065_v49 = vsel %vm116_vm1, %v18775_v62, %v18813_v13  ;;  %v12535_v35 = vld [vmem:[%s23128_s3 + $0x60] sm:$0xf]  ;;  %v4071_v7 = vsel %vm124_vm3, %v18775_v62, %v18813_v13 }
 0x379   :  { %4759 = vmatpush.bf16.msrb.mxu1 %v12368_v19  ;;  %v12440_v19 = vor.u32 %v15240_v21, %v12439_v43  ;;  %v15210_v43 = vld [vmem:[%s23128_s3 + $0x1c0] sm:$0xf0]  ;;  %v12415_v21 = vld [vmem:[%s23128_s3 + $0x278] sm:$0xf] }
 0x37a   :  { %v4247_v34 = vsel %vm112_vm0, %v4042_v61, %v4217_v9  ;;  %v4249_v60 = vsel %vm116_vm1, %v4042_v61, %v4217_v9  ;;  %v4252_v38 = vsel %vm120_vm2, %v4042_v61, %v4217_v9  ;;  %v4255_v4 = vsel %vm124_vm3, %v4042_v61, %v4217_v9  ;;  %v3969_v9 = vpop.f32.mrf.mxu3  ;;  %5131 = vmatpush.bf16.msrb.mxu2 %v12668_v17 }
 0x37b   :  { %v4287_v59 = vunpack.i.h.s16 %v4247_v34  ;;  %v12277_v39 = vpack.i.b16 %v4247_v34, %v4244_v25  ;;  %v18795_v58 = vrot.slane %v4249_v60, 1  ;;  %v18797_v10 = vrot.slane %v4252_v38, 2  ;;  %v12559_v34 = vld [vmem:[%s23128_s3 + $0x90] sm:$0xf]  ;;  %v15173_v60 = vld [vmem:[%s23128_s3 + $0x98] sm:$0xf0]  ;;  %4778 = vmatpush.bf16.msrb.mxu3 %v12464_v29 }
 0x37c   :  { %v18799_v51 = vrot.slane %v4255_v4, 3  ;;  %v12655_v38 = vld [vmem:[%s23128_s3 + $0x150] sm:$0xf]  ;;  %v15197_v4 = vld [vmem:[%s23128_s3 + $0x158] sm:$0xf0] }
 0x37d   :  { %v4029_v36 = vpop.f32.mrf.mxu2  ;;  %v18804_v8 = vpack.i.b16 %v4287_v59, %v5905_v47  ;;  %4403 = vst [vmem:[#allocation1 + $0x7] ss:$9 sm:$0xff] %v12277_v39  ;;  %v4289_v27 = vunpack.i.h.s16 %v18795_v58  ;;  %v4291_v31 = vunpack.i.h.s16 %v18797_v10  ;;  %v12278_v50 = vpack.i.b16 %v18795_v58, %v4287_v59  ;;  %v15243_v39 = vld [vmem:[%s23128_s3 + $0x2c8] sm:$0xf0] }
 0x37e   :  { %v4043_v32 = vpack.c.bf16 %v4029_v36, %v4010_v52  ;;  %v4293_v22 = vunpack.i.h.s16 %v18799_v51  ;;  %v12547_v52 = vld [vmem:[%s23128_s3 + $0x78] sm:$0xf]  ;;  %v15170_v36 = vld [vmem:[%s23128_s3 + $0x80] sm:$0xf0]  ;;  %v12656_v24 = vor.u32 %v15197_v4, %v12655_v38  ;;  %v12452_v17 = vor.u32 %v15243_v39, %v12451_v14  ;;  %v15191_v29 = vld [vmem:[%s23128_s3 + $0x128] sm:$0xf0] }
 0x37f   :  { %v12279_v11 = vpack.i.b16 %v18797_v10, %v4289_v27  ;;  %v12280_v47 = vpack.i.b16 %v18799_v51, %v4291_v31  ;;  %v4068_v27 = vsel %vm120_vm2, %v18775_v62, %v18813_v13  ;;  %v12356_v31 = vor.u32 %v15219_v57, %v12355_v0  ;;  %v15237_v38 = vld [vmem:[%s23128_s3 + $0x298] sm:$0xf0] }
 0x380   :  { %v4218_v37 = vrot.slane %v4043_v32, 3  ;;  %5132 = vmatpush.bf16.msrb.mxu2 %v12656_v24  ;;  %v12548_v2 = vor.u32 %v15170_v36, %v12547_v52  ;;  %4779 = vmatpush.bf16.msrb.mxu3 %v12452_v17  ;;  %v18951_v4 = vrot.slane %v4065_v49, 1  ;;  %v18958_v0 = vrot.slane %v4071_v7, 3  ;;  %v15234_v49 = vld [vmem:[%s23128_s3 + $0x280] sm:$0xf0] }
 0x381   :  { %4760 = vmatpush.bf16.msrb.mxu1 %v12356_v31  ;;  %v4084_v57 = vsel %vm124_vm3, %v18820_v3, %v18880_v26  ;;  %v12511_v7 = vld [vmem:[%s23128_s3 + $0x30] sm:$0xf] }
 0x382   :  { %v18833_v42 = vsel %vm112_vm0, %v4043_v32, %v4218_v37  ;;  %v4262_v25 = vsel %vm116_vm1, %v4043_v32, %v4218_v37  ;;  %v4265_v33 = vsel %vm120_vm2, %v4043_v32, %v4218_v37  ;;  %v18842_v48 = vsel %vm124_vm3, %v4043_v32, %v4218_v37  ;;  %v12643_v32 = vld [vmem:[%s23128_s3 + $0x138] sm:$0xf] }
 0x383   :  { %v18837_v41 = vrot.slane %v4262_v25, 1  ;;  %v18839_v20 = vrot.slane %v4265_v33, 2  ;;  %v4295_v61 = vunpack.i.h.s16 %v18833_v42  ;;  %v12281_v53 = vpack.i.b16 %v18833_v42, %v4293_v22  ;;  %v15167_v25 = vld [vmem:[%s23128_s3 + $0x68] sm:$0xf0]  ;;  %v12631_v33 = vld [vmem:[%s23128_s3 + $0x120] sm:$0xf] }
 0x384   :  { %v18862_v44 = vld [vmem:[#allocation1] sm:$0xff]  ;;  %v18864_v59 = vld [vmem:[#allocation1 + $0x9] sm:$0xff]  ;;  %v23017_v23 = vrot.slane %v18842_v48, 3  ;;  %v12560_v37 = vor.u32 %v15173_v60, %v12559_v34  ;;  %v12644_v22 = vor.u32 %v15194_v1, %v12643_v32  ;;  %v4078_v60 = vsel %vm116_vm1, %v18820_v3, %v18880_v26  ;;  %4780 = vmatpush.bf16.msrb.mxu3 %v12440_v19  ;;  %v15164_v32 = vld [vmem:[%s23128_s3 + $0x50] sm:$0xf0] }
 0x385   :  { %v4297_v18 = vunpack.i.h.s16 %v18837_v41  ;;  %v4299_v55 = vunpack.i.h.s16 %v18839_v20  ;;  %v12282_v40 = vpack.i.b16 %v18837_v41, %v4295_v61  ;;  %4690 = vmatmul.bf16.vlgmr.msra.gmra.mxu1 %v18862_v44  ;;  %4709 = vmatmul.bf16.vlgmr.msra.gmra.mxu3 %v18864_v59  ;;  %4407 = vst [vmem:[#allocation1] ss:$9 sm:$0xff] %v12278_v50  ;;  %v4034_v61 = vpack.c.bf16 %v3969_v9, %v3950_v28  ;;  %v12331_v34 = vld [vmem:[%s23128_s3 + $0x1d0] sm:$0xf]  ;;  %v15213_v28 = vld [vmem:[%s23128_s3 + $0x1d8] sm:$0xf0] }
 0x386   :  { %4409 = vst [vmem:[#allocation1 + $0x1] ss:$9 sm:$0xff] %v12279_v11  ;;  %4728 = vmatmul.bf16.vlgmr.msra.gmra.mxu0 %v18862_v44  ;;  %4747 = vmatmul.bf16.vlgmr.msra.gmra.mxu2 %v18864_v59  ;;  %v12344_v50 = vor.u32 %v15216_v16, %v12343_v6  ;;  %v12427_v9 = vld [vmem:[%s23128_s3 + $0x290] sm:$0xf]  ;;  %v18953_v11 = vrot.slane %v4068_v27, 2  ;;  %v12536_v14 = vor.u32 %v15167_v25, %v12535_v35  ;;  %v18999_v31 = vrot.slane %v4084_v57, 3 }
 0x387   :  { %v12283_v30 = vpack.i.b16 %v18839_v20, %v4297_v18  ;;  %v12284_v12 = vpack.i.b16 %v23017_v23, %v4299_v55  ;;  %4411 = vst [vmem:[#allocation1 + $0x2] ss:$9 sm:$0xff] %v12280_v47  ;;  %5113 = vmatpush.bf16.msrb.mxu0 %v12560_v37  ;;  %v4081_v18 = vsel %vm120_vm2, %v18820_v3, %v18880_v26  ;;  %v3952_v55 = vpop.f32.mrf.mxu1  ;;  %v18963_v47 = vrot.slane %v4078_v60, 1  ;;  %v15188_v6 = vld [vmem:[%s23128_s3 + $0x110] sm:$0xf0] }
 0x388   :  { %4413 = vst [vmem:[#allocation1 + $0x3] ss:$9 sm:$0xff] %v12281_v53  ;;  %v3971_v53 = vpop.f32.mrf.mxu3  ;;  %5133 = vmatpush.bf16.msrb.mxu2 %v12644_v22  ;;  %v12632_v39 = vor.u32 %v15191_v29, %v12631_v33  ;;  %4761 = vmatpush.bf16.msrb.mxu1 %v12344_v50  ;;  %v12332_v52 = vor.u32 %v15213_v28, %v12331_v34  ;;  %v12319_v16 = vld [vmem:[%s23128_s3 + $0x1b8] sm:$0xf]  ;;  %v18997_v27 = vrot.slane %v4081_v18, 2 }
 0x389   :  { %4415 = vst [vmem:[#allocation1 + $0x4] ss:$9 sm:$0xff] %v12282_v40  ;;  %v4059_v40 = vrot.slane %v4034_v61, 3  ;;  %v12428_v36 = vor.u32 %v15237_v38, %v12427_v9  ;;  %v18971_v1 = vpack.c.bf16 %v3971_v53, %v3952_v55  ;;  %v18985_v37 = vsel %vm112_vm0, %v18775_v62, %v18813_v13  ;;  %v12607_v22 = vld [vmem:[%s23128_s3 + $0xf0] sm:$0xf] }
 0x38a   :  { %4417 = vst [vmem:[#allocation1 + $0x5] ss:$9 sm:$0xff] %v12283_v30  ;;  %v12523_v30 = vld [vmem:[%s23128_s3 + $0x48] sm:$0xf]  ;;  %v15185_v25 = vld [vmem:[%s23128_s3 + $0xf8] sm:$0xf0]  ;;  %v12416_v9 = vor.u32 %v15234_v49, %v12415_v21  ;;  %v19049_v57 = vsel %vm112_vm0, %v18820_v3, %v18880_v26 }
 0x38b   :  { %4419 = vst [vmem:[#allocation1 + $0x6] ss:$9 sm:$0xff] %v12284_v12  ;;  %5114 = vmatpush.bf16.msrb.mxu0 %v12548_v2  ;;  %v12619_v12 = vld [vmem:[%s23128_s3 + $0x108] sm:$0xf]  ;;  %v4091_v24 = vsel %vm116_vm1, %v4034_v61, %v4059_v40  ;;  %v4094_v62 = vsel %vm120_vm2, %v4034_v61, %v4059_v40  ;;  %v4097_v13 = vsel %vm124_vm3, %v4034_v61, %v4059_v40  ;;  %v15161_v2 = vld [vmem:[%s23128_s3 + $0x38] sm:$0xf0] }
 0x38c   :  { %5134 = vmatpush.bf16.msrb.mxu2 %v12632_v39  ;;  %v19020_v33 = vsel %vm112_vm0, %v4034_v61, %v4059_v40  ;;  %4762 = vmatpush.bf16.msrb.mxu1 %v12332_v52  ;;  %v12524_v50 = vor.u32 %v15164_v32, %v12523_v30  ;;  %v12620_v19 = vor.u32 %v15188_v6, %v12619_v12  ;;  %v12307_v29 = vld [vmem:[%s23128_s3 + $0x1a0] sm:$0xf]  ;;  %v15207_v34 = vld [vmem:[%s23128_s3 + $0x1a8] sm:$0xf0]  ;;  %v19029_v60 = vrot.slane %v4091_v24, 1 }
 0x38d   :  { %4781 = vmatpush.bf16.msrb.mxu3 %v12428_v36  ;;  %v4060_v28 = vrot.slane %v18971_v1, 3  ;;  %v12320_v61 = vor.u32 %v15210_v43, %v12319_v16  ;;  %v12403_v38 = vld [vmem:[%s23128_s3 + $0x260] sm:$0xf]  ;;  %v19036_v18 = vrot.slane %v4094_v62, 2  ;;  %v19038_v55 = vrot.slane %v4097_v13, 3 }
 0x38e   :  { %v15231_v53 = vld [vmem:[%s23128_s3 + $0x268] sm:$0xf0]  ;;  %v12499_v39 = vld [vmem:[%s23128_s3 + $0x18] sm:$0xf]  ;;  %v15158_v40 = vld [vmem:[%s23128_s3 + $0x20] sm:$0xf0]  ;;  %v12512_v52 = vor.u32 %v15161_v2, %v12511_v7  ;;  %v12608_v36 = vor.u32 %v15185_v25, %v12607_v22  ;;  %v12308_v6 = vor.u32 %v15207_v34, %v12307_v29  ;;  %v23018_v13 = vunpack.i.h.s16 %v19020_v33 }
 0x38f   :  { %5115 = vmatpush.bf16.msrb.mxu0 %v12536_v14  ;;  %v12477_v14 = vpack.i.b16 %v19020_v33, %v18999_v31  ;;  %v12595_v3 = vld [vmem:[%s23128_s3 + $0xd8] sm:$0xf]  ;;  %v15182_v26 = vld [vmem:[%s23128_s3 + $0xe0] sm:$0xf0]  ;;  %v12295_v30 = vld [vmem:[%s23128_s3 + $0x188] sm:$0xf]  ;;  %v4104_v12 = vsel %vm116_vm1, %v18971_v1, %v4060_v28  ;;  %v12404_v16 = vor.u32 %v15231_v53, %v12403_v38  ;;  %v4107_v21 = vsel %vm120_vm2, %v18971_v1, %v4060_v28 }
 0x390   :  { %5135 = vmatpush.bf16.msrb.mxu2 %v12620_v19  ;;  %v15204_v32 = vld [vmem:[%s23128_s3 + $0x190] sm:$0xf0]  ;;  %4763 = vmatpush.bf16.msrb.mxu1 %v12320_v61  ;;  %v12391_v24 = vld [vmem:[%s23128_s3 + $0x248] sm:$0xf]  ;;  %v15175_v49 = vld [vmem:[%s23128_s3 + $0xac] sm:$0xf]  ;;  %v4131_v7 = vunpack.i.h.s16 %v19029_v60  ;;  %v19097_v2 = vsel %vm112_vm0, %v18971_v1, %v4060_v28  ;;  %v19112_v29 = vsel %vm124_vm3, %v18971_v1, %v4060_v28  ;;  %v12500_v34 = vor.u32 %v15158_v40, %v12499_v39 }
 0x391   :  { %4782 = vmatpush.bf16.msrb.mxu3 %v12416_v9  ;;  %v15228_v43 = vld [vmem:[%s23128_s3 + $0x250] sm:$0xf0]  ;;  %v12573_v62 = vld [vmem:[%s23128_s3 + $0xb4] sm:$0xf0]  ;;  %v12487_v22 = vld [vmem:[%s23128_s3] sm:$0xf]  ;;  %v12596_v61 = vor.u32 %v15182_v26, %v12595_v3  ;;  %v4133_v53 = vunpack.i.h.s16 %v19036_v18  ;;  %v12296_v1 = vor.u32 %v15204_v32, %v12295_v30  ;;  %v4135_v3 = vunpack.i.h.s16 %v19038_v55 }
 0x392   :  { %v19003_v17 = vld [vmem:[#allocation1] sm:$0xff]  ;;  %v19005_v35 = vld [vmem:[#allocation1 + $0x9] sm:$0xff]  ;;  %v19108_v19 = vrot.slane %v4104_v12, 1  ;;  %v12392_v28 = vor.u32 %v15228_v43, %v12391_v24  ;;  %v12576_v26 = vor.u32 %v15175_v49, %v12573_v62  ;;  %v15201_v32 = vld [vmem:[%s23128_s3 + $0x178] sm:$0xf0]  ;;  %v12478_v12 = vpack.i.b16 %v19029_v60, %v23018_v13 }
 0x393   :  { %4812 = vst [vmem:[#allocation1] ss:$9 sm:$0xff] %v18985_v37  ;;  %5116 = vmatpush.bf16.msrb.mxu0 %v12524_v50  ;;  %v15199_v25 = vld [vmem:[%s23128_s3 + $0x16c] sm:$0xf]  ;;  %v12669_v50 = vld [vmem:[%s23128_s3 + $0x174] sm:$0xf0]  ;;  %v12479_v43 = vpack.i.b16 %v19036_v18, %v4131_v7  ;;  %v12480_v7 = vpack.i.b16 %v19038_v55, %v4133_v53  ;;  %v12481_v53 = vpack.i.b16 %v19097_v2, %v4135_v3 }
 0x394   :  { %4815 = vst [vmem:[#allocation1 + $0x1] ss:$9 sm:$0xff] %v18951_v4  ;;  %5136 = vmatpush.bf16.msrb.mxu2 %v12608_v36  ;;  %v15155_v9 = vld [vmem:[%s23128_s3 + $0x8] sm:$0xf0]  ;;  %v12583_v38 = vld [vmem:[%s23128_s3 + $0xc0] sm:$0xf]  ;;  %4764 = vmatpush.bf16.msrb.mxu1 %v12308_v6 }
 0x395   :  { %4695 = vmatmul.bf16.gmra.mxu1 %v19003_v17  ;;  %4714 = vmatmul.bf16.gmra.mxu3 %v19005_v35  ;;  %4818 = vst [vmem:[#allocation1 + $0x2] ss:$9 sm:$0xff] %v18953_v11  ;;  %v15179_v39 = vld [vmem:[%s23128_s3 + $0xc8] sm:$0xf0]  ;;  %v12579_v40 = vld [vmem:[%s23128_s3 + $0xb0] sm:$0xf]  ;;  %v12488_v49 = vor.u32 %v15155_v9, %v12487_v22 }
 0x396   :  { %4821 = vst [vmem:[#allocation1 + $0x3] ss:$9 sm:$0xff] %v18958_v0  ;;  %4733 = vmatmul.bf16.gmra.mxu0 %v19003_v17  ;;  %4752 = vmatmul.bf16.gmra.mxu2 %v19005_v35  ;;  %v15177_v36 = vld [vmem:[%s23128_s3 + $0xb8] sm:$0xf0]  ;;  %v12675_v30 = vld [vmem:[%s23128_s3 + $0x170] sm:$0xf]  ;;  %v12584_v62 = vor.u32 %v15179_v39, %v12583_v38 }
 0x397   :  { %4824 = vst [vmem:[#allocation1 + $0x4] ss:$9 sm:$0xff] %v19049_v57  ;;  %5117 = vmatpush.bf16.msrb.mxu0 %v12512_v52  ;;  %4783 = vmatpush.bf16.msrb.mxu3 %v12404_v16  ;;  %v12672_v52 = vor.u32 %v15199_v25, %v12669_v50  ;;  %v4112_v6 = vrot.slane %v19112_v29, 3  ;;  %v4137_v16 = vunpack.i.h.s16 %v19097_v2  ;;  %v15172_v24 = vld [vmem:[%s23128_s3 + $0x94] sm:$0xf]  ;;  %v12580_v22 = vor.u32 %v15177_v36, %v12579_v40 }
 0x398   :  { %4827 = vst [vmem:[#allocation1 + $0x5] ss:$9 sm:$0xff] %v18963_v47  ;;  %5137 = vmatpush.bf16.msrb.mxu2 %v12596_v61  ;;  %v12561_v25 = vld [vmem:[%s23128_s3 + $0x9c] sm:$0xf0]  ;;  %v15196_v50 = vld [vmem:[%s23128_s3 + $0x154] sm:$0xf]  ;;  %4765 = vmatpush.bf16.msrb.mxu1 %v12296_v1 }
 0x399   :  { %4830 = vst [vmem:[#allocation1 + $0x6] ss:$9 sm:$0xff] %v18997_v27  ;;  %v12657_v23 = vld [vmem:[%s23128_s3 + $0x15c] sm:$0xf0]  ;;  %v12567_v61 = vld [vmem:[%s23128_s3 + $0x98] sm:$0xf]  ;;  %v12482_v40 = vpack.i.b16 %v19108_v19, %v4137_v16 }
 0x39a   :  { %4833 = vst [vmem:[#allocation1 + $0x7] ss:$9 sm:$0xff] %v12477_v14  ;;  %v19121_v14 = vrot.slane %v4107_v21, 2  ;;  %v4139_v21 = vunpack.i.h.s16 %v19108_v19  ;;  %v15174_v9 = vld [vmem:[%s23128_s3 + $0xa0] sm:$0xf0] }
 0x39b   :  { %5118 = vmatpush.bf16.msrb.mxu0 %v12500_v34  ;;  %4784 = vmatpush.bf16.msrb.mxu3 %v12392_v28  ;;  %v12676_v34 = vor.u32 %v15201_v32, %v12675_v30  ;;  %v12663_v38 = vld [vmem:[%s23128_s3 + $0x158] sm:$0xf]  ;;  %v15198_v28 = vld [vmem:[%s23128_s3 + $0x160] sm:$0xf0]  ;;  %v15169_v36 = vld [vmem:[%s23128_s3 + $0x7c] sm:$0xf] }
 0x39c   :  { %v4141_v13 = vunpack.i.h.s16 %v19121_v14  ;;  %5150 = vmatpush.bf16.msra.mxu1 %v12576_v26  ;;  %v12549_v3 = vld [vmem:[%s23128_s3 + $0x84] sm:$0xf0]  ;;  %v12483_v30 = vpack.i.b16 %v19121_v14, %v4139_v21  ;;  %5138 = vmatpush.bf16.msrb.mxu2 %v12584_v62  ;;  %v12564_v26 = vor.u32 %v15172_v24, %v12561_v25  ;;  %v15193_v32 = vld [vmem:[%s23128_s3 + $0x13c] sm:$0xf]  ;;  %v12568_v21 = vor.u32 %v15174_v9, %v12567_v61  ;;  %v15171_v24 = vld [vmem:[%s23128_s3 + $0x88] sm:$0xf0] }
 0x39d   :  { %v12537_v25 = vld [vmem:[%s23128_s3 + $0x6c] sm:$0xf0]  ;;  %v12543_v61 = vld [vmem:[%s23128_s3 + $0x68] sm:$0xf]  ;;  %v15168_v9 = vld [vmem:[%s23128_s3 + $0x70] sm:$0xf0] }
 0x39e   :  { %v12484_v16 = vpack.i.b16 %v4112_v6, %v4141_v13  ;;  %v12651_v13 = vld [vmem:[%s23128_s3 + $0x140] sm:$0xf]  ;;  %v12882_v29 = vld [vmem:[%s23128_s3 + $0x408] sm:$0xf] }
 0x39f   :  { %5169 = vmatpush.bf16.msra.mxu3 %v12672_v52  ;;  %5119 = vmatpush.bf16.msrb.mxu0 %v12488_v49  ;;  %v12660_v52 = vor.u32 %v15196_v50, %v12657_v23  ;;  %v12664_v49 = vor.u32 %v15198_v28, %v12663_v38  ;;  %v12555_v23 = vld [vmem:[%s23128_s3 + $0x80] sm:$0xf]  ;;  %v15190_v50 = vld [vmem:[%s23128_s3 + $0x124] sm:$0xf]  ;;  %v12639_v38 = vld [vmem:[%s23128_s3 + $0x128] sm:$0xf]  ;;  %v5290_v28 = vunpack.i.h.s16 %v18985_v37 }
 0x3a0   :  { %5207 = vmatpush.bf16.msra.mxu2 %v12676_v34  ;;  %5151 = vmatpush.bf16.msra.mxu1 %v12564_v26  ;;  %v12633_v34 = vld [vmem:[%s23128_s3 + $0x12c] sm:$0xf0]  ;;  %v15163_v26 = vld [vmem:[%s23128_s3 + $0x4c] sm:$0xf] }
 0x3a1   :  { %v19170_v39 = vld [vmem:[#allocation1] sm:$0xff]  ;;  %v19172_v1 = vld [vmem:[#allocation1 + $0x9] sm:$0xff] }
 0x3a2   :  { %4837 = vst [vmem:[#allocation1] ss:$9 sm:$0xff] %v12478_v12  ;;  %v12645_v12 = vld [vmem:[%s23128_s3 + $0x144] sm:$0xf0] }
 0x3a3   :  { %4839 = vst [vmem:[#allocation1 + $0x1] ss:$9 sm:$0xff] %v12479_v43  ;;  %5188 = vmatpush.bf16.msra.mxu0 %v12580_v22  ;;  %v15195_v43 = vld [vmem:[%s23128_s3 + $0x148] sm:$0xf0]  ;;  %5170 = vmatpush.bf16.msra.mxu3 %v12660_v52  ;;  %v12648_v62 = vor.u32 %v15193_v32, %v12645_v12  ;;  %v12525_v52 = vld [vmem:[%s23128_s3 + $0x54] sm:$0xf0]  ;;  %v12544_v32 = vor.u32 %v15168_v9, %v12543_v61 }
 0x3a4   :  { %4841 = vst [vmem:[#allocation1 + $0x2] ss:$9 sm:$0xff] %v12480_v7  ;;  %5208 = vmatpush.bf16.msra.mxu2 %v12664_v49  ;;  %v12556_v7 = vor.u32 %v15171_v24, %v12555_v23  ;;  %v12652_v22 = vor.u32 %v15195_v43, %v12651_v13  ;;  %v15187_v12 = vld [vmem:[%s23128_s3 + $0x10c] sm:$0xf]  ;;  %v5296_v49 = vunpack.i.h.s16 %v18958_v0  ;;  %v15165_v23 = vld [vmem:[%s23128_s3 + $0x58] sm:$0xf0]  ;;  %v12741_v43 = vpack.i.b16 %v18951_v4, %v5290_v28 }
 0x3a5   :  { %4766 = vmatmul.bf16.vlgmr.msrb.gmra.mxu1 %v18862_v44  ;;  %4785 = vmatmul.bf16.vlgmr.msrb.gmra.mxu3 %v18864_v59  ;;  %4843 = vst [vmem:[#allocation1 + $0x3] ss:$9 sm:$0xff] %v12481_v53  ;;  %v15166_v44 = vld [vmem:[%s23128_s3 + $0x64] sm:$0xf]  ;;  %v12552_v59 = vor.u32 %v15169_v36, %v12549_v3  ;;  %v15192_v53 = vld [vmem:[%s23128_s3 + $0x130] sm:$0xf0]  ;;  %v5294_v36 = vunpack.i.h.s16 %v18953_v11 }
 0x3a6   :  { %5120 = vmatmul.bf16.vlgmr.msrb.gmra.mxu0 %v19170_v39  ;;  %5139 = vmatmul.bf16.vlgmr.msrb.gmra.mxu2 %v19172_v1  ;;  %4845 = vst [vmem:[#allocation1 + $0x4] ss:$9 sm:$0xff] %v12482_v40  ;;  %v5292_v40 = vunpack.i.h.s16 %v18951_v4  ;;  %v12540_v3 = vor.u32 %v15166_v44, %v12537_v25  ;;  %v12640_v37 = vor.u32 %v15192_v53, %v12639_v38  ;;  %v12627_v24 = vld [vmem:[%s23128_s3 + $0x110] sm:$0xf]  ;;  %v15189_v13 = vld [vmem:[%s23128_s3 + $0x118] sm:$0xf0]  ;;  %v5300_v4 = vunpack.i.h.s16 %v18963_v47 }
 0x3a7   :  { %4847 = vst [vmem:[#allocation1 + $0x5] ss:$9 sm:$0xff] %v12483_v30  ;;  %5189 = vmatpush.bf16.msra.mxu0 %v12568_v21  ;;  %5152 = vmatpush.bf16.msra.mxu1 %v12552_v59  ;;  %v12636_v30 = vor.u32 %v15190_v50, %v12633_v34  ;;  %v12531_v21 = vld [vmem:[%s23128_s3 + $0x50] sm:$0xf]  ;;  %v5298_v59 = vunpack.i.h.s16 %v19049_v57  ;;  %v12513_v25 = vld [vmem:[%s23128_s3 + $0x3c] sm:$0xf0]  ;;  %v12528_v34 = vor.u32 %v15163_v26, %v12525_v52  ;;  %v5302_v38 = vunpack.i.h.s16 %v18997_v27 }
 0x3a8   :  { %4849 = vst [vmem:[#allocation1 + $0x6] ss:$9 sm:$0xff] %v12484_v16  ;;  %5171 = vmatpush.bf16.msra.mxu3 %v12648_v62  ;;  %5209 = vmatpush.bf16.msra.mxu2 %v12652_v22  ;;  %v12621_v16 = vld [vmem:[%s23128_s3 + $0x114] sm:$0xf0]  ;;  %v12742_v44 = vpack.i.b16 %v18953_v11, %v5292_v40  ;;  %v15160_v62 = vld [vmem:[%s23128_s3 + $0x34] sm:$0xf]  ;;  %v12628_v53 = vor.u32 %v15189_v13, %v12627_v24 }
 0x3a9   :  { %v15184_v50 = vld [vmem:[%s23128_s3 + $0xf4] sm:$0xf]  ;;  %v12624_v61 = vor.u32 %v15187_v12, %v12621_v16  ;;  %v12609_v9 = vld [vmem:[%s23128_s3 + $0xfc] sm:$0xf0]  ;;  %v12519_v28 = vld [vmem:[%s23128_s3 + $0x38] sm:$0xf]  ;;  %v12745_v52 = vpack.i.b16 %v18963_v47, %v5298_v59  ;;  %v12516_v12 = vor.u32 %v15160_v62, %v12513_v25 }
 0x3aa   :  { %v15162_v40 = vld [vmem:[%s23128_s3 + $0x40] sm:$0xf0]  ;;  %v12612_v16 = vor.u32 %v15184_v50, %v12609_v9  ;;  %v15181_v47 = vld [vmem:[%s23128_s3 + $0xdc] sm:$0xf]  ;;  %v12507_v24 = vld [vmem:[%s23128_s3 + $0x20] sm:$0xf] }
 0x3ab   :  { %5190 = vmatpush.bf16.msra.mxu0 %v12556_v7  ;;  %v12743_v7 = vpack.i.b16 %v18958_v0, %v5294_v36  ;;  %5153 = vmatpush.bf16.msra.mxu1 %v12540_v3  ;;  %v12532_v0 = vor.u32 %v15165_v23, %v12531_v21  ;;  %v12744_v36 = vpack.i.b16 %v19049_v57, %v5296_v49  ;;  %v5304_v3 = vunpack.i.h.s16 %v18999_v31  ;;  %v15186_v26 = vld [vmem:[%s23128_s3 + $0x100] sm:$0xf0]  ;;  %v12501_v57 = vld [vmem:[%s23128_s3 + $0x24] sm:$0xf0]  ;;  %v15159_v13 = vld [vmem:[%s23128_s3 + $0x28] sm:$0xf0] }
 0x3ac   :  { %5172 = vmatpush.bf16.msra.mxu3 %v12636_v30  ;;  %5210 = vmatpush.bf16.msra.mxu2 %v12640_v37  ;;  %v12615_v30 = vld [vmem:[%s23128_s3 + $0xf8] sm:$0xf]  ;;  %v12746_v37 = vpack.i.b16 %v18997_v27, %v5300_v4  ;;  %v12597_v21 = vld [vmem:[%s23128_s3 + $0xe4] sm:$0xf0]  ;;  %v12747_v49 = vpack.i.b16 %v18999_v31, %v5302_v38  ;;  %v12520_v23 = vor.u32 %v15162_v40, %v12519_v28  ;;  %v12603_v31 = vld [vmem:[%s23128_s3 + $0xe0] sm:$0xf] }
 0x3ad   :  { %v12616_v27 = vor.u32 %v15186_v26, %v12615_v30  ;;  %v15183_v59 = vld [vmem:[%s23128_s3 + $0xe8] sm:$0xf0]  ;;  %v12600_v62 = vor.u32 %v15181_v47, %v12597_v21  ;;  %v15178_v25 = vld [vmem:[%s23128_s3 + $0xc4] sm:$0xf]  ;;  %v12585_v50 = vld [vmem:[%s23128_s3 + $0xcc] sm:$0xf0] }
 0x3ae   :  { %v12604_v4 = vor.u32 %v15183_v59, %v12603_v31  ;;  %v12591_v9 = vld [vmem:[%s23128_s3 + $0xc8] sm:$0xf]  ;;  %v15180_v38 = vld [vmem:[%s23128_s3 + $0xd0] sm:$0xf0]  ;;  %v12588_v30 = vor.u32 %v15178_v25, %v12585_v50  ;;  %v12836_v26 = vld [vmem:[%s23128_s3 + $0x3b4] sm:$0xf0] }
 0x3af   :  { %v19275_v11 = vld [vmem:[#allocation1] sm:$0xff]  ;;  %v19277_v22 = vld [vmem:[#allocation1 + $0x9] sm:$0xff]  ;;  %5191 = vmatpush.bf16.msra.mxu0 %v12544_v32  ;;  %v15157_v32 = vld [vmem:[%s23128_s3 + $0x1c] sm:$0xf]  ;;  %5154 = vmatpush.bf16.msra.mxu1 %v12528_v34 }
 0x3b0   :  { %5401 = vst [vmem:[#allocation1] ss:$9 sm:$0xff] %v12741_v43  ;;  %5173 = vmatpush.bf16.msra.mxu3 %v12624_v61  ;;  %5211 = vmatpush.bf16.msra.mxu2 %v12628_v53  ;;  %v23129_v43 = vunpack.i.h.s16 %v19020_v33  ;;  %v12504_v33 = vor.u32 %v15157_v32, %v12501_v57  ;;  %v12495_v34 = vld [vmem:[%s23128_s3 + $0x8] sm:$0xf]  ;;  %v15156_v61 = vld [vmem:[%s23128_s3 + $0x10] sm:$0xf0] }
 0x3b1   :  { %5404 = vst [vmem:[#allocation1 + $0x1] ss:$9 sm:$0xff] %v12742_v44  ;;  %v15272_v53 = vld [vmem:[%s23128_s3 + $0x3b0] sm:$0xf0]  ;;  %v12930_v28 = vld [vmem:[%s23128_s3 + $0x468] sm:$0xf]  ;;  %v12496_v57 = vor.u32 %v15156_v61, %v12495_v34 }
 0x3b2   :  { %5407 = vst [vmem:[#allocation1 + $0x2] ss:$9 sm:$0xff] %v12743_v7  ;;  %v5392_v44 = vpack.i.b16 %v23129_v43, %v5304_v3  ;;  %v12508_v7 = vor.u32 %v15159_v13, %v12507_v24  ;;  %v15296_v40 = vld [vmem:[%s23128_s3 + $0x470] sm:$0xf0]  ;;  %v12932_v32 = vld [vmem:[%s23128_s3 + $0x474] sm:$0xf0] }
 0x3b3   :  { %5410 = vst [vmem:[#allocation1 + $0x3] ss:$9 sm:$0xff] %v12744_v36  ;;  %5192 = vmatpush.bf16.msra.mxu0 %v12532_v0  ;;  %5155 = vmatpush.bf16.msra.mxu1 %v12516_v12  ;;  %v12834_v0 = vld [vmem:[%s23128_s3 + $0x3a8] sm:$0xf]  ;;  %v15271_v36 = vld [vmem:[%s23128_s3 + $0x3ac] sm:$0xf] }
 0x3b4   :  { %5413 = vst [vmem:[#allocation1 + $0x4] ss:$9 sm:$0xff] %v12745_v52  ;;  %5174 = vmatpush.bf16.msra.mxu3 %v12612_v16  ;;  %5212 = vmatpush.bf16.msra.mxu2 %v12616_v27  ;;  %v15295_v52 = vld [vmem:[%s23128_s3 + $0x46c] sm:$0xf]  ;;  %v12835_v12 = vor.u32 %v15272_v53, %v12834_v0  ;;  %v12931_v16 = vor.u32 %v15296_v40, %v12930_v28  ;;  %v12918_v27 = vld [vmem:[%s23128_s3 + $0x450] sm:$0xf] }
 0x3b5   :  { %4771 = vmatmul.bf16.gmra.mxu1 %v19003_v17  ;;  %4790 = vmatmul.bf16.gmra.mxu3 %v19005_v35  ;;  %5416 = vst [vmem:[#allocation1 + $0x5] ss:$9 sm:$0xff] %v12746_v37  ;;  %v15154_v17 = vld [vmem:[%s23128_s3 + $0x4] sm:$0xf]  ;;  %v12489_v35 = vld [vmem:[%s23128_s3 + $0xc] sm:$0xf0]  ;;  %v12592_v37 = vor.u32 %v15180_v38, %v12591_v9  ;;  %v12839_v47 = vor.u32 %v15271_v36, %v12836_v26 }
 0x3b6   :  { %5125 = vmatmul.bf16.gmra.mxu0 %v19275_v11  ;;  %5144 = vmatmul.bf16.gmra.mxu2 %v19277_v22  ;;  %5419 = vst [vmem:[#allocation1 + $0x6] ss:$9 sm:$0xff] %v12747_v49  ;;  %v12492_v3 = vor.u32 %v15154_v17, %v12489_v35  ;;  %v12935_v21 = vor.u32 %v15295_v52, %v12932_v32  ;;  %v12822_v49 = vld [vmem:[%s23128_s3 + $0x390] sm:$0xf]  ;;  %v15293_v24 = vld [vmem:[%s23128_s3 + $0x458] sm:$0xf0] }
 0x3b7   :  { %5422 = vst [vmem:[#allocation1 + $0x7] ss:$9 sm:$0xff] %v5392_v44  ;;  %5193 = vmatpush.bf16.msra.mxu0 %v12520_v23  ;;  %5156 = vmatpush.bf16.msra.mxu1 %v12504_v33  ;;  %v15269_v23 = vld [vmem:[%s23128_s3 + $0x398] sm:$0xf0]  ;;  %v15268_v13 = vld [vmem:[%s23128_s3 + $0x394] sm:$0xf]  ;;  %v12919_v25 = vor.u32 %v15293_v24, %v12918_v27 }
 0x3b8   :  { %5175 = vmatpush.bf16.msra.mxu3 %v12600_v62  ;;  %5213 = vmatpush.bf16.msra.mxu2 %v12604_v4  ;;  %v12824_v43 = vld [vmem:[%s23128_s3 + $0x39c] sm:$0xf0]  ;;  %v15292_v44 = vld [vmem:[%s23128_s3 + $0x454] sm:$0xf]  ;;  %v12810_v59 = vld [vmem:[%s23128_s3 + $0x378] sm:$0xf]  ;;  %v12823_v62 = vor.u32 %v15269_v23, %v12822_v49 }
 0x3b9   :  { %v12920_v31 = vld [vmem:[%s23128_s3 + $0x45c] sm:$0xf0]  ;;  %v15266_v17 = vld [vmem:[%s23128_s3 + $0x380] sm:$0xf0]  ;;  %v12906_v50 = vld [vmem:[%s23128_s3 + $0x438] sm:$0xf]  ;;  %v12827_v4 = vor.u32 %v15268_v13, %v12824_v43 }
 0x3ba   :  { %v12923_v34 = vor.u32 %v15292_v44, %v12920_v31  ;;  %v15265_v61 = vld [vmem:[%s23128_s3 + $0x37c] sm:$0xf]  ;;  %v12812_v9 = vld [vmem:[%s23128_s3 + $0x384] sm:$0xf0]  ;;  %v15263_v0 = vld [vmem:[%s23128_s3 + $0x368] sm:$0xf0]  ;;  %v12811_v53 = vor.u32 %v15266_v17, %v12810_v59 }
 0x3bb   :  { %5194 = vmatpush.bf16.msra.mxu0 %v12508_v7  ;;  %5157 = vmatpush.bf16.msra.mxu1 %v12492_v3  ;;  %v15290_v7 = vld [vmem:[%s23128_s3 + $0x440] sm:$0xf0]  ;;  %v12908_v38 = vld [vmem:[%s23128_s3 + $0x444] sm:$0xf0]  ;;  %v12800_v36 = vld [vmem:[%s23128_s3 + $0x36c] sm:$0xf0] }
 0x3bc   :  { %5176 = vmatpush.bf16.msra.mxu3 %v12588_v30  ;;  %5214 = vmatpush.bf16.msra.mxu2 %v12592_v37  ;;  %v12907_v28 = vor.u32 %v15290_v7, %v12906_v50  ;;  %v15286_v3 = vld [vmem:[%s23128_s3 + $0x424] sm:$0xf]  ;;  %v12786_v52 = vld [vmem:[%s23128_s3 + $0x348] sm:$0xf]  ;;  %v15259_v37 = vld [vmem:[%s23128_s3 + $0x34c] sm:$0xf] }
 0x3bd   :  { %v12774_v23 = vld [vmem:[%s23128_s3 + $0x330] sm:$0xf]  ;;  %v15257_v27 = vld [vmem:[%s23128_s3 + $0x338] sm:$0xf0]  ;;  %v15256_v31 = vld [vmem:[%s23128_s3 + $0x334] sm:$0xf] }
 0x3be   :  { %v19408_v35 = vld [vmem:[#allocation1] sm:$0xff]  ;;  %v19410_v33 = vld [vmem:[#allocation1 + $0x9] sm:$0xff]  ;;  %v15281_v44 = vld [vmem:[%s23128_s3 + $0x3f8] sm:$0xf0] }
 0x3bf   :  { %5195 = vmatpush.bf16.msra.mxu0 %v12496_v57  ;;  %5701 = vmatpush.bf16.msrb.mxu1 %v12835_v12  ;;  %5426 = vst [vmem:[#allocation1] ss:$9 sm:$0xff] %v19029_v60  ;;  %v15289_v60 = vld [vmem:[%s23128_s3 + $0x43c] sm:$0xf]  ;;  %v12788_v12 = vld [vmem:[%s23128_s3 + $0x354] sm:$0xf0] }
 0x3c0   :  { %5720 = vmatpush.bf16.msrb.mxu3 %v12931_v16  ;;  %5758 = vmatpush.bf16.msrb.mxu2 %v12935_v21  ;;  %5428 = vst [vmem:[#allocation1 + $0x1] ss:$9 sm:$0xff] %v19036_v18  ;;  %v12798_v18 = vld [vmem:[%s23128_s3 + $0x360] sm:$0xf]  ;;  %v12911_v40 = vor.u32 %v15289_v60, %v12908_v38  ;;  %v15283_v16 = vld [vmem:[%s23128_s3 + $0x40c] sm:$0xf]  ;;  %v12791_v24 = vor.u32 %v15259_v37, %v12788_v12 }
 0x3c1   :  { %5430 = vst [vmem:[#allocation1 + $0x2] ss:$9 sm:$0xff] %v19038_v55  ;;  %v12894_v55 = vld [vmem:[%s23128_s3 + $0x420] sm:$0xf]  ;;  %v12799_v30 = vor.u32 %v15263_v0, %v12798_v18  ;;  %v12870_v43 = vld [vmem:[%s23128_s3 + $0x3f0] sm:$0xf] }
 0x3c2   :  { %5432 = vst [vmem:[#allocation1 + $0x3] ss:$9 sm:$0xff] %v19097_v2  ;;  %v15262_v2 = vld [vmem:[%s23128_s3 + $0x364] sm:$0xf]  ;;  %v12776_v59 = vld [vmem:[%s23128_s3 + $0x33c] sm:$0xf0] }
 0x3c3   :  { %5739 = vmatpush.bf16.msrb.mxu0 %v12839_v47  ;;  %5702 = vmatpush.bf16.msrb.mxu1 %v12823_v62  ;;  %5434 = vst [vmem:[#allocation1 + $0x4] ss:$9 sm:$0xff] %v19108_v19  ;;  %v12896_v19 = vld [vmem:[%s23128_s3 + $0x42c] sm:$0xf0]  ;;  %v12803_v32 = vor.u32 %v15262_v2, %v12800_v36  ;;  %v12884_v47 = vld [vmem:[%s23128_s3 + $0x414] sm:$0xf0]  ;;  %v12779_v38 = vor.u32 %v15256_v31, %v12776_v59 }
 0x3c4   :  { %5721 = vmatpush.bf16.msrb.mxu3 %v12919_v25  ;;  %5759 = vmatpush.bf16.msrb.mxu2 %v12923_v34  ;;  %5436 = vst [vmem:[#allocation1 + $0x5] ss:$9 sm:$0xff] %v19121_v14  ;;  %v15260_v14 = vld [vmem:[%s23128_s3 + $0x350] sm:$0xf0]  ;;  %v12899_v57 = vor.u32 %v15286_v3, %v12896_v19  ;;  %v12887_v13 = vor.u32 %v15283_v16, %v12884_v47  ;;  %v12872_v62 = vld [vmem:[%s23128_s3 + $0x3fc] sm:$0xf0] }
 0x3c5   :  { %5158 = vmatmul.bf16.vlgmr.msra.gmra.mxu1 %v19170_v39  ;;  %5177 = vmatmul.bf16.vlgmr.msra.gmra.mxu3 %v19172_v1  ;;  %5438 = vst [vmem:[#allocation1 + $0x6] ss:$9 sm:$0xff] %v4112_v6  ;;  %v15284_v6 = vld [vmem:[%s23128_s3 + $0x410] sm:$0xf0]  ;;  %v12787_v21 = vor.u32 %v15260_v14, %v12786_v52  ;;  %v12762_v25 = vld [vmem:[%s23128_s3 + $0x318] sm:$0xf]  ;;  %v12775_v34 = vor.u32 %v15257_v27, %v12774_v23 }
 0x3c6   :  { %5196 = vmatmul.bf16.vlgmr.msra.gmra.mxu0 %v19170_v39  ;;  %5215 = vmatmul.bf16.vlgmr.msra.gmra.mxu2 %v19172_v1  ;;  %v15287_v39 = vld [vmem:[%s23128_s3 + $0x428] sm:$0xf0]  ;;  %v12815_v1 = vor.u32 %v15265_v61, %v12812_v9  ;;  %v12883_v49 = vor.u32 %v15284_v6, %v12882_v29  ;;  %v15280_v17 = vld [vmem:[%s23128_s3 + $0x3f4] sm:$0xf]  ;;  %v15254_v50 = vld [vmem:[%s23128_s3 + $0x320] sm:$0xf0]  ;;  %v12871_v61 = vor.u32 %v15281_v44, %v12870_v43 }
 0x3c7   :  { %5740 = vmatpush.bf16.msrb.mxu0 %v12827_v4  ;;  %5703 = vmatpush.bf16.msrb.mxu1 %v12811_v53  ;;  %v12895_v26 = vor.u32 %v15287_v39, %v12894_v55  ;;  %v12858_v9 = vld [vmem:[%s23128_s3 + $0x3d8] sm:$0xf]  ;;  %v15278_v60 = vld [vmem:[%s23128_s3 + $0x3e0] sm:$0xf0]  ;;  %v12875_v18 = vor.u32 %v15280_v17, %v12872_v62  ;;  %v15253_v0 = vld [vmem:[%s23128_s3 + $0x31c] sm:$0xf] }
 0x3c8   :  { %5722 = vmatpush.bf16.msrb.mxu3 %v12907_v28  ;;  %5760 = vmatpush.bf16.msrb.mxu2 %v12911_v40  ;;  %v12764_v53 = vld [vmem:[%s23128_s3 + $0x324] sm:$0xf0]  ;;  %v15251_v55 = vld [vmem:[%s23128_s3 + $0x308] sm:$0xf0]  ;;  %v12846_v39 = vld [vmem:[%s23128_s3 + $0x3c0] sm:$0xf] }
 0x3c9   :  { %v12860_v28 = vld [vmem:[%s23128_s3 + $0x3e4] sm:$0xf0]  ;;  %v12752_v40 = vld [vmem:[%s23128_s3 + $0x30c] sm:$0xf0]  ;;  %v15274_v2 = vld [vmem:[%s23128_s3 + $0x3c4] sm:$0xf] }
 0x3ca   :  { %v12848_v3 = vld [vmem:[%s23128_s3 + $0x3cc] sm:$0xf0]  ;;  %v13097_v52 = vld [vmem:[%s23128_s3 + $0x528] sm:$0xf]  ;;  %v12830_v47 = vld [vmem:[%s23128_s3 + $0x398] sm:$0xf] }
 0x3cb   :  { %5741 = vmatpush.bf16.msrb.mxu0 %v12815_v1  ;;  %5704 = vmatpush.bf16.msrb.mxu1 %v12799_v30  ;;  %v15250_v1 = vld [vmem:[%s23128_s3 + $0x304] sm:$0xf]  ;;  %v12842_v19 = vld [vmem:[%s23128_s3 + $0x3b0] sm:$0xf]  ;;  %v15273_v30 = vld [vmem:[%s23128_s3 + $0x3b8] sm:$0xf0] }
 0x3cc   :  { %5723 = vmatpush.bf16.msrb.mxu3 %v12895_v26  ;;  %5761 = vmatpush.bf16.msrb.mxu2 %v12899_v57  ;;  %v19520_v7 = vld [vmem:[#allocation1] sm:$0xff]  ;;  %v19522_v4 = vld [vmem:[#allocation1 + $0x9] sm:$0xff]  ;;  %v15297_v26 = vld [vmem:[%s23128_s3 + $0x478] sm:$0xf0]  ;;  %v12755_v29 = vor.u32 %v15250_v1, %v12752_v40  ;;  %v12843_v6 = vor.u32 %v15273_v30, %v12842_v19 }
 0x3cd   :  { %6002 = vst [vmem:[#allocation1] ss:$9 sm:$0xff] %v18720_v54  ;;  %v15277_v54 = vld [vmem:[%s23128_s3 + $0x3dc] sm:$0xf]  ;;  %v15344_v57 = vld [vmem:[%s23128_s3 + $0x5f0] sm:$0xf0] }
 0x3ce   :  { %6005 = vst [vmem:[#allocation1 + $0x1] ss:$9 sm:$0xff] %v18734_v63  ;;  %v12750_v63 = vld [vmem:[%s23128_s3 + $0x300] sm:$0xf]  ;;  %v12863_v36 = vor.u32 %v15277_v54, %v12860_v28  ;;  %v15294_v23 = vld [vmem:[%s23128_s3 + $0x460] sm:$0xf0] }
 0x3cf   :  { %5742 = vmatpush.bf16.msrb.mxu0 %v12803_v32  ;;  %5705 = vmatpush.bf16.msrb.mxu1 %v12787_v21  ;;  %6008 = vst [vmem:[#allocation1 + $0x2] ss:$9 sm:$0xff] %v18736_v15  ;;  %v15275_v15 = vld [vmem:[%s23128_s3 + $0x3c8] sm:$0xf0]  ;;  %v15320_v32 = vld [vmem:[%s23128_s3 + $0x530] sm:$0xf0] }
 0x3d0   :  { %5724 = vmatpush.bf16.msrb.mxu3 %v12883_v49  ;;  %5762 = vmatpush.bf16.msrb.mxu2 %v12887_v13  ;;  %6011 = vst [vmem:[#allocation1 + $0x3] ss:$9 sm:$0xff] %v18742_v5  ;;  %v12767_v5 = vor.u32 %v15253_v0, %v12764_v53  ;;  %v12847_v14 = vor.u32 %v15275_v15, %v12846_v39  ;;  %v15270_v21 = vld [vmem:[%s23128_s3 + $0x3a0] sm:$0xf0]  ;;  %v12926_v49 = vld [vmem:[%s23128_s3 + $0x458] sm:$0xf] }
 0x3d1   :  { %6014 = vst [vmem:[#allocation1 + $0x4] ss:$9 sm:$0xff] %v18747_v46  ;;  %v12938_v46 = vld [vmem:[%s23128_s3 + $0x470] sm:$0xf]  ;;  %v13098_v12 = vor.u32 %v15320_v32, %v13097_v52  ;;  %v15341_v43 = vld [vmem:[%s23128_s3 + $0x5d8] sm:$0xf0]  ;;  %v12831_v59 = vor.u32 %v15270_v21, %v12830_v47  ;;  %v12927_v17 = vor.u32 %v15294_v23, %v12926_v49 }
 0x3d2   :  { %6017 = vst [vmem:[#allocation1 + $0x5] ss:$9 sm:$0xff] %v18758_v56  ;;  %v12751_v56 = vor.u32 %v15251_v55, %v12750_v63  ;;  %v12939_v37 = vor.u32 %v15297_v26, %v12938_v46  ;;  %v13085_v27 = vld [vmem:[%s23128_s3 + $0x510] sm:$0xf]  ;;  %v12818_v62 = vld [vmem:[%s23128_s3 + $0x380] sm:$0xf] }
 0x3d3   :  { %5743 = vmatpush.bf16.msrb.mxu0 %v12791_v24  ;;  %5706 = vmatpush.bf16.msrb.mxu1 %v12775_v34  ;;  %6020 = vst [vmem:[#allocation1 + $0x6] ss:$9 sm:$0xff] %v18760_v45  ;;  %v13193_v45 = vld [vmem:[%s23128_s3 + $0x5e8] sm:$0xf]  ;;  %v15317_v24 = vld [vmem:[%s23128_s3 + $0x518] sm:$0xf0] }
 0x3d4   :  { %5725 = vmatpush.bf16.msrb.mxu3 %v12871_v61  ;;  %5763 = vmatpush.bf16.msrb.mxu2 %v12875_v18  ;;  %6023 = vst [vmem:[#allocation1 + $0x7] ss:$9 sm:$0xff] %v18804_v8  ;;  %v12851_v8 = vor.u32 %v15274_v2, %v12848_v3  ;;  %v13194_v16 = vor.u32 %v15344_v57, %v13193_v45  ;;  %v13181_v13 = vld [vmem:[%s23128_s3 + $0x5d0] sm:$0xf]  ;;  %v15338_v18 = vld [vmem:[%s23128_s3 + $0x5c0] sm:$0xf0] }
 0x3d5   :  { %5163 = vmatmul.bf16.gmra.mxu1 %v19275_v11  ;;  %5182 = vmatmul.bf16.gmra.mxu3 %v19277_v22  ;;  %v13086_v34 = vor.u32 %v15317_v24, %v13085_v27  ;;  %v13182_v61 = vor.u32 %v15341_v43, %v13181_v13  ;;  %v12806_v0 = vld [vmem:[%s23128_s3 + $0x368] sm:$0xf]  ;;  %v15264_v53 = vld [vmem:[%s23128_s3 + $0x370] sm:$0xf0]  ;;  %v15311_v15 = vld [vmem:[%s23128_s3 + $0x4e8] sm:$0xf0] }
 0x3d6   :  { %5201 = vmatmul.bf16.gmra.mxu0 %v19275_v11  ;;  %5220 = vmatmul.bf16.gmra.mxu2 %v19277_v22  ;;  %v12763_v11 = vor.u32 %v15254_v50, %v12762_v25  ;;  %v12859_v22 = vor.u32 %v15278_v60, %v12858_v9  ;;  %v15267_v25 = vld [vmem:[%s23128_s3 + $0x388] sm:$0xf0]  ;;  %v12914_v50 = vld [vmem:[%s23128_s3 + $0x440] sm:$0xf]  ;;  %v13073_v9 = vld [vmem:[%s23128_s3 + $0x4f8] sm:$0xf]  ;;  %v12807_v1 = vor.u32 %v15264_v53, %v12806_v0 }
 0x3d7   :  { %5744 = vmatpush.bf16.msrb.mxu0 %v12779_v38  ;;  %v15314_v60 = vld [vmem:[%s23128_s3 + $0x500] sm:$0xf0]  ;;  %v13169_v38 = vld [vmem:[%s23128_s3 + $0x5b8] sm:$0xf]  ;;  %v12819_v54 = vor.u32 %v15267_v25, %v12818_v62  ;;  %v15288_v63 = vld [vmem:[%s23128_s3 + $0x430] sm:$0xf0] }
 0x3d8   :  { %5707 = vmatpush.bf16.msrb.mxu1 %v12763_v11  ;;  %5726 = vmatpush.bf16.msrb.mxu3 %v12859_v22  ;;  %v13074_v55 = vor.u32 %v15314_v60, %v13073_v9  ;;  %v13170_v39 = vor.u32 %v15338_v18, %v13169_v38  ;;  %v13157_v11 = vld [vmem:[%s23128_s3 + $0x5a0] sm:$0xf]  ;;  %v23130_v22 = vrot.slane %v18842_v48, 3  ;;  %v15261_v2 = vld [vmem:[%s23128_s3 + $0x358] sm:$0xf0] }
 0x3d9   :  { %5764 = vmatpush.bf16.msrb.mxu2 %v12863_v36  ;;  %v15285_v48 = vld [vmem:[%s23128_s3 + $0x418] sm:$0xf0]  ;;  %v13049_v3 = vld [vmem:[%s23128_s3 + $0x4c8] sm:$0xf]  ;;  %v15308_v19 = vld [vmem:[%s23128_s3 + $0x4d0] sm:$0xf0] }
 0x3da   :  { %v13145_v30 = vld [vmem:[%s23128_s3 + $0x588] sm:$0xf]  ;;  %v15332_v46 = vld [vmem:[%s23128_s3 + $0x590] sm:$0xf0]  ;;  %v13050_v32 = vor.u32 %v15308_v19, %v13049_v3  ;;  %v12878_v57 = vld [vmem:[%s23128_s3 + $0x3f8] sm:$0xf] }
 0x3db   :  { %5745 = vmatpush.bf16.msrb.mxu0 %v12767_v5  ;;  %v19626_v44 = vld [vmem:[#allocation1] sm:$0xff]  ;;  %v19628_v31 = vld [vmem:[#allocation1 + $0x9] sm:$0xff]  ;;  %v13146_v45 = vor.u32 %v15332_v46, %v13145_v30  ;;  %v13025_v43 = vld [vmem:[%s23128_s3 + $0x498] sm:$0xf] }
 0x3dc   :  { %5708 = vmatpush.bf16.msrb.mxu1 %v12751_v56  ;;  %5727 = vmatpush.bf16.msrb.mxu3 %v12847_v14  ;;  %6027 = vst [vmem:[#allocation1] ss:$9 sm:$0xff] %v18795_v58  ;;  %v15291_v58 = vld [vmem:[%s23128_s3 + $0x448] sm:$0xf0]  ;;  %v12782_v56 = vld [vmem:[%s23128_s3 + $0x338] sm:$0xf] }
 0x3dd   :  { %5765 = vmatpush.bf16.msrb.mxu2 %v12851_v8  ;;  %6029 = vst [vmem:[#allocation1 + $0x1] ss:$9 sm:$0xff] %v18797_v10  ;;  %v12915_v28 = vor.u32 %v15291_v58, %v12914_v50  ;;  %v12902_v10 = vld [vmem:[%s23128_s3 + $0x428] sm:$0xf]  ;;  %v15258_v14 = vld [vmem:[%s23128_s3 + $0x340] sm:$0xf0] }
 0x3de   :  { %6031 = vst [vmem:[#allocation1 + $0x2] ss:$9 sm:$0xff] %v18799_v51  ;;  %v13061_v51 = vld [vmem:[%s23128_s3 + $0x4e0] sm:$0xf]  ;;  %v12903_v40 = vor.u32 %v15288_v63, %v12902_v10  ;;  %v13037_v8 = vld [vmem:[%s23128_s3 + $0x4b0] sm:$0xf] }
 0x3df   :  { %5746 = vmatpush.bf16.msrb.mxu0 %v12755_v29  ;;  %6033 = vst [vmem:[#allocation1 + $0x3] ss:$9 sm:$0xff] %v18833_v42  ;;  %v15335_v42 = vld [vmem:[%s23128_s3 + $0x5a8] sm:$0xf0]  ;;  %v13062_v5 = vor.u32 %v15311_v15, %v13061_v51  ;;  %v15282_v29 = vld [vmem:[%s23128_s3 + $0x400] sm:$0xf0] }
 0x3e0   :  { %5777 = vmatpush.bf16.msra.mxu1 %v12843_v6  ;;  %5796 = vmatpush.bf16.msra.mxu3 %v12939_v37  ;;  %6035 = vst [vmem:[#allocation1 + $0x4] ss:$9 sm:$0xff] %v18837_v41  ;;  %v12794_v41 = vld [vmem:[%s23128_s3 + $0x350] sm:$0xf]  ;;  %v13158_v36 = vor.u32 %v15335_v42, %v13157_v11  ;;  %v15305_v6 = vld [vmem:[%s23128_s3 + $0x4b8] sm:$0xf0]  ;;  %v12879_v47 = vor.u32 %v15282_v29, %v12878_v57 }
 0x3e1   :  { %6321 = vmatpush.bf16.msra.mxu2 %v13194_v16  ;;  %6037 = vst [vmem:[#allocation1 + $0x5] ss:$9 sm:$0xff] %v18839_v20  ;;  %v12890_v20 = vld [vmem:[%s23128_s3 + $0x410] sm:$0xf]  ;;  %v12795_v26 = vor.u32 %v15261_v2, %v12794_v41  ;;  %v12783_v16 = vor.u32 %v15258_v14, %v12782_v56  ;;  %v12770_v21 = vld [vmem:[%s23128_s3 + $0x320] sm:$0xf]  ;;  %v13038_v23 = vor.u32 %v15305_v6, %v13037_v8 }
 0x3e2   :  { %6039 = vst [vmem:[#allocation1 + $0x6] ss:$9 sm:$0xff] %v23130_v22  ;;  %v12891_v52 = vor.u32 %v15285_v48, %v12890_v20  ;;  %v13133_v37 = vld [vmem:[%s23128_s3 + $0x570] sm:$0xf]  ;;  %v15255_v49 = vld [vmem:[%s23128_s3 + $0x328] sm:$0xf0] }
 0x3e3   :  { %6302 = vmatpush.bf16.msra.mxu0 %v13098_v12  ;;  %v15329_v12 = vld [vmem:[%s23128_s3 + $0x578] sm:$0xf0]  ;;  %v12866_v24 = vld [vmem:[%s23128_s3 + $0x3e0] sm:$0xf]  ;;  %v15279_v13 = vld [vmem:[%s23128_s3 + $0x3e8] sm:$0xf0]  ;;  %v12771_v50 = vor.u32 %v15255_v49, %v12770_v21 }
 0x3e4   :  { %5778 = vmatpush.bf16.msra.mxu1 %v12831_v59  ;;  %5797 = vmatpush.bf16.msra.mxu3 %v12927_v17  ;;  %v13134_v27 = vor.u32 %v15329_v12, %v13133_v37  ;;  %v15302_v59 = vld [vmem:[%s23128_s3 + $0x4a0] sm:$0xf0]  ;;  %v13121_v17 = vld [vmem:[%s23128_s3 + $0x558] sm:$0xf]  ;;  %v12758_v25 = vld [vmem:[%s23128_s3 + $0x308] sm:$0xf] }
 0x3e5   :  { %5709 = vmatmul.bf16.vlgmr.msrb.gmra.mxu1 %v19408_v35  ;;  %5728 = vmatmul.bf16.vlgmr.msrb.gmra.mxu3 %v19410_v33  ;;  %v15326_v62 = vld [vmem:[%s23128_s3 + $0x560] sm:$0xf0]  ;;  %v12854_v58 = vld [vmem:[%s23128_s3 + $0x3c8] sm:$0xf]  ;;  %v15276_v9 = vld [vmem:[%s23128_s3 + $0x3d0] sm:$0xf0]  ;;  %v13026_v60 = vor.u32 %v15302_v59, %v13025_v43 }
 0x3e6   :  { %5747 = vmatmul.bf16.vlgmr.msrb.gmra.mxu0 %v19408_v35  ;;  %5766 = vmatmul.bf16.vlgmr.msrb.gmra.mxu2 %v19410_v33  ;;  %v13122_v38 = vor.u32 %v15326_v62, %v13121_v17  ;;  %v13013_v18 = vld [vmem:[%s23128_s3 + $0x480] sm:$0xf]  ;;  %v15299_v0 = vld [vmem:[%s23128_s3 + $0x488] sm:$0xf0]  ;;  %v13099_v10 = vld [vmem:[%s23128_s3 + $0x534] sm:$0xf0]  ;;  %v12855_v15 = vor.u32 %v15276_v9, %v12854_v58 }
 0x3e7   :  { %6303 = vmatpush.bf16.msra.mxu0 %v13086_v34  ;;  %6322 = vmatpush.bf16.msra.mxu2 %v13182_v61  ;;  %v12867_v34 = vor.u32 %v15279_v13, %v12866_v24  ;;  %v15252_v61 = vld [vmem:[%s23128_s3 + $0x310] sm:$0xf0]  ;;  %v13109_v53 = vld [vmem:[%s23128_s3 + $0x540] sm:$0xf]  ;;  %v15343_v63 = vld [vmem:[%s23128_s3 + $0x5ec] sm:$0xf] }
 0x3e8   :  { %5779 = vmatpush.bf16.msra.mxu1 %v12819_v54  ;;  %5798 = vmatpush.bf16.msra.mxu3 %v12915_v28  ;;  %v15323_v54 = vld [vmem:[%s23128_s3 + $0x548] sm:$0xf0]  ;;  %v12759_v51 = vor.u32 %v15252_v61, %v12758_v25  ;;  %v15321_v11 = vld [vmem:[%s23128_s3 + $0x538] sm:$0xf0]  ;;  %v13201_v42 = vld [vmem:[%s23128_s3 + $0x5f0] sm:$0xf] }
 0x3e9   :  { %v15319_v28 = vld [vmem:[%s23128_s3 + $0x52c] sm:$0xf]  ;;  %v15345_v22 = vld [vmem:[%s23128_s3 + $0x5f8] sm:$0xf0]  ;;  %v15316_v20 = vld [vmem:[%s23128_s3 + $0x514] sm:$0xf] }
 0x3ea   :  { %v13102_v41 = vor.u32 %v15319_v28, %v13099_v10  ;;  %v13087_v48 = vld [vmem:[%s23128_s3 + $0x51c] sm:$0xf0]  ;;  %v15340_v3 = vld [vmem:[%s23128_s3 + $0x5d4] sm:$0xf]  ;;  %v13093_v30 = vld [vmem:[%s23128_s3 + $0x518] sm:$0xf] }
 0x3eb   :  { %6304 = vmatpush.bf16.msra.mxu0 %v13074_v55  ;;  %6323 = vmatpush.bf16.msra.mxu2 %v13170_v39  ;;  %v13195_v55 = vld [vmem:[%s23128_s3 + $0x5f4] sm:$0xf0]  ;;  %v13105_v39 = vld [vmem:[%s23128_s3 + $0x530] sm:$0xf]  ;;  %v13183_v19 = vld [vmem:[%s23128_s3 + $0x5dc] sm:$0xf0] }
 0x3ec   :  { %5780 = vmatpush.bf16.msra.mxu1 %v12807_v1  ;;  %5799 = vmatpush.bf16.msra.mxu3 %v12903_v40  ;;  %v13014_v1 = vor.u32 %v15299_v0, %v13013_v18  ;;  %v13110_v40 = vor.u32 %v15323_v54, %v13109_v53  ;;  %v13198_v2 = vor.u32 %v15343_v63, %v13195_v55  ;;  %v15318_v46 = vld [vmem:[%s23128_s3 + $0x520] sm:$0xf0]  ;;  %v15313_v57 = vld [vmem:[%s23128_s3 + $0x4fc] sm:$0xf]  ;;  %v13075_v29 = vld [vmem:[%s23128_s3 + $0x504] sm:$0xf0] }
 0x3ed   :  { %v13094_v8 = vor.u32 %v15318_v46, %v13093_v30  ;;  %v15337_v37 = vld [vmem:[%s23128_s3 + $0x5bc] sm:$0xf]  ;;  %v13171_v12 = vld [vmem:[%s23128_s3 + $0x5c4] sm:$0xf0]  ;;  %v13177_v21 = vld [vmem:[%s23128_s3 + $0x5c0] sm:$0xf] }
 0x3ee   :  { %v15339_v49 = vld [vmem:[%s23128_s3 + $0x5c8] sm:$0xf0]  ;;  %v15334_v59 = vld [vmem:[%s23128_s3 + $0x5a4] sm:$0xf]  ;;  %v13159_v17 = vld [vmem:[%s23128_s3 + $0x5ac] sm:$0xf0] }
 0x3ef   :  { %6305 = vmatpush.bf16.msra.mxu0 %v13062_v5  ;;  %6324 = vmatpush.bf16.msra.mxu2 %v13158_v36  ;;  %v13106_v5 = vor.u32 %v15321_v11, %v13105_v39  ;;  %v13202_v36 = vor.u32 %v15345_v22, %v13201_v42  ;;  %v13178_v43 = vor.u32 %v15339_v49, %v13177_v21  ;;  %v13069_v62 = vld [vmem:[%s23128_s3 + $0x4e8] sm:$0xf]  ;;  %v15336_v58 = vld [vmem:[%s23128_s3 + $0x5b0] sm:$0xf0]  ;;  %v15307_v53 = vld [vmem:[%s23128_s3 + $0x4cc] sm:$0xf] }
 0x3f0   :  { %5781 = vmatpush.bf16.msra.mxu1 %v12795_v26  ;;  %5800 = vmatpush.bf16.msra.mxu3 %v12891_v52  ;;  %v13189_v26 = vld [vmem:[%s23128_s3 + $0x5d8] sm:$0xf]  ;;  %v15342_v52 = vld [vmem:[%s23128_s3 + $0x5e0] sm:$0xf0]  ;;  %v13165_v61 = vld [vmem:[%s23128_s3 + $0x5a8] sm:$0xf]  ;;  %v13162_v0 = vor.u32 %v15334_v59, %v13159_v17 }
 0x3f1   :  { %v13190_v6 = vor.u32 %v15342_v52, %v13189_v26  ;;  %v13051_v54 = vld [vmem:[%s23128_s3 + $0x4d4] sm:$0xf0]  ;;  %v13166_v10 = vor.u32 %v15336_v58, %v13165_v61  ;;  %v15331_v63 = vld [vmem:[%s23128_s3 + $0x58c] sm:$0xf]  ;;  %v13057_v39 = vld [vmem:[%s23128_s3 + $0x4d0] sm:$0xf] }
 0x3f2   :  { %v13147_v55 = vld [vmem:[%s23128_s3 + $0x594] sm:$0xf0]  ;;  %v15333_v11 = vld [vmem:[%s23128_s3 + $0x598] sm:$0xf0]  ;;  %v13054_v42 = vor.u32 %v15307_v53, %v13051_v54  ;;  %v15330_v46 = vld [vmem:[%s23128_s3 + $0x580] sm:$0xf0] }
 0x3f3   :  { %6306 = vmatpush.bf16.msra.mxu0 %v13050_v32  ;;  %6325 = vmatpush.bf16.msra.mxu2 %v13146_v45  ;;  %v13090_v32 = vor.u32 %v15316_v20, %v13087_v48  ;;  %v13186_v45 = vor.u32 %v15340_v3, %v13183_v19  ;;  %v13150_v22 = vor.u32 %v15331_v63, %v13147_v55  ;;  %v13135_v20 = vld [vmem:[%s23128_s3 + $0x57c] sm:$0xf0]  ;;  %v13045_v48 = vld [vmem:[%s23128_s3 + $0x4b8] sm:$0xf]  ;;  %v15306_v19 = vld [vmem:[%s23128_s3 + $0x4c0] sm:$0xf0] }
 0x3f4   :  { %5782 = vmatpush.bf16.msra.mxu1 %v12783_v16  ;;  %5801 = vmatpush.bf16.msra.mxu3 %v12879_v47  ;;  %v13081_v16 = vld [vmem:[%s23128_s3 + $0x500] sm:$0xf]  ;;  %v15315_v47 = vld [vmem:[%s23128_s3 + $0x508] sm:$0xf0]  ;;  %v13141_v30 = vld [vmem:[%s23128_s3 + $0x578] sm:$0xf] }
 0x3f5   :  { %5714 = vmatmul.bf16.gmra.mxu1 %v19520_v7  ;;  %5733 = vmatmul.bf16.gmra.mxu3 %v19522_v4  ;;  %v13082_v13 = vor.u32 %v15315_v47, %v13081_v16  ;;  %v13033_v16 = vld [vmem:[%s23128_s3 + $0x4a0] sm:$0xf]  ;;  %v15303_v47 = vld [vmem:[%s23128_s3 + $0x4a8] sm:$0xf0]  ;;  %v13021_v59 = vld [vmem:[%s23128_s3 + $0x488] sm:$0xf] }
 0x3f6   :  { %5752 = vmatmul.bf16.gmra.mxu0 %v19520_v7  ;;  %5771 = vmatmul.bf16.gmra.mxu2 %v19522_v4  ;;  %v13129_v21 = vld [vmem:[%s23128_s3 + $0x560] sm:$0xf]  ;;  %v15327_v49 = vld [vmem:[%s23128_s3 + $0x568] sm:$0xf0]  ;;  %v15324_v61 = vld [vmem:[%s23128_s3 + $0x550] sm:$0xf0] }
 0x3f7   :  { %6307 = vmatpush.bf16.msra.mxu0 %v13038_v23  ;;  %6326 = vmatpush.bf16.msra.mxu2 %v13134_v27  ;;  %v15310_v23 = vld [vmem:[%s23128_s3 + $0x4e4] sm:$0xf]  ;;  %v13063_v27 = vld [vmem:[%s23128_s3 + $0x4ec] sm:$0xf0] }
 0x3f8   :  { %5783 = vmatpush.bf16.msra.mxu1 %v12771_v50  ;;  %5802 = vmatpush.bf16.msra.mxu3 %v12867_v34  ;;  %v15312_v34 = vld [vmem:[%s23128_s3 + $0x4f0] sm:$0xf0]  ;;  %v13066_v18 = vor.u32 %v15310_v23, %v13063_v27  ;;  %v13034_v27 = vor.u32 %v15303_v47, %v13033_v16 }
 0x3f9   :  { %v13070_v28 = vor.u32 %v15312_v34, %v13069_v62  ;;  %v13117_v34 = vld [vmem:[%s23128_s3 + $0x548] sm:$0xf] }
 0x3fb   :  { %6308 = vmatpush.bf16.msra.mxu0 %v13026_v60  ;;  %6327 = vmatpush.bf16.msra.mxu2 %v13122_v38 }
 0x3fc   :  { %5784 = vmatpush.bf16.msra.mxu1 %v12759_v51  ;;  %5803 = vmatpush.bf16.msra.mxu3 %v12855_v15  ;;  %v15309_v51 = vld [vmem:[%s23128_s3 + $0x4d8] sm:$0xf0]  ;;  %v13153_v15 = vld [vmem:[%s23128_s3 + $0x590] sm:$0xf] }
 0x3ff   :  { %6309 = vmatpush.bf16.msra.mxu0 %v13014_v1  ;;  %6328 = vmatpush.bf16.msra.mxu2 %v13110_v40  ;;  %v15304_v1 = vld [vmem:[%s23128_s3 + $0x4b4] sm:$0xf]  ;;  %v13039_v40 = vld [vmem:[%s23128_s3 + $0x4bc] sm:$0xf0] }
 0x400   :  { %6340 = vmatpush.bf16.msrb.mxu1 %v13102_v41  ;;  %6359 = vmatpush.bf16.msrb.mxu3 %v13198_v2  ;;  %v13058_v2 = vor.u32 %v15309_v51, %v13057_v39 }
 0x402   :  { %v4691_v56 = vpop.f32.mrf.mxu1 }
 0x403   :  { %6378 = vmatpush.bf16.msrb.mxu0 %v13106_v5  ;;  %6397 = vmatpush.bf16.msrb.mxu2 %v13202_v36  ;;  %v4729_v14 = vpop.f32.mrf.mxu0  ;;  %v13154_v5 = vor.u32 %v15333_v11, %v13153_v15  ;;  %v15328_v36 = vld [vmem:[%s23128_s3 + $0x574] sm:$0xf] }
 0x404   :  { %6341 = vmatpush.bf16.msrb.mxu1 %v13090_v32  ;;  %6360 = vmatpush.bf16.msrb.mxu3 %v13186_v45  ;;  %v13042_v32 = vor.u32 %v15304_v1, %v13039_v40  ;;  %v13138_v45 = vor.u32 %v15328_v36, %v13135_v20 }
 0x405   :  { %5785 = vmatmul.bf16.vlgmr.msra.gmra.mxu1 %v19408_v35  ;;  %5804 = vmatmul.bf16.vlgmr.msra.gmra.mxu3 %v19410_v33  ;;  %v13078_v35 = vor.u32 %v15313_v57, %v13075_v29  ;;  %v13174_v33 = vor.u32 %v15337_v37, %v13171_v12  ;;  %v15301_v57 = vld [vmem:[%s23128_s3 + $0x49c] sm:$0xf]  ;;  %v13027_v29 = vld [vmem:[%s23128_s3 + $0x4a4] sm:$0xf0] }
 0x406   :  { %6310 = vmatmul.bf16.vlgmr.msra.gmra.mxu0 %v19626_v44  ;;  %6329 = vmatmul.bf16.vlgmr.msra.gmra.mxu2 %v19628_v31  ;;  %v15325_v37 = vld [vmem:[%s23128_s3 + $0x55c] sm:$0xf]  ;;  %v13123_v12 = vld [vmem:[%s23128_s3 + $0x564] sm:$0xf0] }
 0x407   :  { %6379 = vmatpush.bf16.msrb.mxu0 %v13094_v8  ;;  %6398 = vmatpush.bf16.msrb.mxu2 %v13190_v6  ;;  %v13046_v8 = vor.u32 %v15306_v19, %v13045_v48  ;;  %v13142_v6 = vor.u32 %v15330_v46, %v13141_v30 }
 0x408   :  { %v4710_v24 = vpop.f32.mrf.mxu3  ;;  %6342 = vmatpush.bf16.msrb.mxu1 %v13078_v35  ;;  %6361 = vmatpush.bf16.msrb.mxu3 %v13174_v33  ;;  %v15298_v35 = vld [vmem:[%s23128_s3 + $0x484] sm:$0xf]  ;;  %v13015_v33 = vld [vmem:[%s23128_s3 + $0x48c] sm:$0xf0] }
 0x409   :  { %v19881_v25 = vadd.f32 %v4710_v24, %v4691_v56  ;;  %v4748_v50 = vpop.f32.mrf.mxu2  ;;  %v19950_v56 = vld [vmem:[#allocation1] sm:$0xff]  ;;  %v13130_v24 = vor.u32 %v15327_v49, %v13129_v21  ;;  %v13018_v53 = vor.u32 %v15298_v35, %v13015_v33 }
 0x40a   :  { %v19892_v9 = vadd.f32 %v4748_v50, %v4729_v14  ;;  %v19894_v60 = vpop.f32.mrf.mxu1  ;;  %v19952_v14 = vld [vmem:[#allocation1 + $0x9] sm:$0xff]  ;;  %v15300_v50 = vld [vmem:[%s23128_s3 + $0x490] sm:$0xf0] }
 0x40b   :  { %v19896_v38 = vpop.f32.mrf.mxu0  ;;  %6380 = vmatpush.bf16.msrb.mxu0 %v13082_v13  ;;  %6399 = vmatpush.bf16.msrb.mxu2 %v13178_v43  ;;  %v15322_v13 = vld [vmem:[%s23128_s3 + $0x544] sm:$0xf]  ;;  %v13111_v43 = vld [vmem:[%s23128_s3 + $0x54c] sm:$0xf0]  ;;  %s23143_s3 = sld [smem:[#allocation60_spill]] }
 0x40c   :  { %6343 = vmatpush.bf16.msrb.mxu1 %v13066_v18  ;;  %6362 = vmatpush.bf16.msrb.mxu3 %v13162_v0  ;;  %v13114_v54 = vor.u32 %v15322_v13, %v13111_v43 }
 0x40f   :  { %6381 = vmatpush.bf16.msrb.mxu0 %v13070_v28  ;;  %6400 = vmatpush.bf16.msrb.mxu2 %v13166_v10  ;;  %v13022_v28 = vor.u32 %v15300_v50, %v13021_v59  ;;  %v13118_v10 = vor.u32 %v15324_v61, %v13117_v34 }
 0x410   :  { %v19928_v41 = vpop.f32.mrf.mxu3  ;;  %6344 = vmatpush.bf16.msrb.mxu1 %v13054_v42  ;;  %6363 = vmatpush.bf16.msrb.mxu3 %v13150_v22 }
 0x411   :  { %v19939_v3 = vpop.f32.mrf.mxu2 }
 0x412   :  { %v4696_v26 = vpop.f32.mrf.mxu1 }
 0x413   :  { %v4734_v52 = vpop.f32.mrf.mxu0  ;;  %6382 = vmatpush.bf16.msrb.mxu0 %v13058_v2  ;;  %6401 = vmatpush.bf16.msrb.mxu2 %v13154_v5 }
 0x414   :  { %6345 = vmatpush.bf16.msrb.mxu1 %v13042_v32  ;;  %6364 = vmatpush.bf16.msrb.mxu3 %v13138_v45 }
 0x415   :  { %5790 = vmatmul.bf16.gmra.mxu1 %v19520_v7  ;;  %5809 = vmatmul.bf16.gmra.mxu3 %v19522_v4  ;;  %v13030_v7 = vor.u32 %v15301_v57, %v13027_v29  ;;  %v13126_v4 = vor.u32 %v15325_v37, %v13123_v12 }
 0x416   :  { %6315 = vmatmul.bf16.gmra.mxu0 %v19950_v56  ;;  %6334 = vmatmul.bf16.gmra.mxu2 %v19952_v14 }
 0x417   :  { %6383 = vmatpush.bf16.msrb.mxu0 %v13046_v8  ;;  %6402 = vmatpush.bf16.msrb.mxu2 %v13142_v6 }
 0x418   :  { %v4715_v23 = vpop.f32.mrf.mxu3  ;;  %6346 = vmatpush.bf16.msrb.mxu1 %v13030_v7  ;;  %6365 = vmatpush.bf16.msrb.mxu3 %v13126_v4 }
 0x419   :  { %v4716_v17 = vadd.f32 %v4715_v23, %v4696_v26  ;;  %v4753_v62 = vpop.f32.mrf.mxu2 }
 0x41a   :  { %v4754_v58 = vadd.f32 %v4753_v62, %v4734_v52  ;;  %v20006_v18 = vpop.f32.mrf.mxu1 }
 0x41b   :  { %v20008_v0 = vpop.f32.mrf.mxu0  ;;  %6384 = vmatpush.bf16.msrb.mxu0 %v13034_v27  ;;  %6403 = vmatpush.bf16.msrb.mxu2 %v13130_v24 }
 0x41c   :  { %6347 = vmatpush.bf16.msrb.mxu1 %v13018_v53  ;;  %6366 = vmatpush.bf16.msrb.mxu3 %v13114_v54 }
 0x41f   :  { %6385 = vmatpush.bf16.msrb.mxu0 %v13022_v28  ;;  %6404 = vmatpush.bf16.msrb.mxu2 %v13118_v10 }
 0x420   :  { %v20010_v63 = vpop.f32.mrf.mxu3 }
 0x421   :  { %v20012_v55 = vpop.f32.mrf.mxu2 }
 0x422   :  { %v4767_v39 = vpop.f32.mrf.mxu1 }
 0x423   :  { %v5121_v51 = vpop.f32.mrf.mxu0 }
 0x424   :  { %v5122_v15 = vadd.f32 %v5121_v51, %v19881_v25 }
 0x425   :  { %6348 = vmatmul.bf16.vlgmr.msrb.gmra.mxu1 %v19626_v44  ;;  %6367 = vmatmul.bf16.vlgmr.msrb.gmra.mxu3 %v19628_v31 }
 0x426   :  { %6386 = vmatmul.bf16.vlgmr.msrb.gmra.mxu0 %v19626_v44  ;;  %6405 = vmatmul.bf16.vlgmr.msrb.gmra.mxu2 %v19628_v31 }
 0x428   :  { %v4786_v11 = vpop.f32.mrf.mxu3 }
 0x429   :  { %v4787_v42 = vadd.f32 %v4786_v11, %v4767_v39  ;;  %v5140_v22 = vpop.f32.mrf.mxu2 }
 0x42a   :  { %v20019_v1 = vadd.f32 %v5140_v22, %v5122_v15  ;;  %v20021_v40 = vpop.f32.mrf.mxu1 }
 0x42b   :  { %v20023_v2 = vpop.f32.mrf.mxu0 }
 0x430   :  { %v20025_v5 = vpop.f32.mrf.mxu3 }
 0x431   :  { %v20027_v25 = vpop.f32.mrf.mxu2 }
 0x432   :  { %v4772_v36 = vpop.f32.mrf.mxu1 }
 0x433   :  { %v5126_v20 = vpop.f32.mrf.mxu0 }
 0x434   :  { %v5127_v48 = vadd.f32 %v5126_v20, %v4716_v17 }
 0x435   :  { %6353 = vmatmul.bf16.gmra.mxu1 %v19950_v56  ;;  %6372 = vmatmul.bf16.gmra.mxu3 %v19952_v14 }
 0x436   :  { %6391 = vmatmul.bf16.gmra.mxu0 %v19950_v56  ;;  %6410 = vmatmul.bf16.gmra.mxu2 %v19952_v14 }
 0x438   :  { %v4791_v44 = vpop.f32.mrf.mxu3 }
 0x439   :  { %v4792_v31 = vadd.f32 %v4791_v44, %v4772_v36  ;;  %v5145_v19 = vpop.f32.mrf.mxu2 }
 0x43a   :  { %v20033_v30 = vadd.f32 %v5145_v19, %v5127_v48  ;;  %v20035_v46 = vpop.f32.mrf.mxu1 }
 0x43b   :  { %v20037_v26 = vpop.f32.mrf.mxu0 }
 0x440   :  { %v20039_v52 = vpop.f32.mrf.mxu3 }
 0x441   :  { %v20041_v32 = vpop.f32.mrf.mxu2 }
 0x442   :  { %v5159_v45 = vpop.f32.mrf.mxu1 }
 0x443   :  { %v5160_v57 = vadd.f32 %v5159_v45, %v19892_v9  ;;  %v5197_v29 = vpop.f32.mrf.mxu0 }
 0x444   :  { %v5198_v56 = vadd.f32 %v5197_v29, %v4787_v42 }
 0x448   :  { %v5178_v8 = vpop.f32.mrf.mxu3 }
 0x449   :  { %v5179_v14 = vadd.f32 %v5178_v8, %v5160_v57  ;;  %v5216_v6 = vpop.f32.mrf.mxu2 }
 0x44a   :  { %v20044_v37 = vadd.f32 %v5216_v6, %v5198_v56  ;;  %v20046_v12 = vpop.f32.mrf.mxu1 }
 0x44b   :  { %v20048_v16 = vpop.f32.mrf.mxu0 }
 0x450   :  { %v20050_v47 = vpop.f32.mrf.mxu3 }
 0x451   :  { %v20052_v21 = vpop.f32.mrf.mxu2 }
 0x452   :  { %v5164_v49 = vpop.f32.mrf.mxu1 }
 0x453   :  { %v5165_v7 = vadd.f32 %v5164_v49, %v4754_v58  ;;  %v5202_v4 = vpop.f32.mrf.mxu0 }
 0x454   :  { %v5203_v35 = vadd.f32 %v5202_v4, %v4792_v31 }
 0x458   :  { %v5183_v9 = vpop.f32.mrf.mxu3 }
 0x459   :  { %v5184_v33 = vadd.f32 %v5183_v9, %v5165_v7  ;;  %v5221_v23 = vpop.f32.mrf.mxu2 }
 0x45a   :  { %v20054_v27 = vadd.f32 %v5221_v23, %v5203_v35  ;;  %v20056_v24 = vpop.f32.mrf.mxu1 }
 0x45b   :  { %v20058_v13 = vpop.f32.mrf.mxu0 }
 0x460   :  { %v20060_v43 = vpop.f32.mrf.mxu3 }
 0x461   :  { %v20062_v59 = vpop.f32.mrf.mxu2 }
 0x462   :  { %v5710_v17 = vpop.f32.mrf.mxu1 }
 0x463   :  { %v5748_v62 = vpop.f32.mrf.mxu0 }
 0x468   :  { %v5729_v50 = vpop.f32.mrf.mxu3 }
 0x469   :  { %v5767_v34 = vpop.f32.mrf.mxu2 }
 0x46a   :  { %v5768_v61 = vadd.f32 %v5767_v34, %v5748_v62  ;;  %v5712_v58 = vpop.f32.mrf.mxu1  ;;  %v4718_v62 = vadd.f32 %v20010_v63, %v20006_v18 }
 0x46b   :  { %v20064_v53 = vpop.f32.mrf.mxu0 }
 0x46c   :  { %v20066_v54 = vadd.f32 %v5768_v61, %v5179_v14 }
 0x46e   :  { %23131 = vst [vmem:[#allocation16_spill] sm:$0xff] %v20066_v54 }
 0x470   :  { %v5731_v28 = vpop.f32.mrf.mxu3 }
 0x471   :  { %v20068_v10 = vpop.f32.mrf.mxu2 }
 0x472   :  { %v5715_v39 = vpop.f32.mrf.mxu1 }
 0x473   :  { %v5753_v51 = vpop.f32.mrf.mxu0 }
 0x478   :  { %v5734_v15 = vpop.f32.mrf.mxu3 }
 0x479   :  { %v5772_v11 = vpop.f32.mrf.mxu2  ;;  %v5735_v35 = vadd.f32 %v5734_v15, %v5715_v39  ;;  %v5730_v15 = vadd.f32 %v5729_v50, %v5710_v17 }
 0x47a   :  { %v5773_v42 = vadd.f32 %v5772_v11, %v5753_v51  ;;  %v5717_v22 = vpop.f32.mrf.mxu1  ;;  %v5732_v51 = vadd.f32 %v5731_v28, %v5712_v58  ;;  %v5129_v11 = vadd.f32 %v20037_v26, %v4718_v62 }
 0x47b   :  { %v20070_v36 = vpop.f32.mrf.mxu0  ;;  %v5815_v17 = vadd.f32 %v5730_v15, %v20019_v1 }
 0x47c   :  { %v20072_v20 = vadd.f32 %v5773_v42, %v5184_v33  ;;  %v4713_v33 = vadd.f32 %v19928_v41, %v19894_v60  ;;  %v5821_v42 = vadd.f32 %v5735_v35, %v20033_v30  ;;  %v20101_v60 = vld [vmem:[%s23132_s11] sm:$0x7]  ;;  %v5148_v18 = vadd.f32 %v20041_v32, %v5129_v11 }
 0x47d   :  { %v6429_v30 = vperm.slane %v20101_v60, 0 }
 0x47e   :  { %v5124_v61 = vadd.f32 %v20023_v2, %v4713_v33 }
 0x480   :  { %v5736_v48 = vpop.f32.mrf.mxu3  ;;  %v5143_v39 = vadd.f32 %v20027_v25, %v5124_v61 }
 0x481   :  { %v20074_v44 = vpop.f32.mrf.mxu2  ;;  %v5737_v54 = vadd.f32 %v5736_v48, %v5717_v22 }
 0x482   :  { %v20076_v31 = vpop.f32.mrf.mxu1  ;;  %v5818_v2 = vadd.f32 %v5732_v51, %v5143_v39 }
 0x483   :  { %v6311_v19 = vpop.f32.mrf.mxu0  ;;  %v5824_v28 = vadd.f32 %v5737_v54, %v5148_v18  ;;  %v20119_v18 = vld [vmem:[%s23133_s7] sm:$0xff] }
 0x488   :  { %v20078_v45 = vpop.f32.mrf.mxu3 }
 0x489   :  { %v6330_v57 = vpop.f32.mrf.mxu2 }
 0x48a   :  { %v20080_v29 = vpop.f32.mrf.mxu1  ;;  %v6331_v58 = vadd.f32 %v6330_v57, %v6311_v19 }
 0x48b   :  { %v6313_v56 = vpop.f32.mrf.mxu0 }
 0x48c   :  { %v6416_v32 = vadd.f32 %v6331_v58, %v5815_v17  ;;  %v20126_v58 = vld [vmem:[%s22992_s12] sm:$0xff]  ;;  %v4789_v17 = vadd.f32 %v20025_v5, %v20021_v40  ;;  %v5775_v40 = vadd.f32 %v20074_v44, %v20070_v36 }
 0x48e   :  { %v6435_v57 = vadd.f32 %v6429_v30, %v6416_v32  ;;  %v4794_v32 = vadd.f32 %v20039_v52, %v20035_v46 }
 0x490   :  { %v20082_v8 = vpop.f32.mrf.mxu3  ;;  %v6447_v1 = vmax.f32 %v6435_v57, 0.0  ;;  %v5205_v46 = vadd.f32 %v20058_v13, %v4794_v32  ;;  %v15397_v32 = vld [vmem:[%s23135_s0 + $0x184] sm:$0xf0] }
 0x491   :  { %v6332_v14 = vpop.f32.mrf.mxu2  ;;  %v5808_v52 = vadd.f32 %v20082_v8, %v20080_v29 }
 0x492   :  { %v20084_v6 = vpop.f32.mrf.mxu1  ;;  %v6333_v41 = vadd.f32 %v6332_v14, %v6313_v56 }
 0x493   :  { %v6316_v49 = vpop.f32.mrf.mxu0 }
 0x494   :  { %v6419_v50 = vadd.f32 %v6333_v41, %v5818_v2 }
 0x496   :  { %v6438_v35 = vadd.f32 %v6429_v30, %v6419_v50 }
 0x498   :  { %v20086_v7 = vpop.f32.mrf.mxu3 }
 0x499   :  { %v6335_v4 = vpop.f32.mrf.mxu2 }
 0x49a   :  { %v20088_v9 = vpop.f32.mrf.mxu1  ;;  %v6336_v34 = vadd.f32 %v6335_v4, %v6316_v49 }
 0x49b   :  { %v6318_v23 = vpop.f32.mrf.mxu0 }
 0x49c   :  { %v6422_v63 = vadd.f32 %v6336_v34, %v5821_v42  ;;  %v6467_v42 = vld [vmem:[%s23133_s7 + $0x8] sm:$0x1]  ;;  %s23144_s7 = sld [smem:[#allocation59_spill]] }
 0x49d   :  { %v6473_v39 = vunpack.c.l.b16 %v6467_v42 }
 0x49e   :  { %v6441_v56 = vadd.f32 %v6429_v30, %v6422_v63 }
 0x49f   :  { %v20121_v63 = vpack.c.b16 %v6473_v39, %v6473_v39 }
 0x4a0   :  { %v20104_v49 = vpop.f32.mrf.mxu3  ;;  %v6453_v33 = vmax.f32 %v6441_v56, 0.0  ;;  %v4756_v56 = vadd.f32 %v20012_v55, %v20008_v0 }
 0x4a1   :  { %v6337_v26 = vpop.f32.mrf.mxu2 }
 0x4a2   :  { %v6338_v22 = vadd.f32 %v6337_v26, %v6318_v23  ;;  %v20107_v25 = vpop.f32.mrf.mxu1  ;;  %v6450_v23 = vmax.f32 %v6438_v35, 0.0  ;;  %v5200_v35 = vadd.f32 %v20048_v16, %v4789_v17 }
 0x4a3   :  { %v20110_v48 = vpop.f32.mrf.mxu0 }
 0x4a4   :  { %v6425_v14 = vadd.f32 %v6338_v22, %v5824_v28  ;;  %v6459_v15 = vpack.c.bf16 %v6450_v23, %v6447_v1  ;;  %v4751_v22 = vadd.f32 %v19939_v3, %v19896_v38  ;;  %v5167_v38 = vadd.f32 %v20056_v24, %v4756_v56 }
 0x4a5   :  { %v5770_v3 = vadd.f32 %v20068_v10, %v20064_v53  ;;  %v5219_v5 = vadd.f32 %v20052_v21, %v5200_v35  ;;  %v5813_v24 = vadd.f32 %v20104_v49, %v20088_v9  ;;  %v5224_v10 = vadd.f32 %v20062_v59, %v5205_v46 }
 0x4a6   :  { %v6444_v4 = vadd.f32 %v6429_v30, %v6425_v14  ;;  %v5811_v14 = vadd.f32 %v20086_v7, %v20084_v6  ;;  %v6430_v7 = vperm.slane %v20101_v60, 1 }
 0x4a7   :  { %v5826_v57 = vadd.f32 %v5813_v24, %v5224_v10  ;;  %v15389_v24 = vld [vmem:[%s23135_s0 + $0x144] sm:$0xf0] }
 0x4a8   :  { %v6456_v62 = vmax.f32 %v6444_v4, 0.0  ;;  %v6368_v19 = vpop.f32.mrf.mxu3  ;;  %v5162_v4 = vadd.f32 %v20046_v12, %v4751_v22  ;;  %v5186_v12 = vadd.f32 %v20060_v43, %v5167_v38  ;;  %v5823_v16 = vadd.f32 %v5811_v14, %v20054_v27  ;;  %v13320_v14 = vld [vmem:[%s23135_s0 + $0x180] sm:$0xf] }
 0x4a9   :  { %v6406_v54 = vpop.f32.mrf.mxu2  ;;  %v6369_v29 = vadd.f32 %v6368_v19, %v20107_v25  ;;  %v5820_v27 = vadd.f32 %v5808_v52, %v5219_v5  ;;  %v15391_v52 = vld [vmem:[%s23135_s0 + $0x154] sm:$0xf0] }
 0x4aa   :  { %v6462_v34 = vpack.c.bf16 %v6456_v62, %v6453_v33  ;;  %v6351_v61 = vpop.f32.mrf.mxu1  ;;  %v5181_v55 = vadd.f32 %v20050_v47, %v5162_v4  ;;  %v5806_v47 = vadd.f32 %v20078_v45, %v20076_v31  ;;  %v5825_v44 = vadd.f32 %v5775_v40, %v5186_v12 }
 0x4ab   :  { %v6389_v11 = vpop.f32.mrf.mxu0  ;;  %v6407_v9 = vadd.f32 %v6406_v54, %v20110_v48  ;;  %v6431_v31 = vperm.slane %v20101_v60, 2 }
 0x4ac   :  { %v6485_v51 = vsel %vm6483_vm13, %v6462_v34, 0  ;;  %v5819_v13 = vadd.f32 %v5770_v3, %v5181_v55  ;;  %v5817_v34 = vadd.f32 %v5806_v47, %v20044_v37  ;;  %v13321_v3 = vor.u32 %v15397_v32, %v13320_v14  ;;  %v15395_v55 = vld [vmem:[%s23135_s0 + $0x174] sm:$0xf0] }
 0x4ad   :  { %6499 = vmatpush.bf16.msra.mxu0 %v6485_v51  ;;  %15726 = vmatpush.bf16.msra.mxu1 %v6485_v51 }
 0x4ae   :  { %6563 = vmatpush.bf16.msra.mxu2 %v6485_v51  ;;  %v6418_v42 = vadd.f32 %v6407_v9, %v5817_v34 }
 0x4b0   :  { %v6370_v41 = vpop.f32.mrf.mxu3 }
 0x4b1   :  { %v6408_v2 = vpop.f32.mrf.mxu2  ;;  %6500 = vmatpush.bf16.msra.mxu0 %v6459_v15  ;;  %15727 = vmatpush.bf16.msra.mxu1 %v6459_v15  ;;  %v6371_v53 = vadd.f32 %v6370_v41, %v6351_v61  ;;  %v23134_v61 = vld [vmem:[#allocation16_spill] sm:$0xff] }
 0x4b2   :  { %6564 = vmatpush.bf16.msra.mxu2 %v6459_v15  ;;  %v6354_v26 = vpop.f32.mrf.mxu1  ;;  %v6409_v36 = vadd.f32 %v6408_v2, %v6389_v11  ;;  %v6417_v51 = vadd.f32 %v6369_v29, %v23134_v61 }
 0x4b3   :  { %v6392_v28 = vpop.f32.mrf.mxu0  ;;  %v6420_v45 = vadd.f32 %v6371_v53, %v5819_v13  ;;  %v15387_v13 = vld [vmem:[%s23135_s0 + $0x134] sm:$0xf0] }
 0x4b4   :  { %13207 = vmatmul.msk.bf16.vlgmr.msra.gmra.mxu0 %vm6476_vm14, %v20119_v18  ;;  %13208 = vmatmul.msk.bf16.vlgmr.msra.gmra.mxu1 %vm6476_vm14, %v20121_v63  ;;  %v6421_v23 = vadd.f32 %v6409_v36, %v5820_v27 }
 0x4b5   :  { %13217 = vmatmul.msk.bf16.vlgmr.msra.gmra.mxu2 %vm6476_vm14, %v20126_v58  ;;  %v6439_v48 = vadd.f32 %v6430_v7, %v6420_v45 }
 0x4b6   :  { %v6440_v15 = vadd.f32 %v6431_v31, %v6421_v23 }
 0x4b7   :  { %v6451_v17 = vmax.f32 %v6439_v48, 0.0 }
 0x4b8   :  { %v6373_v30 = vpop.f32.mrf.mxu3  ;;  %v6452_v56 = vmax.f32 %v6440_v15, 0.0 }
 0x4b9   :  { %v6411_v50 = vpop.f32.mrf.mxu2  ;;  %v6374_v33 = vadd.f32 %v6373_v30, %v6354_v26  ;;  %v6436_v26 = vadd.f32 %v6430_v7, %v6417_v51  ;;  %v6437_v30 = vadd.f32 %v6431_v31, %v6418_v42 }
 0x4ba   :  { %v6412_v0 = vadd.f32 %v6411_v50, %v6392_v28  ;;  %v6356_v43 = vpop.f32.mrf.mxu1 }
 0x4bb   :  { %v6423_v21 = vadd.f32 %v6374_v33, %v20072_v20  ;;  %v6394_v49 = vpop.f32.mrf.mxu0  ;;  %v6448_v4 = vmax.f32 %v6436_v26, 0.0  ;;  %v6449_v33 = vmax.f32 %v6437_v30, 0.0  ;;  %v15385_v30 = vld [vmem:[%s23135_s0 + $0x124] sm:$0xf0] }
 0x4bc   :  { %v6424_v8 = vadd.f32 %v6412_v0, %v5823_v16  ;;  %v13312_v0 = vld [vmem:[%s23135_s0 + $0x170] sm:$0xf]  ;;  %v13288_v16 = vld [vmem:[%s23135_s0 + $0x140] sm:$0xf] }
 0x4bd   :  { %v6442_v25 = vadd.f32 %v6430_v7, %v6423_v21  ;;  %v6460_v38 = vpack.c.bf16 %v6451_v17, %v6448_v4  ;;  %v6461_v40 = vpack.c.bf16 %v6452_v56, %v6449_v33  ;;  %v13313_v5 = vor.u32 %v15395_v55, %v13312_v0  ;;  %v13280_v21 = vld [vmem:[%s23135_s0 + $0x130] sm:$0xf]  ;;  %v13384_v17 = vld [vmem:[%s23135_s0 + $0x200] sm:$0xf] }
 0x4be   :  { %v6443_v1 = vadd.f32 %v6431_v31, %v6424_v8  ;;  %v13289_v53 = vor.u32 %v15389_v24, %v13288_v16 }
 0x4bf   :  { %v6454_v41 = vmax.f32 %v6442_v25, 0.0 }
 0x4c0   :  { %v6375_v6 = vpop.f32.mrf.mxu3  ;;  %v6455_v60 = vmax.f32 %v6443_v1, 0.0 }
 0x4c1   :  { %v6376_v59 = vadd.f32 %v6375_v6, %v6356_v43  ;;  %v6413_v62 = vpop.f32.mrf.mxu2 }
 0x4c2   :  { %v6414_v20 = vadd.f32 %v6413_v62, %v6394_v49 }
 0x4c3   :  { %v6426_v19 = vadd.f32 %v6376_v59, %v5825_v44  ;;  %v13281_v44 = vor.u32 %v15387_v13, %v13280_v21 }
 0x4c4   :  { %v6427_v11 = vadd.f32 %v6414_v20, %v5826_v57 }
 0x4c5   :  { %v6445_v39 = vadd.f32 %v6430_v7, %v6426_v19 }
 0x4c6   :  { %v6446_v54 = vadd.f32 %v6431_v31, %v6427_v11 }
 0x4c7   :  { %v6457_v2 = vmax.f32 %v6445_v39, 0.0 }
 0x4c8   :  { %v6458_v28 = vmax.f32 %v6446_v54, 0.0 }
 0x4c9   :  { %v6463_v22 = vpack.c.bf16 %v6457_v2, %v6454_v41 }
 0x4ca   :  { %v6464_v37 = vpack.c.bf16 %v6458_v28, %v6455_v60  ;;  %v13272_v28 = vld [vmem:[%s23135_s0 + $0x120] sm:$0xf] }
 0x4cb   :  { %v6488_v50 = vsel %vm6483_vm13, %v6463_v22, 0 }
 0x4cc   :  { %6517 = vmatpush.bf16.msra.mxu3 %v6488_v50  ;;  %v6491_v35 = vsel %vm6483_vm13, %v6464_v37, 0  ;;  %6577 = vmatpush.bf16.msrb.mxu1 %v6488_v50  ;;  %vm6645_vm13 = vcmask 1044483   ;;  %v13273_v37 = vor.u32 %v15385_v30, %v13272_v28  ;;  %v15413_v50 = vld [vmem:[%s23135_s0 + $0x204] sm:$0xf0] }
 0x4cd   :  { %6535 = vmatpush.bf16.msrb.mxu0 %v6491_v35  ;;  %6591 = vmatpush.bf16.msrb.mxu2 %v6491_v35  ;;  %v13385_v32 = vor.u32 %v15413_v50, %v13384_v17 }
 0x4d0   :  { %6518 = vmatpush.bf16.msra.mxu3 %v6460_v38  ;;  %6578 = vmatpush.bf16.msrb.mxu1 %v6460_v38 }
 0x4d1   :  { %6536 = vmatpush.bf16.msrb.mxu0 %v6461_v40  ;;  %6592 = vmatpush.bf16.msrb.mxu2 %v6461_v40 }
 0x4d3   :  { %13209 = vmatmul.msk.bf16.vlgmr.msra.gmra.mxu3 %vm6476_vm14, %v20119_v18  ;;  %13218 = vmatmul.msk.bf16.vlgmr.msrb.gmra.mxu1 %vm6476_vm14, %v20126_v58 }
 0x4d4   :  { %7204 = vmatpush.bf16.msrb.mxu3 %v13321_v3  ;;  %13219 = vmatmul.msk.bf16.vlgmr.msrb.gmra.mxu2 %vm6476_vm14, %v20126_v58  ;;  %v15393_v58 = vld [vmem:[%s23135_s0 + $0x164] sm:$0xf0] }
 0x4d5   :  { %13211 = vmatmul.msk.bf16.vlgmr.msrb.gmra.mxu0 %vm6476_vm14, %v20119_v18  ;;  %v13304_v18 = vld [vmem:[%s23135_s0 + $0x160] sm:$0xf] }
 0x4d6   :  { %v13305_v46 = vor.u32 %v15393_v58, %v13304_v18  ;;  %7218 = vmatpush.bf16.msra.mxu0 %v13385_v32 }
 0x4d8   :  { %7205 = vmatpush.bf16.msrb.mxu3 %v13313_v5 }
 0x4dc   :  { %7206 = vmatpush.bf16.msrb.mxu3 %v13305_v46 }
 0x4e3   :  { %13210 = vmatmul.msk.bf16.gmra.mxu3 %vm6476_vm14, %v20121_v63 }
 0x4e5   :  { %13212 = vmatmul.msk.bf16.gmra.mxu0 %vm6476_vm14, %v20121_v63  ;;  %v13296_v63 = vld [vmem:[%s23135_s0 + $0x150] sm:$0xf]  ;;  %vm6754_vm14 = vsmask.f32 4352 }
 0x4e6   :  { %v13297_v12 = vor.u32 %v15391_v52, %v13296_v63  ;;  %v15396_v52 = vld [vmem:[%s23135_s0 + $0x184] sm:$0xf]  ;;  %vm20329_vm12 = vmand %vm6636_vm15, %vm6754_vm14  ;;  %vm6760_vm14 = vcmask 122880  }
 0x4e7   :  { %vm6756_vm8 = vmor %vm20329_vm12, %vm20324_vm6  ;;  %vm7201_vm12 = vcmask 130048   ;;  %vm8470_vm6 = vsmask.f32 3328 }
 0x4e8   :  { %7207 = vmatpush.bf16.msrb.mxu3 %v13297_v12  ;;  %v13322_v12 = vld [vmem:[%s23135_s0 + $0x188] sm:$0xf0] }
 0x4ec   :  { %7208 = vmatpush.bf16.msrb.mxu3 %v13289_v53  ;;  %v13264_v53 = vld [vmem:[%s23135_s0 + $0x110] sm:$0xf] }
 0x4f0   :  { %7209 = vmatpush.bf16.msrb.mxu3 %v13281_v44 }
 0x4f4   :  { %7210 = vmatpush.bf16.msrb.mxu3 %v13273_v37 }
 0x531   :  { %v20214_v10 = vpop.f32.mrf.mxu1  ;;  %v6502_v36 = vpop.f32.mrf.mxu0 }
 0x538   :  { %v6566_v29 = vpop.f32.mrf.mxu2 }
 0x539   :  { %v6509_v47 = vpop.f32.mrf.mxu1  ;;  %v6504_v8 = vpop.f32.mrf.mxu0 }
 0x53a   :  { %v15383_v47 = vld [vmem:[%s23135_s0 + $0x114] sm:$0xf0] }
 0x540   :  { %v6568_v43 = vpop.f32.mrf.mxu2 }
 0x550   :  { %v6580_v6 = vpop.f32.mrf.mxu1 }
 0x551   :  { %v20222_v7 = vpack.c.bf16 %v6580_v6, %v6566_v29  ;;  %v15415_v29 = vld [vmem:[%s23135_s0 + $0x214] sm:$0xf0] }
 0x552   :  { %v6538_v27 = vpop.f32.mrf.mxu0 }
 0x553   :  { %v6600_v9 = vpack.c.bf16 %v6538_v27, %v6538_v27 }
 0x555   :  { %v6612_v49 = vrot.slane %v6600_v9, 6  ;;  %v6613_v59 = vrot.slane %v6600_v9, 1  ;;  %v13462_v9 = vld [vmem:[%s23135_s0 + $0x70] sm:$0xf] }
 0x556   :  { %v6520_v62 = vpop.f32.mrf.mxu3 }
 0x557   :  { %v6599_v57 = vpack.c.bf16 %v6520_v62, %v6502_v36  ;;  %v6594_v31 = vpop.f32.mrf.mxu2  ;;  %v6625_v45 = vsel %vm120_vm2, %v6612_v49, %v6613_v59  ;;  %v6630_v23 = vsel %vm124_vm3, %v6612_v49, %v6613_v59  ;;  %v6637_v25 = vsel %vm6636_vm15, %v6612_v49, %v6613_v59  ;;  %v13392_v36 = vld [vmem:[%s23135_s0 + $0x210] sm:$0xf] }
 0x558   :  { %v6774_v20 = vpack.c.bf16 %v6594_v31, %v6594_v31  ;;  %v6644_v19 = vsel %vm6643_vm7, %v6612_v49, %v6613_v59  ;;  %v6582_v60 = vpop.f32.mrf.mxu1  ;;  %v15363_v49 = vld [vmem:[%s23135_s0 + $0x74] sm:$0xf0]  ;;  %v13325_v31 = vor.u32 %v15396_v52, %v13322_v12 }
 0x559   :  { %v6611_v34 = vrot.slane %v6599_v57, 3  ;;  %v20249_v56 = vpack.c.bf16 %v6582_v60, %v6568_v43  ;;  %v13386_v43 = vld [vmem:[%s23135_s0 + $0x208] sm:$0xf0] }
 0x55a   :  { %6778 = vst.msk [vmem:[#allocation5 + $0x8] sm:$0xf] %vm23022_vm4, %v6774_v20  ;;  %v6540_v26 = vpop.f32.mrf.mxu0  ;;  %7246 = vmatpush.bf16.msra.mxu2 %v13325_v31 }
 0x55b   :  { %v6622_v61 = vsel %vm112_vm0, %v6599_v57, %v6611_v34  ;;  %v6629_v51 = vsel %vm116_vm1, %v6599_v57, %v6611_v34  ;;  %v6635_v1 = vsel %vm120_vm2, %v6599_v57, %v6611_v34  ;;  %v6642_v11 = vsel %vm124_vm3, %v6599_v57, %v6611_v34 }
 0x55c   :  { %v6627_v42 = vsel %vm6626_vm9, %v6622_v61, %v6625_v45  ;;  %v6632_v39 = vsel %vm6631_vm10, %v6629_v51, %v6630_v23  ;;  %v6639_v48 = vsel %vm6638_vm11, %v6635_v1, %v6637_v25  ;;  %v6646_v54 = vsel %vm6645_vm13, %v6642_v11, %v6644_v19 }
 0x55d   :  { %v6634_v15 = vrot.slane %v6632_v39, 1  ;;  %v6641_v41 = vrot.slane %v6639_v48, 2  ;;  %v6648_v2 = vrot.slane %v6646_v54, 3  ;;  %6709 = vst [vmem:[#allocation1] ss:$4 sm:$0xff] %v6627_v42  ;;  %v6602_v33 = vpack.c.bf16 %v6540_v26, %v6540_v26 }
 0x55e   :  { %v6522_v22 = vpop.f32.mrf.mxu3  ;;  %v13265_v34 = vor.u32 %v15383_v47, %v13264_v53  ;;  %v13393_v23 = vor.u32 %v15415_v29, %v13392_v36  ;;  %v13463_v51 = vor.u32 %v15363_v49, %v13462_v9  ;;  %v15409_v9 = vld [vmem:[%s23135_s0 + $0x1e4] sm:$0xf0]  ;;  %v15392_v49 = vld [vmem:[%s23135_s0 + $0x164] sm:$0xf] }
 0x55f   :  { %6712 = vst [vmem:[#allocation1 + $0x1] ss:$4 sm:$0xff] %v6634_v15  ;;  %v6596_v14 = vpop.f32.mrf.mxu2  ;;  %v20251_v35 = vpack.c.bf16 %v6522_v22, %v6504_v8  ;;  %v20263_v5 = vrot.slane %v6602_v33, 6  ;;  %v20265_v18 = vrot.slane %v6602_v33, 1  ;;  %v15412_v8 = vld [vmem:[%s23135_s0 + $0x204] sm:$0xf] }
 0x560   :  { %6715 = vst [vmem:[#allocation1 + $0x2] ss:$4 sm:$0xff] %v6641_v41  ;;  %v6776_v4 = vpack.c.bf16 %v6596_v14, %v6596_v14  ;;  %v13389_v61 = vor.u32 %v15412_v8, %v13386_v43  ;;  %7211 = vmatpush.bf16.msrb.mxu3 %v13265_v34  ;;  %7239 = vmatpush.bf16.msra.mxu1 %v13393_v23  ;;  %v6757_v15 = vld [vmem:[#allocation4 + $0xc] sm:$0x11]  ;;  %v20342_v41 = vrot.slane %v20222_v7, 3  ;;  %v20419_v8 = vrot.slane %v20249_v56, 3 }
 0x561   :  { %6718 = vst [vmem:[#allocation1 + $0x3] ss:$4 sm:$0xff] %v6648_v2  ;;  %v20255_v38 = vrot.slane %v20251_v35, 3  ;;  %v6654_v16 = vsel %vm120_vm2, %v20263_v5, %v20265_v18  ;;  %v6658_v24 = vsel %vm124_vm3, %v20263_v5, %v20265_v18  ;;  %v6663_v44 = vsel %vm6636_vm15, %v20263_v5, %v20265_v18  ;;  %v6891_v11 = vld [vmem:[#allocation5 + $0x8] sm:$0xf] }
 0x562   :  { %6780 = vst.msk [vmem:[#allocation5 + $0x14] sm:$0xf] %vm23022_vm4, %v6776_v4  ;;  %v20259_v40 = vpop.f32.mrf.mxu0  ;;  %v20333_v48 = vrot.slane %v6891_v11, 6  ;;  %v20335_v54 = vrot.slane %v6891_v11, 1  ;;  %v20361_v22 = vsel %vm116_vm1, %v20222_v7, %v20342_v41  ;;  %v20366_v37 = vsel %vm120_vm2, %v20222_v7, %v20342_v41  ;;  %v13376_v4 = vld [vmem:[%s23135_s0 + $0x1f0] sm:$0xf] }
 0x563   :  { %v6651_v58 = vsel %vm112_vm0, %v20251_v35, %v20255_v38  ;;  %v6657_v46 = vsel %vm116_vm1, %v20251_v35, %v20255_v38  ;;  %v6662_v63 = vsel %vm120_vm2, %v20251_v35, %v20255_v38  ;;  %v20371_v17 = vsel %vm124_vm3, %v20222_v7, %v20342_v41  ;;  %v15411_v33 = vld [vmem:[%s23135_s0 + $0x1f4] sm:$0xf0]  ;;  %v13370_v23 = vld [vmem:[%s23135_s0 + $0x1e8] sm:$0xf0] }
 0x564   :  { %v6655_v21 = vsel %vm6626_vm9, %v6651_v58, %v6654_v16  ;;  %v6659_v13 = vsel %vm6631_vm10, %v6657_v46, %v6658_v24  ;;  %v20313_v27 = vsel %vm6638_vm11, %v6662_v63, %v6663_v44  ;;  %7260 = vmatpush.bf16.msra.mxu3 %v13389_v61  ;;  %7492 = vmatpush.bf16.msrb.mxu1 %v13463_v51  ;;  %v13314_v58 = vld [vmem:[%s23135_s0 + $0x178] sm:$0xf0]  ;;  %v15400_v51 = vld [vmem:[%s23135_s0 + $0x1a4] sm:$0xf] }
 0x565   :  { %v6661_v6 = vrot.slane %v6659_v13, 1  ;;  %v6688_v62 = vunpack.i.l.s16 %v6655_v21  ;;  %v6689_v57 = vunpack.i.h.s16 %v6655_v21  ;;  %v6666_v25 = vrot.slane %v20313_v27, 2  ;;  %v13368_v27 = vld [vmem:[%s23135_s0 + $0x1e0] sm:$0xf] }
 0x566   :  { %v20257_v3 = vpop.f32.mrf.mxu3  ;;  %v6913_v26 = vsel %vm124_vm3, %v20333_v48, %v20335_v54  ;;  %v6918_v60 = vsel %vm6636_vm15, %v20333_v48, %v20335_v54  ;;  %v6923_v30 = vsel %vm6643_vm7, %v20333_v48, %v20335_v54  ;;  %v6667_v53 = vsel %vm124_vm3, %v20251_v35, %v20255_v38  ;;  %v15410_v38 = vld [vmem:[%s23135_s0 + $0x1f4] sm:$0xf] }
 0x567   :  { %v6691_v20 = vunpack.i.h.s16 %v6661_v6  ;;  %v13220_v19 = vpack.i.b16 %v6661_v6, %v6689_v57  ;;  %6721 = vst [vmem:[#allocation1 + $0x20] ss:$4 sm:$0xff] %v6688_v62  ;;  %v20375_v50 = vsel %vm6631_vm10, %v20361_v22, %v6913_v26  ;;  %v20379_v14 = vsel %vm6638_vm11, %v20366_v37, %v6918_v60 }
 0x568   :  { %v20261_v0 = vld [vmem:[#allocation1] sm:$0xff]  ;;  %v6723_v55 = vld [vmem:[#allocation1 + $0x8] sm:$0xff]  ;;  %v20383_v32 = vsel %vm6645_vm13, %v20371_v17, %v6923_v30  ;;  %v6916_v63 = vrot.slane %v20375_v50, 1  ;;  %v6921_v52 = vrot.slane %v20379_v14, 2  ;;  %v13377_v47 = vor.u32 %v15411_v33, %v13376_v4  ;;  %v15407_v33 = vld [vmem:[%s23135_s0 + $0x1d4] sm:$0xf0] }
 0x569   :  { %6750 = vst.msk [vmem:[#allocation4 + $0x8] sm:$0xf] %vm23022_vm4, %v6723_v55  ;;  %v13221_v39 = vpack.i.b16 %v6666_v25, %v6691_v20  ;;  %v15394_v55 = vld [vmem:[%s23135_s0 + $0x174] sm:$0xf]  ;;  %v6893_v12 = vld [vmem:[#allocation5 + $0x14] sm:$0xf]  ;;  %v6668_v36 = vsel %vm6643_vm7, %v20263_v5, %v20265_v18  ;;  %v6603_v13 = vpack.c.bf16 %v20257_v3, %v20214_v10  ;;  %v6604_v44 = vpack.c.bf16 %v20259_v40, %v20259_v40  ;;  %vm20462_vm4 = vmand %vm6760_vm14, %vm1120_vm5 }
 0x56a   :  { %v6545_v45 = vpop.f32.mrf.mxu0  ;;  %6727 = vst [vmem:[#allocation1] ss:$4 sm:$0xff] %v13220_v19  ;;  %v20402_v16 = vrot.slane %v20261_v0, 3  ;;  %v6926_v24 = vrot.slane %v20383_v32, 3  ;;  %v13317_v21 = vor.u32 %v15394_v55, %v13314_v58  ;;  %v20421_v43 = vrot.slane %v6893_v12, 6  ;;  %7219 = vmatpush.bf16.msra.mxu0 %v13377_v47 }
 0x56b   :  { %6729 = vst [vmem:[#allocation1 + $0x1] ss:$4 sm:$0xff] %v13221_v39  ;;  %v20423_v35 = vrot.slane %v6893_v12, 1  ;;  %v6669_v10 = vsel %vm6645_vm13, %v6667_v53, %v6668_v36  ;;  %v6762_v3 = vld [vmem:[#allocation4 + $0x14] sm:$0x1]  ;;  %v6693_v6 = vunpack.i.h.s16 %v6666_v25  ;;  %v6617_v62 = vrot.slane %v6603_v13, 3 }
 0x56c   :  { %7247 = vmatpush.bf16.msra.mxu2 %v13317_v21  ;;  %v13378_v40 = vld [vmem:[%s23135_s0 + $0x1f8] sm:$0xf0]  ;;  %v13454_v5 = vld [vmem:[%s23135_s0 + $0x60] sm:$0xf]  ;;  %v15361_v18 = vld [vmem:[%s23135_s0 + $0x64] sm:$0xf0]  ;;  %v13369_v53 = vor.u32 %v15409_v9, %v13368_v27  ;;  %v20507_v27 = vsel %vm112_vm0, %v20222_v7, %v20342_v41  ;;  %v20739_v14 = vsel %vm124_vm3, %v20261_v0, %v20402_v16 }
 0x56d   :  { %v6618_v57 = vrot.slane %v6604_v44, 6  ;;  %v6619_v31 = vrot.slane %v6604_v44, 1  ;;  %v15408_v20 = vld [vmem:[%s23135_s0 + $0x1e4] sm:$0xf]  ;;  %v6671_v34 = vrot.slane %v6669_v10, 3  ;;  %v6674_v19 = vsel %vm112_vm0, %v6603_v13, %v6617_v62 }
 0x56e   :  { %v6527_v59 = vpop.f32.mrf.mxu3  ;;  %v6724_v2 = vld [vmem:[#allocation1 + $0x20] sm:$0xff]  ;;  %v6725_v45 = vld [vmem:[#allocation1 + $0x28] sm:$0xff]  ;;  %v13446_v25 = vld [vmem:[%s23135_s0 + $0x50] sm:$0xf]  ;;  %v13381_v11 = vor.u32 %v15410_v38, %v13378_v40  ;;  %v13455_v39 = vor.u32 %v15361_v18, %v13454_v5  ;;  %v13373_v44 = vor.u32 %v15408_v20, %v13370_v23  ;;  %7220 = vmatpush.bf16.msra.mxu0 %v13369_v53  ;;  %v6936_v9 = vsel %vm124_vm3, %v20421_v43, %v20423_v35 }
 0x56f   :  { %v6758_v28 = vsel %vm6756_vm8, %v6724_v2, %v6757_v15  ;;  %v13306_v59 = vld [vmem:[%s23135_s0 + $0x168] sm:$0xf0]  ;;  %v6677_v61 = vsel %vm120_vm2, %v6618_v57, %v6619_v31  ;;  %v15359_v15 = vld [vmem:[%s23135_s0 + $0x54] sm:$0xf0]  ;;  %v13360_v2 = vld [vmem:[%s23135_s0 + $0x1d0] sm:$0xf]  ;;  %v13222_v30 = vpack.i.b16 %v6671_v34, %v6693_v6  ;;  %v6763_v4 = vsel %vm20462_vm4, %v6725_v45, %v6762_v3 }
 0x570   :  { %6759 = vst [vmem:[#allocation4 + $0xc] sm:$0x11] %v6758_v28  ;;  %v20397_v46 = vld [vmem:[#allocation4 + $0x8] sm:$0xf]  ;;  %v6678_v60 = vsel %vm6626_vm9, %v6674_v19, %v6677_v61  ;;  %v6695_v28 = vunpack.i.h.s16 %v6671_v34  ;;  %v15390_v55 = vld [vmem:[%s23135_s0 + $0x154] sm:$0xf]  ;;  %7261 = vmatpush.bf16.msra.mxu3 %v13381_v11  ;;  %7493 = vmatpush.bf16.msrb.mxu1 %v13455_v39  ;;  %v13309_v47 = vor.u32 %v15392_v49, %v13306_v59 }
 0x571   :  { %v20416_v29 = vrot.slane %v20397_v46, 6  ;;  %v20472_v26 = vld [vmem:[#allocation4 + $0x8] sm:$0xf]  ;;  %v13298_v58 = vld [vmem:[%s23135_s0 + $0x158] sm:$0xf0]  ;;  %v6697_v12 = vunpack.i.h.s16 %v6678_v60  ;;  %v13447_v38 = vor.u32 %v15359_v15, %v13446_v25  ;;  %v13361_v40 = vor.u32 %v15407_v33, %v13360_v2 }
 0x572   :  { %6764 = vst [vmem:[#allocation4 + $0x14] sm:$0x1] %v6763_v4  ;;  %v15406_v36 = vld [vmem:[%s23135_s0 + $0x1d4] sm:$0xf]  ;;  %v13362_v21 = vld [vmem:[%s23135_s0 + $0x1d8] sm:$0xf0]  ;;  %v13223_v13 = vpack.i.b16 %v6678_v60, %v6695_v28  ;;  %7248 = vmatpush.bf16.msra.mxu2 %v13309_v47  ;;  %v13301_v5 = vor.u32 %v15390_v55, %v13298_v58  ;;  %v20530_v45 = vsel %vm116_vm1, %v20249_v56, %v20419_v8 }
 0x573   :  { %6731 = vst [vmem:[#allocation1 + $0x2] ss:$4 sm:$0xff] %v13222_v30  ;;  %v13438_v10 = vld [vmem:[%s23135_s0 + $0x40] sm:$0xf]  ;;  %v15357_v3 = vld [vmem:[%s23135_s0 + $0x44] sm:$0xf0]  ;;  %v13365_v7 = vor.u32 %v15406_v36, %v13362_v21  ;;  %v6941_v20 = vsel %vm6636_vm15, %v20421_v43, %v20423_v35  ;;  %v6946_v34 = vsel %vm6643_vm7, %v20421_v43, %v20423_v35  ;;  %v20552_v11 = vsel %vm6631_vm10, %v20530_v45, %v6936_v9 }
 0x574   :  { %6735 = vst [vmem:[#allocation1 + $0x20] ss:$4 sm:$0xff] %v6697_v12  ;;  %v13352_v18 = vld [vmem:[%s23135_s0 + $0x1c0] sm:$0xf]  ;;  %v15405_v6 = vld [vmem:[%s23135_s0 + $0x1c4] sm:$0xf0]  ;;  %7262 = vmatpush.bf16.msra.mxu3 %v13373_v44  ;;  %7494 = vmatpush.bf16.msrb.mxu1 %v13447_v38  ;;  %v13439_v41 = vor.u32 %v15357_v3, %v13438_v10  ;;  %v6909_v60 = vsel %vm120_vm2, %v20333_v48, %v20335_v54 }
 0x575   :  { %6733 = vst [vmem:[#allocation1 + $0x3] ss:$4 sm:$0xff] %v13223_v13  ;;  %v15388_v49 = vld [vmem:[%s23135_s0 + $0x144] sm:$0xf]  ;;  %v13290_v59 = vld [vmem:[%s23135_s0 + $0x148] sm:$0xf0]  ;;  %7221 = vmatpush.bf16.msra.mxu0 %v13361_v40  ;;  %v20566_v28 = vsel %vm112_vm0, %v20249_v56, %v20419_v8  ;;  %v20571_v30 = vsel %vm120_vm2, %v20249_v56, %v20419_v8  ;;  %v20576_v4 = vsel %vm124_vm3, %v20249_v56, %v20419_v8 }
 0x576   :  { %v20519_v62 = vrot.slane %v20397_v46, 1  ;;  %v20522_v57 = vrot.slane %v20472_v26, 6  ;;  %v15404_v31 = vld [vmem:[%s23135_s0 + $0x1c4] sm:$0xf]  ;;  %v6932_v46 = vsel %vm120_vm2, %v20421_v43, %v20423_v35  ;;  %v6767_v23 = vld [vmem:[#allocation4 + $0x24] sm:$0x11]  ;;  %7249 = vmatpush.bf16.msra.mxu2 %v13301_v5  ;;  %v13353_v43 = vor.u32 %v15405_v6, %v13352_v18 }
 0x577   :  { %v13354_v25 = vld [vmem:[%s23135_s0 + $0x1c8] sm:$0xf0]  ;;  %v13430_v19 = vld [vmem:[%s23135_s0 + $0x30] sm:$0xf]  ;;  %v15355_v61 = vld [vmem:[%s23135_s0 + $0x34] sm:$0xf0]  ;;  %v13293_v35 = vor.u32 %v15388_v49, %v13290_v59  ;;  %v20591_v55 = vsel %vm6638_vm11, %v20571_v30, %v6941_v20  ;;  %v20604_v47 = vsel %vm6626_vm9, %v20566_v28, %v6932_v46  ;;  %v20609_v21 = vsel %vm6645_vm13, %v20576_v4, %v6946_v34 }
 0x578   :  { %v6770_v39 = vld [vmem:[#allocation4 + $0x2c] sm:$0x1]  ;;  %v13344_v15 = vld [vmem:[%s23135_s0 + $0x1b0] sm:$0xf]  ;;  %v15403_v2 = vld [vmem:[%s23135_s0 + $0x1b4] sm:$0xf0]  ;;  %7263 = vmatpush.bf16.msra.mxu3 %v13365_v7  ;;  %7495 = vmatpush.bf16.msrb.mxu1 %v13439_v41  ;;  %v13357_v56 = vor.u32 %v15404_v31, %v13354_v25  ;;  %v13431_v8 = vor.u32 %v15355_v61, %v13430_v19  ;;  %v6910_v1 = vsel %vm6626_vm9, %v20507_v27, %v6909_v60  ;;  %v6958_v19 = vunpack.i.h.s16 %v20604_v47 }
 0x579   :  { %v15386_v33 = vld [vmem:[%s23135_s0 + $0x134] sm:$0xf]  ;;  %v13282_v48 = vld [vmem:[%s23135_s0 + $0x138] sm:$0xf0]  ;;  %v13422_v12 = vld [vmem:[%s23135_s0 + $0x20] sm:$0xf]  ;;  %v13345_v38 = vor.u32 %v15403_v2, %v13344_v15  ;;  %7222 = vmatpush.bf16.msra.mxu0 %v13353_v43  ;;  %v20649_v41 = vsel %vm112_vm0, %v20261_v0, %v20402_v16 }
 0x57a   :  { %v20587_v54 = vld [vmem:[%s23135_s0 + $0x1b4] sm:$0xf]  ;;  %v13346_v58 = vld [vmem:[%s23135_s0 + $0x1b8] sm:$0xf0]  ;;  %v15353_v53 = vld [vmem:[%s23135_s0 + $0x24] sm:$0xf0]  ;;  %7250 = vmatpush.bf16.msra.mxu2 %v13293_v35  ;;  %v13285_v6 = vor.u32 %v15386_v33, %v13282_v48  ;;  %v6805_v35 = vsel %vm124_vm3, %v20416_v29, %v20519_v62  ;;  %v6801_v48 = vsel %vm120_vm2, %v20416_v29, %v20519_v62 }
 0x57b   :  { %v6939_v36 = vrot.slane %v20552_v11, 1  ;;  %v6738_v13 = vld [vmem:[#allocation1 + $0x20] sm:$0xff]  ;;  %v6739_v44 = vld [vmem:[#allocation1 + $0x28] sm:$0xff]  ;;  %v20620_v40 = vrot.slane %v20472_v26, 1  ;;  %v6944_v42 = vrot.slane %v20591_v55, 2  ;;  %v13349_v31 = vor.u32 %v20587_v54, %v13346_v58 }
 0x57c   :  { %v20614_v10 = vld [vmem:[%s23135_s0 + $0x1a0] sm:$0xf]  ;;  %v15401_v3 = vld [vmem:[%s23135_s0 + $0x1a4] sm:$0xf0]  ;;  %v6768_v5 = vsel %vm6756_vm8, %v6738_v13, %v6767_v23  ;;  %v6771_v18 = vsel %vm20462_vm4, %v6739_v44, %v6770_v39  ;;  %v15384_v9 = vld [vmem:[%s23135_s0 + $0x124] sm:$0xf]  ;;  %7264 = vmatpush.bf16.msra.mxu3 %v13357_v56  ;;  %7496 = vmatpush.bf16.msrb.mxu1 %v13431_v8  ;;  %v13423_v46 = vor.u32 %v15353_v53, %v13422_v12 }
 0x57d   :  { %v13274_v26 = vld [vmem:[%s23135_s0 + $0x128] sm:$0xf0]  ;;  %v20635_v49 = vld [vmem:[#allocation1] sm:$0xff]  ;;  %6769 = vst [vmem:[#allocation4 + $0x24] sm:$0x11] %v6768_v5  ;;  %v20661_v23 = vsel %vm116_vm1, %v20261_v0, %v20402_v16  ;;  %v6949_v25 = vrot.slane %v20609_v21, 3  ;;  %v6960_v61 = vunpack.i.h.s16 %v6939_v36  ;;  %7223 = vmatpush.bf16.msra.mxu0 %v13345_v38  ;;  %v13337_v15 = vor.u32 %v15401_v3, %v20614_v10 }
 0x57e   :  { %v13338_v59 = vld [vmem:[%s23135_s0 + $0x1a8] sm:$0xf0]  ;;  %6772 = vst [vmem:[#allocation4 + $0x2c] sm:$0x1] %v6771_v18  ;;  %v13414_v20 = vld [vmem:[%s23135_s0 + $0x10] sm:$0xf]  ;;  %7251 = vmatpush.bf16.msra.mxu2 %v13285_v6  ;;  %v13277_v2 = vor.u32 %v15384_v9, %v13274_v26  ;;  %v20690_v54 = vsel %vm120_vm2, %v20261_v0, %v20402_v16  ;;  %v6810_v55 = vsel %vm6636_vm15, %v20416_v29, %v20519_v62  ;;  %v6962_v56 = vunpack.i.h.s16 %v6944_v42 }
 0x57f   :  { %v6737_v7 = vld [vmem:[#allocation1 + $0x8] sm:$0xff]  ;;  %v15351_v34 = vld [vmem:[%s23135_s0 + $0x14] sm:$0xf0]  ;;  %v13328_v39 = vld [vmem:[%s23135_s0 + $0x190] sm:$0xf]  ;;  %vm23142_vm8 = vcmask 125952   ;;  %v13258_v21 = vpack.i.b16 %v20604_v47, %v6926_v24  ;;  %v13341_v13 = vor.u32 %v15400_v51, %v13338_v59  ;;  %v20720_v32 = vsel %vm6631_vm10, %v20661_v23, %v6805_v35 }
 0x580   :  { %v15399_v43 = vld [vmem:[%s23135_s0 + $0x194] sm:$0xf0]  ;;  %v15382_v60 = vld [vmem:[%s23135_s0 + $0x114] sm:$0xf]  ;;  %v13266_v33 = vld [vmem:[%s23135_s0 + $0x118] sm:$0xf0]  ;;  %7265 = vmatpush.bf16.msra.mxu3 %v13349_v31  ;;  %7497 = vmatpush.bf16.msrb.mxu1 %v13423_v46  ;;  %v13415_v44 = vor.u32 %v15351_v34, %v13414_v20  ;;  %v6815_v24 = vsel %vm6643_vm7, %v20416_v29, %v20519_v62  ;;  %v13259_v47 = vpack.i.b16 %v6939_v36, %v6958_v19 }
 0x581   :  { %6766 = vst.msk [vmem:[#allocation4 + $0x20] sm:$0xf] %vm23142_vm8, %v6737_v7  ;;  %v15398_v8 = vld [vmem:[%s23135_s0 + $0x194] sm:$0xf]  ;;  %v13330_v58 = vld [vmem:[%s23135_s0 + $0x198] sm:$0xf0]  ;;  %v13260_v3 = vpack.i.b16 %v6944_v42, %v6960_v61  ;;  %7224 = vmatpush.bf16.msra.mxu0 %v13337_v15  ;;  %v13329_v5 = vor.u32 %v15399_v43, %v13328_v39  ;;  %v13269_v18 = vor.u32 %v15382_v60, %v13266_v33 }
 0x582   :  { %v15414_v12 = vld [vmem:[%s23135_s0 + $0x214] sm:$0xf]  ;;  %v13394_v53 = vld [vmem:[%s23135_s0 + $0x218] sm:$0xf0]  ;;  %7007 = vst [vmem:[#allocation1] ss:$9 sm:$0xff] %v6910_v1  ;;  %7252 = vmatpush.bf16.msra.mxu2 %v13277_v2  ;;  %v6816_v36 = vsel %vm6645_vm13, %v20739_v14, %v6815_v24  ;;  %v13333_v6 = vor.u32 %v15398_v8, %v13330_v58  ;;  %v6802_v26 = vsel %vm6626_vm9, %v20649_v41, %v6801_v48 }
 0x583   :  { %v13406_v38 = vld [vmem:[%s23135_s0] sm:$0xf]  ;;  %v15349_v10 = vld [vmem:[%s23135_s0 + $0x4] sm:$0xf0]  ;;  %7010 = vst [vmem:[#allocation1 + $0x1] ss:$9 sm:$0xff] %v6916_v63  ;;  %v13397_v62 = vor.u32 %v15414_v12, %v13394_v53  ;;  %v20748_v0 = vsel %vm6638_vm11, %v20690_v54, %v6810_v55  ;;  %v20753_v16 = vsel %vm120_vm2, %v20522_v57, %v20620_v40  ;;  %v7599_v51 = vsel %vm124_vm3, %v20522_v57, %v20620_v40 }
 0x584   :  { %7013 = vst [vmem:[#allocation1 + $0x2] ss:$9 sm:$0xff] %v6921_v52  ;;  %v13534_v50 = vld [vmem:[%s23135_s0 + $0x100] sm:$0xf]  ;;  %v15381_v63 = vld [vmem:[%s23135_s0 + $0x104] sm:$0xf0]  ;;  %v13261_v52 = vpack.i.b16 %v6949_v25, %v6962_v56  ;;  %7266 = vmatpush.bf16.msra.mxu3 %v13341_v13  ;;  %7498 = vmatpush.bf16.msrb.mxu1 %v13415_v44  ;;  %v13407_v9 = vor.u32 %v15349_v10, %v13406_v38 }
 0x585   :  { %v6793_v29 = vrot.slane %v20635_v49, 3  ;;  %7016 = vst [vmem:[#allocation1 + $0x3] ss:$9 sm:$0xff] %v13258_v21  ;;  %v13535_v11 = vor.u32 %v15381_v63, %v13534_v50  ;;  %v6808_v1 = vrot.slane %v20720_v32, 1  ;;  %7225 = vmatpush.bf16.msra.mxu0 %v13329_v5  ;;  %v6818_v46 = vrot.slane %v6816_v36, 3 }
 0x586   :  { %7019 = vst [vmem:[#allocation1 + $0x4] ss:$9 sm:$0xff] %v13259_v47  ;;  %7253 = vmatpush.bf16.msra.mxu2 %v13269_v18  ;;  %v13526_v19 = vld [vmem:[%s23135_s0 + $0xf0] sm:$0xf]  ;;  %v15379_v61 = vld [vmem:[%s23135_s0 + $0xf4] sm:$0xf0]  ;;  %v7604_v10 = vsel %vm6636_vm15, %v20522_v57, %v20620_v40  ;;  %v7609_v24 = vsel %vm6643_vm7, %v20522_v57, %v20620_v40 }
 0x587   :  { %7022 = vst [vmem:[#allocation1 + $0x5] ss:$9 sm:$0xff] %v13260_v3  ;;  %v20760_v31 = vsel %vm112_vm0, %v20635_v49, %v6793_v29  ;;  %v20764_v20 = vsel %vm116_vm1, %v20635_v49, %v6793_v29  ;;  %v20768_v34 = vsel %vm120_vm2, %v20635_v49, %v6793_v29  ;;  %v20772_v25 = vsel %vm124_vm3, %v20635_v49, %v6793_v29  ;;  %v15362_v49 = vld [vmem:[%s23135_s0 + $0x74] sm:$0xf]  ;;  %v13464_v15 = vld [vmem:[%s23135_s0 + $0x78] sm:$0xf0] }
 0x588   :  { %v6785_v42 = vld [vmem:[#allocation4 + $0x20] sm:$0xf]  ;;  %7025 = vst [vmem:[#allocation1 + $0x6] ss:$9 sm:$0xff] %v13261_v52  ;;  %7267 = vmatpush.bf16.msra.mxu3 %v13333_v6  ;;  %7499 = vmatpush.bf16.msrb.mxu1 %v13407_v9  ;;  %v15378_v55 = vld [vmem:[%s23135_s0 + $0xf4] sm:$0xf]  ;;  %v13527_v3 = vor.u32 %v15379_v61, %v13526_v19  ;;  %v13467_v50 = vor.u32 %v15362_v49, %v13464_v15 }
 0x589   :  { %v6794_v59 = vrot.slane %v6785_v42, 6  ;;  %v6795_v7 = vrot.slane %v6785_v42, 1  ;;  %7281 = vmatpush.bf16.msrb.mxu0 %v13397_v62  ;;  %v13528_v56 = vld [vmem:[%s23135_s0 + $0xf8] sm:$0xf0]  ;;  %v13518_v21 = vld [vmem:[%s23135_s0 + $0xe0] sm:$0xf]  ;;  %v20838_v9 = vsel %vm6631_vm10, %v20661_v23, %v7599_v51  ;;  %v7596_v15 = vsel %vm6626_vm9, %v20649_v41, %v20753_v16 }
 0x58a   :  { %7527 = vmatpush.bf16.msrb.mxu2 %v13535_v11  ;;  %v15377_v13 = vld [vmem:[%s23135_s0 + $0xe4] sm:$0xf0]  ;;  %v15360_v44 = vld [vmem:[%s23135_s0 + $0x64] sm:$0xf]  ;;  %v13456_v38 = vld [vmem:[%s23135_s0 + $0x68] sm:$0xf0]  ;;  %v13531_v36 = vor.u32 %v15378_v55, %v13528_v56  ;;  %v7610_v55 = vsel %vm6645_vm13, %v20739_v14, %v7609_v24 }
 0x58b   :  { %v6824_v39 = vsel %vm120_vm2, %v6794_v59, %v6795_v7  ;;  %v6828_v43 = vsel %vm124_vm3, %v6794_v59, %v6795_v7  ;;  %v6833_v35 = vsel %vm6636_vm15, %v6794_v59, %v6795_v7  ;;  %v6838_v48 = vsel %vm6643_vm7, %v6794_v59, %v6795_v7  ;;  %v7579_v47 = vld [vmem:[#allocation4 + $0x20] sm:$0xf]  ;;  %v15376_v63 = vld [vmem:[%s23135_s0 + $0xe4] sm:$0xf]  ;;  %v13520_v5 = vld [vmem:[%s23135_s0 + $0xe8] sm:$0xf0] }
 0x58c   :  { %v6825_v2 = vsel %vm6626_vm9, %v20760_v31, %v6824_v39  ;;  %v6829_v60 = vsel %vm6631_vm10, %v20764_v20, %v6828_v43  ;;  %v6834_v33 = vsel %vm6638_vm11, %v20768_v34, %v6833_v35  ;;  %v6839_v12 = vsel %vm6645_vm13, %v20772_v25, %v6838_v48  ;;  %v15380_v18 = vld [vmem:[%s23135_s0 + $0x104] sm:$0xf]  ;;  %v13536_v7 = vld [vmem:[%s23135_s0 + $0x108] sm:$0xf0]  ;;  %v7978_v19 = vld [vmem:[#allocation5 + $0x8] sm:$0xf] }
 0x58d   :  { %v6831_v8 = vrot.slane %v6829_v60, 1  ;;  %v6836_v58 = vrot.slane %v6834_v33, 2  ;;  %v6850_v53 = vunpack.i.h.s16 %v6825_v2  ;;  %v13400_v11 = vpack.i.b16 %v6825_v2, %v6818_v46  ;;  %v13510_v39 = vld [vmem:[%s23135_s0 + $0xd0] sm:$0xf]  ;;  %v15375_v43 = vld [vmem:[%s23135_s0 + $0xd4] sm:$0xf0] }
 0x58e   :  { %v6813_v6 = vrot.slane %v20748_v0, 2  ;;  %v6841_v42 = vrot.slane %v6839_v12, 3  ;;  %v20846_v46 = vsel %vm6638_vm11, %v20690_v54, %v7604_v10  ;;  %v20848_v61 = vrot.slane %v7579_v47, 6  ;;  %v15358_v32 = vld [vmem:[%s23135_s0 + $0x54] sm:$0xf] }
 0x58f   :  { %v6852_v29 = vunpack.i.h.s16 %v6831_v8  ;;  %v6854_v52 = vunpack.i.h.s16 %v6836_v58  ;;  %v7026_v62 = vld [vmem:[#allocation1] sm:$0xff]  ;;  %v20831_v57 = vld [vmem:[#allocation1 + $0x9] sm:$0xff]  ;;  %v20833_v40 = vld [vmem:[#allocation1 + $0x12] sm:$0xff]  ;;  %v13401_v59 = vpack.i.b16 %v6831_v8, %v6850_v53  ;;  %v20850_v23 = vrot.slane %v7579_v47, 1 }
 0x590   :  { %7212 = vmatmul.bf16.vlgmr.msrb.gmra.mxu3 %v7026_v62  ;;  %7226 = vmatmul.bf16.vlgmr.msra.gmra.mxu0 %v20831_v57  ;;  %7296 = vst [vmem:[#allocation1] ss:$9 sm:$0xff] %v6802_v26  ;;  %v13519_v51 = vor.u32 %v15377_v13, %v13518_v21  ;;  %v13459_v54 = vor.u32 %v15360_v44, %v13456_v38  ;;  %v15374_v2 = vld [vmem:[%s23135_s0 + $0xd4] sm:$0xf]  ;;  %v13512_v60 = vld [vmem:[%s23135_s0 + $0xd8] sm:$0xf0]  ;;  %v7636_v44 = vunpack.i.h.s16 %v7596_v15 }
 0x591   :  { %v13402_v0 = vpack.i.b16 %v6836_v58, %v6852_v29  ;;  %13398 = vmatmul.msk.bf16.vlgmr.msra.gmra.mxu1 %vm7201_vm12, %v20833_v40  ;;  %7299 = vst [vmem:[#allocation1 + $0x1] ss:$9 sm:$0xff] %v6808_v1  ;;  %7254 = vmatmul.bf16.vlgmr.msra.gmra.mxu2 %v7026_v62  ;;  %v13403_v26 = vpack.i.b16 %v6841_v42, %v6854_v52  ;;  %v13448_v1 = vld [vmem:[%s23135_s0 + $0x58] sm:$0xf0]  ;;  %v7602_v33 = vrot.slane %v20838_v9, 1  ;;  %v7607_v48 = vrot.slane %v20846_v46, 2 }
 0x592   :  { %7302 = vst [vmem:[#allocation1 + $0x2] ss:$9 sm:$0xff] %v6813_v6  ;;  %7506 = vmatpush.bf16.msra.mxu0 %v13527_v3  ;;  %7534 = vmatpush.bf16.msrb.mxu3 %v13467_v50  ;;  %v13523_v35 = vor.u32 %v15376_v63, %v13520_v5  ;;  %v13539_v49 = vor.u32 %v15380_v18, %v13536_v7  ;;  %v20884_v16 = vrot.slane %v7978_v19, 6  ;;  %v13502_v58 = vld [vmem:[%s23135_s0 + $0xc0] sm:$0xf]  ;;  %v7612_v13 = vrot.slane %v7610_v55, 3 }
 0x593   :  { %7305 = vst [vmem:[#allocation1 + $0x3] ss:$9 sm:$0xff] %v13400_v11  ;;  %7548 = vmatpush.bf16.msra.mxu1 %v13531_v36  ;;  %v7618_v41 = vsel %vm120_vm2, %v20848_v61, %v20850_v23  ;;  %v13511_v56 = vor.u32 %v15375_v43, %v13510_v39  ;;  %v13451_v8 = vor.u32 %v15358_v32, %v13448_v1  ;;  %v15373_v14 = vld [vmem:[%s23135_s0 + $0xc4] sm:$0xf0]  ;;  %v15356_v53 = vld [vmem:[%s23135_s0 + $0x44] sm:$0xf]  ;;  %v7638_v3 = vunpack.i.h.s16 %v7602_v33 }
 0x594   :  { %7308 = vst [vmem:[#allocation1 + $0x4] ss:$9 sm:$0xff] %v13401_v59  ;;  %7569 = vmatpush.bf16.msra.mxu2 %v13539_v49  ;;  %v13515_v12 = vor.u32 %v15374_v2, %v13512_v60  ;;  %v13440_v21 = vld [vmem:[%s23135_s0 + $0x48] sm:$0xf0]  ;;  %v20898_v38 = vrot.slane %v7978_v19, 1  ;;  %v7619_v10 = vsel %vm6626_vm9, %v20760_v31, %v7618_v41  ;;  %v7640_v50 = vunpack.i.h.s16 %v7607_v48 }
 0x595   :  { %7311 = vst [vmem:[#allocation1 + $0x5] ss:$9 sm:$0xff] %v13402_v0  ;;  %v15372_v24 = vld [vmem:[%s23135_s0 + $0xc4] sm:$0xf]  ;;  %v13504_v47 = vld [vmem:[%s23135_s0 + $0xc8] sm:$0xf0]  ;;  %v7622_v63 = vsel %vm124_vm3, %v20848_v61, %v20850_v23  ;;  %v13503_v5 = vor.u32 %v15373_v14, %v13502_v58  ;;  %v13443_v18 = vor.u32 %v15356_v53, %v13440_v21  ;;  %v7627_v62 = vsel %vm6636_vm15, %v20848_v61, %v20850_v23 }
 0x596   :  { %7314 = vst [vmem:[#allocation1 + $0x6] ss:$9 sm:$0xff] %v13403_v26  ;;  %7507 = vmatpush.bf16.msra.mxu0 %v13519_v51  ;;  %7535 = vmatpush.bf16.msrb.mxu3 %v13459_v54  ;;  %v13494_v31 = vld [vmem:[%s23135_s0 + $0xb0] sm:$0xf]  ;;  %v15371_v29 = vld [vmem:[%s23135_s0 + $0xb4] sm:$0xf0]  ;;  %v7643_v11 = vunpack.i.h.s16 %v7619_v10  ;;  %v13507_v36 = vor.u32 %v15372_v24, %v13504_v47  ;;  %v7642_v59 = vunpack.i.h.s16 %v7612_v13  ;;  %v13576_v7 = vpack.i.b16 %v7602_v33, %v7636_v44 }
 0x597   :  { %7549 = vmatpush.bf16.msra.mxu1 %v13523_v35  ;;  %v15354_v52 = vld [vmem:[%s23135_s0 + $0x34] sm:$0xf]  ;;  %v13432_v6 = vld [vmem:[%s23135_s0 + $0x38] sm:$0xf0]  ;;  %v8000_v46 = vsel %vm124_vm3, %v20884_v16, %v20898_v38  ;;  %v7980_v19 = vld [vmem:[#allocation5 + $0x14] sm:$0xf]  ;;  %v7632_v0 = vsel %vm6643_vm7, %v20848_v61, %v20850_v23  ;;  %v13577_v54 = vpack.i.b16 %v7607_v48, %v7638_v3  ;;  %v13578_v39 = vpack.i.b16 %v7612_v13, %v7640_v50 }
 0x598   :  { %v15370_v9 = vld [vmem:[%s23135_s0 + $0xb4] sm:$0xf]  ;;  %v13496_v42 = vld [vmem:[%s23135_s0 + $0xb8] sm:$0xf0]  ;;  %v13701_v26 = vld [vmem:[%s23135_s0 + $0x310] sm:$0xf]  ;;  %v7623_v43 = vsel %vm6631_vm10, %v20764_v20, %v7622_v63  ;;  %v13495_v35 = vor.u32 %v15371_v29, %v13494_v31  ;;  %v7628_v20 = vsel %vm6638_vm11, %v20768_v34, %v7627_v62  ;;  %v13435_v2 = vor.u32 %v15354_v52, %v13432_v6 }
 0x599   :  { %v15447_v51 = vld [vmem:[%s23135_s0 + $0x314] sm:$0xf0]  ;;  %v13486_v61 = vld [vmem:[%s23135_s0 + $0xa0] sm:$0xf]  ;;  %v15369_v23 = vld [vmem:[%s23135_s0 + $0xa4] sm:$0xf0]  ;;  %v13499_v60 = vor.u32 %v15370_v9, %v13496_v42  ;;  %v7633_v55 = vsel %vm6645_vm13, %v20772_v25, %v7632_v0  ;;  %v7688_v41 = vpack.i.b16 %v7643_v11, %v7642_v59  ;;  %v8005_v47 = vsel %vm6636_vm15, %v20884_v16, %v20898_v38 }
 0x59a   :  { %7508 = vmatpush.bf16.msra.mxu0 %v13511_v56  ;;  %7536 = vmatpush.bf16.msrb.mxu3 %v13451_v8  ;;  %v15352_v49 = vld [vmem:[%s23135_s0 + $0x24] sm:$0xf]  ;;  %v13424_v33 = vld [vmem:[%s23135_s0 + $0x28] sm:$0xf0]  ;;  %v13702_v56 = vor.u32 %v15447_v51, %v13701_v26  ;;  %v13693_v8 = vld [vmem:[%s23135_s0 + $0x300] sm:$0xf]  ;;  %v13487_v44 = vor.u32 %v15369_v23, %v13486_v61  ;;  %v7996_v29 = vsel %vm120_vm2, %v20884_v16, %v20898_v38 }
 0x59b   :  { %7550 = vmatpush.bf16.msra.mxu1 %v13515_v12  ;;  %v15368_v48 = vld [vmem:[%s23135_s0 + $0xa4] sm:$0xf]  ;;  %v13488_v34 = vld [vmem:[%s23135_s0 + $0xa8] sm:$0xf0]  ;;  %v7625_v58 = vrot.slane %v7623_v43, 1  ;;  %v20985_v12 = vsel %vm6631_vm10, %v20361_v22, %v8000_v46  ;;  %v20987_v14 = vrot.slane %v7980_v19, 6  ;;  %v13427_v10 = vor.u32 %v15352_v49, %v13424_v33 }
 0x59c   :  { %v15445_v25 = vld [vmem:[%s23135_s0 + $0x304] sm:$0xf0]  ;;  %v7630_v53 = vrot.slane %v7628_v20, 2  ;;  %v15350_v22 = vld [vmem:[%s23135_s0 + $0x14] sm:$0xf]  ;;  %v7990_v21 = vrot.slane %v7980_v19, 1  ;;  %v13491_v3 = vor.u32 %v15368_v48, %v13488_v34  ;;  %v8010_v62 = vsel %vm6643_vm7, %v20884_v16, %v20898_v38 }
 0x59d   :  { %v20946_v32 = vld [vmem:[#allocation1] sm:$0xff]  ;;  %v20948_v1 = vld [vmem:[#allocation1 + $0x12] sm:$0xff]  ;;  %v20959_v15 = vld [vmem:[#allocation1 + $0x9] sm:$0xff]  ;;  %v7635_v13 = vrot.slane %v7633_v55, 3  ;;  %v13694_v50 = vor.u32 %v15445_v25, %v13693_v8  ;;  %v8003_v52 = vrot.slane %v20985_v12, 1  ;;  %v21028_v11 = vsel %vm6638_vm11, %v20366_v37, %v8005_v47 }
 0x59e   :  { %7509 = vmatpush.bf16.msra.mxu0 %v13503_v5  ;;  %7537 = vmatpush.bf16.msrb.mxu3 %v13443_v18  ;;  %7693 = vst [vmem:[#allocation1] ss:$9 sm:$0xff] %v13576_v7  ;;  %v13416_v24 = vld [vmem:[%s23135_s0 + $0x18] sm:$0xf0]  ;;  %v15366_v63 = vld [vmem:[%s23135_s0 + $0x94] sm:$0xf]  ;;  %v8023_v37 = vsel %vm124_vm3, %v20987_v14, %v7990_v21  ;;  %v7997_v0 = vsel %vm6626_vm9, %v20507_v27, %v7996_v29 }
 0x59f   :  { %7551 = vmatpush.bf16.msra.mxu1 %v13507_v36  ;;  %7696 = vst [vmem:[#allocation1 + $0x1] ss:$9 sm:$0xff] %v13577_v54  ;;  %v13480_v5 = vld [vmem:[%s23135_s0 + $0x98] sm:$0xf0]  ;;  %v13685_v18 = vld [vmem:[%s23135_s0 + $0x2f0] sm:$0xf]  ;;  %v13419_v6 = vor.u32 %v15350_v22, %v13416_v24  ;;  %v8019_v43 = vsel %vm120_vm2, %v20987_v14, %v7990_v21  ;;  %v8028_v27 = vsel %vm6636_vm15, %v20987_v14, %v7990_v21  ;;  %v8037_v48 = vunpack.i.h.s16 %v7997_v0 }
 0x5a0   :  { %7268 = vmatmul.bf16.vlgmr.msra.gmra.mxu3 %v20831_v57  ;;  %13399 = vmatmul.msk.bf16.vlgmr.msrb.gmra.mxu0 %vm7201_vm12, %v20833_v40  ;;  %7699 = vst [vmem:[#allocation1 + $0x2] ss:$9 sm:$0xff] %v13578_v39  ;;  %v13478_v57 = vld [vmem:[%s23135_s0 + $0x90] sm:$0xf]  ;;  %v15367_v40 = vld [vmem:[%s23135_s0 + $0x94] sm:$0xf0]  ;;  %v13483_v38 = vor.u32 %v15366_v63, %v13480_v5  ;;  %v21063_v39 = vsel %vm6645_vm13, %v20371_v17, %v8010_v62 }
 0x5a1   :  { %7500 = vmatmul.bf16.vlgmr.msrb.gmra.mxu1 %v20946_v32  ;;  %13540 = vmatmul.msk.bf16.vlgmr.msrb.gmra.mxu2 %vm7201_vm12, %v20948_v1  ;;  %7702 = vst [vmem:[#allocation1 + $0x3] ss:$9 sm:$0xff] %v7688_v41  ;;  %v15443_v31 = vld [vmem:[%s23135_s0 + $0x2f4] sm:$0xf0]  ;;  %v13479_v36 = vor.u32 %v15367_v40, %v13478_v57  ;;  %v13470_v9 = vld [vmem:[%s23135_s0 + $0x80] sm:$0xf]  ;;  %v21081_v49 = vsel %vm6631_vm10, %v20530_v45, %v8023_v37 }
 0x5a2   :  { %7510 = vmatpush.bf16.msra.mxu0 %v13495_v35  ;;  %7538 = vmatpush.bf16.msrb.mxu3 %v13435_v2  ;;  %7705 = vst [vmem:[#allocation1 + $0x4] ss:$9 sm:$0xff] %v7625_v58  ;;  %v15365_v42 = vld [vmem:[%s23135_s0 + $0x84] sm:$0xf0]  ;;  %v15348_v16 = vld [vmem:[%s23135_s0 + $0x4] sm:$0xf]  ;;  %v13686_v59 = vor.u32 %v15443_v31, %v13685_v18  ;;  %v8033_v55 = vsel %vm6643_vm7, %v20987_v14, %v7990_v21 }
 0x5a3   :  { %7552 = vmatpush.bf16.msra.mxu1 %v13499_v60  ;;  %7903 = vmatpush.bf16.msrb.mxu2 %v13702_v56  ;;  %7708 = vst [vmem:[#allocation1 + $0x5] ss:$9 sm:$0xff] %v7630_v53  ;;  %v13408_v7 = vld [vmem:[%s23135_s0 + $0x8] sm:$0xf0]  ;;  %v15364_v46 = vld [vmem:[%s23135_s0 + $0x84] sm:$0xf]  ;;  %v13471_v20 = vor.u32 %v15365_v42, %v13470_v9  ;;  %v8020_v34 = vsel %vm6626_vm9, %v20566_v28, %v8019_v43 }
 0x5a4   :  { %7711 = vst [vmem:[#allocation1 + $0x6] ss:$9 sm:$0xff] %v7635_v13  ;;  %v13472_v19 = vld [vmem:[%s23135_s0 + $0x88] sm:$0xf0]  ;;  %v13637_v26 = vld [vmem:[%s23135_s0 + $0x290] sm:$0xf]  ;;  %v13411_v2 = vor.u32 %v15348_v16, %v13408_v7  ;;  %v21098_v8 = vsel %vm6638_vm11, %v20571_v30, %v8028_v27  ;;  %v8039_v30 = vunpack.i.h.s16 %v8003_v52  ;;  %v13751_v29 = vpack.i.b16 %v8003_v52, %v8037_v48 }
 0x5a5   :  { %v15431_v51 = vld [vmem:[%s23135_s0 + $0x294] sm:$0xf0]  ;;  %v15430_v54 = vld [vmem:[%s23135_s0 + $0x294] sm:$0xf]  ;;  %v13639_v35 = vld [vmem:[%s23135_s0 + $0x298] sm:$0xf0]  ;;  %v13475_v45 = vor.u32 %v15364_v46, %v13472_v19 }
 0x5a6   :  { %7511 = vmatpush.bf16.msra.mxu0 %v13487_v44  ;;  %7539 = vmatpush.bf16.msrb.mxu3 %v13427_v10  ;;  %v13677_v61 = vld [vmem:[%s23135_s0 + $0x2e0] sm:$0xf]  ;;  %v15441_v23 = vld [vmem:[%s23135_s0 + $0x2e4] sm:$0xf0]  ;;  %v8008_v17 = vrot.slane %v21028_v11, 2  ;;  %v13638_v41 = vor.u32 %v15431_v51, %v13637_v26  ;;  %v13642_v58 = vor.u32 %v15430_v54, %v13639_v35  ;;  %v8013_v28 = vrot.slane %v21063_v39, 3 }
 0x5a7   :  { %7553 = vmatpush.bf16.msra.mxu1 %v13491_v3  ;;  %7904 = vmatpush.bf16.msrb.mxu2 %v13694_v50  ;;  %v13709_v60 = vld [vmem:[%s23135_s0 + $0x320] sm:$0xf]  ;;  %v15449_v33 = vld [vmem:[%s23135_s0 + $0x324] sm:$0xf0]  ;;  %v15446_v56 = vld [vmem:[%s23135_s0 + $0x314] sm:$0xf]  ;;  %v13678_v25 = vor.u32 %v15441_v23, %v13677_v61  ;;  %v21121_v10 = vsel %vm6645_vm13, %v20576_v4, %v8033_v55  ;;  %v8044_v50 = vunpack.i.h.s16 %v8020_v34 }
 0x5a8   :  { %v13703_v14 = vld [vmem:[%s23135_s0 + $0x318] sm:$0xf0]  ;;  %v13629_v53 = vld [vmem:[%s23135_s0 + $0x280] sm:$0xf]  ;;  %v15429_v57 = vld [vmem:[%s23135_s0 + $0x284] sm:$0xf0]  ;;  %v13710_v40 = vor.u32 %v15449_v33, %v13709_v60  ;;  %v8041_v13 = vunpack.i.h.s16 %v8008_v17  ;;  %v8043_v9 = vunpack.i.h.s16 %v8013_v28  ;;  %v13752_v42 = vpack.i.b16 %v8008_v17, %v8039_v30 }
 0x5a9   :  { %v15428_v22 = vld [vmem:[%s23135_s0 + $0x284] sm:$0xf]  ;;  %v13631_v21 = vld [vmem:[%s23135_s0 + $0x288] sm:$0xf0]  ;;  %v8026_v44 = vrot.slane %v21081_v49, 1  ;;  %v8031_v3 = vrot.slane %v21098_v8, 2  ;;  %v13706_v63 = vor.u32 %v15446_v56, %v13703_v14  ;;  %v13630_v5 = vor.u32 %v15429_v57, %v13629_v53 }
 0x5aa   :  { %7512 = vmatpush.bf16.msra.mxu0 %v13479_v36  ;;  %7540 = vmatpush.bf16.msrb.mxu3 %v13419_v6  ;;  %v13669_v24 = vld [vmem:[%s23135_s0 + $0x2d0] sm:$0xf]  ;;  %v15439_v47 = vld [vmem:[%s23135_s0 + $0x2d4] sm:$0xf0]  ;;  %v15444_v4 = vld [vmem:[%s23135_s0 + $0x304] sm:$0xf]  ;;  %v13634_v62 = vor.u32 %v15428_v22, %v13631_v21  ;;  %v8089_v19 = vpack.i.b16 %v8044_v50, %v8043_v9 }
 0x5ab   :  { %7554 = vmatpush.bf16.msra.mxu1 %v13483_v38  ;;  %7905 = vmatpush.bf16.msrb.mxu2 %v13686_v59  ;;  %v21133_v18 = vld [vmem:[#allocation1 + $0x12] sm:$0xff]  ;;  %v21135_v31 = vld [vmem:[#allocation1 + $0x9] sm:$0xff]  ;;  %v8036_v12 = vrot.slane %v21121_v10, 3  ;;  %v13670_v52 = vor.u32 %v15439_v47, %v13669_v24  ;;  %v13623_v37 = vld [vmem:[%s23135_s0 + $0x278] sm:$0xf0]  ;;  %v13753_v59 = vpack.i.b16 %v8013_v28, %v8041_v13 }
 0x5ac   :  { %v13695_v11 = vld [vmem:[%s23135_s0 + $0x308] sm:$0xf0]  ;;  %v13621_v36 = vld [vmem:[%s23135_s0 + $0x270] sm:$0xf]  ;;  %v15427_v6 = vld [vmem:[%s23135_s0 + $0x274] sm:$0xf0] }
 0x5ad   :  { %v15426_v16 = vld [vmem:[%s23135_s0 + $0x274] sm:$0xf]  ;;  %v21156_v38 = vld [vmem:[#allocation1] sm:$0xff]  ;;  %v15437_v46 = vld [vmem:[%s23135_s0 + $0x2c4] sm:$0xf0]  ;;  %v13698_v0 = vor.u32 %v15444_v4, %v13695_v11  ;;  %v13622_v26 = vor.u32 %v15427_v6, %v13621_v36 }
 0x5ae   :  { %7513 = vmatpush.bf16.msra.mxu0 %v13471_v20  ;;  %7541 = vmatpush.bf16.msrb.mxu3 %v13411_v2  ;;  %v13661_v7 = vld [vmem:[%s23135_s0 + $0x2c0] sm:$0xf]  ;;  %8094 = vst [vmem:[#allocation1] ss:$9 sm:$0xff] %v13751_v29  ;;  %v13626_v51 = vor.u32 %v15426_v16, %v13623_v37  ;;  %v15425_v39 = vld [vmem:[%s23135_s0 + $0x264] sm:$0xf0] }
 0x5af   :  { %7555 = vmatpush.bf16.msra.mxu1 %v13475_v45  ;;  %7906 = vmatpush.bf16.msrb.mxu2 %v13678_v25  ;;  %8097 = vst [vmem:[#allocation1 + $0x1] ss:$9 sm:$0xff] %v13752_v42  ;;  %v13613_v54 = vld [vmem:[%s23135_s0 + $0x260] sm:$0xf]  ;;  %v13662_v43 = vor.u32 %v15437_v46, %v13661_v7  ;;  %v15424_v27 = vld [vmem:[%s23135_s0 + $0x264] sm:$0xf] }
 0x5b0   :  { %8100 = vst [vmem:[#allocation1 + $0x2] ss:$9 sm:$0xff] %v13753_v59  ;;  %v13653_v35 = vld [vmem:[%s23135_s0 + $0x2b0] sm:$0xf]  ;;  %v15435_v61 = vld [vmem:[%s23135_s0 + $0x2b4] sm:$0xf0]  ;;  %v13614_v17 = vor.u32 %v15425_v39, %v13613_v54 }
 0x5b1   :  { %7514 = vmatmul.bf16.vlgmr.msra.gmra.mxu0 %v20959_v15  ;;  %7542 = vmatmul.bf16.vlgmr.msrb.gmra.mxu3 %v20946_v32  ;;  %v15442_v32 = vld [vmem:[%s23135_s0 + $0x2f4] sm:$0xf]  ;;  %8103 = vst [vmem:[#allocation1 + $0x3] ss:$9 sm:$0xff] %v8089_v19  ;;  %v15440_v49 = vld [vmem:[%s23135_s0 + $0x2e4] sm:$0xf]  ;;  %v13654_v48 = vor.u32 %v15435_v61, %v13653_v35 }
 0x5b2   :  { %7889 = vmatpush.bf16.msrb.mxu0 %v13638_v41  ;;  %7924 = vmatpush.bf16.msra.mxu3 %v13710_v40  ;;  %8106 = vst [vmem:[#allocation1 + $0x4] ss:$9 sm:$0xff] %v8026_v44  ;;  %v13679_v20 = vld [vmem:[%s23135_s0 + $0x2e8] sm:$0xf0]  ;;  %v13605_v60 = vld [vmem:[%s23135_s0 + $0x250] sm:$0xf] }
 0x5b3   :  { %7931 = vmatpush.bf16.msrb.mxu1 %v13642_v58  ;;  %13541 = vmatmul.msk.bf16.vlgmr.msra.gmra.mxu2 %vm7201_vm12, %v20948_v1  ;;  %v13615_v1 = vld [vmem:[%s23135_s0 + $0x268] sm:$0xf0]  ;;  %8109 = vst [vmem:[#allocation1 + $0x5] ss:$9 sm:$0xff] %v8031_v3  ;;  %v15423_v33 = vld [vmem:[%s23135_s0 + $0x254] sm:$0xf0]  ;;  %v13682_v34 = vor.u32 %v15440_v49, %v13679_v20 }
 0x5b4   :  { %7556 = vmatmul.bf16.vlgmr.msra.gmra.mxu1 %v20959_v15  ;;  %v13687_v15 = vld [vmem:[%s23135_s0 + $0x2f8] sm:$0xf0]  ;;  %7907 = vmatpush.bf16.msrb.mxu2 %v13670_v52  ;;  %v13618_v2 = vor.u32 %v15424_v27, %v13615_v1  ;;  %8112 = vst [vmem:[#allocation1 + $0x6] ss:$9 sm:$0xff] %v8036_v12  ;;  %v15422_v55 = vld [vmem:[%s23135_s0 + $0x254] sm:$0xf]  ;;  %v13606_v8 = vor.u32 %v15423_v33, %v13605_v60 }
 0x5b5   :  { %v13690_v23 = vor.u32 %v15442_v32, %v13687_v15  ;;  %v13607_v45 = vld [vmem:[%s23135_s0 + $0x258] sm:$0xf0]  ;;  %v13645_v41 = vld [vmem:[%s23135_s0 + $0x2a0] sm:$0xf]  ;;  %v15433_v56 = vld [vmem:[%s23135_s0 + $0x2a4] sm:$0xf0] }
 0x5b6   :  { %7945 = vmatpush.bf16.msrb.mxu3 %v13706_v63  ;;  %7890 = vmatpush.bf16.msrb.mxu0 %v13630_v5  ;;  %v13812_v58 = vld [vmem:[%s23135_s0 + $0x3a0] sm:$0xf]  ;;  %v15465_v25 = vld [vmem:[%s23135_s0 + $0x3a4] sm:$0xf0]  ;;  %v15438_v14 = vld [vmem:[%s23135_s0 + $0x2d4] sm:$0xf]  ;;  %v13610_v53 = vor.u32 %v15422_v55, %v13607_v45  ;;  %v13646_v40 = vor.u32 %v15433_v56, %v13645_v41 }
 0x5b7   :  { %7932 = vmatpush.bf16.msrb.mxu1 %v13634_v62  ;;  %v13671_v57 = vld [vmem:[%s23135_s0 + $0x2d8] sm:$0xf0]  ;;  %v13597_v28 = vld [vmem:[%s23135_s0 + $0x240] sm:$0xf]  ;;  %v15421_v30 = vld [vmem:[%s23135_s0 + $0x244] sm:$0xf0]  ;;  %v13813_v13 = vor.u32 %v15465_v25, %v13812_v58 }
 0x5b8   :  { %7908 = vmatpush.bf16.msrb.mxu2 %v13662_v43  ;;  %v15420_v22 = vld [vmem:[%s23135_s0 + $0x244] sm:$0xf]  ;;  %v13599_v21 = vld [vmem:[%s23135_s0 + $0x248] sm:$0xf0]  ;;  %v13674_v44 = vor.u32 %v15438_v14, %v13671_v57  ;;  %v13598_v10 = vor.u32 %v15421_v30, %v13597_v28  ;;  %v13804_v24 = vld [vmem:[%s23135_s0 + $0x390] sm:$0xf] }
 0x5b9   :  { %v15463_v47 = vld [vmem:[%s23135_s0 + $0x394] sm:$0xf0]  ;;  %v15436_v3 = vld [vmem:[%s23135_s0 + $0x2c4] sm:$0xf]  ;;  %v13602_v50 = vor.u32 %v15420_v22, %v13599_v21  ;;  %v13663_v63 = vld [vmem:[%s23135_s0 + $0x2c8] sm:$0xf0] }
 0x5ba   :  { %7946 = vmatpush.bf16.msrb.mxu3 %v13698_v0  ;;  %7891 = vmatpush.bf16.msrb.mxu0 %v13622_v26  ;;  %v13589_v5 = vld [vmem:[%s23135_s0 + $0x230] sm:$0xf]  ;;  %v15419_v4 = vld [vmem:[%s23135_s0 + $0x234] sm:$0xf0]  ;;  %v15418_v29 = vld [vmem:[%s23135_s0 + $0x234] sm:$0xf]  ;;  %v13805_v11 = vor.u32 %v15463_v47, %v13804_v24  ;;  %v13666_v6 = vor.u32 %v15436_v3, %v13663_v63 }
 0x5bb   :  { %7933 = vmatpush.bf16.msrb.mxu1 %v13626_v51  ;;  %v13591_v62 = vld [vmem:[%s23135_s0 + $0x238] sm:$0xf0]  ;;  %v13796_v36 = vld [vmem:[%s23135_s0 + $0x380] sm:$0xf]  ;;  %v13590_v9 = vor.u32 %v15419_v4, %v13589_v5  ;;  %v15461_v42 = vld [vmem:[%s23135_s0 + $0x384] sm:$0xf0] }
 0x5bc   :  { %7909 = vmatpush.bf16.msrb.mxu2 %v13654_v48  ;;  %v15434_v12 = vld [vmem:[%s23135_s0 + $0x2b4] sm:$0xf]  ;;  %v13655_v52 = vld [vmem:[%s23135_s0 + $0x2b8] sm:$0xf0]  ;;  %v13594_v16 = vor.u32 %v15418_v29, %v13591_v62  ;;  %v13581_v37 = vld [vmem:[%s23135_s0 + $0x220] sm:$0xf]  ;;  %v13797_v26 = vor.u32 %v15461_v42, %v13796_v36 }
 0x5bd   :  { %v15417_v59 = vld [vmem:[%s23135_s0 + $0x224] sm:$0xf0]  ;;  %v15416_v7 = vld [vmem:[%s23135_s0 + $0x224] sm:$0xf]  ;;  %v13583_v46 = vld [vmem:[%s23135_s0 + $0x228] sm:$0xf0]  ;;  %v13658_v51 = vor.u32 %v15434_v12, %v13655_v52 }
 0x5be   :  { %7947 = vmatpush.bf16.msrb.mxu3 %v13690_v23  ;;  %7892 = vmatpush.bf16.msrb.mxu0 %v13614_v17  ;;  %v15448_v19 = vld [vmem:[%s23135_s0 + $0x324] sm:$0xf]  ;;  %v13711_v0 = vld [vmem:[%s23135_s0 + $0x328] sm:$0xf0]  ;;  %v13884_v32 = vld [vmem:[%s23135_s0 + $0x430] sm:$0xf]  ;;  %v13582_v54 = vor.u32 %v15417_v59, %v13581_v37  ;;  %v13586_v27 = vor.u32 %v15416_v7, %v13583_v46 }
 0x5bf   :  { %7934 = vmatpush.bf16.msrb.mxu1 %v13618_v2  ;;  %v15483_v15 = vld [vmem:[%s23135_s0 + $0x434] sm:$0xf0]  ;;  %v13788_v39 = vld [vmem:[%s23135_s0 + $0x370] sm:$0xf]  ;;  %v15432_v1 = vld [vmem:[%s23135_s0 + $0x2a4] sm:$0xf]  ;;  %v13714_v61 = vor.u32 %v15448_v19, %v13711_v0 }
 0x5c0   :  { %7910 = vmatpush.bf16.msrb.mxu2 %v13646_v40  ;;  %v15459_v43 = vld [vmem:[%s23135_s0 + $0x374] sm:$0xf0]  ;;  %v13647_v35 = vld [vmem:[%s23135_s0 + $0x2a8] sm:$0xf0]  ;;  %v13876_v23 = vld [vmem:[%s23135_s0 + $0x420] sm:$0xf]  ;;  %v13885_v17 = vor.u32 %v15483_v15, %v13884_v32 }
 0x5c1   :  { %13715 = vmatmul.msk.bf16.vlgmr.msra.gmra.mxu3 %vm7201_vm12, %v21133_v18  ;;  %v15481_v49 = vld [vmem:[%s23135_s0 + $0x424] sm:$0xf0]  ;;  %v15464_v20 = vld [vmem:[%s23135_s0 + $0x3a4] sm:$0xf]  ;;  %v13814_v2 = vld [vmem:[%s23135_s0 + $0x3a8] sm:$0xf0]  ;;  %v13789_v60 = vor.u32 %v15459_v43, %v13788_v39  ;;  %v13650_v55 = vor.u32 %v15432_v1, %v13647_v35 }
 0x5c2   :  { %7948 = vmatpush.bf16.msrb.mxu3 %v13682_v34  ;;  %7893 = vmatpush.bf16.msrb.mxu0 %v13606_v8  ;;  %v15480_v33 = vld [vmem:[%s23135_s0 + $0x424] sm:$0xf]  ;;  %v13878_v48 = vld [vmem:[%s23135_s0 + $0x428] sm:$0xf0]  ;;  %v13780_v45 = vld [vmem:[%s23135_s0 + $0x360] sm:$0xf]  ;;  %v13877_v56 = vor.u32 %v15481_v49, %v13876_v23  ;;  %v13817_v34 = vor.u32 %v15464_v20, %v13814_v2 }
 0x5c3   :  { %7935 = vmatpush.bf16.msrb.mxu1 %v13610_v53  ;;  %7911 = vmatmul.bf16.vlgmr.msrb.gmra.mxu2 %v21135_v31  ;;  %v15457_v41 = vld [vmem:[%s23135_s0 + $0x364] sm:$0xf0]  ;;  %v13868_v8 = vld [vmem:[%s23135_s0 + $0x410] sm:$0xf]  ;;  %v13881_v58 = vor.u32 %v15480_v33, %v13878_v48  ;;  %v15479_v25 = vld [vmem:[%s23135_s0 + $0x414] sm:$0xf0] }
 0x5c4   :  { %8290 = vmatpush.bf16.msra.mxu2 %v13813_v13  ;;  %v15462_v14 = vld [vmem:[%s23135_s0 + $0x394] sm:$0xf]  ;;  %v13806_v53 = vld [vmem:[%s23135_s0 + $0x398] sm:$0xf0]  ;;  %v13781_v57 = vor.u32 %v15457_v41, %v13780_v45  ;;  %v13772_v40 = vld [vmem:[%s23135_s0 + $0x350] sm:$0xf]  ;;  %v13869_v21 = vor.u32 %v15479_v25, %v13868_v8 }
 0x5c5   :  { %v15478_v28 = vld [vmem:[%s23135_s0 + $0x414] sm:$0xf]  ;;  %v13870_v30 = vld [vmem:[%s23135_s0 + $0x418] sm:$0xf0]  ;;  %v15455_v22 = vld [vmem:[%s23135_s0 + $0x354] sm:$0xf0]  ;;  %v13809_v13 = vor.u32 %v15462_v14, %v13806_v53 }
 0x5c6   :  { %7949 = vmatpush.bf16.msrb.mxu3 %v13674_v44  ;;  %7894 = vmatpush.bf16.msrb.mxu0 %v13598_v10  ;;  %v13860_v44 = vld [vmem:[%s23135_s0 + $0x400] sm:$0xf]  ;;  %v13873_v10 = vor.u32 %v15478_v28, %v13870_v30  ;;  %v15460_v24 = vld [vmem:[%s23135_s0 + $0x384] sm:$0xf]  ;;  %v13798_v47 = vld [vmem:[%s23135_s0 + $0x388] sm:$0xf0]  ;;  %v13773_v3 = vor.u32 %v15455_v22, %v13772_v40 }
 0x5c7   :  { %7936 = vmatpush.bf16.msrb.mxu1 %v13602_v50  ;;  %v15476_v50 = vld [vmem:[%s23135_s0 + $0x404] sm:$0xf]  ;;  %v13862_v63 = vld [vmem:[%s23135_s0 + $0x408] sm:$0xf0]  ;;  %v13764_v5 = vld [vmem:[%s23135_s0 + $0x340] sm:$0xf]  ;;  %v13801_v29 = vor.u32 %v15460_v24, %v13798_v47 }
 0x5c8   :  { %8291 = vmatpush.bf16.msra.mxu2 %v13805_v11  ;;  %v15453_v4 = vld [vmem:[%s23135_s0 + $0x344] sm:$0xf0]  ;;  %v13852_v62 = vld [vmem:[%s23135_s0 + $0x3f0] sm:$0xf]  ;;  %v13865_v11 = vor.u32 %v15476_v50, %v13862_v63  ;;  %v15475_v36 = vld [vmem:[%s23135_s0 + $0x3f4] sm:$0xf0] }
 0x5c9   :  { %v13765_v42 = vor.u32 %v15453_v4, %v13764_v5  ;;  %v15474_v12 = vld [vmem:[%s23135_s0 + $0x3f4] sm:$0xf]  ;;  %v13854_v52 = vld [vmem:[%s23135_s0 + $0x3f8] sm:$0xf0]  ;;  %v15451_v37 = vld [vmem:[%s23135_s0 + $0x334] sm:$0xf0]  ;;  %v13853_v59 = vor.u32 %v15475_v36, %v13852_v62 }
 0x5ca   :  { %7950 = vmatpush.bf16.msrb.mxu3 %v13666_v6  ;;  %7895 = vmatpush.bf16.msrb.mxu0 %v13590_v9  ;;  %v15458_v6 = vld [vmem:[%s23135_s0 + $0x374] sm:$0xf]  ;;  %v13790_v9 = vld [vmem:[%s23135_s0 + $0x378] sm:$0xf0]  ;;  %v13844_v46 = vld [vmem:[%s23135_s0 + $0x3e0] sm:$0xf] }
 0x5cb   :  { %7937 = vmatpush.bf16.msrb.mxu1 %v13594_v16  ;;  %v13756_v16 = vld [vmem:[%s23135_s0 + $0x330] sm:$0xf]  ;;  %v13793_v7 = vor.u32 %v15458_v6, %v13790_v9  ;;  %v15482_v19 = vld [vmem:[%s23135_s0 + $0x434] sm:$0xf]  ;;  %v13886_v0 = vld [vmem:[%s23135_s0 + $0x438] sm:$0xf0] }
 0x5cc   :  { %8292 = vmatpush.bf16.msra.mxu2 %v13797_v26  ;;  %v13857_v26 = vor.u32 %v15474_v12, %v13854_v52  ;;  %v15473_v32 = vld [vmem:[%s23135_s0 + $0x3e4] sm:$0xf0]  ;;  %v15456_v15 = vld [vmem:[%s23135_s0 + $0x364] sm:$0xf]  ;;  %v13846_v43 = vld [vmem:[%s23135_s0 + $0x3e8] sm:$0xf0] }
 0x5cd   :  { %v15472_v39 = vld [vmem:[%s23135_s0 + $0x3e4] sm:$0xf]  ;;  %v13845_v1 = vor.u32 %v15473_v32, %v13844_v46  ;;  %v15454_v49 = vld [vmem:[%s23135_s0 + $0x354] sm:$0xf]  ;;  %v13774_v20 = vld [vmem:[%s23135_s0 + $0x358] sm:$0xf0] }
 0x5ce   :  { %7951 = vmatpush.bf16.msrb.mxu3 %v13658_v51  ;;  %7896 = vmatpush.bf16.msrb.mxu0 %v13582_v54  ;;  %v13782_v51 = vld [vmem:[%s23135_s0 + $0x368] sm:$0xf0]  ;;  %v13757_v54 = vor.u32 %v15451_v37, %v13756_v16  ;;  %v13849_v23 = vor.u32 %v15472_v39, %v13846_v43  ;;  %v8115_v2 = vld [vmem:[#allocation1 + $0x12] sm:$0xff]  ;;  %v13838_v33 = vld [vmem:[%s23135_s0 + $0x3d8] sm:$0xf0]  ;;  %v13777_v45 = vor.u32 %v15454_v49, %v13774_v20 }
 0x5cf   :  { %7938 = vmatpush.bf16.msrb.mxu1 %v13586_v27  ;;  %v13889_v27 = vor.u32 %v15482_v19, %v13886_v0  ;;  %v13785_v35 = vor.u32 %v15456_v15, %v13782_v51  ;;  %v8113_v48 = vld [vmem:[#allocation1] sm:$0xff]  ;;  %v13766_v8 = vld [vmem:[%s23135_s0 + $0x348] sm:$0xf0]  ;;  %v15467_v30 = vld [vmem:[%s23135_s0 + $0x3b4] sm:$0xf0] }
 0x5d0   :  { %8293 = vmatpush.bf16.msra.mxu2 %v13789_v60  ;;  %v15470_v60 = vld [vmem:[%s23135_s0 + $0x3d4] sm:$0xf]  ;;  %v13830_v25 = vld [vmem:[%s23135_s0 + $0x3c8] sm:$0xf0]  ;;  %v13758_v22 = vld [vmem:[%s23135_s0 + $0x338] sm:$0xf0] }
 0x5d1   :  { %7897 = vmatmul.bf16.vlgmr.msrb.gmra.mxu0 %v21156_v38  ;;  %v13841_v41 = vor.u32 %v15470_v60, %v13838_v33  ;;  %v15450_v40 = vld [vmem:[%s23135_s0 + $0x334] sm:$0xf]  ;;  %v8114_v24 = vld [vmem:[#allocation1 + $0x9] sm:$0xff]  ;;  %vm8473_vm7 = vsmask.f32 7424 }
 0x5d2   :  { %7966 = vmatpush.bf16.msra.mxu0 %v13714_v61  ;;  %7939 = vmatmul.bf16.vlgmr.msrb.gmra.mxu1 %v21156_v38  ;;  %v15477_v38 = vld [vmem:[%s23135_s0 + $0x404] sm:$0xf0]  ;;  %v13836_v61 = vld [vmem:[%s23135_s0 + $0x3d0] sm:$0xf]  ;;  %vm8541_vm14 = vsmask.f32 1280 }
 0x5d3   :  { %8325 = vmatpush.bf16.msra.mxu1 %v13885_v17  ;;  %7952 = vmatpush.bf16.msrb.mxu3 %v13650_v55  ;;  %v15471_v17 = vld [vmem:[%s23135_s0 + $0x3d4] sm:$0xf0]  ;;  %vm8542_vm8 = vsmask.f32 3336 }
 0x5d4   :  { %8294 = vmatpush.bf16.msra.mxu2 %v13781_v57  ;;  %v13837_v55 = vor.u32 %v15471_v17, %v13836_v61  ;;  %v13820_v57 = vld [vmem:[%s23135_s0 + $0x3b0] sm:$0xf] }
 0x5d6   :  { %8304 = vmatpush.bf16.msrb.mxu0 %v13877_v56  ;;  %7953 = vmatmul.bf16.vlgmr.msrb.gmra.mxu3 %v21135_v31  ;;  %v13861_v31 = vor.u32 %v15477_v38, %v13860_v44  ;;  %v15469_v56 = vld [vmem:[%s23135_s0 + $0x3c4] sm:$0xf0]  ;;  %v13821_v44 = vor.u32 %v15467_v30, %v13820_v57  ;;  %v15524_v30 = vld [vmem:[%s23143_s3 + $0x144] sm:$0xf] }
 0x5d7   :  { %8332 = vmatpush.bf16.msra.mxu3 %v13817_v34  ;;  %8346 = vmatpush.bf16.msrb.mxu1 %v13881_v58  ;;  %v15452_v34 = vld [vmem:[%s23135_s0 + $0x344] sm:$0xf] }
 0x5d8   :  { %8295 = vmatpush.bf16.msra.mxu2 %v13773_v3  ;;  %v15468_v58 = vld [vmem:[%s23135_s0 + $0x3c4] sm:$0xf]  ;;  %v13769_v53 = vor.u32 %v15452_v34, %v13766_v8 }
 0x5d9   :  { %v13833_v28 = vor.u32 %v15468_v58, %v13830_v25 }
 0x5da   :  { %8305 = vmatpush.bf16.msrb.mxu0 %v13869_v21  ;;  %v15466_v21 = vld [vmem:[%s23135_s0 + $0x3b4] sm:$0xf] }
 0x5db   :  { %8333 = vmatpush.bf16.msra.mxu3 %v13809_v13  ;;  %8347 = vmatpush.bf16.msrb.mxu1 %v13873_v10  ;;  %v13822_v13 = vld [vmem:[%s23135_s0 + $0x3b8] sm:$0xf0]  ;;  %v13761_v10 = vor.u32 %v15450_v40, %v13758_v22  ;;  %v13975_v40 = vld [vmem:[%s23143_s3 + $0x148] sm:$0xf0] }
 0x5dc   :  { %8296 = vmatpush.bf16.msra.mxu2 %v13765_v42  ;;  %v13825_v38 = vor.u32 %v15466_v21, %v13822_v13 }
 0x5de   :  { %8306 = vmatpush.bf16.msrb.mxu0 %v13861_v31 }
 0x5df   :  { %8334 = vmatpush.bf16.msra.mxu3 %v13801_v29  ;;  %8348 = vmatpush.bf16.msrb.mxu1 %v13865_v11 }
 0x5e0   :  { %8297 = vmatpush.bf16.msra.mxu2 %v13757_v54 }
 0x5e1   :  { %13716 = vmatmul.msk.bf16.vlgmr.msra.gmra.mxu0 %vm7201_vm12, %v21133_v18  ;;  %v13828_v18 = vld [vmem:[%s23135_s0 + $0x3c0] sm:$0xf] }
 0x5e2   :  { %8307 = vmatpush.bf16.msrb.mxu0 %v13853_v59  ;;  %13890 = vmatmul.msk.bf16.vlgmr.msra.gmra.mxu1 %vm7201_vm12, %v8115_v2  ;;  %v13829_v14 = vor.u32 %v15469_v56, %v13828_v18 }
 0x5e3   :  { %8335 = vmatpush.bf16.msra.mxu3 %v13793_v7  ;;  %8349 = vmatpush.bf16.msrb.mxu1 %v13857_v26 }
 0x5e4   :  { %8367 = vmatpush.bf16.msrb.mxu2 %v13889_v27 }
 0x5e5   :  { %8298 = vmatmul.bf16.vlgmr.msra.gmra.mxu2 %v8113_v48 }
 0x5e6   :  { %8308 = vmatpush.bf16.msrb.mxu0 %v13845_v1 }
 0x5e7   :  { %8336 = vmatpush.bf16.msra.mxu3 %v13785_v35  ;;  %8350 = vmatpush.bf16.msrb.mxu1 %v13849_v23 }
 0x5ea   :  { %8309 = vmatpush.bf16.msrb.mxu0 %v13837_v55  ;;  %v15526_v55 = vld [vmem:[%s23143_s3 + $0x154] sm:$0xf] }
 0x5eb   :  { %8337 = vmatpush.bf16.msra.mxu3 %v13777_v45  ;;  %8351 = vmatpush.bf16.msrb.mxu1 %v13841_v41  ;;  %v13983_v45 = vld [vmem:[%s23143_s3 + $0x158] sm:$0xf0] }
 0x5ec   :  { %v13986_v56 = vor.u32 %v15526_v55, %v13983_v45  ;;  %v14013_v55 = vld [vmem:[%s23143_s3 + $0x190] sm:$0xf] }
 0x5ee   :  { %8310 = vmatpush.bf16.msrb.mxu0 %v13829_v14 }
 0x5ef   :  { %8338 = vmatpush.bf16.msra.mxu3 %v13769_v53  ;;  %8352 = vmatpush.bf16.msrb.mxu1 %v13833_v28  ;;  %v21521_v28 = vld [vmem:[%s23144_s7] sm:$0x3] }
 0x5f2   :  { %8311 = vmatpush.bf16.msrb.mxu0 %v13821_v44 }
 0x5f3   :  { %8339 = vmatpush.bf16.msra.mxu3 %v13761_v10  ;;  %8353 = vmatpush.bf16.msrb.mxu1 %v13825_v38  ;;  %v13978_v10 = vor.u32 %v15524_v30, %v13975_v40  ;;  %v15538_v30 = vld [vmem:[%s23143_s3 + $0x1b4] sm:$0xf]  ;;  %v14031_v40 = vld [vmem:[%s23143_s3 + $0x1b8] sm:$0xf0] }
 0x5f5   :  { %8312 = vmatmul.bf16.vlgmr.msrb.gmra.mxu0 %v8114_v24  ;;  %13891 = vmatmul.msk.bf16.vlgmr.msrb.gmra.mxu2 %vm7201_vm12, %v8115_v2  ;;  %vm8543_vm12 = vmor %vm8541_vm14, %vm8542_vm8  ;;  %vm9029_vm14 = vcmask 1046534  }
 0x5f6   :  { %8340 = vmatmul.bf16.vlgmr.msra.gmra.mxu3 %v8113_v48  ;;  %8354 = vmatmul.bf16.vlgmr.msrb.gmra.mxu1 %v8114_v24 }
 0x5f7   :  { %8780 = vmatpush.bf16.msrb.mxu3 %v13986_v56 }
 0x5fb   :  { %8781 = vmatpush.bf16.msrb.mxu3 %v13978_v10  ;;  %v14034_v10 = vor.u32 %v15538_v30, %v14031_v40  ;;  %v15498_v30 = vld [vmem:[%s23143_s3 + $0x74] sm:$0xf]  ;;  %v14097_v40 = vld [vmem:[%s23143_s3 + $0x78] sm:$0xf0] }
 0x5fd   :  { %8795 = vmatpush.bf16.msra.mxu1 %v14034_v10 }
 0x60d   :  { %v7227_v47 = vpop.f32.mrf.mxu0 }
 0x60e   :  { %v7241_v50 = vpop.f32.mrf.mxu1 }
 0x613   :  { %v7213_v3 = vpop.f32.mrf.mxu3 }
 0x614   :  { %v7228_v63 = vadd.f32 %v7227_v47, %v7213_v3  ;;  %v7255_v4 = vpop.f32.mrf.mxu2 }
 0x615   :  { %v7229_v31 = vpop.f32.mrf.mxu0 }
 0x616   :  { %v7242_v5 = vadd.f32 %v7241_v50, %v7228_v63  ;;  %v7243_v62 = vpop.f32.mrf.mxu1  ;;  %v8379_v50 = vperm.slane %v21521_v28, 0  ;;  %v8380_v63 = vperm.slane %v21521_v28, 1 }
 0x61b   :  { %v7215_v29 = vpop.f32.mrf.mxu3 }
 0x61c   :  { %v7257_v11 = vpop.f32.mrf.mxu2  ;;  %v7230_v33 = vadd.f32 %v7229_v31, %v7215_v29 }
 0x61d   :  { %v7283_v6 = vpop.f32.mrf.mxu0 }
 0x61e   :  { %v7501_v9 = vpop.f32.mrf.mxu1  ;;  %v7244_v58 = vadd.f32 %v7243_v62, %v7230_v33  ;;  %v13981_v62 = vld [vmem:[%s23143_s3 + $0x150] sm:$0xf]  ;;  %v15523_v33 = vld [vmem:[%s23143_s3 + $0x134] sm:$0xf0] }
 0x61f   :  { %v7502_v18 = vadd.f32 %v7501_v9, %v7242_v5 }
 0x623   :  { %v7269_v36 = vpop.f32.mrf.mxu3 }
 0x624   :  { %v7529_v42 = vpop.f32.mrf.mxu2  ;;  %v7270_v60 = vadd.f32 %v7269_v36, %v7255_v4  ;;  %v14029_v36 = vld [vmem:[%s23143_s3 + $0x1b0] sm:$0xf] }
 0x625   :  { %v7285_v52 = vpop.f32.mrf.mxu0 }
 0x626   :  { %v7503_v16 = vpop.f32.mrf.mxu1  ;;  %v7284_v8 = vadd.f32 %v7283_v6, %v7270_v60  ;;  %v13965_v60 = vld [vmem:[%s23143_s3 + $0x130] sm:$0xf] }
 0x627   :  { %v7504_v22 = vadd.f32 %v7503_v16, %v7244_v58  ;;  %v15522_v16 = vld [vmem:[%s23143_s3 + $0x134] sm:$0xf]  ;;  %v13951_v58 = vld [vmem:[%s23143_s3 + $0x118] sm:$0xf0] }
 0x62b   :  { %v7271_v12 = vpop.f32.mrf.mxu3 }
 0x62c   :  { %v21496_v37 = vpop.f32.mrf.mxu2  ;;  %v7272_v25 = vadd.f32 %v7271_v12, %v7257_v11  ;;  %v15527_v11 = vld [vmem:[%s23143_s3 + $0x154] sm:$0xf0] }
 0x62d   :  { %v13982_v12 = vor.u32 %v15527_v11, %v13981_v62 }
 0x62e   :  { %v7515_v7 = vpop.f32.mrf.mxu0  ;;  %v7286_v3 = vadd.f32 %v7285_v52, %v7272_v25  ;;  %v15539_v52 = vld [vmem:[%s23143_s3 + $0x1b4] sm:$0xf0] }
 0x62f   :  { %v7516_v34 = vadd.f32 %v7515_v7, %v7502_v18  ;;  %8754 = vmatpush.bf16.msra.mxu0 %v13982_v12 }
 0x631   :  { %v7557_v46 = vpop.f32.mrf.mxu1  ;;  %v7530_v38 = vadd.f32 %v7529_v42, %v7516_v34  ;;  %v15535_v34 = vld [vmem:[%s23143_s3 + $0x194] sm:$0xf0] }
 0x634   :  { %v7543_v59 = vpop.f32.mrf.mxu3 }
 0x635   :  { %v7544_v53 = vadd.f32 %v7543_v59, %v7284_v8  ;;  %v13967_v59 = vld [vmem:[%s23143_s3 + $0x138] sm:$0xf0]  ;;  %v15518_v8 = vld [vmem:[%s23143_s3 + $0x114] sm:$0xf] }
 0x636   :  { %v21498_v19 = vpop.f32.mrf.mxu2  ;;  %v7517_v26 = vpop.f32.mrf.mxu0 }
 0x637   :  { %v7518_v47 = vadd.f32 %v7517_v26, %v7504_v22  ;;  %v7558_v5 = vadd.f32 %v7557_v46, %v7544_v53  ;;  %v14030_v26 = vor.u32 %v15539_v52, %v14029_v36 }
 0x639   :  { %v21500_v32 = vpop.f32.mrf.mxu1  ;;  %8769 = vmatpush.bf16.msra.mxu2 %v14030_v26 }
 0x63c   :  { %v7545_v0 = vpop.f32.mrf.mxu3 }
 0x63d   :  { %v7546_v6 = vadd.f32 %v7545_v0, %v7286_v3  ;;  %v13973_v0 = vld [vmem:[%s23143_s3 + $0x140] sm:$0xf]  ;;  %v13954_v3 = vor.u32 %v15518_v8, %v13951_v58  ;;  %v13927_v58 = vld [vmem:[%s23143_s3 + $0xe8] sm:$0xf0] }
 0x63e   :  { %v21502_v15 = vpop.f32.mrf.mxu2 }
 0x63f   :  { %v7560_v45 = vadd.f32 %v21500_v32, %v7546_v6 }
 0x644   :  { %v7926_v54 = vpop.f32.mrf.mxu3 }
 0x646   :  { %v7912_v43 = vpop.f32.mrf.mxu2 }
 0x64c   :  { %v7928_v35 = vpop.f32.mrf.mxu3 }
 0x64e   :  { %v7898_v51 = vpop.f32.mrf.mxu0  ;;  %v7914_v23 = vpop.f32.mrf.mxu2 }
 0x64f   :  { %v7940_v39 = vpop.f32.mrf.mxu1  ;;  %v7913_v41 = vadd.f32 %v7912_v43, %v7898_v51  ;;  %v13970_v51 = vor.u32 %v15522_v16, %v13967_v59  ;;  %v7532_v43 = vadd.f32 %v21496_v37, %v7518_v47  ;;  %v15519_v59 = vld [vmem:[%s23143_s3 + $0x114] sm:$0xf0] }
 0x651   :  { %v7927_v57 = vadd.f32 %v7926_v54, %v7913_v41  ;;  %v15525_v54 = vld [vmem:[%s23143_s3 + $0x144] sm:$0xf0]  ;;  %8782 = vmatpush.bf16.msrb.mxu3 %v13970_v51 }
 0x653   :  { %v7973_v4 = vadd.f32 %v7927_v57, %v7530_v38  ;;  %v15521_v38 = vld [vmem:[%s23143_s3 + $0x124] sm:$0xf0] }
 0x656   :  { %v7900_v27 = vpop.f32.mrf.mxu0 }
 0x657   :  { %v21504_v1 = vpop.f32.mrf.mxu1  ;;  %v7915_v21 = vadd.f32 %v7914_v23, %v7900_v27  ;;  %v15520_v23 = vld [vmem:[%s23143_s3 + $0x124] sm:$0xf] }
 0x659   :  { %v7954_v49 = vpop.f32.mrf.mxu3  ;;  %v7929_v9 = vadd.f32 %v7928_v35, %v7915_v21  ;;  %v13974_v35 = vor.u32 %v15525_v54, %v13973_v0  ;;  %v13966_v21 = vor.u32 %v15523_v33, %v13965_v60  ;;  %v15531_v54 = vld [vmem:[%s23143_s3 + $0x174] sm:$0xf0]  ;;  %v13989_v33 = vld [vmem:[%s23143_s3 + $0x160] sm:$0xf] }
 0x65a   :  { %v7955_v31 = vadd.f32 %v7954_v49, %v7940_v39  ;;  %v14021_v39 = vld [vmem:[%s23143_s3 + $0x1a0] sm:$0xf]  ;;  %v7572_v49 = vadd.f32 %v21498_v19, %v7558_v5  ;;  %v15516_v5 = vld [vmem:[%s23143_s3 + $0x104] sm:$0xf] }
 0x65b   :  { %v7975_v18 = vadd.f32 %v7929_v9, %v7532_v43  ;;  %8755 = vmatpush.bf16.msra.mxu0 %v13974_v35  ;;  %v7574_v9 = vadd.f32 %v21502_v15, %v7560_v45  ;;  %v15512_v45 = vld [vmem:[%s23143_s3 + $0xe4] sm:$0xf] }
 0x65e   :  { %v7968_v61 = vpop.f32.mrf.mxu0 }
 0x65f   :  { %v8327_v17 = vpop.f32.mrf.mxu1  ;;  %v7969_v7 = vadd.f32 %v7968_v61, %v7955_v31  ;;  %v15537_v61 = vld [vmem:[%s23143_s3 + $0x1a4] sm:$0xf0]  ;;  %v15536_v31 = vld [vmem:[%s23143_s3 + $0x1a4] sm:$0xf]  ;;  %8756 = vmatpush.bf16.msra.mxu0 %v13966_v21 }
 0x660   :  { %v14022_v37 = vor.u32 %v15537_v61, %v14021_v39  ;;  %v14015_v39 = vld [vmem:[%s23143_s3 + $0x198] sm:$0xf0] }
 0x661   :  { %v21516_v14 = vpop.f32.mrf.mxu3  ;;  %v7974_v25 = vadd.f32 %v7969_v7, %v7572_v49  ;;  %v13997_v7 = vld [vmem:[%s23143_s3 + $0x170] sm:$0xf]  ;;  %v13941_v49 = vld [vmem:[%s23143_s3 + $0x100] sm:$0xf] }
 0x662   :  { %v7957_v22 = vadd.f32 %v21516_v14, %v21504_v1  ;;  %8770 = vmatpush.bf16.msra.mxu2 %v14022_v37  ;;  %v14005_v1 = vld [vmem:[%s23143_s3 + $0x180] sm:$0xf]  ;;  %v15533_v14 = vld [vmem:[%s23143_s3 + $0x184] sm:$0xf0]  ;;  %v13998_v60 = vor.u32 %v15531_v54, %v13997_v7  ;;  %v14079_v7 = vld [vmem:[%s23143_s3 + $0x50] sm:$0xf] }
 0x663   :  { %v14006_v16 = vor.u32 %v15533_v14, %v14005_v1  ;;  %v15495_v54 = vld [vmem:[%s23143_s3 + $0x54] sm:$0xf0] }
 0x666   :  { %v21506_v20 = vpop.f32.mrf.mxu0 }
 0x667   :  { %v21508_v48 = vpop.f32.mrf.mxu1 }
 0x668   :  { %v8299_v2 = vpop.f32.mrf.mxu2 }
 0x670   :  { %v8301_v13 = vpop.f32.mrf.mxu2 }
 0x672   :  { %v8313_v44 = vpop.f32.mrf.mxu0 }
 0x673   :  { %v8314_v24 = vadd.f32 %v8313_v44, %v8299_v2  ;;  %v8355_v42 = vpop.f32.mrf.mxu1  ;;  %v14014_v44 = vor.u32 %v15535_v34, %v14013_v55  ;;  %v15529_v55 = vld [vmem:[%s23143_s3 + $0x164] sm:$0xf0] }
 0x675   :  { %v8328_v29 = vadd.f32 %v8327_v17, %v8314_v24  ;;  %v13959_v17 = vld [vmem:[%s23143_s3 + $0x128] sm:$0xf0]  ;;  %8771 = vmatpush.bf16.msra.mxu2 %v14014_v44 }
 0x676   :  { %v13962_v56 = vor.u32 %v15520_v23, %v13959_v17 }
 0x677   :  { %v8374_v46 = vadd.f32 %v8328_v29, %v7973_v4  ;;  %v7971_v4 = vadd.f32 %v21506_v20, %v7957_v22  ;;  %v14023_v29 = vld [vmem:[%s23143_s3 + $0x1a8] sm:$0xf0]  ;;  %v21629_v20 = vld [vmem:[%s23143_s3 + $0x110] sm:$0xf] }
 0x678   :  { %v8369_v41 = vpop.f32.mrf.mxu2  ;;  %8783 = vmatpush.bf16.msrb.mxu3 %v13962_v56  ;;  %v14026_v6 = vor.u32 %v15536_v31, %v14023_v29  ;;  %v13950_v37 = vor.u32 %v15519_v59, %v21629_v20  ;;  %v14087_v31 = vld [vmem:[%s23143_s3 + $0x60] sm:$0xf]  ;;  %v15497_v29 = vld [vmem:[%s23143_s3 + $0x64] sm:$0xf0]  ;;  %v13991_v59 = vld [vmem:[%s23143_s3 + $0x168] sm:$0xf0] }
 0x679   :  { %v8341_v27 = vpop.f32.mrf.mxu3  ;;  %v8383_v32 = vadd.f32 %v8379_v50, %v8374_v46  ;;  %v15534_v46 = vld [vmem:[%s23143_s3 + $0x194] sm:$0xf]  ;;  %v7976_v61 = vadd.f32 %v7971_v4, %v7574_v9  ;;  %8772 = vmatpush.bf16.msra.mxu2 %v14006_v16  ;;  %v13990_v4 = vor.u32 %v15529_v55, %v13989_v33  ;;  %v13925_v9 = vld [vmem:[%s23143_s3 + $0xe0] sm:$0xf]  ;;  %v15528_v16 = vld [vmem:[%s23143_s3 + $0x164] sm:$0xf] }
 0x67a   :  { %v8356_v2 = vadd.f32 %v8355_v42, %v8341_v27  ;;  %v8315_v19 = vpop.f32.mrf.mxu0  ;;  %8796 = vmatpush.bf16.msra.mxu1 %v14026_v6  ;;  %v13935_v27 = vld [vmem:[%s23143_s3 + $0xf8] sm:$0xf0]  ;;  %v14018_v35 = vor.u32 %v15534_v46, %v14015_v39  ;;  %v14089_v6 = vld [vmem:[%s23143_s3 + $0x68] sm:$0xf0]  ;;  %v14143_v46 = vld [vmem:[%s23143_s3 + $0xd0] sm:$0xf] }
 0x67b   :  { %v8316_v53 = vadd.f32 %v8315_v19, %v8301_v13  ;;  %v13957_v13 = vld [vmem:[%s23143_s3 + $0x120] sm:$0xf]  ;;  %v8387_v62 = vmax.f32 %v8383_v32, 0.0  ;;  %v8357_v42 = vpop.f32.mrf.mxu1  ;;  %v14007_v19 = vld [vmem:[%s23143_s3 + $0x188] sm:$0xf0] }
 0x67c   :  { %v8370_v57 = vadd.f32 %v8369_v41, %v8356_v2  ;;  %v13958_v52 = vor.u32 %v15521_v38, %v13957_v13  ;;  %8784 = vmatpush.bf16.msrb.mxu3 %v13954_v3  ;;  %v15517_v2 = vld [vmem:[%s23143_s3 + $0x104] sm:$0xf0]  ;;  %v13933_v13 = vld [vmem:[%s23143_s3 + $0xf0] sm:$0xf]  ;;  %v15515_v38 = vld [vmem:[%s23143_s3 + $0xf4] sm:$0xf0] }
 0x67d   :  { %v8330_v24 = vadd.f32 %v21508_v48, %v8316_v53  ;;  %v13943_v48 = vld [vmem:[%s23143_s3 + $0x108] sm:$0xf0]  ;;  %v13942_v32 = vor.u32 %v15517_v2, %v13941_v49  ;;  %8773 = vmatpush.bf16.msra.mxu2 %v13998_v60  ;;  %v15494_v39 = vld [vmem:[%s23143_s3 + $0x54] sm:$0xf] }
 0x67e   :  { %v8375_v47 = vadd.f32 %v8370_v57, %v7974_v25  ;;  %v13946_v0 = vor.u32 %v15516_v5, %v13943_v48  ;;  %8757 = vmatpush.bf16.msra.mxu0 %v13958_v52  ;;  %v14095_v25 = vld [vmem:[%s23143_s3 + $0x70] sm:$0xf]  ;;  %8797 = vmatpush.bf16.msra.mxu1 %v14018_v35  ;;  %v15499_v57 = vld [vmem:[%s23143_s3 + $0x74] sm:$0xf0]  ;;  %v13930_v48 = vor.u32 %v15512_v45, %v13927_v58  ;;  %v15509_v58 = vld [vmem:[%s23143_s3 + $0xc4] sm:$0xf0] }
 0x67f   :  { %v8376_v11 = vadd.f32 %v8330_v24, %v7975_v18  ;;  %v15532_v18 = vld [vmem:[%s23143_s3 + $0x184] sm:$0xf]  ;;  %v15530_v24 = vld [vmem:[%s23143_s3 + $0x174] sm:$0xf]  ;;  %v13934_v52 = vor.u32 %v15515_v38, %v13933_v13  ;;  %v14063_v13 = vld [vmem:[%s23143_s3 + $0x30] sm:$0xf] }
 0x680   :  { %v8384_v36 = vadd.f32 %v8380_v63, %v8375_v47  ;;  %v8371_v43 = vpop.f32.mrf.mxu2  ;;  %8785 = vmatpush.bf16.msrb.mxu3 %v13946_v0  ;;  %v14010_v53 = vor.u32 %v15532_v18, %v14007_v19  ;;  %v13999_v47 = vld [vmem:[%s23143_s3 + $0x178] sm:$0xf0]  ;;  %v14071_v19 = vld [vmem:[%s23143_s3 + $0x40] sm:$0xf]  ;;  %v15491_v38 = vld [vmem:[%s23143_s3 + $0x34] sm:$0xf0] }
 0x681   :  { %v8343_v12 = vpop.f32.mrf.mxu3  ;;  %v21643_v15 = vadd.f32 %v8379_v50, %v8376_v11  ;;  %v15514_v50 = vld [vmem:[%s23143_s3 + $0xf4] sm:$0xf]  ;;  %v14002_v20 = vor.u32 %v15530_v24, %v13999_v47  ;;  %8774 = vmatpush.bf16.msra.mxu2 %v13990_v4  ;;  %v14129_v47 = vld [vmem:[%s23143_s3 + $0xb8] sm:$0xf0] }
 0x682   :  { %v8388_v26 = vmax.f32 %v8384_v36, 0.0  ;;  %v8358_v51 = vadd.f32 %v8357_v42, %v8343_v12  ;;  %v13938_v8 = vor.u32 %v15514_v50, %v13935_v27  ;;  %8758 = vmatpush.bf16.msra.mxu0 %v13950_v37  ;;  %8798 = vmatpush.bf16.msra.mxu1 %v14010_v53  ;;  %v14100_v36 = vor.u32 %v15498_v30, %v14097_v40  ;;  %v15513_v42 = vld [vmem:[%s23143_s3 + $0xe4] sm:$0xf0]  ;;  %v15492_v40 = vld [vmem:[%s23143_s3 + $0x44] sm:$0xf] }
 0x683   :  { %v8389_v41 = vmax.f32 %v21643_v15, 0.0  ;;  %v15511_v15 = vld [vmem:[%s23143_s3 + $0xd4] sm:$0xf0]  ;;  %v13926_v50 = vor.u32 %v15513_v42, %v13925_v9  ;;  %v13994_v27 = vor.u32 %v15528_v16, %v13991_v59  ;;  %v15506_v24 = vld [vmem:[%s23143_s3 + $0xb4] sm:$0xf] }
 0x684   :  { %v8391_v23 = vpack.c.bf16 %v8388_v26, %v8387_v62  ;;  %v8372_v17 = vadd.f32 %v8371_v43, %v8358_v51  ;;  %8786 = vmatpush.bf16.msrb.mxu3 %v13938_v8  ;;  %v15496_v62 = vld [vmem:[%s23143_s3 + $0x64] sm:$0xf]  ;;  %v14088_v51 = vor.u32 %v15497_v29, %v14087_v31  ;;  %v14144_v35 = vor.u32 %v15511_v15, %v14143_v46  ;;  %v15490_v4 = vld [vmem:[%s23143_s3 + $0x34] sm:$0xf]  ;;  %v15489_v9 = vld [vmem:[%s23143_s3 + $0x24] sm:$0xf0] }
 0x685   :  { %v14092_v0 = vor.u32 %v15496_v62, %v14089_v6  ;;  %v14132_v31 = vor.u32 %v15506_v24, %v14129_v47  ;;  %v15504_v62 = vld [vmem:[%s23143_s3 + $0xa4] sm:$0xf]  ;;  %v14119_v6 = vld [vmem:[%s23143_s3 + $0xa0] sm:$0xf]  ;;  %v14047_v59 = vld [vmem:[%s23143_s3 + $0x10] sm:$0xf] }
 0x686   :  { %v8395_v56 = vrot.slane %v8391_v23, 3  ;;  %v8377_v34 = vadd.f32 %v8372_v17, %v7976_v61  ;;  %8759 = vmatpush.bf16.msra.mxu0 %v13942_v32  ;;  %8799 = vmatpush.bf16.msra.mxu1 %v14002_v20  ;;  %v14081_v61 = vld [vmem:[%s23143_s3 + $0x58] sm:$0xf0]  ;;  %v14137_v32 = vld [vmem:[%s23143_s3 + $0xc8] sm:$0xf0] }
 0x687   :  { %v14145_v17 = vld [vmem:[%s23143_s3 + $0xd8] sm:$0xf0]  ;;  %v14084_v8 = vor.u32 %v15494_v39, %v14081_v61  ;;  %v15505_v20 = vld [vmem:[%s23143_s3 + $0xa4] sm:$0xf0]  ;;  %v15488_v42 = vld [vmem:[%s23143_s3 + $0x24] sm:$0xf] }
 0x688   :  { %v8399_v22 = vsel %vm112_vm0, %v8391_v23, %v8395_v56  ;;  %v8401_v21 = vsel %vm116_vm1, %v8391_v23, %v8395_v56  ;;  %v8404_v44 = vsel %vm120_vm2, %v8391_v23, %v8395_v56  ;;  %v8407_v10 = vsel %vm124_vm3, %v8391_v23, %v8395_v56  ;;  %8787 = vmatpush.bf16.msrb.mxu3 %v13930_v48  ;;  %v15510_v23 = vld [vmem:[%s23143_s3 + $0xd4] sm:$0xf]  ;;  %v14135_v56 = vld [vmem:[%s23143_s3 + $0xc0] sm:$0xf]  ;;  %v14065_v48 = vld [vmem:[%s23143_s3 + $0x38] sm:$0xf0] }
 0x689   :  { %v8403_v3 = vrot.slane %v8401_v21, 1  ;;  %v8406_v1 = vrot.slane %v8404_v44, 2  ;;  %v8409_v14 = vrot.slane %v8407_v10, 3  ;;  %8443 = vst [vmem:[#allocation1] ss:$4 sm:$0xff] %v8399_v22  ;;  %v8386_v5 = vadd.f32 %v8380_v63, %v8377_v34 }
 0x68a   :  { %v14096_v63 = vor.u32 %v15499_v57, %v14095_v25  ;;  %8760 = vmatpush.bf16.msra.mxu0 %v13934_v52  ;;  %v14148_v60 = vor.u32 %v15510_v23, %v14145_v17  ;;  %v14080_v34 = vor.u32 %v15495_v54, %v14079_v7  ;;  %v15508_v25 = vld [vmem:[%s23143_s3 + $0xc4] sm:$0xf]  ;;  %8800 = vmatpush.bf16.msra.mxu1 %v13994_v27  ;;  %v14073_v22 = vld [vmem:[%s23143_s3 + $0x48] sm:$0xf0]  ;;  %vm8472_vm3 = vcmask 785412  }
 0x68b   :  { %v8426_v11 = vunpack.i.l.s16 %v8409_v14  ;;  %8446 = vst [vmem:[#allocation1 + $0x1] ss:$4 sm:$0xff] %v8403_v3  ;;  %v8390_v28 = vmax.f32 %v8386_v5, 0.0  ;;  %v8427_v43 = vunpack.i.h.s16 %v8409_v14  ;;  %v14140_v21 = vor.u32 %v15508_v25, %v14137_v32  ;;  %v14127_v14 = vld [vmem:[%s23143_s3 + $0xb0] sm:$0xf]  ;;  %vm8474_vm4 = vmand %vm8472_vm3, %vm8473_vm7 }
 0x68c   :  { %8449 = vst [vmem:[#allocation1 + $0x2] ss:$4 sm:$0xff] %v8406_v1  ;;  %8954 = vmatpush.bf16.msrb.mxu2 %v14096_v63  ;;  %8980 = vmatpush.bf16.msra.mxu3 %v14100_v36  ;;  %v14136_v10 = vor.u32 %v15509_v58, %v14135_v56  ;;  %v14076_v1 = vor.u32 %v15492_v40, %v14073_v22  ;;  %v15507_v5 = vld [vmem:[%s23143_s3 + $0xb4] sm:$0xf0]  ;;  %v14055_v36 = vld [vmem:[%s23143_s3 + $0x20] sm:$0xf] }
 0x68d   :  { %8452 = vst [vmem:[#allocation1 + $0x3] ss:$4 sm:$0xff] %v8426_v11  ;;  %v8392_v12 = vpack.c.bf16 %v8390_v28, %v8389_v41  ;;  %v15493_v41 = vld [vmem:[%s23143_s3 + $0x44] sm:$0xf0]  ;;  %v14128_v29 = vor.u32 %v15507_v5, %v14127_v14  ;;  %v14121_v11 = vld [vmem:[%s23143_s3 + $0xa8] sm:$0xf0]  ;;  %v14064_v28 = vor.u32 %v15491_v38, %v14063_v13  ;;  %v14068_v63 = vor.u32 %v15490_v4, %v14065_v48 }
 0x68e   :  { %8761 = vmatpush.bf16.msra.mxu0 %v13926_v50  ;;  %8995 = vmatpush.bf16.msrb.mxu1 %v14148_v60  ;;  %v14072_v3 = vor.u32 %v15493_v41, %v14071_v19  ;;  %v14124_v52 = vor.u32 %v15504_v62, %v14121_v11  ;;  %v14120_v16 = vor.u32 %v15505_v20, %v14119_v6  ;;  %v15487_v7 = vld [vmem:[%s23143_s3 + $0x14] sm:$0xf0]  ;;  %v15502_v46 = vld [vmem:[%s23143_s3 + $0x94] sm:$0xf]  ;;  %v14113_v15 = vld [vmem:[%s23143_s3 + $0x98] sm:$0xf0] }
 0x68f   :  { %v8396_v26 = vrot.slane %v8392_v12, 3  ;;  %v15503_v54 = vld [vmem:[%s23143_s3 + $0x94] sm:$0xf0]  ;;  %v15486_v39 = vld [vmem:[%s23143_s3 + $0x14] sm:$0xf] }
 0x690   :  { %8955 = vmatpush.bf16.msrb.mxu2 %v14088_v51  ;;  %8981 = vmatpush.bf16.msra.mxu3 %v14092_v0  ;;  %v14111_v0 = vld [vmem:[%s23143_s3 + $0x90] sm:$0xf]  ;;  %v8479_v50 = vld [vmem:[#allocation6 + $0x8] sm:$0xff]  ;;  %v14105_v60 = vld [vmem:[%s23143_s3 + $0x88] sm:$0xf0] }
 0x691   :  { %v8412_v49 = vsel %vm112_vm0, %v8392_v12, %v8396_v26  ;;  %v8414_v2 = vsel %vm116_vm1, %v8392_v12, %v8396_v26  ;;  %v8417_v37 = vsel %vm120_vm2, %v8392_v12, %v8396_v26  ;;  %v14057_v12 = vld [vmem:[%s23143_s3 + $0x28] sm:$0xf0]  ;;  %vm8469_vm1 = vcmask 1043456   ;;  %v14049_v27 = vld [vmem:[%s23143_s3 + $0x18] sm:$0xf0] }
 0x692   :  { %v8416_v33 = vrot.slane %v8414_v2, 1  ;;  %v8419_v55 = vrot.slane %v8417_v37, 2  ;;  %v8429_v45 = vunpack.i.h.s16 %v8412_v49  ;;  %v13892_v18 = vpack.i.b16 %v8412_v49, %v8427_v43  ;;  %8969 = vmatpush.bf16.msrb.mxu0 %v14144_v35  ;;  %8996 = vmatpush.bf16.msrb.mxu1 %v14140_v21  ;;  %v8476_v43 = vld [vmem:[#allocation6] sm:$0xff]  ;;  %vm21861_vm10 = vmand %vm8469_vm1, %vm8470_vm6  ;;  %v14039_v2 = vld [vmem:[%s23143_s3] sm:$0xf] }
 0x693   :  { %v14056_v26 = vor.u32 %v15489_v9, %v14055_v36  ;;  %v14060_v51 = vor.u32 %v15488_v42, %v14057_v12  ;;  %v14116_v35 = vor.u32 %v15502_v46, %v14113_v15  ;;  %v14112_v49 = vor.u32 %v15503_v54, %v14111_v0  ;;  %v15500_v37 = vld [vmem:[%s23143_s3 + $0x84] sm:$0xf]  ;;  %vm8475_vm13 = vmor %vm8474_vm4, %vm21861_vm10  ;;  %v15485_v19 = vld [vmem:[%s23143_s3 + $0x4] sm:$0xf0] }
 0x694   :  { %v8431_v53 = vunpack.i.h.s16 %v8416_v33  ;;  %v8433_v57 = vunpack.i.h.s16 %v8419_v55  ;;  %v13893_v30 = vpack.i.b16 %v8416_v33, %v8429_v45  ;;  %8456 = vst [vmem:[#allocation1 + $0x20] ss:$4 sm:$0xff] %v13892_v18  ;;  %8956 = vmatpush.bf16.msrb.mxu2 %v14080_v34  ;;  %8982 = vmatpush.bf16.msra.mxu3 %v14084_v8  ;;  %v8453_v61 = vld [vmem:[#allocation1] sm:$0xff]  ;;  %v14048_v33 = vor.u32 %v15487_v7, %v14047_v59  ;;  %v15501_v18 = vld [vmem:[%s23143_s3 + $0x84] sm:$0xf0] }
 0x695   :  { %v14103_v45 = vld [vmem:[%s23143_s3 + $0x80] sm:$0xf]  ;;  %v15484_v41 = vld [vmem:[%s23143_s3 + $0x4] sm:$0xf]  ;;  %v14041_v56 = vld [vmem:[%s23143_s3 + $0x8] sm:$0xf0]  ;;  %v8477_v34 = vsel %vm8475_vm13, %v8453_v61, %v8476_v43  ;;  %v14108_v58 = vor.u32 %v15500_v37, %v14105_v60  ;;  %v14040_v32 = vor.u32 %v15485_v19, %v14039_v2 }
 0x696   :  { %v13894_v44 = vpack.i.b16 %v8419_v55, %v8431_v53  ;;  %8459 = vst [vmem:[#allocation1 + $0x21] ss:$4 sm:$0xff] %v13893_v30  ;;  %8970 = vmatpush.bf16.msrb.mxu0 %v14136_v10  ;;  %8997 = vmatpush.bf16.msrb.mxu1 %v14132_v31  ;;  %v14052_v55 = vor.u32 %v15486_v39, %v14049_v27  ;;  %vm8544_vm3 = vsmask.f32 5392  ;;  %vm8546_vm6 = vsmask.f32 7448 }
 0x697   :  { %8465 = vst [vmem:[#allocation1 + $0x23] ss:$4 sm:$0xff] %v8433_v57  ;;  %v14104_v25 = vor.u32 %v15501_v18, %v14103_v45  ;;  %v14044_v53 = vor.u32 %v15484_v41, %v14041_v56  ;;  %vm8545_vm7 = vmor %vm8543_vm12, %vm8544_vm3  ;;  %v14241_v7 = vld [vmem:[%s23143_s3 + $0x230] sm:$0xf]  ;;  %v15555_v46 = vld [vmem:[%s23143_s3 + $0x234] sm:$0xf0] }
 0x698   :  { %8462 = vst [vmem:[#allocation1 + $0x22] ss:$4 sm:$0xff] %v13894_v44  ;;  %8957 = vmatpush.bf16.msrb.mxu2 %v14072_v3  ;;  %8983 = vmatpush.bf16.msra.mxu3 %v14076_v1  ;;  %vm8547_vm10 = vmor %vm8545_vm7, %vm8546_vm6  ;;  %v14289_v15 = vld [vmem:[%s23143_s3 + $0x290] sm:$0xf]  ;;  %v15554_v54 = vld [vmem:[%s23143_s3 + $0x234] sm:$0xf]  ;;  %v14242_v18 = vor.u32 %v15555_v46, %v14241_v7 }
 0x699   :  { %8478 = vst [vmem:[#allocation6] sm:$0xff] %v8477_v34  ;;  %v14243_v39 = vld [vmem:[%s23143_s3 + $0x238] sm:$0xf0]  ;;  %v15566_v43 = vld [vmem:[%s23143_s3 + $0x294] sm:$0xf]  ;;  %vm8751_vm4 = vcmask 785408  }
 0x69a   :  { %8971 = vmatpush.bf16.msrb.mxu0 %v14128_v29  ;;  %8998 = vmatpush.bf16.msrb.mxu1 %v14124_v52  ;;  %v14291_v61 = vld [vmem:[%s23143_s3 + $0x298] sm:$0xf0]  ;;  %v21929_v17 = vld [vmem:[%s23143_s3 + $0x220] sm:$0xf]  ;;  %v21944_v60 = vld [vmem:[%s23143_s3 + $0x284] sm:$0xf0] }
 0x69b   :  { %v21939_v37 = vld [vmem:[%s23143_s3 + $0x280] sm:$0xf]  ;;  %v21959_v41 = vld [vmem:[%s23143_s3 + $0x224] sm:$0xf]  ;;  %v14235_v56 = vld [vmem:[%s23143_s3 + $0x228] sm:$0xf0] }
 0x69c   :  { %8958 = vmatpush.bf16.msrb.mxu2 %v14064_v28  ;;  %8984 = vmatpush.bf16.msra.mxu3 %v14068_v63  ;;  %v15549_v7 = vld [vmem:[%s23143_s3 + $0x204] sm:$0xf0]  ;;  %v14265_v46 = vld [vmem:[%s23143_s3 + $0x260] sm:$0xf]  ;;  %vm23159_vm12 = vsmask.f32 6424 }
 0x69d   :  { %vm9564_vm6 = vcmask 15360   ;;  %vm11158_vm7 = vcmask 74752  }
 0x69e   :  { %8972 = vmatpush.bf16.msrb.mxu0 %v14120_v16  ;;  %8999 = vmatpush.bf16.msrb.mxu1 %v14116_v35 }
 0x69f   :  { %v8466_v23 = vld [vmem:[#allocation1 + $0x20] sm:$0xff] }
 0x6a0   :  { %8959 = vmatpush.bf16.msrb.mxu2 %v14056_v26  ;;  %8985 = vmatpush.bf16.msra.mxu3 %v14060_v51  ;;  %v8480_v8 = vsel %vm8475_vm13, %v8466_v23, %v8479_v50  ;;  %v8523_v57 = vld [vmem:[#allocation6] sm:$0x77]  ;;  %v15567_v26 = vld [vmem:[%s23143_s3 + $0x294] sm:$0xf0]  ;;  %vm21948_vm13 = vmor %vm112_vm0, %vm120_vm2 }
 0x6a1   :  { %8481 = vst [vmem:[#allocation6 + $0x8] sm:$0xff] %v8480_v8  ;;  %v8527_v40 = vrot.slane %v8523_v57, 2  ;;  %v21896_v12 = vld [vmem:[#allocation6] sm:$0xee]  ;;  %v14290_v19 = vor.u32 %v15567_v26, %v14289_v15  ;;  %vm21982_vm2 = vmor %vm21948_vm13, %vm6636_vm15  ;;  %v15561_v15 = vld [vmem:[%s23143_s3 + $0x264] sm:$0xf0] }
 0x6a2   :  { %8973 = vmatpush.bf16.msrb.mxu0 %v14112_v49  ;;  %9000 = vmatpush.bf16.msrb.mxu1 %v14108_v58  ;;  %v8483_v52 = vld [vmem:[#allocation6] sm:$0x33]  ;;  %v9276_v0 = vrot.slane %v21896_v12, 2  ;;  %v21934_v49 = vld [vmem:[%s23143_s3 + $0x224] sm:$0xf0]  ;;  %vm22019_vm15 = vmor %vm21982_vm2, %vm9029_vm14 }
 0x6a3   :  { %v8531_v21 = vsel %vm6626_vm9, %v8523_v57, %v8527_v40  ;;  %v8532_v44 = vsel %vm6638_vm11, %v8523_v57, %v8527_v40  ;;  %v9006_v51 = vld [vmem:[#allocation6] sm:$0x66]  ;;  %v8487_v50 = vrot.slane %v8483_v52, 2  ;;  %v15564_v40 = vld [vmem:[%s23143_s3 + $0x284] sm:$0xf] }
 0x6a4   :  { %8960 = vmatpush.bf16.msrb.mxu2 %v14048_v33  ;;  %8986 = vmatpush.bf16.msra.mxu3 %v14052_v55  ;;  %v8534_v10 = vrot.slane %v8532_v44, 2  ;;  %v8548_v47 = vshrl.u32 %v8531_v21, 16  ;;  %v8551_v3 = vshll.u32 %v8531_v21, 16  ;;  %v9010_v2 = vrot.slane %v9006_v51, 2  ;;  %v15558_v21 = vld [vmem:[%s23143_s3 + $0x254] sm:$0xf] }
 0x6a5   :  { %v21954_v45 = vsel %vm6638_vm11, %v21896_v12, %v9276_v0  ;;  %v8491_v34 = vsel %vm6626_vm9, %v8483_v52, %v8487_v50 }
 0x6a6   :  { %8974 = vmatpush.bf16.msrb.mxu0 %v14104_v25  ;;  %v8550_v5 = vrot.slane %v8548_v47, 6  ;;  %v8553_v4 = vrot.slane %v8551_v3, 7  ;;  %v8557_v48 = vshll.u32 %v8534_v10, 16  ;;  %v9014_v44 = vsel %vm6626_vm9, %v9006_v51, %v9010_v2 }
 0x6a7   :  { %v9016_v10 = vsel %vm6638_vm11, %v9006_v51, %v9010_v2 }
 0x6a8   :  { %8961 = vmatpush.bf16.msrb.mxu2 %v14040_v32  ;;  %8987 = vmatpush.bf16.msra.mxu3 %v14044_v53  ;;  %v8524_v30 = vld [vmem:[#allocation6 + $0x8] sm:$0x77]  ;;  %v8554_v11 = vor.u32 %v8553_v4, %v8550_v5  ;;  %v8559_v36 = vrot.slane %v8557_v48, 7  ;;  %v14246_v32 = vor.u32 %v15554_v54, %v14243_v39  ;;  %v14294_v53 = vor.u32 %v15566_v43, %v14291_v61  ;;  %v14273_v5 = vld [vmem:[%s23143_s3 + $0x270] sm:$0xf] }
 0x6a9   :  { %v8528_v22 = vrot.slane %v8524_v30, 2  ;;  %v21898_v16 = vld [vmem:[#allocation6 + $0x8] sm:$0xee]  ;;  %v9280_v4 = vsel %vm6626_vm9, %v21896_v12, %v9276_v0  ;;  %v14238_v48 = vor.u32 %v21959_v41, %v14235_v56  ;;  %v15548_v39 = vld [vmem:[%s23143_s3 + $0x204] sm:$0xf] }
 0x6aa   :  { %v8555_v63 = vrot.slane %v8554_v11, 2  ;;  %v8484_v59 = vld [vmem:[#allocation6 + $0x8] sm:$0x33]  ;;  %v9277_v35 = vrot.slane %v21898_v16, 2  ;;  %v9293_v26 = vshrl.u32 %v9280_v4, 16 }
 0x6ab   :  { %v8537_v13 = vsel %vm6626_vm9, %v8524_v30, %v8528_v22  ;;  %v8538_v38 = vsel %vm6638_vm11, %v8524_v30, %v8528_v22  ;;  %v9007_v27 = vld [vmem:[#allocation6 + $0x8] sm:$0x66]  ;;  %v8488_v23 = vrot.slane %v8484_v59, 2  ;;  %v14234_v30 = vor.u32 %v21934_v49, %v21929_v17  ;;  %v14283_v22 = vld [vmem:[%s23143_s3 + $0x288] sm:$0xf0] }
 0x6ac   :  { %v8540_v24 = vrot.slane %v8538_v38, 2  ;;  %v8561_v1 = vshrl.u32 %v8537_v13, 16  ;;  %v8564_v14 = vshll.u32 %v8537_v13, 16  ;;  %v8560_v9 = vsel %vm8547_vm10, %v8555_v63, %v8559_v36  ;;  %v14225_v38 = vld [vmem:[%s23143_s3 + $0x210] sm:$0xf] }
 0x6ad   :  { %8604 = vst [vmem:[#allocation1] ss:$4 sm:$0xff] %v8560_v9  ;;  %v9011_v55 = vrot.slane %v9007_v27, 2  ;;  %v21967_v58 = vsel %vm6638_vm11, %v21898_v16, %v9277_v35  ;;  %v8494_v57 = vsel %vm6626_vm9, %v8484_v59, %v8488_v23  ;;  %v9283_v13 = vrot.slane %v21954_v45, 2  ;;  %v14227_v11 = vld [vmem:[%s23143_s3 + $0x218] sm:$0xf0] }
 0x6ae   :  { %v8563_v31 = vrot.slane %v8561_v1, 6  ;;  %v8566_v29 = vrot.slane %v8564_v14, 7  ;;  %v8570_v62 = vshll.u32 %v8540_v24, 16  ;;  %v9289_v3 = vrot.slane %v21967_v58, 2  ;;  %v15551_v14 = vld [vmem:[%s23143_s3 + $0x214] sm:$0xf0] }
 0x6af   :  { %v9021_v24 = vsel %vm6626_vm9, %v9007_v27, %v9011_v55  ;;  %v9023_v47 = vsel %vm6638_vm11, %v9007_v27, %v9011_v55  ;;  %v14282_v1 = vor.u32 %v21944_v60, %v21939_v37  ;;  %v14151_v63 = vrot.slane %v9014_v44, 9  ;;  %v14275_v9 = vld [vmem:[%s23143_s3 + $0x278] sm:$0xf0]  ;;  %v14219_v43 = vld [vmem:[%s23143_s3 + $0x208] sm:$0xf0] }
 0x6b0   :  { %v8567_v28 = vor.u32 %v8566_v29, %v8563_v31  ;;  %v8572_v20 = vrot.slane %v8570_v62, 7  ;;  %v14286_v31 = vor.u32 %v15564_v40, %v14283_v22  ;;  %v15563_v29 = vld [vmem:[%s23143_s3 + $0x274] sm:$0xf0]  ;;  %v15550_v62 = vld [vmem:[%s23143_s3 + $0x214] sm:$0xf]  ;;  %v14152_v36 = vrot.slane %v9016_v10, 9 }
 0x6b1   :  { %v14154_v12 = vrot.slane %v9023_v47, 9  ;;  %vm23153_vm11 = vsmask.f32 2312  ;;  %v9298_v59 = vshrl.u32 %v9283_v13, 16  ;;  %v9310_v51 = vshrl.u32 %v9289_v3, 16 }
 0x6b2   :  { %v8568_v6 = vrot.slane %v8567_v28, 2  ;;  %vm22033_vm8 = vmor %vm1120_vm5, %vm23153_vm11  ;;  %v14226_v0 = vor.u32 %v15551_v14, %v14225_v38  ;;  %v14274_v54 = vor.u32 %v15563_v29, %v14273_v5  ;;  %v14230_v27 = vor.u32 %v15550_v62, %v14227_v11  ;;  %v15560_v61 = vld [vmem:[%s23143_s3 + $0x264] sm:$0xf]  ;;  %v14267_v23 = vld [vmem:[%s23143_s3 + $0x268] sm:$0xf0] }
 0x6b3   :  { %v9034_v17 = vsel %vm22019_vm15, %v14151_v63, %v14152_v36  ;;  %vm23156_vm5 = vsmask.f32 4368  ;;  %v9300_v33 = vrot.slane %v9298_v59, 7  ;;  %v9301_v55 = vshll.u32 %v9283_v13, 16  ;;  %v14209_v45 = vld [vmem:[%s23143_s3 + $0x1f0] sm:$0xf] }
 0x6b4   :  { %v8573_v42 = vsel %vm8547_vm10, %v8568_v6, %v8572_v20  ;;  %v9286_v6 = vsel %vm6626_vm9, %v21898_v16, %v9277_v35  ;;  %v15562_v20 = vld [vmem:[%s23143_s3 + $0x274] sm:$0xf]  ;;  %v14217_v16 = vld [vmem:[%s23143_s3 + $0x200] sm:$0xf]  ;;  %vm22066_vm9 = vmor %vm22033_vm8, %vm23156_vm5  ;;  %v9312_v41 = vrot.slane %v9310_v51, 7  ;;  %vm11179_vm10 = vcmask 1024  }
 0x6b5   :  { %8607 = vst [vmem:[#allocation1 + $0x1] ss:$4 sm:$0xff] %v8573_v42  ;;  %v14153_v42 = vrot.slane %v9021_v24, 9  ;;  %v9305_v50 = vshrl.u32 %v9286_v6, 16  ;;  %v14278_v35 = vor.u32 %v15562_v20, %v14275_v9  ;;  %v14218_v56 = vor.u32 %v15549_v7, %v14217_v16  ;;  %vm22084_vm3 = vmor %vm22066_vm9, %vm23159_vm12  ;;  %v15546_v40 = vld [vmem:[%s23143_s3 + $0x1f4] sm:$0xf] }
 0x6b6   :  { %v14211_v22 = vld [vmem:[%s23143_s3 + $0x1f8] sm:$0xf0]  ;;  %v9303_v10 = vor.u32 %v9301_v55, %v9300_v33  ;;  %v14201_v13 = vld [vmem:[%s23143_s3 + $0x1e0] sm:$0xf]  ;;  %v15545_v38 = vld [vmem:[%s23143_s3 + $0x1e4] sm:$0xf0] }
 0x6b7   :  { %v9038_v60 = vsel %vm22019_vm15, %v14153_v42, %v14154_v12  ;;  %v14259_v44 = vld [vmem:[%s23143_s3 + $0x258] sm:$0xf0]  ;;  %v14249_v24 = vld [vmem:[%s23143_s3 + $0x240] sm:$0xf]  ;;  %v15557_v14 = vld [vmem:[%s23143_s3 + $0x244] sm:$0xf0]  ;;  %v14202_v12 = vor.u32 %v15545_v38, %v14201_v13 }
 0x6b8   :  { %v15544_v5 = vld [vmem:[%s23143_s3 + $0x1e4] sm:$0xf]  ;;  %v14203_v4 = vld [vmem:[%s23143_s3 + $0x1e8] sm:$0xf0]  ;;  %v14385_v11 = vld [vmem:[%s23143_s3 + $0x310] sm:$0xf]  ;;  %v14250_v52 = vor.u32 %v15557_v14, %v14249_v24 }
 0x6b9   :  { %v15556_v29 = vld [vmem:[%s23143_s3 + $0x244] sm:$0xf]  ;;  %v14251_v62 = vld [vmem:[%s23143_s3 + $0x248] sm:$0xf0]  ;;  %v15583_v28 = vld [vmem:[%s23143_s3 + $0x314] sm:$0xf0]  ;;  %v14206_v59 = vor.u32 %v15544_v5, %v14203_v4 }
 0x6ba   :  { %v15582_v63 = vld [vmem:[%s23143_s3 + $0x314] sm:$0xf]  ;;  %v14387_v36 = vld [vmem:[%s23143_s3 + $0x318] sm:$0xf0]  ;;  %v14254_v16 = vor.u32 %v15556_v29, %v14251_v62  ;;  %v14193_v7 = vld [vmem:[%s23143_s3 + $0x1d0] sm:$0xf] }
 0x6bb   :  { %v15542_v51 = vld [vmem:[%s23143_s3 + $0x1d4] sm:$0xf]  ;;  %v14187_v49 = vld [vmem:[%s23143_s3 + $0x1c8] sm:$0xf0]  ;;  %v14433_v33 = vld [vmem:[%s23143_s3 + $0x370] sm:$0xf] }
 0x6bc   :  { %v8608_v8 = vld.sshfl [vmem:[#allocation1] sm:$0xff pattern:$0x73625140]  ;;  %v8609_v25 = vld.sshfl [vmem:[#allocation1 + $0x8] sm:$0xff pattern:$0x73625140] }
 0x6bd   :  { %8762 = vmatmul.bf16.vlgmr.msra.gmra.mxu0 %v8608_v8  ;;  %14035 = vmatmul.msk.bf16.vlgmr.msra.gmra.mxu2 %vm8751_vm4, %v8609_v25  ;;  %8806 = vst [vmem:[#allocation1] ss:$4 sm:$0xff] %v8491_v34  ;;  %v14266_v34 = vor.u32 %v15561_v15, %v14265_v46  ;;  %v15543_v46 = vld [vmem:[%s23143_s3 + $0x1d4] sm:$0xf0]  ;;  %v14386_v15 = vor.u32 %v15583_v28, %v14385_v11  ;;  %v14427_v13 = vld [vmem:[%s23143_s3 + $0x368] sm:$0xf0] }
 0x6be   :  { %8808 = vst [vmem:[#allocation1 + $0x1] ss:$4 sm:$0xff] %v8494_v57  ;;  %8788 = vmatmul.bf16.vlgmr.msrb.gmra.mxu3 %v8608_v8  ;;  %14036 = vmatmul.msk.bf16.vlgmr.msra.gmra.mxu1 %vm8751_vm4, %v8609_v25  ;;  %v14257_v8 = vld [vmem:[%s23143_s3 + $0x250] sm:$0xf]  ;;  %v14298_v25 = vrot.slane %v9305_v50, 9  ;;  %v14270_v57 = vor.u32 %v15560_v61, %v14267_v23  ;;  %vm11209_vm15 = vcmask 0  }
 0x6bf   :  { %9218 = vmatpush.bf16.msra.mxu0 %v14242_v18  ;;  %9233 = vmatpush.bf16.msra.mxu2 %v14290_v19  ;;  %v15547_v18 = vld [vmem:[%s23143_s3 + $0x1f4] sm:$0xf0]  ;;  %v14297_v19 = vrot.slane %v9293_v26, 9  ;;  %v14390_v26 = vor.u32 %v15582_v63, %v14387_v36  ;;  %v14379_v50 = vld [vmem:[%s23143_s3 + $0x308] sm:$0xf0] }
 0x6c0   :  { %9244 = vmatpush.bf16.msra.mxu1 %v14246_v32  ;;  %9259 = vmatpush.bf16.msrb.mxu3 %v14294_v53  ;;  %v9313_v32 = vshll.u32 %v9289_v3, 16  ;;  %v14222_v53 = vor.u32 %v15548_v39, %v14219_v43  ;;  %v14210_v3 = vor.u32 %v15547_v18, %v14209_v45  ;;  %v15581_v39 = vld [vmem:[%s23143_s3 + $0x304] sm:$0xf0]  ;;  %v15580_v43 = vld [vmem:[%s23143_s3 + $0x304] sm:$0xf] }
 0x6c1   :  { %v9304_v6 = vsel %vm22084_vm3, %v14297_v19, %v9303_v10  ;;  %v15541_v23 = vld [vmem:[%s23143_s3 + $0x1c4] sm:$0xf0]  ;;  %v15595_v55 = vld [vmem:[%s23143_s3 + $0x374] sm:$0xf0]  ;;  %v15578_v18 = vld [vmem:[%s23143_s3 + $0x2f4] sm:$0xf] }
 0x6c2   :  { %v9315_v47 = vor.u32 %v9313_v32, %v9312_v41  ;;  %v15579_v45 = vld [vmem:[%s23143_s3 + $0x2f4] sm:$0xf0]  ;;  %v14371_v19 = vld [vmem:[%s23143_s3 + $0x2f8] sm:$0xf0]  ;;  %v14434_v58 = vor.u32 %v15595_v55, %v14433_v33  ;;  %v15592_v10 = vld [vmem:[%s23143_s3 + $0x364] sm:$0xf] }
 0x6c3   :  { %9219 = vmatpush.bf16.msra.mxu0 %v14234_v30  ;;  %9234 = vmatpush.bf16.msra.mxu2 %v14282_v1  ;;  %v15559_v30 = vld [vmem:[%s23143_s3 + $0x254] sm:$0xf0]  ;;  %v14374_v32 = vor.u32 %v15578_v18, %v14371_v19  ;;  %v14430_v5 = vor.u32 %v15592_v10, %v14427_v13  ;;  %v15590_v29 = vld [vmem:[%s23143_s3 + $0x354] sm:$0xf]  ;;  %v14419_v62 = vld [vmem:[%s23143_s3 + $0x358] sm:$0xf0] }
 0x6c4   :  { %9245 = vmatpush.bf16.msra.mxu1 %v14238_v48  ;;  %9260 = vmatpush.bf16.msrb.mxu3 %v14286_v31  ;;  %v14258_v1 = vor.u32 %v15559_v30, %v14257_v8  ;;  %v14214_v48 = vor.u32 %v15546_v40, %v14211_v22  ;;  %v14262_v31 = vor.u32 %v15558_v21, %v14259_v44  ;;  %v15593_v30 = vld [vmem:[%s23143_s3 + $0x364] sm:$0xf0]  ;;  %v15576_v21 = vld [vmem:[%s23143_s3 + $0x2e4] sm:$0xf]  ;;  %v14363_v44 = vld [vmem:[%s23143_s3 + $0x2e8] sm:$0xf0] }
 0x6c5   :  { %v8809_v2 = vld.sshfl [vmem:[#allocation1] sm:$0xff pattern:$0x73625140]  ;;  %v8810_v37 = vld.sshfl [vmem:[#allocation1 + $0x8] sm:$0xff pattern:$0x73625140]  ;;  %v9316_v42 = vsel %vm22084_vm3, %v14298_v25, %v9315_v47  ;;  %v14366_v47 = vor.u32 %v15576_v21, %v14363_v44 }
 0x6c6   :  { %9069 = vst [vmem:[#allocation1] ss:$4 sm:$0xff] %v9034_v17  ;;  %v15540_v17 = vld [vmem:[%s23143_s3 + $0x1c4] sm:$0xf]  ;;  %v15577_v22 = vld [vmem:[%s23143_s3 + $0x2e4] sm:$0xf0] }
 0x6c7   :  { %9220 = vmatpush.bf16.msra.mxu0 %v14226_v0  ;;  %9235 = vmatpush.bf16.msra.mxu2 %v14274_v54  ;;  %9072 = vst [vmem:[#allocation1 + $0x1] ss:$4 sm:$0xff] %v9038_v60  ;;  %v14195_v0 = vld [vmem:[%s23143_s3 + $0x1d8] sm:$0xf0]  ;;  %v14377_v54 = vld [vmem:[%s23143_s3 + $0x300] sm:$0xf]  ;;  %v14190_v8 = vor.u32 %v15540_v17, %v14187_v49 }
 0x6c8   :  { %9246 = vmatpush.bf16.msra.mxu1 %v14230_v27  ;;  %9261 = vmatpush.bf16.msrb.mxu3 %v14278_v35  ;;  %v14194_v27 = vor.u32 %v15543_v46, %v14193_v7  ;;  %v14185_v35 = vld [vmem:[%s23143_s3 + $0x1c0] sm:$0xf]  ;;  %v14198_v61 = vor.u32 %v15542_v51, %v14195_v0  ;;  %v14369_v60 = vld [vmem:[%s23143_s3 + $0x2f0] sm:$0xf]  ;;  %v15591_v14 = vld [vmem:[%s23143_s3 + $0x354] sm:$0xf0] }
 0x6c9   :  { %v14186_v41 = vor.u32 %v15541_v23, %v14185_v35  ;;  %v14370_v25 = vor.u32 %v15579_v45, %v14369_v60  ;;  %v15575_v4 = vld [vmem:[%s23143_s3 + $0x2d4] sm:$0xf0]  ;;  %v14345_v36 = vld [vmem:[%s23143_s3 + $0x2c0] sm:$0xf]  ;;  %v14401_v51 = vld [vmem:[%s23143_s3 + $0x330] sm:$0xf] }
 0x6ca   :  { %v15587_v0 = vld [vmem:[%s23143_s3 + $0x334] sm:$0xf0]  ;;  %v14403_v35 = vld [vmem:[%s23143_s3 + $0x338] sm:$0xf0]  ;;  %v14329_v49 = vld [vmem:[%s23143_s3 + $0x2a0] sm:$0xf] }
 0x6cb   :  { %9221 = vmatpush.bf16.msra.mxu0 %v14218_v56  ;;  %9236 = vmatpush.bf16.msra.mxu2 %v14266_v34  ;;  %v15594_v56 = vld [vmem:[%s23143_s3 + $0x374] sm:$0xf]  ;;  %v14435_v34 = vld [vmem:[%s23143_s3 + $0x378] sm:$0xf0]  ;;  %v15569_v33 = vld [vmem:[%s23143_s3 + $0x2a4] sm:$0xf0] }
 0x6cc   :  { %9247 = vmatpush.bf16.msra.mxu1 %v14222_v53  ;;  %9262 = vmatpush.bf16.msrb.mxu3 %v14270_v57  ;;  %v14361_v53 = vld [vmem:[%s23143_s3 + $0x2e0] sm:$0xf]  ;;  %v14438_v40 = vor.u32 %v15594_v56, %v14435_v34  ;;  %v15568_v55 = vld [vmem:[%s23143_s3 + $0x2a4] sm:$0xf]  ;;  %v14331_v45 = vld [vmem:[%s23143_s3 + $0x2a8] sm:$0xf0]  ;;  %v14330_v34 = vor.u32 %v15569_v33, %v14329_v49 }
 0x6cd   :  { %8962 = vmatmul.bf16.vlgmr.msrb.gmra.mxu2 %v8809_v2  ;;  %14149 = vmatmul.msk.bf16.vlgmr.msrb.gmra.mxu0 %vm8751_vm4, %v8810_v37  ;;  %v14425_v57 = vld [vmem:[%s23143_s3 + $0x360] sm:$0xf]  ;;  %v14362_v24 = vor.u32 %v15577_v22, %v14361_v53  ;;  %v15584_v18 = vld [vmem:[%s23143_s3 + $0x324] sm:$0xf]  ;;  %v14395_v19 = vld [vmem:[%s23143_s3 + $0x328] sm:$0xf0] }
 0x6ce   :  { %8988 = vmatmul.bf16.vlgmr.msra.gmra.mxu3 %v8809_v2  ;;  %14150 = vmatmul.msk.bf16.vlgmr.msrb.gmra.mxu1 %vm8751_vm4, %v8810_v37  ;;  %v22143_v20 = vld.sshfl [vmem:[#allocation1] sm:$0xff pattern:$0x73625140]  ;;  %v22145_v9 = vld.sshfl [vmem:[#allocation1 + $0x8] sm:$0xff pattern:$0x73625140]  ;;  %v14378_v2 = vor.u32 %v15581_v39, %v14377_v54  ;;  %v14382_v37 = vor.u32 %v15580_v43, %v14379_v50  ;;  %v14426_v38 = vor.u32 %v15593_v30, %v14425_v57 }
 0x6cf   :  { %9222 = vmatpush.bf16.msra.mxu0 %v14210_v3  ;;  %9237 = vmatpush.bf16.msra.mxu2 %v14258_v1  ;;  %9347 = vst [vmem:[#allocation1] ss:$4 sm:$0xff] %v9304_v6  ;;  %v14353_v3 = vld [vmem:[%s23143_s3 + $0x2d0] sm:$0xf]  ;;  %v14409_v6 = vld [vmem:[%s23143_s3 + $0x340] sm:$0xf] }
 0x6d0   :  { %9248 = vmatpush.bf16.msra.mxu1 %v14214_v48  ;;  %9263 = vmatpush.bf16.msrb.mxu3 %v14262_v31  ;;  %9350 = vst [vmem:[#allocation1 + $0x1] ss:$4 sm:$0xff] %v9316_v42  ;;  %v14417_v1 = vld [vmem:[%s23143_s3 + $0x350] sm:$0xf]  ;;  %v15574_v48 = vld [vmem:[%s23143_s3 + $0x2d4] sm:$0xf]  ;;  %v14354_v28 = vor.u32 %v15575_v4, %v14353_v3 }
 0x6d1   :  { %v14355_v31 = vld [vmem:[%s23143_s3 + $0x2d8] sm:$0xf0]  ;;  %v14418_v11 = vor.u32 %v15591_v14, %v14417_v1  ;;  %v15573_v42 = vld [vmem:[%s23143_s3 + $0x2c4] sm:$0xf0]  ;;  %v15571_v39 = vld [vmem:[%s23143_s3 + $0x2b4] sm:$0xf0] }
 0x6d2   :  { %v14358_v63 = vor.u32 %v15574_v48, %v14355_v31  ;;  %v14346_v46 = vor.u32 %v15573_v42, %v14345_v36  ;;  %v15570_v43 = vld [vmem:[%s23143_s3 + $0x2b4] sm:$0xf]  ;;  %v14339_v50 = vld [vmem:[%s23143_s3 + $0x2b8] sm:$0xf0]  ;;  %v9563_v56 = vld [vmem:[%s22997_s17] sm:$0x1] }
 0x6d3   :  { %9223 = vmatpush.bf16.msra.mxu0 %v14202_v12  ;;  %9238 = vmatpush.bf16.msra.mxu2 %v14250_v52  ;;  %v15572_v12 = vld [vmem:[%s23143_s3 + $0x2c4] sm:$0xf]  ;;  %v14347_v52 = vld [vmem:[%s23143_s3 + $0x2c8] sm:$0xf0]  ;;  %v14342_v17 = vor.u32 %v15570_v43, %v14339_v50  ;;  %v9561_v57 = vld [vmem:[%s22994_s14] sm:$0x3] }
 0x6d4   :  { %9249 = vmatpush.bf16.msra.mxu1 %v14206_v59  ;;  %9264 = vmatpush.bf16.msrb.mxu3 %v14254_v16  ;;  %v15588_v59 = vld [vmem:[%s23143_s3 + $0x344] sm:$0xf]  ;;  %v14411_v16 = vld [vmem:[%s23143_s3 + $0x348] sm:$0xf0]  ;;  %v9562_v30 = vpack.c.bf16 %v9561_v57, %v9561_v57  ;;  %v14494_v43 = vld [vmem:[%s23000_s20 + $0x70] sm:$0xf0] }
 0x6d5   :  { %v14414_v54 = vor.u32 %v15588_v59, %v14411_v16  ;;  %v14444_v59 = vld [vmem:[%s23000_s20] sm:$0xf]  ;;  %v14460_v50 = vld [vmem:[%s23000_s20 + $0x10] sm:$0xf] }
 0x6d6   :  { %v15600_v16 = vld [vmem:[%s23000_s20 + $0x1c] sm:$0xf0] }
 0x6d7   :  { %9496 = vmatpush.bf16.msrb.mxu2 %v14386_v15  ;;  %9224 = vmatpush.bf16.msra.mxu0 %v14194_v27  ;;  %v14350_v15 = vor.u32 %v15572_v12, %v14347_v52  ;;  %v15586_v27 = vld [vmem:[%s23143_s3 + $0x334] sm:$0xf]  ;;  %v9351_v53 = vld.sshfl [vmem:[#allocation1] sm:$0xff pattern:$0x73625140] }
 0x6d8   :  { %9522 = vmatpush.bf16.msra.mxu3 %v14390_v26  ;;  %9250 = vmatpush.bf16.msra.mxu1 %v14198_v61  ;;  %v14337_v26 = vld [vmem:[%s23143_s3 + $0x2b0] sm:$0xf]  ;;  %v14402_v61 = vor.u32 %v15587_v0, %v14401_v51  ;;  %v14406_v60 = vor.u32 %v15586_v27, %v14403_v35 }
 0x6d9   :  { %v14338_v23 = vor.u32 %v15571_v39, %v14337_v26  ;;  %v14492_v26 = vld [vmem:[%s23000_s20 + $0x50] sm:$0xf]  ;;  %v15606_v39 = vld [vmem:[%s23000_s20 + $0x54] sm:$0xf] }
 0x6da   :  { %v15610_v51 = vld [vmem:[%s23000_s20 + $0x6c] sm:$0xf0]  ;;  %v14497_v35 = vor.u32 %v15606_v39, %v14494_v43 }
 0x6db   :  { %9497 = vmatpush.bf16.msrb.mxu2 %v14378_v2  ;;  %9225 = vmatpush.bf16.msra.mxu0 %v14186_v41  ;;  %v14393_v2 = vld [vmem:[%s23143_s3 + $0x320] sm:$0xf] }
 0x6dc   :  { %9523 = vmatpush.bf16.msra.mxu3 %v14382_v37  ;;  %9251 = vmatpush.bf16.msra.mxu1 %v14190_v8  ;;  %v15585_v37 = vld [vmem:[%s23143_s3 + $0x324] sm:$0xf0]  ;;  %v14334_v8 = vor.u32 %v15568_v55, %v14331_v45  ;;  %v15605_v45 = vld [vmem:[%s23000_s20 + $0x4c] sm:$0xf] }
 0x6dd   :  { %14295 = vmatmul.msk.bf16.vlgmr.msra.gmra.mxu2 %vm8751_vm4, %v22145_v9  ;;  %v14394_v41 = vor.u32 %v15585_v37, %v14393_v2  ;;  %v14484_v37 = vld [vmem:[%s23000_s20 + $0x48] sm:$0xf] }
 0x6de   :  { %9226 = vmatmul.bf16.vlgmr.msra.gmra.mxu0 %v22143_v20  ;;  %14296 = vmatmul.msk.bf16.vlgmr.msrb.gmra.mxu3 %vm8751_vm4, %v22145_v9  ;;  %v14422_v9 = vor.u32 %v15590_v29, %v14419_v62 }
 0x6df   :  { %9511 = vmatpush.bf16.msrb.mxu0 %v14434_v58  ;;  %9498 = vmatpush.bf16.msrb.mxu2 %v14370_v25  ;;  %v14398_v58 = vor.u32 %v15584_v18, %v14395_v19  ;;  %v9569_v25 = vsel %vm112_vm0, %v9563_v56, 0  ;;  %v14486_v18 = vld [vmem:[%s23000_s20 + $0x68] sm:$0xf0]  ;;  %v14452_v19 = vld [vmem:[%s23000_s20 + $0x8] sm:$0xf]  ;;  %vm9692_vm0 = vcmask 261120  }
 0x6e0   :  { %9524 = vmatpush.bf16.msra.mxu3 %v14374_v32  ;;  %9537 = vmatpush.bf16.msrb.mxu1 %v14438_v40  ;;  %v9352_v32 = vld.sshfl [vmem:[#allocation1 + $0x8] sm:$0xff pattern:$0x73625140] }
 0x6e1   :  { %9252 = vmatmul.bf16.vlgmr.msra.gmra.mxu1 %v22143_v20  ;;  %v15589_v20 = vld [vmem:[%s23143_s3 + $0x344] sm:$0xf0] }
 0x6e2   :  { %v14410_v7 = vor.u32 %v15589_v20, %v14409_v6  ;;  %v14478_v6 = vld [vmem:[%s23000_s20 + $0x60] sm:$0xf0]  ;;  %v15601_v56 = vld [vmem:[%s23000_s20 + $0x24] sm:$0xf0] }
 0x6e3   :  { %9512 = vmatpush.bf16.msrb.mxu0 %v14426_v38  ;;  %9499 = vmatpush.bf16.msrb.mxu2 %v14362_v24 }
 0x6e4   :  { %9525 = vmatpush.bf16.msra.mxu3 %v14366_v47  ;;  %9538 = vmatpush.bf16.msrb.mxu1 %v14430_v5 }
 0x6e7   :  { %9513 = vmatpush.bf16.msrb.mxu0 %v14418_v11  ;;  %9500 = vmatpush.bf16.msrb.mxu2 %v14354_v28  ;;  %v14476_v11 = vld [vmem:[%s23000_s20 + $0x40] sm:$0xf] }
 0x6e8   :  { %9526 = vmatpush.bf16.msra.mxu3 %v14358_v63  ;;  %9539 = vmatpush.bf16.msrb.mxu1 %v14422_v9  ;;  %v15608_v28 = vld [vmem:[%s23000_s20 + $0x5c] sm:$0xf0]  ;;  %v15604_v63 = vld [vmem:[%s23000_s20 + $0x44] sm:$0xf] }
 0x6e9   :  { %v14477_v36 = vor.u32 %v15608_v28, %v14476_v11  ;;  %v14481_v20 = vor.u32 %v15604_v63, %v14478_v6 }
 0x6eb   :  { %9514 = vmatpush.bf16.msrb.mxu0 %v14410_v7  ;;  %9501 = vmatpush.bf16.msrb.mxu2 %v14346_v46  ;;  %v15596_v7 = vld [vmem:[%s23000_s20 + $0x4] sm:$0xf]  ;;  %v14445_v46 = vor.u32 %v15600_v16, %v14444_v59  ;;  %v14470_v59 = vld [vmem:[%s23000_s20 + $0x38] sm:$0xf0] }
 0x6ec   :  { %9527 = vmatpush.bf16.msra.mxu3 %v14350_v15  ;;  %9540 = vmatpush.bf16.msrb.mxu1 %v14414_v54  ;;  %v14446_v15 = vld [vmem:[%s23000_s20 + $0x20] sm:$0xf0]  ;;  %v14493_v54 = vor.u32 %v15610_v51, %v14492_v26 }
 0x6ed   :  { %v14449_v0 = vor.u32 %v15596_v7, %v14446_v15  ;;  %v15729_v15 = vld [vmem:[%s22998_s18] ss:$0 sm:$0xff] }
 0x6ef   :  { %9515 = vmatpush.bf16.msrb.mxu0 %v14402_v61  ;;  %9502 = vmatpush.bf16.msrb.mxu2 %v14338_v23  ;;  %v15602_v61 = vld [vmem:[%s23000_s20 + $0x2c] sm:$0xf0]  ;;  %v15598_v23 = vld [vmem:[%s23000_s20 + $0x14] sm:$0xf] }
 0x6f0   :  { %9528 = vmatpush.bf16.msra.mxu3 %v14342_v17  ;;  %9541 = vmatpush.bf16.msrb.mxu1 %v14406_v60  ;;  %v14462_v17 = vld [vmem:[%s23000_s20 + $0x30] sm:$0xf0]  ;;  %v14461_v2 = vor.u32 %v15602_v61, %v14460_v50  ;;  %v15609_v60 = vld [vmem:[%s23000_s20 + $0x64] sm:$0xf0] }
 0x6f1   :  { %v14465_v33 = vor.u32 %v15598_v23, %v14462_v17  ;;  %v14485_v55 = vor.u32 %v15609_v60, %v14484_v37 }
 0x6f3   :  { %9516 = vmatpush.bf16.msrb.mxu0 %v14394_v41  ;;  %9503 = vmatpush.bf16.msrb.mxu2 %v14330_v34  ;;  %v14489_v41 = vor.u32 %v15605_v45, %v14486_v18  ;;  %v15597_v34 = vld [vmem:[%s23000_s20 + $0xc] sm:$0xf]  ;;  %v15619_v45 = vld [vmem:[%s23003_s23 + $0x38] sm:$0xff]  ;;  %v15690_v18 = vld [vmem:[%s23003_s23 + $0x70] sm:$0xff] }
 0x6f4   :  { %9529 = vmatpush.bf16.msra.mxu3 %v14334_v8  ;;  %9542 = vmatpush.bf16.msrb.mxu1 %v14398_v58  ;;  %v14454_v8 = vld [vmem:[%s23000_s20 + $0x28] sm:$0xf0]  ;;  %v14453_v58 = vor.u32 %v15601_v56, %v14452_v19  ;;  %v15683_v19 = vld [vmem:[%s23003_s23 + $0x38] sm:$0xff]  ;;  %v15618_v56 = vld [vmem:[%s23003_s23 + $0x30] sm:$0xff] }
 0x6f6   :  { %14439 = vmatmul.msk.bf16.vlgmr.msrb.gmra.mxu0 %vm8751_vm4, %v9352_v32  ;;  %9504 = vmatmul.bf16.vlgmr.msrb.gmra.mxu2 %v9351_v53 }
 0x6f7   :  { %9578 = vmatpush.bf16.msra.mxu0 %v9569_v25  ;;  %9530 = vmatmul.bf16.vlgmr.msra.gmra.mxu3 %v9351_v53  ;;  %v14457_v25 = vor.u32 %v15597_v34, %v14454_v8  ;;  %v15689_v34 = vld [vmem:[%s23003_s23 + $0x68] sm:$0xff]  ;;  %v15682_v8 = vld [vmem:[%s23003_s23 + $0x30] sm:$0xff] }
 0x6f8   :  { %14440 = vmatmul.msk.bf16.vlgmr.msrb.gmra.mxu1 %vm8751_vm4, %v9352_v32  ;;  %9702 = vmatpush.bf16.msra.mxu2 %v14477_v36 }
 0x6f9   :  { %9715 = vmatpush.bf16.msra.mxu1 %v14481_v20  ;;  %9728 = vmatpush.bf16.msrb.mxu3 %v14485_v55  ;;  %v14502_v20 = vld [vmem:[%s23000_s20 + $0x78] sm:$0xf0] }
 0x6fa   :  { %v15627_v55 = vld [vmem:[%s23003_s23 + $0x78] sm:$0xff] }
 0x6fb   :  { %9741 = vmatpush.bf16.msrb.mxu0 %v14489_v41  ;;  %v15626_v41 = vld [vmem:[%s23003_s23 + $0x70] sm:$0xff] }
 0x6fc   :  { %9703 = vmatpush.bf16.msra.mxu2 %v14445_v46 }
 0x6fd   :  { %9716 = vmatpush.bf16.msra.mxu1 %v14449_v0  ;;  %9729 = vmatpush.bf16.msrb.mxu3 %v14453_v58  ;;  %v15625_v58 = vld [vmem:[%s23003_s23 + $0x68] sm:$0xff] }
 0x6ff   :  { %9742 = vmatpush.bf16.msrb.mxu0 %v14457_v25  ;;  %v15617_v25 = vld [vmem:[%s23003_s23 + $0x28] sm:$0xff] }
 0x700   :  { %9754 = vmatpush.bf16.msrb.mxu2 %v14493_v54  ;;  %v15730_v54 = vld [vmem:[%s22999_s19] ss:$0 sm:$0xff] }
 0x701   :  { %9767 = vmatpush.bf16.msrb.mxu1 %v14497_v35 }
 0x704   :  { %9755 = vmatpush.bf16.msrb.mxu2 %v14461_v2 }
 0x705   :  { %9768 = vmatpush.bf16.msrb.mxu1 %v14465_v33  ;;  %v15691_v33 = vld [vmem:[%s23003_s23 + $0x78] sm:$0xff] }
 0x706   :  { %14441 = vmatmul.msk.bf16.vlgmr.msra.gmra.mxu0 %vm9564_vm6, %v9562_v30 }
 0x73a   :  { %v22344_v40 = vpop.f32.mrf.mxu0 }
 0x73b   :  { %v22346_v22 = vpop.f32.mrf.mxu1 }
 0x740   :  { %v22348_v21 = vpop.f32.mrf.mxu2 }
 0x741   :  { %v22350_v44 = vpop.f32.mrf.mxu3  ;;  %v8777_v32 = vadd.f32 %v22348_v21, %v22344_v40 }
 0x742   :  { %v8765_v10 = vpop.f32.mrf.mxu0  ;;  %v8803_v53 = vadd.f32 %v22346_v22, %v22350_v44 }
 0x743   :  { %v8804_v13 = vpop.f32.mrf.mxu1 }
 0x748   :  { %v8778_v38 = vpop.f32.mrf.mxu2 }
 0x749   :  { %v8791_v24 = vpop.f32.mrf.mxu3 }
 0x74a   :  { %v22352_v47 = vpop.f32.mrf.mxu0 }
 0x74b   :  { %v22354_v3 = vpop.f32.mrf.mxu1 }
 0x750   :  { %v22356_v1 = vpop.f32.mrf.mxu2 }
 0x751   :  { %v22358_v14 = vpop.f32.mrf.mxu3  ;;  %v8964_v30 = vadd.f32 %v22356_v1, %v8777_v32  ;;  %v15688_v32 = vld [vmem:[%s23003_s23 + $0x60] sm:$0xff] }
 0x752   :  { %v8978_v5 = vpop.f32.mrf.mxu0  ;;  %v8990_v10 = vadd.f32 %v22358_v14, %v8803_v53  ;;  %v15681_v53 = vld [vmem:[%s23003_s23 + $0x28] sm:$0xff] }
 0x753   :  { %v9004_v4 = vpop.f32.mrf.mxu1  ;;  %v8482_v5 = vld [vmem:[%s23162_s29] sm:$0x3]  ;;  %v8977_v40 = vadd.f32 %v22352_v47, %v8964_v30  ;;  %v15607_v47 = vld [vmem:[%s23000_s20 + $0x5c] sm:$0xf] }
 0x754   :  { %v9003_v21 = vadd.f32 %v22354_v3, %v8990_v10  ;;  %v9551_v44 = vperm.slane %v8482_v5, 0  ;;  %v15616_v30 = vld [vmem:[%s23003_s23 + $0x20] sm:$0xff]  ;;  %v15687_v10 = vld [vmem:[%s23003_s23 + $0x58] sm:$0xff] }
 0x758   :  { %v8965_v48 = vpop.f32.mrf.mxu2 }
 0x759   :  { %v8991_v31 = vpop.f32.mrf.mxu3  ;;  %v9552_v48 = vperm.slane %v8482_v5, 1  ;;  %v15615_v5 = vld [vmem:[%s23003_s23 + $0x18] sm:$0xff] }
 0x75b   :  { %v9227_v29 = vpop.f32.mrf.mxu0 }
 0x75e   :  { %v9253_v62 = vpop.f32.mrf.mxu1 }
 0x760   :  { %v9240_v9 = vpop.f32.mrf.mxu2 }
 0x761   :  { %v9266_v42 = vpop.f32.mrf.mxu3  ;;  %v9241_v38 = vadd.f32 %v9240_v9, %v9227_v29  ;;  %v14500_v29 = vld [vmem:[%s23000_s20 + $0x58] sm:$0xf] }
 0x762   :  { %v9267_v24 = vadd.f32 %v9266_v42, %v9253_v62  ;;  %v15611_v62 = vld [vmem:[%s23000_s20 + $0x74] sm:$0xf0] }
 0x763   :  { %v9229_v12 = vpop.f32.mrf.mxu0  ;;  %v9270_v1 = vadd.f32 %v9241_v38, %v8977_v40  ;;  %v14501_v6 = vor.u32 %v15611_v62, %v14500_v29  ;;  %v14468_v9 = vld [vmem:[%s23000_s20 + $0x18] sm:$0xf]  ;;  %v9996_v38 = vld [vmem:[%s22993_s13] sm:$0x1]  ;;  %v15686_v40 = vld [vmem:[%s23003_s23 + $0x50] sm:$0xff] }
 0x764   :  { %v9271_v31 = vadd.f32 %v9267_v24, %v9003_v21  ;;  %v15603_v42 = vld [vmem:[%s23000_s20 + $0x34] sm:$0xf0]  ;;  %v14505_v12 = vor.u32 %v15607_v47, %v14502_v20  ;;  %v15650_v29 = vld [vmem:[%s23003_s23 + $0x130] sm:$0xff]  ;;  %v15657_v62 = vld [vmem:[%s23003_s23 + $0x168] sm:$0xff] }
 0x765   :  { %9780 = vmatpush.bf16.msra.mxu3 %v14501_v6  ;;  %v14469_v16 = vor.u32 %v15603_v42, %v14468_v9  ;;  %v15623_v24 = vld [vmem:[%s23003_s23 + $0x58] sm:$0xff]  ;;  %v15649_v47 = vld [vmem:[%s23003_s23 + $0x128] sm:$0xff]  ;;  %v15654_v6 = vld [vmem:[%s23003_s23 + $0x150] sm:$0xff] }
 0x766   :  { %v9255_v52 = vpop.f32.mrf.mxu1  ;;  %9793 = vmatpush.bf16.msra.mxu0 %v14505_v12  ;;  %v15679_v21 = vld [vmem:[%s23003_s23 + $0x18] sm:$0xff]  ;;  %v15685_v20 = vld [vmem:[%s23003_s23 + $0x48] sm:$0xff]  ;;  %v15678_v42 = vld [vmem:[%s23003_s23 + $0x10] sm:$0xff] }
 0x767   :  { %v15599_v52 = vld [vmem:[%s23000_s20 + $0x1c] sm:$0xf]  ;;  %v15653_v12 = vld [vmem:[%s23003_s23 + $0x148] sm:$0xff]  ;;  %s11218_s20 = sshll.u32 %s23007_s27, 4  ;;  %s11219_s20 = int_to_ptr.hbm [resolvable:$true] %s11218_s20 }
 0x768   :  { %v9242_v27 = vpop.f32.mrf.mxu2  ;;  %v14473_v26 = vor.u32 %v15599_v52, %v14470_v59  ;;  %v15647_v9 = vld [vmem:[%s23003_s23 + $0x118] sm:$0xff]  ;;  %v15684_v52 = vld [vmem:[%s23003_s23 + $0x40] sm:$0xff] }
 0x769   :  { %v9268_v49 = vpop.f32.mrf.mxu3  ;;  %9781 = vmatpush.bf16.msra.mxu3 %v14469_v16  ;;  %v15643_v59 = vld [vmem:[%s23003_s23 + $0xf8] sm:$0xff]  ;;  %v15646_v16 = vld [vmem:[%s23003_s23 + $0x110] sm:$0xff] }
 0x76a   :  { %9794 = vmatpush.bf16.msra.mxu0 %v14473_v26  ;;  %v15645_v26 = vld [vmem:[%s23003_s23 + $0x108] sm:$0xff] }
 0x773   :  { %v9518_v57 = vpop.f32.mrf.mxu0 }
 0x775   :  { %v9544_v13 = vpop.f32.mrf.mxu1 }
 0x779   :  { %v9505_v22 = vpop.f32.mrf.mxu2 }
 0x77a   :  { %v9531_v4 = vpop.f32.mrf.mxu3  ;;  %v9519_v14 = vadd.f32 %v9518_v57, %v9505_v22  ;;  %v15624_v57 = vld [vmem:[%s23003_s23 + $0x60] sm:$0xff]  ;;  %v15622_v22 = vld [vmem:[%s23003_s23 + $0x50] sm:$0xff] }
 0x77b   :  { %v9545_v11 = vadd.f32 %v9544_v13, %v9531_v4  ;;  %v9520_v28 = vpop.f32.mrf.mxu0  ;;  %v15680_v13 = vld [vmem:[%s23003_s23 + $0x20] sm:$0xff]  ;;  %v15621_v4 = vld [vmem:[%s23003_s23 + $0x48] sm:$0xff] }
 0x77c   :  { %v9548_v3 = vadd.f32 %v9519_v14, %v9270_v1  ;;  %v15620_v1 = vld [vmem:[%s23003_s23 + $0x40] sm:$0xff]  ;;  %v15659_v14 = vld [vmem:[%s23003_s23 + $0x178] sm:$0xff]  ;;  %v15658_v28 = vld [vmem:[%s23003_s23 + $0x170] sm:$0xff] }
 0x77d   :  { %v9549_v63 = vadd.f32 %v9545_v11, %v9271_v31  ;;  %v9546_v36 = vpop.f32.mrf.mxu1  ;;  %v15612_v31 = vld [vmem:[%s23003_s23] sm:$0xff]  ;;  %v15651_v11 = vld [vmem:[%s23003_s23 + $0x138] sm:$0xff] }
 0x77e   :  { %v9555_v7 = vadd.f32 %v9551_v44, %v9548_v3  ;;  %v15614_v44 = vld [vmem:[%s23003_s23 + $0x10] sm:$0xff]  ;;  %v15656_v3 = vld [vmem:[%s23003_s23 + $0x160] sm:$0xff]  ;;  %v15655_v36 = vld [vmem:[%s23003_s23 + $0x158] sm:$0xff] }
 0x77f   :  { %v9556_v46 = vadd.f32 %v9552_v48, %v9549_v63  ;;  %v15613_v48 = vld [vmem:[%s23003_s23 + $0x8] sm:$0xff]  ;;  %v15648_v63 = vld [vmem:[%s23003_s23 + $0x120] sm:$0xff] }
 0x780   :  { %v9557_v43 = vmax.f32 %v9555_v7, 0.0  ;;  %v15677_v7 = vld [vmem:[%s23003_s23 + $0x8] sm:$0xff] }
 0x781   :  { %v9507_v51 = vpop.f32.mrf.mxu2  ;;  %v9558_v50 = vmax.f32 %v9556_v46, 0.0  ;;  %v15652_v46 = vld [vmem:[%s23003_s23 + $0x140] sm:$0xff] }
 0x782   :  { %v9533_v0 = vpop.f32.mrf.mxu3  ;;  %v9559_v23 = vpack.c.bf16 %v9557_v43, %v9557_v43  ;;  %v15676_v51 = vld [vmem:[%s23003_s23] sm:$0xff]  ;;  %v15634_v43 = vld [vmem:[%s23003_s23 + $0xb0] sm:$0xff] }
 0x783   :  { %v9580_v39 = vpop.f32.mrf.mxu0  ;;  %v9560_v17 = vpack.c.bf16 %v9558_v50, %v9558_v50  ;;  %v15635_v0 = vld [vmem:[%s23003_s23 + $0xb8] sm:$0xff]  ;;  %v15640_v50 = vld [vmem:[%s23003_s23 + $0xe0] sm:$0xff] }
 0x784   :  { %v9588_v27 = vmul.f32 %v15729_v15, %v9580_v39  ;;  %v22476_v37 = vsel %vm8469_vm1, %v9559_v23, 0  ;;  %v15642_v15 = vld [vmem:[%s23003_s23 + $0xf0] sm:$0xff]  ;;  %v15644_v39 = vld [vmem:[%s23003_s23 + $0x100] sm:$0xff] }
 0x785   :  { %v22479_v60 = vsel %vm8469_vm1, %v9560_v17, 0  ;;  %vm9997_vm1 = vcmask 64512   ;;  %v15639_v17 = vld [vmem:[%s23003_s23 + $0xd8] sm:$0xff] }
 0x786   :  { %v9593_v35 = vadd.f32 %v15730_v54, %v9588_v27  ;;  %v15641_v54 = vld [vmem:[%s23003_s23 + $0xe8] sm:$0xff] }
 0x787   :  { %v15633_v27 = vld [vmem:[%s23003_s23 + $0xa8] sm:$0xff] }
 0x788   :  { %v9594_v61 = vmax.f32 %v9593_v35, 0.0  ;;  %v22662_v35 = vld [vmem:[%s23001_s21] sm:$0xff] }
 0x789   :  { %v9803_v23 = vperm.slane %v22662_v35, 1 }
 0x78a   :  { %v9595_v49 = vpack.c.bf16 %v9594_v61, %v9594_v61  ;;  %v22667_v61 = vld [vmem:[%s23002_s22] sm:$0xff] }
 0x78b   :  { %v9582_v2 = vpop.f32.mrf.mxu0 }
 0x78c   :  { %14506 = vmatmul.msk.bf16.vlgmr.msra.gmra.mxu2 %vm9692_vm0, %v9595_v49  ;;  %14507 = vmatmul.msk.bf16.vlgmr.msra.gmra.mxu1 %vm9692_vm0, %v9595_v49  ;;  %v9829_v2 = vperm.slane %v22667_v61, 1 }
 0x78d   :  { %10015 = vmatpush.bf16.msra.mxu2 %v22476_v37  ;;  %10028 = vmatpush.bf16.msra.mxu1 %v22479_v60 }
 0x78e   :  { %14508 = vmatmul.msk.bf16.vlgmr.msrb.gmra.mxu3 %vm9692_vm0, %v9595_v49  ;;  %14509 = vmatmul.msk.bf16.vlgmr.msrb.gmra.mxu0 %vm9692_vm0, %v9595_v49 }
 0x78f   :  { %10177 = vmatpush.bf16.msrb.mxu0 %v15691_v33  ;;  %10164 = vmatpush.bf16.msrb.mxu3 %v15683_v19  ;;  %v15638_v33 = vld [vmem:[%s23003_s23 + $0xd0] sm:$0xff] }
 0x793   :  { %10178 = vmatpush.bf16.msrb.mxu0 %v15690_v18  ;;  %10165 = vmatpush.bf16.msrb.mxu3 %v15682_v8  ;;  %v15631_v18 = vld [vmem:[%s23003_s23 + $0x98] sm:$0xff] }
 0x797   :  { %10179 = vmatpush.bf16.msrb.mxu0 %v15689_v34  ;;  %10166 = vmatpush.bf16.msrb.mxu3 %v15681_v53  ;;  %v15637_v34 = vld [vmem:[%s23003_s23 + $0xc8] sm:$0xff] }
 0x79b   :  { %10180 = vmatpush.bf16.msrb.mxu0 %v15688_v32  ;;  %10167 = vmatpush.bf16.msrb.mxu3 %v15680_v13 }
 0x79c   :  { %14510 = vmatmul.msk.bf16.vlgmr.msrb.gmra.mxu2 %vm9692_vm0, %v9595_v49  ;;  %14511 = vmatmul.msk.bf16.vlgmr.msrb.gmra.mxu1 %vm9692_vm0, %v9595_v49 }
 0x79d   :  { %10587 = vmatpush.bf16.msrb.mxu1 %v15627_v55  ;;  %10574 = vmatpush.bf16.msrb.mxu2 %v15619_v45 }
 0x79e   :  { %14512 = vmatmul.msk.bf16.vlgmr.msra.gmra.mxu3 %vm9692_vm0, %v9595_v49  ;;  %14513 = vmatmul.msk.bf16.vlgmr.msra.gmra.mxu0 %vm9692_vm0, %v9595_v49  ;;  %v15632_v49 = vld [vmem:[%s23003_s23 + $0xa0] sm:$0xff] }
 0x79f   :  { %10181 = vmatpush.bf16.msrb.mxu0 %v15687_v10  ;;  %10168 = vmatpush.bf16.msrb.mxu3 %v15679_v21 }
 0x7a1   :  { %10588 = vmatpush.bf16.msrb.mxu1 %v15626_v41  ;;  %10575 = vmatpush.bf16.msrb.mxu2 %v15618_v56  ;;  %v9802_v56 = vperm.slane %v22662_v35, 0 }
 0x7a3   :  { %10182 = vmatpush.bf16.msrb.mxu0 %v15686_v40  ;;  %10169 = vmatpush.bf16.msrb.mxu3 %v15678_v42 }
 0x7a5   :  { %10589 = vmatpush.bf16.msrb.mxu1 %v15625_v58  ;;  %10576 = vmatpush.bf16.msrb.mxu2 %v15617_v25  ;;  %v9828_v58 = vperm.slane %v22667_v61, 0  ;;  %v15630_v25 = vld [vmem:[%s23003_s23 + $0x90] sm:$0xff] }
 0x7a7   :  { %10183 = vmatpush.bf16.msrb.mxu0 %v15685_v20  ;;  %10170 = vmatpush.bf16.msrb.mxu3 %v15677_v7 }
 0x7a9   :  { %10590 = vmatpush.bf16.msrb.mxu1 %v15624_v57  ;;  %10577 = vmatpush.bf16.msrb.mxu2 %v15616_v30  ;;  %v15636_v30 = vld [vmem:[%s23003_s23 + $0xc0] sm:$0xff] }
 0x7ab   :  { %10184 = vmatpush.bf16.msrb.mxu0 %v15684_v52  ;;  %10171 = vmatpush.bf16.msrb.mxu3 %v15676_v51 }
 0x7ac   :  { %14514 = vmatmul.msk.bf16.vlgmr.msra.gmra.mxu2 %vm9997_vm1, %v9996_v38  ;;  %14515 = vmatmul.msk.bf16.vlgmr.msra.gmra.mxu1 %vm9997_vm1, %v9996_v38 }
 0x7ad   :  { %10591 = vmatpush.bf16.msrb.mxu1 %v15623_v24  ;;  %10578 = vmatpush.bf16.msrb.mxu2 %v15615_v5  ;;  %v15629_v24 = vld [vmem:[%s23003_s23 + $0x88] sm:$0xff] }
 0x7af   :  { %10613 = vmatpush.bf16.msra.mxu0 %v15643_v59  ;;  %10600 = vmatpush.bf16.msra.mxu3 %v15635_v0 }
 0x7b1   :  { %10592 = vmatpush.bf16.msrb.mxu1 %v15622_v22  ;;  %10579 = vmatpush.bf16.msrb.mxu2 %v15614_v44  ;;  %v9807_v22 = vperm.slane %v22662_v35, 5  ;;  %v15628_v44 = vld [vmem:[%s23003_s23 + $0x80] sm:$0xff] }
 0x7b3   :  { %10614 = vmatpush.bf16.msra.mxu0 %v15642_v15  ;;  %10601 = vmatpush.bf16.msra.mxu3 %v15634_v43  ;;  %v22731_v43 = vld [vmem:[%s23003_s23 + $0x1f8] sm:$0xff] }
 0x7b5   :  { %10593 = vmatpush.bf16.msrb.mxu1 %v15621_v4  ;;  %10580 = vmatpush.bf16.msrb.mxu2 %v15613_v48  ;;  %v9833_v48 = vperm.slane %v22667_v61, 5 }
 0x7b7   :  { %10615 = vmatpush.bf16.msra.mxu0 %v15641_v54  ;;  %10602 = vmatpush.bf16.msra.mxu3 %v15633_v27  ;;  %v15705_v54 = vld [vmem:[%s23003_s23 + $0xe8] sm:$0xff] }
 0x7b9   :  { %10594 = vmatpush.bf16.msrb.mxu1 %v15620_v1  ;;  %10581 = vmatpush.bf16.msrb.mxu2 %v15612_v31 }
 0x7bb   :  { %10616 = vmatpush.bf16.msra.mxu0 %v15640_v50  ;;  %10603 = vmatpush.bf16.msra.mxu3 %v15632_v49  ;;  %v15698_v50 = vld [vmem:[%s23003_s23 + $0xb0] sm:$0xff]  ;;  %v15704_v49 = vld [vmem:[%s23003_s23 + $0xe0] sm:$0xff] }
 0x7bd   :  { %10639 = vmatpush.bf16.msra.mxu1 %v15659_v14  ;;  %10626 = vmatpush.bf16.msra.mxu2 %v15651_v11 }
 0x7bf   :  { %10617 = vmatpush.bf16.msra.mxu0 %v15639_v17  ;;  %10604 = vmatpush.bf16.msra.mxu3 %v15631_v18 }
 0x7c1   :  { %10640 = vmatpush.bf16.msra.mxu1 %v15658_v28  ;;  %10627 = vmatpush.bf16.msra.mxu2 %v15650_v29  ;;  %v9806_v29 = vperm.slane %v22662_v35, 4 }
 0x7c3   :  { %10618 = vmatpush.bf16.msra.mxu0 %v15638_v33  ;;  %10605 = vmatpush.bf16.msra.mxu3 %v15630_v25  ;;  %v15697_v33 = vld [vmem:[%s23003_s23 + $0xa8] sm:$0xff]  ;;  %v14836_v25 = vld [vmem:[%s22993_s13 + $0x1] sm:$0x1] }
 0x7c5   :  { %10641 = vmatpush.bf16.msra.mxu1 %v15657_v62  ;;  %10628 = vmatpush.bf16.msra.mxu2 %v15649_v47  ;;  %v9832_v47 = vperm.slane %v22667_v61, 4 }
 0x7c7   :  { %10619 = vmatpush.bf16.msra.mxu0 %v15637_v34  ;;  %10606 = vmatpush.bf16.msra.mxu3 %v15629_v24  ;;  %v9804_v34 = vperm.slane %v22662_v35, 2  ;;  %v22788_v24 = vld [vmem:[%s23003_s23 + $0x1e0] sm:$0xff] }
 0x7c9   :  { %10642 = vmatpush.bf16.msra.mxu1 %v15656_v3  ;;  %10629 = vmatpush.bf16.msra.mxu2 %v15648_v63  ;;  %v9808_v3 = vperm.slane %v22662_v35, 6 }
 0x7cb   :  { %10620 = vmatpush.bf16.msra.mxu0 %v15636_v30  ;;  %10607 = vmatpush.bf16.msra.mxu3 %v15628_v44  ;;  %v15702_v30 = vld [vmem:[%s23003_s23 + $0xd0] sm:$0xff] }
 0x7cd   :  { %10643 = vmatpush.bf16.msra.mxu1 %v15655_v36  ;;  %10630 = vmatpush.bf16.msra.mxu2 %v15647_v9  ;;  %v15707_v36 = vld [vmem:[%s23003_s23 + $0xf8] sm:$0xff]  ;;  %v9834_v9 = vperm.slane %v22667_v61, 6 }
 0x7d1   :  { %10644 = vmatpush.bf16.msra.mxu1 %v15654_v6  ;;  %10631 = vmatpush.bf16.msra.mxu2 %v15646_v16  ;;  %v15706_v16 = vld [vmem:[%s23003_s23 + $0xf0] sm:$0xff] }
 0x7d5   :  { %10645 = vmatpush.bf16.msra.mxu1 %v15653_v12  ;;  %10632 = vmatpush.bf16.msra.mxu2 %v15645_v26  ;;  %v15699_v26 = vld [vmem:[%s23003_s23 + $0xb8] sm:$0xff] }
 0x7d9   :  { %10646 = vmatpush.bf16.msra.mxu1 %v15652_v46  ;;  %10633 = vmatpush.bf16.msra.mxu2 %v15644_v39 }
 0x809   :  { %v9718_v55 = vpop.f32.mrf.mxu1 }
 0x80a   :  { %v9819_v45 = vmul.f32 %v9803_v23, %v9718_v55  ;;  %v9805_v23 = vperm.slane %v22662_v35, 3 }
 0x80b   :  { %v22683_v19 = vpop.f32.mrf.mxu0 }
 0x80c   :  { %v9845_v41 = vadd.f32 %v9829_v2, %v9819_v45  ;;  %v22744_v2 = vld [vmem:[%s23003_s23 + $0x1f0] sm:$0xff]  ;;  %v9821_v55 = vmul.f32 %v9805_v23, %v22683_v19  ;;  %v9831_v45 = vperm.slane %v22667_v61, 3  ;;  %v22764_v19 = vld [vmem:[%s23003_s23 + $0x1e8] sm:$0xff]  ;;  %v15723_v23 = vld [vmem:[%s23003_s23 + $0x178] sm:$0xff] }
 0x80e   :  { %v9853_v8 = vmax.f32 %v9845_v41, 0.0  ;;  %v22754_v41 = vld [vmem:[%s23003_s23 + $0x1b8] sm:$0xff] }
 0x80f   :  { %v9705_v32 = vpop.f32.mrf.mxu2 }
 0x810   :  { %v9861_v53 = vpack.c.bf16 %v9853_v8, %v9853_v8  ;;  %v9818_v57 = vmul.f32 %v9802_v56, %v9705_v32  ;;  %v15703_v56 = vld [vmem:[%s23003_s23 + $0xd8] sm:$0xff] }
 0x811   :  { %v9720_v10 = vpop.f32.mrf.mxu1  ;;  %v22696_v13 = vpop.f32.mrf.mxu3 }
 0x812   :  { %v9844_v38 = vadd.f32 %v9828_v58, %v9818_v57  ;;  %10595 = vmatmul.bf16.vlgmr.msrb.gmra.mxu1 %v9861_v53  ;;  %v15696_v58 = vld [vmem:[%s23003_s23 + $0xa0] sm:$0xff]  ;;  %v9847_v53 = vadd.f32 %v9831_v45, %v9821_v55  ;;  %v22777_v57 = vld [vmem:[%s23003_s23 + $0x1b0] sm:$0xff]  ;;  %v9820_v10 = vmul.f32 %v9804_v34, %v22696_v13  ;;  %v22797_v13 = vld [vmem:[%s23003_s23 + $0x1a8] sm:$0xff] }
 0x813   :  { %10703 = vmatpush.bf16.msrb.mxu1 %v22479_v60  ;;  %v9746_v5 = vpop.f32.mrf.mxu0  ;;  %v15713_v55 = vld [vmem:[%s23003_s23 + $0x128] sm:$0xff]  ;;  %v15722_v45 = vld [vmem:[%s23003_s23 + $0x170] sm:$0xff] }
 0x814   :  { %v9852_v40 = vmax.f32 %v9844_v38, 0.0  ;;  %v9830_v38 = vperm.slane %v22667_v61, 2  ;;  %v15695_v5 = vld [vmem:[%s23003_s23 + $0x98] sm:$0xff] }
 0x816   :  { %v9860_v21 = vpack.c.bf16 %v9852_v40, %v9852_v40  ;;  %v9855_v40 = vmax.f32 %v9847_v53, 0.0  ;;  %v9846_v44 = vadd.f32 %v9830_v38, %v9820_v10 }
 0x817   :  { %v9707_v4 = vpop.f32.mrf.mxu2 }
 0x818   :  { %10582 = vmatmul.bf16.vlgmr.msrb.gmra.mxu2 %v9860_v21  ;;  %v15701_v21 = vld [vmem:[%s23003_s23 + $0xc8] sm:$0xff]  ;;  %v22807_v4 = vld [vmem:[%s23003_s23 + $0x1d8] sm:$0xff] }
 0x819   :  { %10690 = vmatpush.bf16.msrb.mxu2 %v22476_v37  ;;  %v9770_v1 = vpop.f32.mrf.mxu1  ;;  %v9733_v31 = vpop.f32.mrf.mxu3 }
 0x81a   :  { %v9823_v14 = vmul.f32 %v9807_v22, %v9770_v1  ;;  %v9863_v1 = vpack.c.bf16 %v9855_v40, %v9855_v40  ;;  %v9809_v31 = vperm.slane %v22662_v35, 7  ;;  %v22826_v35 = vld [vmem:[%s23003_s23 + $0x1d0] sm:$0xff] }
 0x81b   :  { %v22708_v11 = vpop.f32.mrf.mxu0  ;;  %v15710_v40 = vld [vmem:[%s23003_s23 + $0x110] sm:$0xff] }
 0x81c   :  { %v9849_v28 = vadd.f32 %v9833_v48, %v9823_v14  ;;  %v15694_v48 = vld [vmem:[%s23003_s23 + $0x90] sm:$0xff]  ;;  %v22817_v14 = vld [vmem:[%s23003_s23 + $0x1a0] sm:$0xff] }
 0x81e   :  { %v9857_v62 = vmax.f32 %v9849_v28, 0.0  ;;  %v15700_v28 = vld [vmem:[%s23003_s23 + $0xc0] sm:$0xff] }
 0x81f   :  { %v9757_v63 = vpop.f32.mrf.mxu2 }
 0x820   :  { %v9865_v6 = vpack.c.bf16 %v9857_v62, %v9857_v62  ;;  %v9822_v20 = vmul.f32 %v9806_v29, %v9757_v63  ;;  %v9854_v29 = vmax.f32 %v9846_v44, 0.0  ;;  %v15693_v62 = vld [vmem:[%s23003_s23 + $0x88] sm:$0xff]  ;;  %v22837_v63 = vld [vmem:[%s23003_s23 + $0x198] sm:$0xff] }
 0x821   :  { %v9772_v42 = vpop.f32.mrf.mxu1  ;;  %v9783_v12 = vpop.f32.mrf.mxu3  ;;  %v15709_v44 = vld [vmem:[%s23003_s23 + $0x108] sm:$0xff] }
 0x822   :  { %v9848_v52 = vadd.f32 %v9832_v47, %v9822_v20  ;;  %10647 = vmatmul.bf16.vlgmr.msra.gmra.mxu1 %v9865_v6  ;;  %v9824_v59 = vmul.f32 %v9808_v3, %v9783_v12  ;;  %v9825_v47 = vmul.f32 %v9809_v31, %v22708_v11  ;;  %v9835_v3 = vperm.slane %v22667_v61, 7  ;;  %v22844_v11 = vld [vmem:[%s23003_s23 + $0x1c8] sm:$0xff]  ;;  %v15692_v61 = vld [vmem:[%s23003_s23 + $0x80] sm:$0xff]  ;;  %v22853_v20 = vld [vmem:[%s23003_s23 + $0x190] sm:$0xff] }
 0x823   :  { %10852 = vmatpush.bf16.msra.mxu1 %v15707_v36  ;;  %v9798_v7 = vpop.f32.mrf.mxu0  ;;  %v9862_v36 = vpack.c.bf16 %v9854_v29, %v9854_v29  ;;  %v22866_v12 = vld [vmem:[%s23003_s23 + $0x188] sm:$0xff]  ;;  %v15708_v31 = vld [vmem:[%s23003_s23 + $0x100] sm:$0xff] }
 0x824   :  { %v9856_v46 = vmax.f32 %v9848_v52, 0.0  ;;  %v22720_v15 = vadd.f32 %v9834_v9, %v9824_v59  ;;  %v9851_v6 = vadd.f32 %v9835_v3, %v9825_v47  ;;  %v22859_v9 = vld [vmem:[%s23003_s23 + $0x1c0] sm:$0xff] }
 0x825   :  { %v22874_v59 = vld [vmem:[%s23003_s23 + $0x180] sm:$0xff] }
 0x826   :  { %v9864_v51 = vpack.c.bf16 %v9856_v46, %v9856_v46  ;;  %v9859_v42 = vmax.f32 %v9851_v6, 0.0 }
 0x827   :  { %10853 = vmatpush.bf16.msra.mxu1 %v15706_v16  ;;  %v9759_v0 = vpop.f32.mrf.mxu2  ;;  %v9858_v16 = vmax.f32 %v22720_v15, 0.0 }
 0x828   :  { %10634 = vmatmul.bf16.vlgmr.msra.gmra.mxu2 %v9864_v51  ;;  %v9867_v52 = vpack.c.bf16 %v9859_v42, %v9859_v42 }
 0x829   :  { %10839 = vmatpush.bf16.msra.mxu2 %v15699_v26  ;;  %v10030_v39 = vpop.f32.mrf.mxu1  ;;  %v9785_v27 = vpop.f32.mrf.mxu3  ;;  %v9866_v7 = vpack.c.bf16 %v9858_v16, %v9858_v16 }
 0x82a   :  { %v10035_v17 = vpack.c.bf16 %v10030_v39, %v10030_v39  ;;  %v15714_v27 = vld [vmem:[%s23003_s23 + $0x130] sm:$0xff] }
 0x82b   :  { %10854 = vmatpush.bf16.msra.mxu1 %v15705_v54 }
 0x82c   :  { %10185 = vmatmul.bf16.vlgmr.msrb.gmra.mxu0 %v10035_v17 }
 0x82d   :  { %10665 = vmatpush.bf16.msrb.mxu0 %v22731_v43  ;;  %10840 = vmatpush.bf16.msra.mxu2 %v15698_v50 }
 0x82f   :  { %10855 = vmatpush.bf16.msra.mxu1 %v15704_v49  ;;  %v10017_v18 = vpop.f32.mrf.mxu2 }
 0x830   :  { %v10034_v8 = vpack.c.bf16 %v10017_v18, %v10017_v18 }
 0x831   :  { %10666 = vmatpush.bf16.msrb.mxu0 %v22744_v2  ;;  %10841 = vmatpush.bf16.msra.mxu2 %v15697_v33  ;;  %v10032_v32 = vpop.f32.mrf.mxu1 }
 0x832   :  { %10172 = vmatmul.bf16.vlgmr.msrb.gmra.mxu3 %v10034_v8  ;;  %14838 = vmatmul.msk.bf16.vlgmr.msrb.gmra.mxu1 %vm9997_vm1, %v14836_v25  ;;  %v15721_v32 = vld [vmem:[%s23003_s23 + $0x168] sm:$0xff] }
 0x833   :  { %10652 = vmatpush.bf16.msrb.mxu3 %v22754_v41  ;;  %10856 = vmatpush.bf16.msra.mxu1 %v15703_v56 }
 0x835   :  { %10667 = vmatpush.bf16.msrb.mxu0 %v22764_v19  ;;  %10842 = vmatpush.bf16.msra.mxu2 %v15696_v58 }
 0x837   :  { %10653 = vmatpush.bf16.msrb.mxu3 %v22777_v57  ;;  %10857 = vmatpush.bf16.msra.mxu1 %v15702_v30  ;;  %v10019_v22 = vpop.f32.mrf.mxu2 }
 0x838   :  { %14837 = vmatmul.msk.bf16.vlgmr.msrb.gmra.mxu2 %vm9997_vm1, %v14836_v25  ;;  %v15712_v25 = vld [vmem:[%s23003_s23 + $0x120] sm:$0xff] }
 0x839   :  { %10668 = vmatpush.bf16.msrb.mxu0 %v22788_v24  ;;  %10843 = vmatpush.bf16.msra.mxu2 %v15695_v5 }
 0x83b   :  { %10654 = vmatpush.bf16.msrb.mxu3 %v22797_v13  ;;  %10858 = vmatpush.bf16.msra.mxu1 %v15701_v21  ;;  %v15719_v21 = vld [vmem:[%s23003_s23 + $0x158] sm:$0xff] }
 0x83c   :  { %10621 = vmatmul.bf16.vlgmr.msra.gmra.mxu0 %v9863_v1 }
 0x83d   :  { %10669 = vmatpush.bf16.msrb.mxu0 %v22807_v4  ;;  %10844 = vmatpush.bf16.msra.mxu2 %v15694_v48 }
 0x83f   :  { %10655 = vmatpush.bf16.msrb.mxu3 %v22817_v14  ;;  %10859 = vmatpush.bf16.msra.mxu1 %v15700_v28  ;;  %v15717_v28 = vld [vmem:[%s23003_s23 + $0x148] sm:$0xff] }
 0x841   :  { %10670 = vmatpush.bf16.msrb.mxu0 %v22826_v35  ;;  %10845 = vmatpush.bf16.msra.mxu2 %v15693_v62 }
 0x842   :  { %10608 = vmatmul.bf16.vlgmr.msra.gmra.mxu3 %v9862_v36 }
 0x843   :  { %11079 = vmatpush.bf16.msrb.mxu1 %v22479_v60  ;;  %10656 = vmatpush.bf16.msrb.mxu3 %v22837_v63 }
 0x845   :  { %10671 = vmatpush.bf16.msrb.mxu0 %v22844_v11  ;;  %10846 = vmatpush.bf16.msra.mxu2 %v15692_v61 }
 0x847   :  { %10657 = vmatpush.bf16.msrb.mxu3 %v22853_v20 }
 0x849   :  { %11066 = vmatpush.bf16.msrb.mxu2 %v22476_v37  ;;  %10672 = vmatpush.bf16.msrb.mxu0 %v22859_v9 }
 0x84b   :  { %10658 = vmatpush.bf16.msrb.mxu3 %v22866_v12 }
 0x84c   :  { %10673 = vmatmul.bf16.vlgmr.msrb.gmra.mxu0 %v9867_v52 }
 0x84d   :  { %10891 = vmatpush.bf16.msra.mxu0 %v22479_v60  ;;  %v14903_v60 = vld [vmem:[%s22993_s13 + $0x2] sm:$0x1] }
 0x84f   :  { %10659 = vmatpush.bf16.msrb.mxu3 %v22874_v59 }
 0x851   :  { %11040 = vmatpush.bf16.msrb.mxu0 %v15723_v23 }
 0x852   :  { %10660 = vmatmul.bf16.vlgmr.msrb.gmra.mxu3 %v9866_v7 }
 0x853   :  { %10878 = vmatpush.bf16.msra.mxu3 %v22476_v37  ;;  %v15715_v37 = vld [vmem:[%s23003_s23 + $0x138] sm:$0xff] }
 0x855   :  { %11041 = vmatpush.bf16.msrb.mxu0 %v15722_v45 }
 0x857   :  { %11027 = vmatpush.bf16.msrb.mxu3 %v15715_v37 }
 0x859   :  { %11042 = vmatpush.bf16.msrb.mxu0 %v15721_v32 }
 0x85b   :  { %11028 = vmatpush.bf16.msrb.mxu3 %v15714_v27 }
 0x85c   :  { %14905 = vmatmul.msk.bf16.vlgmr.msra.gmra.mxu0 %vm9997_vm1, %v14903_v60 }
 0x85f   :  { %11029 = vmatpush.bf16.msrb.mxu3 %v15713_v55  ;;  %v15724_v55 = vld [vmem:[%s23006_s26] sm:$0xff] }
 0x862   :  { %14904 = vmatmul.msk.bf16.vlgmr.msra.gmra.mxu3 %vm9997_vm1, %v14903_v60 }
 0x863   :  { %11030 = vmatpush.bf16.msrb.mxu3 %v15712_v25 }
 0x88f   :  { %v10596_v46 = vpop.f32.mrf.mxu1 }
 0x897   :  { %v10598_v26 = vpop.f32.mrf.mxu1 }
 0x89b   :  { %v10583_v51 = vpop.f32.mrf.mxu2 }
 0x89f   :  { %v22884_v0 = vpop.f32.mrf.mxu1 }
 0x8a3   :  { %v10585_v15 = vpop.f32.mrf.mxu2 }
 0x8a7   :  { %v10650_v54 = vpop.f32.mrf.mxu1 }
 0x8a9   :  { %v10186_v39 = vpop.f32.mrf.mxu0 }
 0x8ab   :  { %v10635_v50 = vpop.f32.mrf.mxu2 }
 0x8af   :  { %v10705_v17 = vpop.f32.mrf.mxu1 }
 0x8b0   :  { %v10710_v49 = vpack.c.bf16 %v10705_v17, %v10705_v17 }
 0x8b1   :  { %v10188_v33 = vpop.f32.mrf.mxu0 }
 0x8b2   :  { %10860 = vmatmul.bf16.vlgmr.msra.gmra.mxu1 %v10710_v49  ;;  %v15725_v33 = vld [vmem:[%s23006_s26 + $0x8] sm:$0xff] }
 0x8b3   :  { %v10637_v18 = vpop.f32.mrf.mxu2  ;;  %11100 = vmatpush.bf16.msra.mxu1 %v22731_v43  ;;  %v15711_v43 = vld [vmem:[%s23003_s23 + $0x118] sm:$0xff] }
 0x8b4   :  { %11031 = vmatpush.bf16.msrb.mxu3 %v15711_v43 }
 0x8b5   :  { %v10173_v56 = vpop.f32.mrf.mxu3 }
 0x8b6   :  { %v10187_v34 = vadd.f32 %v10186_v39, %v10173_v56 }
 0x8b7   :  { %v10707_v8 = vpop.f32.mrf.mxu1  ;;  %11101 = vmatpush.bf16.msra.mxu1 %v22744_v2  ;;  %v15720_v2 = vld [vmem:[%s23003_s23 + $0x160] sm:$0xff] }
 0x8b8   :  { %v10584_v58 = vadd.f32 %v10583_v51, %v10187_v34  ;;  %11043 = vmatpush.bf16.msrb.mxu0 %v15720_v2  ;;  %11032 = vmatpush.bf16.msrb.mxu3 %v15710_v40  ;;  %v15731_v34 = vld [vmem:[%s23004_s24] ss:$0 sm:$0xff] }
 0x8b9   :  { %v10622_v53 = vpop.f32.mrf.mxu0 }
 0x8ba   :  { %v10597_v30 = vadd.f32 %v10596_v46, %v10584_v58  ;;  %v15732_v58 = vld [vmem:[%s23005_s25] ss:$0 sm:$0xff] }
 0x8bb   :  { %v10692_v10 = vpop.f32.mrf.mxu2  ;;  %11102 = vmatpush.bf16.msra.mxu1 %v22764_v19  ;;  %v14970_v19 = vld [vmem:[%s22993_s13 + $0x3] sm:$0x1] }
 0x8bc   :  { %v10709_v38 = vpack.c.bf16 %v10692_v10, %v10692_v10  ;;  %11044 = vmatpush.bf16.msrb.mxu0 %v15719_v21  ;;  %11033 = vmatpush.bf16.msrb.mxu3 %v15709_v44  ;;  %v11171_v10 = vld [vmem:[%s22995_s15] sm:$0x3]  ;;  %s15765_s15 = smov [#allocation7]  }
 0x8bd   :  { %v10175_v5 = vpop.f32.mrf.mxu3 }
 0x8be   :  { %10847 = vmatmul.bf16.vlgmr.msra.gmra.mxu2 %v10709_v38 }
 0x8bf   :  { %11087 = vmatpush.bf16.msra.mxu2 %v22754_v41  ;;  %11103 = vmatpush.bf16.msra.mxu1 %v22788_v24  ;;  %v15718_v41 = vld [vmem:[%s23003_s23 + $0x150] sm:$0xff] }
 0x8c0   :  { %11045 = vmatpush.bf16.msrb.mxu0 %v15718_v41  ;;  %11034 = vmatpush.bf16.msrb.mxu3 %v15708_v31 }
 0x8c1   :  { %v10624_v22 = vpop.f32.mrf.mxu0 }
 0x8c2   :  { %14972 = vmatmul.msk.bf16.vlgmr.msrb.gmra.mxu1 %vm9997_vm1, %v14970_v19 }
 0x8c3   :  { %v10694_v48 = vpop.f32.mrf.mxu2  ;;  %11088 = vmatpush.bf16.msra.mxu2 %v22777_v57  ;;  %11104 = vmatpush.bf16.msra.mxu1 %v22807_v4  ;;  %v15716_v4 = vld [vmem:[%s23003_s23 + $0x140] sm:$0xff] }
 0x8c4   :  { %11046 = vmatpush.bf16.msrb.mxu0 %v15717_v28  ;;  %11151 = vmatpush.bf16.msra.mxu3 %v15725_v33 }
 0x8c5   :  { %v10609_v24 = vpop.f32.mrf.mxu3 }
 0x8c6   :  { %v10610_v1 = vadd.f32 %v10609_v24, %v10597_v30  ;;  %v11176_v24 = vld [vmem:[%s22996_s16] sm:$0x3]  ;;  %s11216_s16 = sshll.u32 %s15765_s15, 4  ;;  %s11217_s16 = int_to_ptr.vmem [resolvable:$true] %s11216_s16 }
 0x8c7   :  { %11089 = vmatpush.bf16.msra.mxu2 %v22797_v13  ;;  %11105 = vmatpush.bf16.msra.mxu1 %v22826_v35 }
 0x8c8   :  { %v10623_v29 = vadd.f32 %v10622_v53, %v10610_v1  ;;  %11047 = vmatpush.bf16.msrb.mxu0 %v15716_v4  ;;  %11152 = vmatpush.bf16.msra.mxu3 %v15724_v55  ;;  %v11187_v1 = vsel %vm11179_vm10, %v11176_v24, 0.0 }
 0x8c9   :  { %v10674_v57 = vpop.f32.mrf.mxu0  ;;  %v11188_v31 = vrot.slane %v11187_v1, 4 }
 0x8ca   :  { %v10636_v62 = vadd.f32 %v10635_v50, %v10623_v29 }
 0x8cb   :  { %11090 = vmatpush.bf16.msra.mxu2 %v22817_v14  ;;  %11106 = vmatpush.bf16.msra.mxu1 %v22844_v11  ;;  %v11189_v28 = vadd.f32 %v11188_v31, %v11187_v1 }
 0x8cc   :  { %v10649_v47 = vadd.f32 %v22884_v0, %v10636_v62 }
 0x8cd   :  { %v10611_v3 = vpop.f32.mrf.mxu3  ;;  %v11190_v29 = vrot.slane %v11189_v28, 2 }
 0x8ce   :  { %14971 = vmatmul.msk.bf16.vlgmr.msrb.gmra.mxu2 %vm9997_vm1, %v14970_v19 }
 0x8cf   :  { %11091 = vmatpush.bf16.msra.mxu2 %v22837_v63  ;;  %11107 = vmatpush.bf16.msra.mxu1 %v22859_v9 }
 0x8d1   :  { %v10676_v13 = vpop.f32.mrf.mxu0 }
 0x8d3   :  { %11092 = vmatpush.bf16.msra.mxu2 %v22853_v20 }
 0x8d5   :  { %v10661_v35 = vpop.f32.mrf.mxu3 }
 0x8d6   :  { %v10662_v36 = vadd.f32 %v10661_v35, %v10649_v47 }
 0x8d7   :  { %11093 = vmatpush.bf16.msra.mxu2 %v22866_v12 }
 0x8d8   :  { %v10675_v14 = vadd.f32 %v10674_v57, %v10662_v36  ;;  %v11191_v57 = vadd.f32 %v11190_v29, %v11189_v28 }
 0x8d9   :  { %v10893_v61 = vpop.f32.mrf.mxu0 }
 0x8da   :  { %v10898_v6 = vpack.c.bf16 %v10893_v61, %v10893_v61  ;;  %v11192_v62 = vrot.slane %v11191_v57, 1 }
 0x8db   :  { %11094 = vmatpush.bf16.msra.mxu2 %v22874_v59 }
 0x8dc   :  { %11048 = vmatmul.bf16.vlgmr.msrb.gmra.mxu0 %v10898_v6  ;;  %v11193_v4 = vadd.f32 %v11192_v62, %v11191_v57 }
 0x8dd   :  { %v10663_v11 = vpop.f32.mrf.mxu3 }
 0x8de   :  { %vm11199_vm4 = vweird.f32 %v11193_v4 }
 0x8e1   :  { %v10895_v42 = vpop.f32.mrf.mxu0 }
 0x8e5   :  { %v10880_v52 = vpop.f32.mrf.mxu3 }
 0x8e6   :  { %v10897_v16 = vpack.c.bf16 %v10880_v52, %v10880_v52 }
 0x8e8   :  { %11035 = vmatmul.bf16.vlgmr.msrb.gmra.mxu3 %v10897_v16 }
 0x8ed   :  { %v10882_v63 = vpop.f32.mrf.mxu3 }
 0x92f   :  { %v10861_v9 = vpop.f32.mrf.mxu1 }
 0x937   :  { %v10863_v7 = vpop.f32.mrf.mxu1 }
 0x93f   :  { %v11081_v60 = vpop.f32.mrf.mxu1 }
 0x940   :  { %v11086_v20 = vpack.c.bf16 %v11081_v60, %v11081_v60 }
 0x941   :  { %v10848_v46 = vpop.f32.mrf.mxu2 }
 0x942   :  { %v10862_v26 = vadd.f32 %v10861_v9, %v10848_v46  ;;  %11108 = vmatmul.bf16.vlgmr.msra.gmra.mxu1 %v11086_v20  ;;  %v11205_v9 = vand.u32 2147483648, %v11193_v4  ;;  %v11203_v20 = vand.u32 2147483647, %v11193_v4 }
 0x944   :  { %v10865_v12 = vadd.f32 %v10862_v26, %v10675_v14  ;;  %v11206_v26 = vor.u32 1.1754944e-38, %v11205_v9  ;;  %vm11204_vm14 = vcmp.eq.f32.partialorder %v11203_v20, 8.507059e+37 }
 0x947   :  { %v11083_v51 = vpop.f32.mrf.mxu1 }
 0x949   :  { %v10850_v0 = vpop.f32.mrf.mxu2 }
 0x951   :  { %v11068_v15 = vpop.f32.mrf.mxu2 }
 0x952   :  { %v11085_v54 = vpack.c.bf16 %v11068_v15, %v11068_v15 }
 0x954   :  { %11095 = vmatmul.bf16.vlgmr.msra.gmra.mxu2 %v11085_v54 }
 0x959   :  { %v11049_v59 = vpop.f32.mrf.mxu0  ;;  %v11070_v39 = vpop.f32.mrf.mxu2 }
 0x961   :  { %v11051_v37 = vpop.f32.mrf.mxu0 }
 0x96b   :  { %v11036_v50 = vpop.f32.mrf.mxu3 }
 0x96c   :  { %v11050_v27 = vadd.f32 %v11049_v59, %v11036_v50 }
 0x96e   :  { %v11053_v23 = vadd.f32 %v11050_v27, %v10865_v12 }
 0x973   :  { %v11038_v17 = vpop.f32.mrf.mxu3 }
 0x9bf   :  { %v11109_v49 = vpop.f32.mrf.mxu1 }
 0x9c7   :  { %v11111_v45 = vpop.f32.mrf.mxu1 }
 0x9d7   :  { %v11096_v18 = vpop.f32.mrf.mxu2 }
 0x9d8   :  { %v11110_v56 = vadd.f32 %v11109_v49, %v11096_v18 }
 0x9da   :  { %v11113_v8 = vadd.f32 %v11110_v56, %v11053_v23 }
 0x9dc   :  { %v11118_v25 = vmul.f32 %v15731_v34, %v11113_v8 }
 0x9de   :  { %v11123_v32 = vadd.f32 %v15732_v58, %v11118_v25 }
 0x9df   :  { %v11098_v53 = vpop.f32.mrf.mxu2 }
 0x9e0   :  { %v11124_v30 = vmax.f32 %v11123_v32, 0.0 }
 0x9e2   :  { %v11125_v43 = vpack.c.bf16 %v11124_v30, %v11124_v30 }
 0x9e4   :  { %14981 = vmatmul.msk.bf16.vlgmr.msra.gmra.mxu3 %vm9692_vm0, %v11125_v43 }
 0xa67   :  { %v11154_v2 = vpop.f32.mrf.mxu3 }
 0xa68   :  { %v11159_v38 = vsel %vm11158_vm7, %v11154_v2, -inf  ;;  %v11172_v5 = vmul.f32 %v11171_v10, %v11154_v2 }
 0xa69   :  { %11160 = vmax.xlane.f32.xlu0 %v11159_v38 }
 0xa6a   :  { %v11173_v40 = vsel %vm11158_vm7, %v11172_v5, 0.0 }
 0xa6b   :  { %11174 = vadd.xlane.f32.xlu1 %v11173_v40 }
 0xa6f   :  { %v11156_v21 = vpop.f32.mrf.mxu3 }
 0xadc   :  { %v11161_v22 = vpop.xlane.xlu0 %11160 }
 0xadd   :  { %v11162_v19 = vsub.f32 %v11154_v2, %v11161_v22 }
 0xade   :  { %v11175_v61 = vpop.xlane.xlu1 %11174 }
 0xadf   :  { %v11163_v44 = vmul.f32 1.442695, %v11162_v19 }
 0xae1   :  { %15733 = vpow2.f32 %v11163_v44 }
 0xae2   :  { %15735 = vrcp.f32 %v11193_v4 }
 0xae7   :  { %v15734_v48 = vpop.eup %15733 }
 0xae8   :  { %v11165_v41 = vsel %vm11158_vm7, %v15734_v48, 0.0  ;;  %v15736_v3 = vpop.eup %15735 }
 0xae9   :  { %11166 = vadd.xlane.f32.xlu0 %v11165_v41  ;;  %v11195_v35 = vmul.f32 %v15736_v3, %v11193_v4  ;;  %vm11200_vm13 = vweird.f32 %v15736_v3 }
 0xaea   :  { %vm11201_vm2 = vmor %vm11199_vm4, %vm11200_vm13 }
 0xaeb   :  { %v11196_v6 = vsub.f32 1.0, %v11195_v35 }
 0xaed   :  { %v11197_v52 = vmul.f32 %v15736_v3, %v11196_v6 }
 0xaef   :  { %v11198_v60 = vadd.f32 %v15736_v3, %v11197_v52 }
 0xaf1   :  { %v11202_v51 = vsel %vm11201_vm2, %v15736_v3, %v11198_v60 }
 0xaf2   :  { %v11207_v15 = vsel %vm11204_vm14, %v11206_v26, %v11202_v51 }
 0xb5c   :  { %v11167_v47 = vpop.xlane.xlu0 %11166 }
 0xb5d   :  { %15737 = vlog2.f32 %v11167_v47 }
 0xb63   :  { %v15738_v13 = vpop.eup %15737 }
 0xb64   :  { %v11169_v36 = vmul.f32 0.6931472, %v15738_v13 }
 0xb66   :  { %v11170_v14 = vadd.f32 %v11169_v36, %v11161_v22 }
 0xb68   :  { %v11177_v11 = vsub.f32 %v11170_v14, %v11175_v61 }
 0xb6a   :  { %v11178_v42 = vmul.f32 %v11177_v11, %v11176_v24 }
 0xb6c   :  { %v11180_v16 = vsel %vm11179_vm10, %v11178_v42, 0.0 }
 0xb6d   :  { %v11181_v63 = vrot.slane %v11180_v16, 4 }
 0xb6f   :  { %v11182_v7 = vadd.f32 %v11181_v63, %v11180_v16 }
 0xb71   :  { %v11183_v46 = vrot.slane %v11182_v7, 2 }
 0xb73   :  { %v11184_v12 = vadd.f32 %v11183_v46, %v11182_v7 }
 0xb75   :  { %v11185_v0 = vrot.slane %v11184_v12, 1 }
 0xb77   :  { %v11186_v54 = vadd.f32 %v11185_v0, %v11184_v12 }
 0xb79   :  { %v11208_v59 = vmul.f32 %v11207_v15, %v11186_v54 }
 0xb7b   :  { %11210 = vst.msk [vmem:[#allocation7] sm:$0x1] %vm11209_vm15, %v11208_v59 }
 0xb7c   :  { %11221 = dma.vmem_to_hbm [thread:$0]  %s11217_s16, 16, %s11219_s20, [#allocation8]  }
 0xb7d   :  { %15763 = dma.done.wait [#allocation8], 16  }
 0xb7e   :  { %15764 = vsyncadd [#allocation8], 4294967280 }
 0xb7f   :  { %11226 = vsyncpa [#allocation8], 1 }

</bundles_post_ra>
